<compile_context>
chip_gen: v6e
topology: v6e:2x2x1
jax: 0.10.0
libtpu: 0.0.40
codegen_flags: <defaults>
</compile_context>

<pallas_src>
import functools

import jax
import jax.numpy as jnp
from jax.experimental import pallas as pl
from jax.experimental.pallas import tpu as pltpu


# ---------------------------------------------------------------------------
# Static conv geometry (reference defaults: 30x30 input, 3 x [k=5, stride=2]).
# ---------------------------------------------------------------------------
K = 5                                  # conv kernel size (all layers)
S = 2                                  # conv stride (all layers)
H_IN = 30                              # input spatial size
H1 = (H_IN - K) // S + 1               # 13  conv1 output spatial
H2 = (H1 - K) // S + 1                 # 5   conv2 output spatial
H3 = (H2 - K) // S + 1                 # 1   conv3 output spatial
NTAP = K * K                           # 25 taps per conv layer
NPOS2 = H2 * H2                        # 25 conv2 output positions
NPOS2_PAD = ((NPOS2 + 7) // 8) * 8     # 32: padded position count (sublane aligned)
OUT_WIDTH = 128                        # lane-dense fused output width


def _conv_out(h, k, s):
    return (h - k) // s + 1


# ---------------------------------------------------------------------------
# Fused Pallas kernel
# ---------------------------------------------------------------------------
def _fused_policy_kernel(p1_ref, w1_ref, b1_ref,
                         w2_ref, b2_ref,
                         w3_ref, b3_ref,
                         s_ref, w1a_ref, w1b_ref, bf1_ref,
                         wf2_ref, bf2_ref,
                         wh_ref, bh_ref,
                         out_ref):
    f32 = jnp.float32
    n = out_ref.shape[0]                 # batch (static)
    blk_rows = NPOS2_PAD * n             # rows per conv2-tap block (= 64 for n=2)

    # ---- conv1: one MXU matmul over the duplicated, tap-major patch rows ----
    # p1 row (t*blk_rows + p*n + b) = conv1 im2col patch (cols ordered
    # (kh1, kw1, c)) at conv1-output position (2j + kh2, 2i + kw2), where the
    # conv2 tap t = kh2*K + kw2 and the conv2 output position p = j*H2 + i.
    y1 = jnp.dot(p1_ref[...], w1_ref[...], preferred_element_type=f32)
    y1 = jnp.maximum(y1 + b1_ref[...], 0.0)               # (NTAP*blk_rows, 64)

    # ---- conv2: 25 shifted matmuls over aligned contiguous row blocks ----
    acc2 = jnp.zeros((blk_rows, w2_ref.shape[2]), f32)     # (blk_rows, 32)
    for t in range(NTAP):
        blk = y1[t * blk_rows:(t + 1) * blk_rows, :]       # aligned static slice
        acc2 = acc2 + jnp.dot(blk, w2_ref[t], preferred_element_type=f32)
    a2 = jnp.maximum(acc2 + b2_ref[...], 0.0)              # row = p*n + b

    # ---- conv3 (1x1 output): 25 static contiguous row slices + matmuls ----
    acc3 = jnp.zeros((n, w3_ref.shape[2]), f32)            # (n, 16)
    for p in range(NPOS2):
        rows = a2[p * n:(p + 1) * n, :]                    # (n, 32), static slice
        acc3 = acc3 + jnp.dot(rows, w3_ref[p], preferred_element_type=f32)
    emb = jnp.maximum(acc3 + b3_ref[...], 0.0)             # (n, 16)

    # ---- MLP head (fc1 split over [cnn | state] -> no lane concat needed) ----
    h1 = jnp.tanh(jnp.dot(emb, w1a_ref[...], preferred_element_type=f32)
                  + jnp.dot(s_ref[...], w1b_ref[...], preferred_element_type=f32)
                  + bf1_ref[...])
    h2 = jnp.tanh(jnp.dot(h1, wf2_ref[...], preferred_element_type=f32)
                  + bf2_ref[...])

    # ---- lane-dense combined output: [value | action_mean | log_std | 0...] ----
    # log-std is constant, so it lives purely in the head bias (weights are 0).
    out_ref[...] = jnp.dot(h2, wh_ref[...], preferred_element_type=f32) + bh_ref[...]


# ---------------------------------------------------------------------------
# Trace-time input preparation (XLA glue on the raw input only)
# ---------------------------------------------------------------------------
def build_conv2tap_patches(o_cat):
    """conv1 im2col patches, duplicated & grouped by conv2 tap.

    Returns (NTAP * NPOS2_PAD * N, K*K*C) f32.  Row
      (kh2*K + kw2) * NPOS2_PAD * N + (j*H2 + i) * N + b
    holds the conv1 patch (columns ordered (kh1, kw1, c)) at conv1-output
    position (2j + kh2, 2i + kw2) for batch item b.  Padded position rows
    (j*H2 + i >= NPOS2) are zero and are never read by conv3.
    """
    n, c, h, w = o_cat.shape
    x = jnp.transpose(o_cat, (0, 2, 3, 1))                     # NHWC, once
    ho = _conv_out(h, K, S)                                    # 13
    wo = _conv_out(w, K, S)                                    # 13

    taps = []
    for kh in range(K):
        for kw in range(K):
            taps.append(x[:, kh:kh + S * ho:S, kw:kw + S * wo:S, :])
    pstd = jnp.concatenate(taps, axis=-1)                      # (N, 13, 13, K*K*C)

    kdim = K * K * c
    blocks = []
    for kh2 in range(K):
        for kw2 in range(K):
            blk = pstd[:, kh2:kh2 + S * H2:S, kw2:kw2 + S * H2:S, :]   # (N, 5, 5, kdim)
            blk = blk.reshape(n, NPOS2, kdim)
            blk = jnp.pad(blk, ((0, 0), (0, NPOS2_PAD - NPOS2), (0, 0)))
            blk = jnp.transpose(blk, (1, 0, 2))                # (NPOS2_PAD, N, kdim)
            blocks.append(blk)
    p1 = jnp.stack(blocks, axis=0)                             # (25, 32, N, kdim)
    return p1.reshape(NTAP * NPOS2_PAD * n, kdim)              # (1600, 150) for N=2


# ---------------------------------------------------------------------------
# Parameters: PyTorch-layout init + one-time kernel-layout preparation
# ---------------------------------------------------------------------------
def init_params(key, in_channels, feature_maps, kernel_sizes, n_emb, hidden, a_shape):
    keys = jax.random.split(key, 14)
    scale = 0.1
    fm, ks = feature_maps, kernel_sizes
    return {
        "conv1_w": scale * jax.random.normal(keys[0], (fm[0], in_channels, ks[0], ks[0]), jnp.float32),
        "conv1_b": scale * jax.random.normal(keys[1], (fm[0],), jnp.float32),
        "conv2_w": scale * jax.random.normal(keys[2], (fm[1], fm[0], ks[1], ks[1]), jnp.float32),
        "conv2_b": scale * jax.random.normal(keys[3], (fm[1],), jnp.float32),
        "conv3_w": scale * jax.random.normal(keys[4], (fm[2], fm[1], ks[2], ks[2]), jnp.float32),
        "conv3_b": scale * jax.random.normal(keys[5], (fm[2],), jnp.float32),
        "fc1_w": scale * jax.random.normal(keys[6], (hidden, n_emb), jnp.float32),
        "fc1_b": scale * jax.random.normal(keys[7], (hidden,), jnp.float32),
        "fc2_w": scale * jax.random.normal(keys[8], (hidden, hidden), jnp.float32),
        "fc2_b": scale * jax.random.normal(keys[9], (hidden,), jnp.float32),
        "value_w": scale * jax.random.normal(keys[10], (1, hidden), jnp.float32),
        "value_b": scale * jax.random.normal(keys[11], (1,), jnp.float32),
        "action_w": scale * jax.random.normal(keys[12], (a_shape, hidden), jnp.float32),
        "action_b": scale * jax.random.normal(keys[13], (a_shape,), jnp.float32),
    }


def prepare_params(params, log_std_value, out_width=OUT_WIDTH):
    """One-time re-layout of the PyTorch-style params for the fused kernel."""
    f32 = jnp.float32
    c1w, c2w, c3w = params["conv1_w"], params["conv2_w"], params["conv3_w"]
    fm1, cin = c1w.shape[0], c1w.shape[1]
    fm2, fm3 = c2w.shape[0], c3w.shape[0]
    hidden = params["fc1_w"].shape[0]
    n_cnn = fm3 * H3 * H3                                    # 16
    a_shape = params["action_w"].shape[0]

    prep = {
        # conv weights in tap-major matmul layout (rows/taps ordered (kh, kw, c))
        "w1f": c1w.transpose(2, 3, 1, 0).reshape(K * K * cin, fm1),     # (150, 64)
        "b1": params["conv1_b"].reshape(1, fm1),
        "w2f": c2w.transpose(2, 3, 1, 0).reshape(K * K, fm1, fm2),      # (25, 64, 32)
        "b2": params["conv2_b"].reshape(1, fm2),
        "w3f": c3w.transpose(2, 3, 1, 0).reshape(K * K, fm2, fm3),      # (25, 32, 16)
        "b3": params["conv3_b"].reshape(1, fm3),
        # fc1 split into [cnn embedding | state] blocks, pre-transposed
        "w_fc1_cnn": params["fc1_w"][:, :n_cnn].T,                      # (16, 32)
        "w_fc1_state": params["fc1_w"][:, n_cnn:].T,                    # (12, 32)
        "b_fc1": params["fc1_b"].reshape(1, hidden),
        "w_fc2": params["fc2_w"].T,                                     # (32, 32)
        "b_fc2": params["fc2_b"].reshape(1, hidden),
    }
    # lane-dense head: col 0 = value, cols 1..A = action mean,
    # cols 1+A..1+2A = constant log-std (zero weights, bias only), rest 0.
    # TODO(synk): self.n frame counter is host-side state; log_std is baked
    # into the head bias here — call prepare_params again to update it.
    w_head = jnp.zeros((hidden, out_width), f32)
    w_head = w_head.at[:, 0:1].set(params["value_w"].T)
    w_head = w_head.at[:, 1:1 + a_shape].set(params["action_w"].T)
    b_head = jnp.zeros((1, out_width), f32)
    b_head = b_head.at[0, 0].set(params["value_b"][0])
    b_head = b_head.at[0, 1:1 + a_shape].set(params["action_b"])
    b_head = b_head.at[0, 1 + a_shape:1 + 2 * a_shape].set(log_std_value)
    prep["w_head"] = w_head
    prep["b_head"] = b_head
    return prep


# ---------------------------------------------------------------------------
# Forward
# ---------------------------------------------------------------------------
def semi_combine_forward(prep, s, st, o, ot, *, a_shape):
    o_cat = jnp.concatenate([o, ot], axis=1)                  # (N, 6, 30, 30)
    s_cat = jnp.concatenate([s, st], axis=1)                  # (N, 12)
    n = o_cat.shape[0]

    p1 = build_conv2tap_patches(o_cat)                        # (1600, 150)
    out_width = prep["w_head"].shape[1]

    args = (p1, prep["w1f"], prep["b1"],
            prep["w2f"], prep["b2"],
            prep["w3f"], prep["b3"],
            s_cat, prep["w_fc1_cnn"], prep["w_fc1_state"], prep["b_fc1"],
            prep["w_fc2"], prep["b_fc2"],
            prep["w_head"], prep["b_head"])

    # Grid-less call: every operand is a whole-array VMEM ref (no pipelining
    # machinery / double-buffering for weights that are read once).
    # NOTE(v7x): if the batch ever grows, expose a grid axis over the batch /
    # conv1 row dim with dimension_semantics=("parallel",) to use both cores.
    vmem = pl.BlockSpec(memory_space=pltpu.MemorySpace.VMEM)
    out = pl.pallas_call(
        _fused_policy_kernel,
        out_shape=jax.ShapeDtypeStruct((n, out_width), jnp.float32),
        in_specs=[vmem] * len(args),
        out_specs=vmem,
    )(*args)

    v = out[:, 0:1]
    ac_mean = out[:, 1:1 + a_shape]
    ac_std = out[:, 1 + a_shape:1 + 2 * a_shape]              # raw log-std
    return v, ac_mean, ac_std


# ---------------------------------------------------------------------------
# Pure-JAX reference (for correctness check only)
# ---------------------------------------------------------------------------
def reference_forward(params, s, st, o, ot, strides, log_std_value):
    o_cat = jnp.concatenate([o, ot], axis=1)
    s_cat = jnp.concatenate([s, st], axis=1)
    x = o_cat
    for i, srt in zip((1, 2, 3), strides):
        w, b = params[f"conv{i}_w"], params[f"conv{i}_b"]
        x = jax.lax.conv_general_dilated(
            x, w, window_strides=(srt, srt), padding="VALID",
            dimension_numbers=("NCHW", "OIHW", "NCHW"))
        x = jnp.maximum(x + b.reshape(1, -1, 1, 1), 0.0)
    x = x.reshape(x.shape[0], -1)
    x = jnp.concatenate([x, s_cat], axis=1)
    h = jnp.tanh(x @ params["fc1_w"].T + params["fc1_b"])
    h = jnp.tanh(h @ params["fc2_w"].T + params["fc2_b"])
    v = h @ params["value_w"].T + params["value_b"]
    ac_mean = h @ params["action_w"].T + params["action_b"]
    ac_std = jnp.full_like(ac_mean, log_std_value)
    return v, ac_mean, ac_std


# ---------------------------------------------------------------------------
# Main
# ---------------------------------------------------------------------------
if __name__ == "__main__":
    N = 2
    o_shape = (3, H_IN, H_IN)
    ot_shape = (3, H_IN, H_IN)
    s_shape = 6
    st_shape = 6
    a_shape = 4
    hidden = 32
    feature_maps = [64, 32, 16]
    kernel_sizes = [K, K, K]
    strides = [S, S, S]
    std_start, std_stop, num_frames = -0.6, -1.7, 1000
    n_step = 0
    log_std_value = std_start - (std_start - std_stop) * (n_step / num_frames)

    # derived CNN geometry: 30 -> 13 -> 5 -> 1 spatial, 16 channels
    h = o_shape[1]
    for kk, ss in zip(kernel_sizes, strides):
        h = _conv_out(h, kk, ss)
    assert h == H3 == 1
    n_out = feature_maps[2] * h * h
    n_emb = n_out + s_shape + st_shape

    key = jax.random.PRNGKey(0)
    kp, ko, kot, ks_, kst = jax.random.split(key, 5)
    params = init_params(kp, o_shape[0] + ot_shape[0], feature_maps,
                         kernel_sizes, n_emb, hidden, a_shape)
    prep = prepare_params(params, log_std_value)   # one-time weight re-layout

    o = jax.random.normal(ko, (N, *o_shape), jnp.float32)
    ot = jax.random.normal(kot, (N, *ot_shape), jnp.float32)
    s = jax.random.normal(ks_, (N, s_shape), jnp.float32)
    st = jax.random.normal(kst, (N, st_shape), jnp.float32)

    fwd = jax.jit(functools.partial(semi_combine_forward, a_shape=a_shape))
    v, ac_mean, ac_std = fwd(prep, s, st, o, ot)
    jax.block_until_ready((v, ac_mean, ac_std))

    assert v.shape == (N, 1)
    assert ac_mean.shape == (N, a_shape)
    assert ac_std.shape == (N, a_shape)

    # correctness vs. plain-JAX reference
    rv, rmean, rstd = reference_forward(params, s, st, o, ot, strides, log_std_value)
    assert jnp.allclose(v, rv, atol=1e-2, rtol=1e-2)
    assert jnp.allclose(ac_mean, rmean, atol=1e-2, rtol=1e-2)
    assert jnp.allclose(ac_std, rstd, atol=1e-2, rtol=1e-2)

    print("KERNEL_OK")
</pallas_src>

<mosaic_0001>
module attributes {stable_mosaic.version = 11 : i64} {
  func.func @_fused_policy_kernel(%arg0: memref<1600x150xf32, #tpu.memory_space<vmem>>, %arg1: memref<150x64xf32, #tpu.memory_space<vmem>>, %arg2: memref<1x64xf32, #tpu.memory_space<vmem>>, %arg3: memref<25x64x32xf32, #tpu.memory_space<vmem>>, %arg4: memref<1x32xf32, #tpu.memory_space<vmem>>, %arg5: memref<25x32x16xf32, #tpu.memory_space<vmem>>, %arg6: memref<1x16xf32, #tpu.memory_space<vmem>>, %arg7: memref<2x12xf32, #tpu.memory_space<vmem>>, %arg8: memref<16x32xf32, #tpu.memory_space<vmem>>, %arg9: memref<12x32xf32, #tpu.memory_space<vmem>>, %arg10: memref<1x32xf32, #tpu.memory_space<vmem>>, %arg11: memref<32x32xf32, #tpu.memory_space<vmem>>, %arg12: memref<1x32xf32, #tpu.memory_space<vmem>>, %arg13: memref<32x128xf32, #tpu.memory_space<vmem>>, %arg14: memref<1x128xf32, #tpu.memory_space<vmem>>, %arg15: memref<2x128xf32, #tpu.memory_space<vmem>>) attributes {dimension_semantics = [], scalar_prefetch = 0 : i64, scratch_operands = 0 : i64, tpu.core_type = #tpu.core_type<tc>} {
    %c0 = arith.constant 0 : index
    %c0_0 = arith.constant 0 : index
    %0 = vector.load %arg0[%c0, %c0_0] : memref<1600x150xf32, #tpu.memory_space<vmem>>, vector<1600x150xf32>
    %c0_1 = arith.constant 0 : index
    %c0_2 = arith.constant 0 : index
    %1 = vector.load %arg1[%c0_1, %c0_2] : memref<150x64xf32, #tpu.memory_space<vmem>>, vector<150x64xf32>
    %cst = arith.constant dense<0.000000e+00> : vector<1600x64xf32>
    %2 = tpu.matmul %0, %1, %cst {dimension_numbers = #tpu.dot_dimension_numbers<[1], [0], [0], [1], [0, 0, 1, 1], [], []>} : vector<1600x150xf32>, vector<150x64xf32>, vector<1600x64xf32> -> vector<1600x64xf32>
    %c0_3 = arith.constant 0 : index
    %c0_4 = arith.constant 0 : index
    %3 = vector.load %arg2[%c0_3, %c0_4] : memref<1x64xf32, #tpu.memory_space<vmem>>, vector<1x64xf32>
    %4 = vector.broadcast %3 : vector<1x64xf32> to vector<1600x64xf32>
    %5 = arith.addf %2, %4 : vector<1600x64xf32>
    %cst_5 = arith.constant 0.000000e+00 : f32
    %6 = vector.broadcast %cst_5 : f32 to vector<1600x64xf32>
    %7 = arith.maximumf %5, %6 : vector<1600x64xf32>
    %cst_6 = arith.constant 0.000000e+00 : f32
    %8 = vector.broadcast %cst_6 : f32 to vector<64x32xf32>
    %9 = vector.extract_strided_slice %7 {offsets = [0, 0], sizes = [64, 64], strides = [1, 1]} : vector<1600x64xf32> to vector<64x64xf32>
    %c0_7 = arith.constant 0 : index
    %c0_8 = arith.constant 0 : index
    %c0_9 = arith.constant 0 : index
    %10 = vector.load %arg3[%c0_7, %c0_8, %c0_9] : memref<25x64x32xf32, #tpu.memory_space<vmem>>, vector<1x64x32xf32>
    %11 = vector.shape_cast %10 : vector<1x64x32xf32> to vector<64x32xf32>
    %cst_10 = arith.constant dense<0.000000e+00> : vector<64x32xf32>
    %12 = tpu.matmul %9, %11, %cst_10 {dimension_numbers = #tpu.dot_dimension_numbers<[1], [0], [0], [1], [0, 0, 1, 1], [], []>} : vector<64x64xf32>, vector<64x32xf32>, vector<64x32xf32> -> vector<64x32xf32>
    %13 = arith.addf %8, %12 : vector<64x32xf32>
    %14 = vector.extract_strided_slice %7 {offsets = [64, 0], sizes = [64, 64], strides = [1, 1]} : vector<1600x64xf32> to vector<64x64xf32>
    %c1 = arith.constant 1 : index
    %c0_11 = arith.constant 0 : index
    %c0_12 = arith.constant 0 : index
    %15 = vector.load %arg3[%c1, %c0_11, %c0_12] : memref<25x64x32xf32, #tpu.memory_space<vmem>>, vector<1x64x32xf32>
    %16 = vector.shape_cast %15 : vector<1x64x32xf32> to vector<64x32xf32>
    %cst_13 = arith.constant dense<0.000000e+00> : vector<64x32xf32>
    %17 = tpu.matmul %14, %16, %cst_13 {dimension_numbers = #tpu.dot_dimension_numbers<[1], [0], [0], [1], [0, 0, 1, 1], [], []>} : vector<64x64xf32>, vector<64x32xf32>, vector<64x32xf32> -> vector<64x32xf32>
    %18 = arith.addf %13, %17 : vector<64x32xf32>
    %19 = vector.extract_strided_slice %7 {offsets = [128, 0], sizes = [64, 64], strides = [1, 1]} : vector<1600x64xf32> to vector<64x64xf32>
    %c2 = arith.constant 2 : index
    %c0_14 = arith.constant 0 : index
    %c0_15 = arith.constant 0 : index
    %20 = vector.load %arg3[%c2, %c0_14, %c0_15] : memref<25x64x32xf32, #tpu.memory_space<vmem>>, vector<1x64x32xf32>
    %21 = vector.shape_cast %20 : vector<1x64x32xf32> to vector<64x32xf32>
    %cst_16 = arith.constant dense<0.000000e+00> : vector<64x32xf32>
    %22 = tpu.matmul %19, %21, %cst_16 {dimension_numbers = #tpu.dot_dimension_numbers<[1], [0], [0], [1], [0, 0, 1, 1], [], []>} : vector<64x64xf32>, vector<64x32xf32>, vector<64x32xf32> -> vector<64x32xf32>
    %23 = arith.addf %18, %22 : vector<64x32xf32>
    %24 = vector.extract_strided_slice %7 {offsets = [192, 0], sizes = [64, 64], strides = [1, 1]} : vector<1600x64xf32> to vector<64x64xf32>
    %c3 = arith.constant 3 : index
    %c0_17 = arith.constant 0 : index
    %c0_18 = arith.constant 0 : index
    %25 = vector.load %arg3[%c3, %c0_17, %c0_18] : memref<25x64x32xf32, #tpu.memory_space<vmem>>, vector<1x64x32xf32>
    %26 = vector.shape_cast %25 : vector<1x64x32xf32> to vector<64x32xf32>
    %cst_19 = arith.constant dense<0.000000e+00> : vector<64x32xf32>
    %27 = tpu.matmul %24, %26, %cst_19 {dimension_numbers = #tpu.dot_dimension_numbers<[1], [0], [0], [1], [0, 0, 1, 1], [], []>} : vector<64x64xf32>, vector<64x32xf32>, vector<64x32xf32> -> vector<64x32xf32>
    %28 = arith.addf %23, %27 : vector<64x32xf32>
    %29 = vector.extract_strided_slice %7 {offsets = [256, 0], sizes = [64, 64], strides = [1, 1]} : vector<1600x64xf32> to vector<64x64xf32>
    %c4 = arith.constant 4 : index
    %c0_20 = arith.constant 0 : index
    %c0_21 = arith.constant 0 : index
    %30 = vector.load %arg3[%c4, %c0_20, %c0_21] : memref<25x64x32xf32, #tpu.memory_space<vmem>>, vector<1x64x32xf32>
    %31 = vector.shape_cast %30 : vector<1x64x32xf32> to vector<64x32xf32>
    %cst_22 = arith.constant dense<0.000000e+00> : vector<64x32xf32>
    %32 = tpu.matmul %29, %31, %cst_22 {dimension_numbers = #tpu.dot_dimension_numbers<[1], [0], [0], [1], [0, 0, 1, 1], [], []>} : vector<64x64xf32>, vector<64x32xf32>, vector<64x32xf32> -> vector<64x32xf32>
    %33 = arith.addf %28, %32 : vector<64x32xf32>
    %34 = vector.extract_strided_slice %7 {offsets = [320, 0], sizes = [64, 64], strides = [1, 1]} : vector<1600x64xf32> to vector<64x64xf32>
    %c5 = arith.constant 5 : index
    %c0_23 = arith.constant 0 : index
    %c0_24 = arith.constant 0 : index
    %35 = vector.load %arg3[%c5, %c0_23, %c0_24] : memref<25x64x32xf32, #tpu.memory_space<vmem>>, vector<1x64x32xf32>
    %36 = vector.shape_cast %35 : vector<1x64x32xf32> to vector<64x32xf32>
    %cst_25 = arith.constant dense<0.000000e+00> : vector<64x32xf32>
    %37 = tpu.matmul %34, %36, %cst_25 {dimension_numbers = #tpu.dot_dimension_numbers<[1], [0], [0], [1], [0, 0, 1, 1], [], []>} : vector<64x64xf32>, vector<64x32xf32>, vector<64x32xf32> -> vector<64x32xf32>
    %38 = arith.addf %33, %37 : vector<64x32xf32>
    %39 = vector.extract_strided_slice %7 {offsets = [384, 0], sizes = [64, 64], strides = [1, 1]} : vector<1600x64xf32> to vector<64x64xf32>
    %c6 = arith.constant 6 : index
    %c0_26 = arith.constant 0 : index
    %c0_27 = arith.constant 0 : index
    %40 = vector.load %arg3[%c6, %c0_26, %c0_27] : memref<25x64x32xf32, #tpu.memory_space<vmem>>, vector<1x64x32xf32>
    %41 = vector.shape_cast %40 : vector<1x64x32xf32> to vector<64x32xf32>
    %cst_28 = arith.constant dense<0.000000e+00> : vector<64x32xf32>
    %42 = tpu.matmul %39, %41, %cst_28 {dimension_numbers = #tpu.dot_dimension_numbers<[1], [0], [0], [1], [0, 0, 1, 1], [], []>} : vector<64x64xf32>, vector<64x32xf32>, vector<64x32xf32> -> vector<64x32xf32>
    %43 = arith.addf %38, %42 : vector<64x32xf32>
    %44 = vector.extract_strided_slice %7 {offsets = [448, 0], sizes = [64, 64], strides = [1, 1]} : vector<1600x64xf32> to vector<64x64xf32>
    %c7 = arith.constant 7 : index
    %c0_29 = arith.constant 0 : index
    %c0_30 = arith.constant 0 : index
    %45 = vector.load %arg3[%c7, %c0_29, %c0_30] : memref<25x64x32xf32, #tpu.memory_space<vmem>>, vector<1x64x32xf32>
    %46 = vector.shape_cast %45 : vector<1x64x32xf32> to vector<64x32xf32>
    %cst_31 = arith.constant dense<0.000000e+00> : vector<64x32xf32>
    %47 = tpu.matmul %44, %46, %cst_31 {dimension_numbers = #tpu.dot_dimension_numbers<[1], [0], [0], [1], [0, 0, 1, 1], [], []>} : vector<64x64xf32>, vector<64x32xf32>, vector<64x32xf32> -> vector<64x32xf32>
    %48 = arith.addf %43, %47 : vector<64x32xf32>
    %49 = vector.extract_strided_slice %7 {offsets = [512, 0], sizes = [64, 64], strides = [1, 1]} : vector<1600x64xf32> to vector<64x64xf32>
    %c8 = arith.constant 8 : index
    %c0_32 = arith.constant 0 : index
    %c0_33 = arith.constant 0 : index
    %50 = vector.load %arg3[%c8, %c0_32, %c0_33] : memref<25x64x32xf32, #tpu.memory_space<vmem>>, vector<1x64x32xf32>
    %51 = vector.shape_cast %50 : vector<1x64x32xf32> to vector<64x32xf32>
    %cst_34 = arith.constant dense<0.000000e+00> : vector<64x32xf32>
    %52 = tpu.matmul %49, %51, %cst_34 {dimension_numbers = #tpu.dot_dimension_numbers<[1], [0], [0], [1], [0, 0, 1, 1], [], []>} : vector<64x64xf32>, vector<64x32xf32>, vector<64x32xf32> -> vector<64x32xf32>
    %53 = arith.addf %48, %52 : vector<64x32xf32>
    %54 = vector.extract_strided_slice %7 {offsets = [576, 0], sizes = [64, 64], strides = [1, 1]} : vector<1600x64xf32> to vector<64x64xf32>
    %c9 = arith.constant 9 : index
    %c0_35 = arith.constant 0 : index
    %c0_36 = arith.constant 0 : index
    %55 = vector.load %arg3[%c9, %c0_35, %c0_36] : memref<25x64x32xf32, #tpu.memory_space<vmem>>, vector<1x64x32xf32>
    %56 = vector.shape_cast %55 : vector<1x64x32xf32> to vector<64x32xf32>
    %cst_37 = arith.constant dense<0.000000e+00> : vector<64x32xf32>
    %57 = tpu.matmul %54, %56, %cst_37 {dimension_numbers = #tpu.dot_dimension_numbers<[1], [0], [0], [1], [0, 0, 1, 1], [], []>} : vector<64x64xf32>, vector<64x32xf32>, vector<64x32xf32> -> vector<64x32xf32>
    %58 = arith.addf %53, %57 : vector<64x32xf32>
    %59 = vector.extract_strided_slice %7 {offsets = [640, 0], sizes = [64, 64], strides = [1, 1]} : vector<1600x64xf32> to vector<64x64xf32>
    %c10 = arith.constant 10 : index
    %c0_38 = arith.constant 0 : index
    %c0_39 = arith.constant 0 : index
    %60 = vector.load %arg3[%c10, %c0_38, %c0_39] : memref<25x64x32xf32, #tpu.memory_space<vmem>>, vector<1x64x32xf32>
    %61 = vector.shape_cast %60 : vector<1x64x32xf32> to vector<64x32xf32>
    %cst_40 = arith.constant dense<0.000000e+00> : vector<64x32xf32>
    %62 = tpu.matmul %59, %61, %cst_40 {dimension_numbers = #tpu.dot_dimension_numbers<[1], [0], [0], [1], [0, 0, 1, 1], [], []>} : vector<64x64xf32>, vector<64x32xf32>, vector<64x32xf32> -> vector<64x32xf32>
    %63 = arith.addf %58, %62 : vector<64x32xf32>
    %64 = vector.extract_strided_slice %7 {offsets = [704, 0], sizes = [64, 64], strides = [1, 1]} : vector<1600x64xf32> to vector<64x64xf32>
    %c11 = arith.constant 11 : index
    %c0_41 = arith.constant 0 : index
    %c0_42 = arith.constant 0 : index
    %65 = vector.load %arg3[%c11, %c0_41, %c0_42] : memref<25x64x32xf32, #tpu.memory_space<vmem>>, vector<1x64x32xf32>
    %66 = vector.shape_cast %65 : vector<1x64x32xf32> to vector<64x32xf32>
    %cst_43 = arith.constant dense<0.000000e+00> : vector<64x32xf32>
    %67 = tpu.matmul %64, %66, %cst_43 {dimension_numbers = #tpu.dot_dimension_numbers<[1], [0], [0], [1], [0, 0, 1, 1], [], []>} : vector<64x64xf32>, vector<64x32xf32>, vector<64x32xf32> -> vector<64x32xf32>
    %68 = arith.addf %63, %67 : vector<64x32xf32>
    %69 = vector.extract_strided_slice %7 {offsets = [768, 0], sizes = [64, 64], strides = [1, 1]} : vector<1600x64xf32> to vector<64x64xf32>
    %c12 = arith.constant 12 : index
    %c0_44 = arith.constant 0 : index
    %c0_45 = arith.constant 0 : index
    %70 = vector.load %arg3[%c12, %c0_44, %c0_45] : memref<25x64x32xf32, #tpu.memory_space<vmem>>, vector<1x64x32xf32>
    %71 = vector.shape_cast %70 : vector<1x64x32xf32> to vector<64x32xf32>
    %cst_46 = arith.constant dense<0.000000e+00> : vector<64x32xf32>
    %72 = tpu.matmul %69, %71, %cst_46 {dimension_numbers = #tpu.dot_dimension_numbers<[1], [0], [0], [1], [0, 0, 1, 1], [], []>} : vector<64x64xf32>, vector<64x32xf32>, vector<64x32xf32> -> vector<64x32xf32>
    %73 = arith.addf %68, %72 : vector<64x32xf32>
    %74 = vector.extract_strided_slice %7 {offsets = [832, 0], sizes = [64, 64], strides = [1, 1]} : vector<1600x64xf32> to vector<64x64xf32>
    %c13 = arith.constant 13 : index
    %c0_47 = arith.constant 0 : index
    %c0_48 = arith.constant 0 : index
    %75 = vector.load %arg3[%c13, %c0_47, %c0_48] : memref<25x64x32xf32, #tpu.memory_space<vmem>>, vector<1x64x32xf32>
    %76 = vector.shape_cast %75 : vector<1x64x32xf32> to vector<64x32xf32>
    %cst_49 = arith.constant dense<0.000000e+00> : vector<64x32xf32>
    %77 = tpu.matmul %74, %76, %cst_49 {dimension_numbers = #tpu.dot_dimension_numbers<[1], [0], [0], [1], [0, 0, 1, 1], [], []>} : vector<64x64xf32>, vector<64x32xf32>, vector<64x32xf32> -> vector<64x32xf32>
    %78 = arith.addf %73, %77 : vector<64x32xf32>
    %79 = vector.extract_strided_slice %7 {offsets = [896, 0], sizes = [64, 64], strides = [1, 1]} : vector<1600x64xf32> to vector<64x64xf32>
    %c14 = arith.constant 14 : index
    %c0_50 = arith.constant 0 : index
    %c0_51 = arith.constant 0 : index
    %80 = vector.load %arg3[%c14, %c0_50, %c0_51] : memref<25x64x32xf32, #tpu.memory_space<vmem>>, vector<1x64x32xf32>
    %81 = vector.shape_cast %80 : vector<1x64x32xf32> to vector<64x32xf32>
    %cst_52 = arith.constant dense<0.000000e+00> : vector<64x32xf32>
    %82 = tpu.matmul %79, %81, %cst_52 {dimension_numbers = #tpu.dot_dimension_numbers<[1], [0], [0], [1], [0, 0, 1, 1], [], []>} : vector<64x64xf32>, vector<64x32xf32>, vector<64x32xf32> -> vector<64x32xf32>
    %83 = arith.addf %78, %82 : vector<64x32xf32>
    %84 = vector.extract_strided_slice %7 {offsets = [960, 0], sizes = [64, 64], strides = [1, 1]} : vector<1600x64xf32> to vector<64x64xf32>
    %c15 = arith.constant 15 : index
    %c0_53 = arith.constant 0 : index
    %c0_54 = arith.constant 0 : index
    %85 = vector.load %arg3[%c15, %c0_53, %c0_54] : memref<25x64x32xf32, #tpu.memory_space<vmem>>, vector<1x64x32xf32>
    %86 = vector.shape_cast %85 : vector<1x64x32xf32> to vector<64x32xf32>
    %cst_55 = arith.constant dense<0.000000e+00> : vector<64x32xf32>
    %87 = tpu.matmul %84, %86, %cst_55 {dimension_numbers = #tpu.dot_dimension_numbers<[1], [0], [0], [1], [0, 0, 1, 1], [], []>} : vector<64x64xf32>, vector<64x32xf32>, vector<64x32xf32> -> vector<64x32xf32>
    %88 = arith.addf %83, %87 : vector<64x32xf32>
    %89 = vector.extract_strided_slice %7 {offsets = [1024, 0], sizes = [64, 64], strides = [1, 1]} : vector<1600x64xf32> to vector<64x64xf32>
    %c16 = arith.constant 16 : index
    %c0_56 = arith.constant 0 : index
    %c0_57 = arith.constant 0 : index
    %90 = vector.load %arg3[%c16, %c0_56, %c0_57] : memref<25x64x32xf32, #tpu.memory_space<vmem>>, vector<1x64x32xf32>
    %91 = vector.shape_cast %90 : vector<1x64x32xf32> to vector<64x32xf32>
    %cst_58 = arith.constant dense<0.000000e+00> : vector<64x32xf32>
    %92 = tpu.matmul %89, %91, %cst_58 {dimension_numbers = #tpu.dot_dimension_numbers<[1], [0], [0], [1], [0, 0, 1, 1], [], []>} : vector<64x64xf32>, vector<64x32xf32>, vector<64x32xf32> -> vector<64x32xf32>
    %93 = arith.addf %88, %92 : vector<64x32xf32>
    %94 = vector.extract_strided_slice %7 {offsets = [1088, 0], sizes = [64, 64], strides = [1, 1]} : vector<1600x64xf32> to vector<64x64xf32>
    %c17 = arith.constant 17 : index
    %c0_59 = arith.constant 0 : index
    %c0_60 = arith.constant 0 : index
    %95 = vector.load %arg3[%c17, %c0_59, %c0_60] : memref<25x64x32xf32, #tpu.memory_space<vmem>>, vector<1x64x32xf32>
    %96 = vector.shape_cast %95 : vector<1x64x32xf32> to vector<64x32xf32>
    %cst_61 = arith.constant dense<0.000000e+00> : vector<64x32xf32>
    %97 = tpu.matmul %94, %96, %cst_61 {dimension_numbers = #tpu.dot_dimension_numbers<[1], [0], [0], [1], [0, 0, 1, 1], [], []>} : vector<64x64xf32>, vector<64x32xf32>, vector<64x32xf32> -> vector<64x32xf32>
    %98 = arith.addf %93, %97 : vector<64x32xf32>
    %99 = vector.extract_strided_slice %7 {offsets = [1152, 0], sizes = [64, 64], strides = [1, 1]} : vector<1600x64xf32> to vector<64x64xf32>
    %c18 = arith.constant 18 : index
    %c0_62 = arith.constant 0 : index
    %c0_63 = arith.constant 0 : index
    %100 = vector.load %arg3[%c18, %c0_62, %c0_63] : memref<25x64x32xf32, #tpu.memory_space<vmem>>, vector<1x64x32xf32>
    %101 = vector.shape_cast %100 : vector<1x64x32xf32> to vector<64x32xf32>
    %cst_64 = arith.constant dense<0.000000e+00> : vector<64x32xf32>
    %102 = tpu.matmul %99, %101, %cst_64 {dimension_numbers = #tpu.dot_dimension_numbers<[1], [0], [0], [1], [0, 0, 1, 1], [], []>} : vector<64x64xf32>, vector<64x32xf32>, vector<64x32xf32> -> vector<64x32xf32>
    %103 = arith.addf %98, %102 : vector<64x32xf32>
    %104 = vector.extract_strided_slice %7 {offsets = [1216, 0], sizes = [64, 64], strides = [1, 1]} : vector<1600x64xf32> to vector<64x64xf32>
    %c19 = arith.constant 19 : index
    %c0_65 = arith.constant 0 : index
    %c0_66 = arith.constant 0 : index
    %105 = vector.load %arg3[%c19, %c0_65, %c0_66] : memref<25x64x32xf32, #tpu.memory_space<vmem>>, vector<1x64x32xf32>
    %106 = vector.shape_cast %105 : vector<1x64x32xf32> to vector<64x32xf32>
    %cst_67 = arith.constant dense<0.000000e+00> : vector<64x32xf32>
    %107 = tpu.matmul %104, %106, %cst_67 {dimension_numbers = #tpu.dot_dimension_numbers<[1], [0], [0], [1], [0, 0, 1, 1], [], []>} : vector<64x64xf32>, vector<64x32xf32>, vector<64x32xf32> -> vector<64x32xf32>
    %108 = arith.addf %103, %107 : vector<64x32xf32>
    %109 = vector.extract_strided_slice %7 {offsets = [1280, 0], sizes = [64, 64], strides = [1, 1]} : vector<1600x64xf32> to vector<64x64xf32>
    %c20 = arith.constant 20 : index
    %c0_68 = arith.constant 0 : index
    %c0_69 = arith.constant 0 : index
    %110 = vector.load %arg3[%c20, %c0_68, %c0_69] : memref<25x64x32xf32, #tpu.memory_space<vmem>>, vector<1x64x32xf32>
    %111 = vector.shape_cast %110 : vector<1x64x32xf32> to vector<64x32xf32>
    %cst_70 = arith.constant dense<0.000000e+00> : vector<64x32xf32>
    %112 = tpu.matmul %109, %111, %cst_70 {dimension_numbers = #tpu.dot_dimension_numbers<[1], [0], [0], [1], [0, 0, 1, 1], [], []>} : vector<64x64xf32>, vector<64x32xf32>, vector<64x32xf32> -> vector<64x32xf32>
    %113 = arith.addf %108, %112 : vector<64x32xf32>
    %114 = vector.extract_strided_slice %7 {offsets = [1344, 0], sizes = [64, 64], strides = [1, 1]} : vector<1600x64xf32> to vector<64x64xf32>
    %c21 = arith.constant 21 : index
    %c0_71 = arith.constant 0 : index
    %c0_72 = arith.constant 0 : index
    %115 = vector.load %arg3[%c21, %c0_71, %c0_72] : memref<25x64x32xf32, #tpu.memory_space<vmem>>, vector<1x64x32xf32>
    %116 = vector.shape_cast %115 : vector<1x64x32xf32> to vector<64x32xf32>
    %cst_73 = arith.constant dense<0.000000e+00> : vector<64x32xf32>
    %117 = tpu.matmul %114, %116, %cst_73 {dimension_numbers = #tpu.dot_dimension_numbers<[1], [0], [0], [1], [0, 0, 1, 1], [], []>} : vector<64x64xf32>, vector<64x32xf32>, vector<64x32xf32> -> vector<64x32xf32>
    %118 = arith.addf %113, %117 : vector<64x32xf32>
    %119 = vector.extract_strided_slice %7 {offsets = [1408, 0], sizes = [64, 64], strides = [1, 1]} : vector<1600x64xf32> to vector<64x64xf32>
    %c22 = arith.constant 22 : index
    %c0_74 = arith.constant 0 : index
    %c0_75 = arith.constant 0 : index
    %120 = vector.load %arg3[%c22, %c0_74, %c0_75] : memref<25x64x32xf32, #tpu.memory_space<vmem>>, vector<1x64x32xf32>
    %121 = vector.shape_cast %120 : vector<1x64x32xf32> to vector<64x32xf32>
    %cst_76 = arith.constant dense<0.000000e+00> : vector<64x32xf32>
    %122 = tpu.matmul %119, %121, %cst_76 {dimension_numbers = #tpu.dot_dimension_numbers<[1], [0], [0], [1], [0, 0, 1, 1], [], []>} : vector<64x64xf32>, vector<64x32xf32>, vector<64x32xf32> -> vector<64x32xf32>
    %123 = arith.addf %118, %122 : vector<64x32xf32>
    %124 = vector.extract_strided_slice %7 {offsets = [1472, 0], sizes = [64, 64], strides = [1, 1]} : vector<1600x64xf32> to vector<64x64xf32>
    %c23 = arith.constant 23 : index
    %c0_77 = arith.constant 0 : index
    %c0_78 = arith.constant 0 : index
    %125 = vector.load %arg3[%c23, %c0_77, %c0_78] : memref<25x64x32xf32, #tpu.memory_space<vmem>>, vector<1x64x32xf32>
    %126 = vector.shape_cast %125 : vector<1x64x32xf32> to vector<64x32xf32>
    %cst_79 = arith.constant dense<0.000000e+00> : vector<64x32xf32>
    %127 = tpu.matmul %124, %126, %cst_79 {dimension_numbers = #tpu.dot_dimension_numbers<[1], [0], [0], [1], [0, 0, 1, 1], [], []>} : vector<64x64xf32>, vector<64x32xf32>, vector<64x32xf32> -> vector<64x32xf32>
    %128 = arith.addf %123, %127 : vector<64x32xf32>
    %129 = vector.extract_strided_slice %7 {offsets = [1536, 0], sizes = [64, 64], strides = [1, 1]} : vector<1600x64xf32> to vector<64x64xf32>
    %c24 = arith.constant 24 : index
    %c0_80 = arith.constant 0 : index
    %c0_81 = arith.constant 0 : index
    %130 = vector.load %arg3[%c24, %c0_80, %c0_81] : memref<25x64x32xf32, #tpu.memory_space<vmem>>, vector<1x64x32xf32>
    %131 = vector.shape_cast %130 : vector<1x64x32xf32> to vector<64x32xf32>
    %cst_82 = arith.constant dense<0.000000e+00> : vector<64x32xf32>
    %132 = tpu.matmul %129, %131, %cst_82 {dimension_numbers = #tpu.dot_dimension_numbers<[1], [0], [0], [1], [0, 0, 1, 1], [], []>} : vector<64x64xf32>, vector<64x32xf32>, vector<64x32xf32> -> vector<64x32xf32>
    %133 = arith.addf %128, %132 : vector<64x32xf32>
    %c0_83 = arith.constant 0 : index
    %c0_84 = arith.constant 0 : index
    %134 = vector.load %arg4[%c0_83, %c0_84] : memref<1x32xf32, #tpu.memory_space<vmem>>, vector<1x32xf32>
    %135 = vector.broadcast %134 : vector<1x32xf32> to vector<64x32xf32>
    %136 = arith.addf %133, %135 : vector<64x32xf32>
    %cst_85 = arith.constant 0.000000e+00 : f32
    %137 = vector.broadcast %cst_85 : f32 to vector<64x32xf32>
    %138 = arith.maximumf %136, %137 : vector<64x32xf32>
    %cst_86 = arith.constant 0.000000e+00 : f32
    %139 = vector.broadcast %cst_86 : f32 to vector<2x16xf32>
    %140 = vector.extract_strided_slice %138 {offsets = [0, 0], sizes = [2, 32], strides = [1, 1]} : vector<64x32xf32> to vector<2x32xf32>
    %c0_87 = arith.constant 0 : index
    %c0_88 = arith.constant 0 : index
    %c0_89 = arith.constant 0 : index
    %141 = vector.load %arg5[%c0_87, %c0_88, %c0_89] : memref<25x32x16xf32, #tpu.memory_space<vmem>>, vector<1x32x16xf32>
    %142 = vector.shape_cast %141 : vector<1x32x16xf32> to vector<32x16xf32>
    %cst_90 = arith.constant dense<0.000000e+00> : vector<2x16xf32>
    %143 = tpu.matmul %140, %142, %cst_90 {dimension_numbers = #tpu.dot_dimension_numbers<[1], [0], [0], [1], [0, 0, 1, 1], [], []>} : vector<2x32xf32>, vector<32x16xf32>, vector<2x16xf32> -> vector<2x16xf32>
    %144 = arith.addf %139, %143 : vector<2x16xf32>
    %145 = vector.extract_strided_slice %138 {offsets = [2, 0], sizes = [2, 32], strides = [1, 1]} : vector<64x32xf32> to vector<2x32xf32>
    %c1_91 = arith.constant 1 : index
    %c0_92 = arith.constant 0 : index
    %c0_93 = arith.constant 0 : index
    %146 = vector.load %arg5[%c1_91, %c0_92, %c0_93] : memref<25x32x16xf32, #tpu.memory_space<vmem>>, vector<1x32x16xf32>
    %147 = vector.shape_cast %146 : vector<1x32x16xf32> to vector<32x16xf32>
    %cst_94 = arith.constant dense<0.000000e+00> : vector<2x16xf32>
    %148 = tpu.matmul %145, %147, %cst_94 {dimension_numbers = #tpu.dot_dimension_numbers<[1], [0], [0], [1], [0, 0, 1, 1], [], []>} : vector<2x32xf32>, vector<32x16xf32>, vector<2x16xf32> -> vector<2x16xf32>
    %149 = arith.addf %144, %148 : vector<2x16xf32>
    %150 = vector.extract_strided_slice %138 {offsets = [4, 0], sizes = [2, 32], strides = [1, 1]} : vector<64x32xf32> to vector<2x32xf32>
    %c2_95 = arith.constant 2 : index
    %c0_96 = arith.constant 0 : index
    %c0_97 = arith.constant 0 : index
    %151 = vector.load %arg5[%c2_95, %c0_96, %c0_97] : memref<25x32x16xf32, #tpu.memory_space<vmem>>, vector<1x32x16xf32>
    %152 = vector.shape_cast %151 : vector<1x32x16xf32> to vector<32x16xf32>
    %cst_98 = arith.constant dense<0.000000e+00> : vector<2x16xf32>
    %153 = tpu.matmul %150, %152, %cst_98 {dimension_numbers = #tpu.dot_dimension_numbers<[1], [0], [0], [1], [0, 0, 1, 1], [], []>} : vector<2x32xf32>, vector<32x16xf32>, vector<2x16xf32> -> vector<2x16xf32>
    %154 = arith.addf %149, %153 : vector<2x16xf32>
    %155 = vector.extract_strided_slice %138 {offsets = [6, 0], sizes = [2, 32], strides = [1, 1]} : vector<64x32xf32> to vector<2x32xf32>
    %c3_99 = arith.constant 3 : index
    %c0_100 = arith.constant 0 : index
    %c0_101 = arith.constant 0 : index
    %156 = vector.load %arg5[%c3_99, %c0_100, %c0_101] : memref<25x32x16xf32, #tpu.memory_space<vmem>>, vector<1x32x16xf32>
    %157 = vector.shape_cast %156 : vector<1x32x16xf32> to vector<32x16xf32>
    %cst_102 = arith.constant dense<0.000000e+00> : vector<2x16xf32>
    %158 = tpu.matmul %155, %157, %cst_102 {dimension_numbers = #tpu.dot_dimension_numbers<[1], [0], [0], [1], [0, 0, 1, 1], [], []>} : vector<2x32xf32>, vector<32x16xf32>, vector<2x16xf32> -> vector<2x16xf32>
    %159 = arith.addf %154, %158 : vector<2x16xf32>
    %160 = vector.extract_strided_slice %138 {offsets = [8, 0], sizes = [2, 32], strides = [1, 1]} : vector<64x32xf32> to vector<2x32xf32>
    %c4_103 = arith.constant 4 : index
    %c0_104 = arith.constant 0 : index
    %c0_105 = arith.constant 0 : index
    %161 = vector.load %arg5[%c4_103, %c0_104, %c0_105] : memref<25x32x16xf32, #tpu.memory_space<vmem>>, vector<1x32x16xf32>
    %162 = vector.shape_cast %161 : vector<1x32x16xf32> to vector<32x16xf32>
    %cst_106 = arith.constant dense<0.000000e+00> : vector<2x16xf32>
    %163 = tpu.matmul %160, %162, %cst_106 {dimension_numbers = #tpu.dot_dimension_numbers<[1], [0], [0], [1], [0, 0, 1, 1], [], []>} : vector<2x32xf32>, vector<32x16xf32>, vector<2x16xf32> -> vector<2x16xf32>
    %164 = arith.addf %159, %163 : vector<2x16xf32>
    %165 = vector.extract_strided_slice %138 {offsets = [10, 0], sizes = [2, 32], strides = [1, 1]} : vector<64x32xf32> to vector<2x32xf32>
    %c5_107 = arith.constant 5 : index
    %c0_108 = arith.constant 0 : index
    %c0_109 = arith.constant 0 : index
    %166 = vector.load %arg5[%c5_107, %c0_108, %c0_109] : memref<25x32x16xf32, #tpu.memory_space<vmem>>, vector<1x32x16xf32>
    %167 = vector.shape_cast %166 : vector<1x32x16xf32> to vector<32x16xf32>
    %cst_110 = arith.constant dense<0.000000e+00> : vector<2x16xf32>
    %168 = tpu.matmul %165, %167, %cst_110 {dimension_numbers = #tpu.dot_dimension_numbers<[1], [0], [0], [1], [0, 0, 1, 1], [], []>} : vector<2x32xf32>, vector<32x16xf32>, vector<2x16xf32> -> vector<2x16xf32>
    %169 = arith.addf %164, %168 : vector<2x16xf32>
    %170 = vector.extract_strided_slice %138 {offsets = [12, 0], sizes = [2, 32], strides = [1, 1]} : vector<64x32xf32> to vector<2x32xf32>
    %c6_111 = arith.constant 6 : index
    %c0_112 = arith.constant 0 : index
    %c0_113 = arith.constant 0 : index
    %171 = vector.load %arg5[%c6_111, %c0_112, %c0_113] : memref<25x32x16xf32, #tpu.memory_space<vmem>>, vector<1x32x16xf32>
    %172 = vector.shape_cast %171 : vector<1x32x16xf32> to vector<32x16xf32>
    %cst_114 = arith.constant dense<0.000000e+00> : vector<2x16xf32>
    %173 = tpu.matmul %170, %172, %cst_114 {dimension_numbers = #tpu.dot_dimension_numbers<[1], [0], [0], [1], [0, 0, 1, 1], [], []>} : vector<2x32xf32>, vector<32x16xf32>, vector<2x16xf32> -> vector<2x16xf32>
    %174 = arith.addf %169, %173 : vector<2x16xf32>
    %175 = vector.extract_strided_slice %138 {offsets = [14, 0], sizes = [2, 32], strides = [1, 1]} : vector<64x32xf32> to vector<2x32xf32>
    %c7_115 = arith.constant 7 : index
    %c0_116 = arith.constant 0 : index
    %c0_117 = arith.constant 0 : index
    %176 = vector.load %arg5[%c7_115, %c0_116, %c0_117] : memref<25x32x16xf32, #tpu.memory_space<vmem>>, vector<1x32x16xf32>
    %177 = vector.shape_cast %176 : vector<1x32x16xf32> to vector<32x16xf32>
    %cst_118 = arith.constant dense<0.000000e+00> : vector<2x16xf32>
    %178 = tpu.matmul %175, %177, %cst_118 {dimension_numbers = #tpu.dot_dimension_numbers<[1], [0], [0], [1], [0, 0, 1, 1], [], []>} : vector<2x32xf32>, vector<32x16xf32>, vector<2x16xf32> -> vector<2x16xf32>
    %179 = arith.addf %174, %178 : vector<2x16xf32>
    %180 = vector.extract_strided_slice %138 {offsets = [16, 0], sizes = [2, 32], strides = [1, 1]} : vector<64x32xf32> to vector<2x32xf32>
    %c8_119 = arith.constant 8 : index
    %c0_120 = arith.constant 0 : index
    %c0_121 = arith.constant 0 : index
    %181 = vector.load %arg5[%c8_119, %c0_120, %c0_121] : memref<25x32x16xf32, #tpu.memory_space<vmem>>, vector<1x32x16xf32>
    %182 = vector.shape_cast %181 : vector<1x32x16xf32> to vector<32x16xf32>
    %cst_122 = arith.constant dense<0.000000e+00> : vector<2x16xf32>
    %183 = tpu.matmul %180, %182, %cst_122 {dimension_numbers = #tpu.dot_dimension_numbers<[1], [0], [0], [1], [0, 0, 1, 1], [], []>} : vector<2x32xf32>, vector<32x16xf32>, vector<2x16xf32> -> vector<2x16xf32>
    %184 = arith.addf %179, %183 : vector<2x16xf32>
    %185 = vector.extract_strided_slice %138 {offsets = [18, 0], sizes = [2, 32], strides = [1, 1]} : vector<64x32xf32> to vector<2x32xf32>
    %c9_123 = arith.constant 9 : index
    %c0_124 = arith.constant 0 : index
    %c0_125 = arith.constant 0 : index
    %186 = vector.load %arg5[%c9_123, %c0_124, %c0_125] : memref<25x32x16xf32, #tpu.memory_space<vmem>>, vector<1x32x16xf32>
    %187 = vector.shape_cast %186 : vector<1x32x16xf32> to vector<32x16xf32>
    %cst_126 = arith.constant dense<0.000000e+00> : vector<2x16xf32>
    %188 = tpu.matmul %185, %187, %cst_126 {dimension_numbers = #tpu.dot_dimension_numbers<[1], [0], [0], [1], [0, 0, 1, 1], [], []>} : vector<2x32xf32>, vector<32x16xf32>, vector<2x16xf32> -> vector<2x16xf32>
    %189 = arith.addf %184, %188 : vector<2x16xf32>
    %190 = vector.extract_strided_slice %138 {offsets = [20, 0], sizes = [2, 32], strides = [1, 1]} : vector<64x32xf32> to vector<2x32xf32>
    %c10_127 = arith.constant 10 : index
    %c0_128 = arith.constant 0 : index
    %c0_129 = arith.constant 0 : index
    %191 = vector.load %arg5[%c10_127, %c0_128, %c0_129] : memref<25x32x16xf32, #tpu.memory_space<vmem>>, vector<1x32x16xf32>
    %192 = vector.shape_cast %191 : vector<1x32x16xf32> to vector<32x16xf32>
    %cst_130 = arith.constant dense<0.000000e+00> : vector<2x16xf32>
    %193 = tpu.matmul %190, %192, %cst_130 {dimension_numbers = #tpu.dot_dimension_numbers<[1], [0], [0], [1], [0, 0, 1, 1], [], []>} : vector<2x32xf32>, vector<32x16xf32>, vector<2x16xf32> -> vector<2x16xf32>
    %194 = arith.addf %189, %193 : vector<2x16xf32>
    %195 = vector.extract_strided_slice %138 {offsets = [22, 0], sizes = [2, 32], strides = [1, 1]} : vector<64x32xf32> to vector<2x32xf32>
    %c11_131 = arith.constant 11 : index
    %c0_132 = arith.constant 0 : index
    %c0_133 = arith.constant 0 : index
    %196 = vector.load %arg5[%c11_131, %c0_132, %c0_133] : memref<25x32x16xf32, #tpu.memory_space<vmem>>, vector<1x32x16xf32>
    %197 = vector.shape_cast %196 : vector<1x32x16xf32> to vector<32x16xf32>
    %cst_134 = arith.constant dense<0.000000e+00> : vector<2x16xf32>
    %198 = tpu.matmul %195, %197, %cst_134 {dimension_numbers = #tpu.dot_dimension_numbers<[1], [0], [0], [1], [0, 0, 1, 1], [], []>} : vector<2x32xf32>, vector<32x16xf32>, vector<2x16xf32> -> vector<2x16xf32>
    %199 = arith.addf %194, %198 : vector<2x16xf32>
    %200 = vector.extract_strided_slice %138 {offsets = [24, 0], sizes = [2, 32], strides = [1, 1]} : vector<64x32xf32> to vector<2x32xf32>
    %c12_135 = arith.constant 12 : index
    %c0_136 = arith.constant 0 : index
    %c0_137 = arith.constant 0 : index
    %201 = vector.load %arg5[%c12_135, %c0_136, %c0_137] : memref<25x32x16xf32, #tpu.memory_space<vmem>>, vector<1x32x16xf32>
    %202 = vector.shape_cast %201 : vector<1x32x16xf32> to vector<32x16xf32>
    %cst_138 = arith.constant dense<0.000000e+00> : vector<2x16xf32>
    %203 = tpu.matmul %200, %202, %cst_138 {dimension_numbers = #tpu.dot_dimension_numbers<[1], [0], [0], [1], [0, 0, 1, 1], [], []>} : vector<2x32xf32>, vector<32x16xf32>, vector<2x16xf32> -> vector<2x16xf32>
    %204 = arith.addf %199, %203 : vector<2x16xf32>
    %205 = vector.extract_strided_slice %138 {offsets = [26, 0], sizes = [2, 32], strides = [1, 1]} : vector<64x32xf32> to vector<2x32xf32>
    %c13_139 = arith.constant 13 : index
    %c0_140 = arith.constant 0 : index
    %c0_141 = arith.constant 0 : index
    %206 = vector.load %arg5[%c13_139, %c0_140, %c0_141] : memref<25x32x16xf32, #tpu.memory_space<vmem>>, vector<1x32x16xf32>
    %207 = vector.shape_cast %206 : vector<1x32x16xf32> to vector<32x16xf32>
    %cst_142 = arith.constant dense<0.000000e+00> : vector<2x16xf32>
    %208 = tpu.matmul %205, %207, %cst_142 {dimension_numbers = #tpu.dot_dimension_numbers<[1], [0], [0], [1], [0, 0, 1, 1], [], []>} : vector<2x32xf32>, vector<32x16xf32>, vector<2x16xf32> -> vector<2x16xf32>
    %209 = arith.addf %204, %208 : vector<2x16xf32>
    %210 = vector.extract_strided_slice %138 {offsets = [28, 0], sizes = [2, 32], strides = [1, 1]} : vector<64x32xf32> to vector<2x32xf32>
    %c14_143 = arith.constant 14 : index
    %c0_144 = arith.constant 0 : index
    %c0_145 = arith.constant 0 : index
    %211 = vector.load %arg5[%c14_143, %c0_144, %c0_145] : memref<25x32x16xf32, #tpu.memory_space<vmem>>, vector<1x32x16xf32>
    %212 = vector.shape_cast %211 : vector<1x32x16xf32> to vector<32x16xf32>
    %cst_146 = arith.constant dense<0.000000e+00> : vector<2x16xf32>
    %213 = tpu.matmul %210, %212, %cst_146 {dimension_numbers = #tpu.dot_dimension_numbers<[1], [0], [0], [1], [0, 0, 1, 1], [], []>} : vector<2x32xf32>, vector<32x16xf32>, vector<2x16xf32> -> vector<2x16xf32>
    %214 = arith.addf %209, %213 : vector<2x16xf32>
    %215 = vector.extract_strided_slice %138 {offsets = [30, 0], sizes = [2, 32], strides = [1, 1]} : vector<64x32xf32> to vector<2x32xf32>
    %c15_147 = arith.constant 15 : index
    %c0_148 = arith.constant 0 : index
    %c0_149 = arith.constant 0 : index
    %216 = vector.load %arg5[%c15_147, %c0_148, %c0_149] : memref<25x32x16xf32, #tpu.memory_space<vmem>>, vector<1x32x16xf32>
    %217 = vector.shape_cast %216 : vector<1x32x16xf32> to vector<32x16xf32>
    %cst_150 = arith.constant dense<0.000000e+00> : vector<2x16xf32>
    %218 = tpu.matmul %215, %217, %cst_150 {dimension_numbers = #tpu.dot_dimension_numbers<[1], [0], [0], [1], [0, 0, 1, 1], [], []>} : vector<2x32xf32>, vector<32x16xf32>, vector<2x16xf32> -> vector<2x16xf32>
    %219 = arith.addf %214, %218 : vector<2x16xf32>
    %220 = vector.extract_strided_slice %138 {offsets = [32, 0], sizes = [2, 32], strides = [1, 1]} : vector<64x32xf32> to vector<2x32xf32>
    %c16_151 = arith.constant 16 : index
    %c0_152 = arith.constant 0 : index
    %c0_153 = arith.constant 0 : index
    %221 = vector.load %arg5[%c16_151, %c0_152, %c0_153] : memref<25x32x16xf32, #tpu.memory_space<vmem>>, vector<1x32x16xf32>
    %222 = vector.shape_cast %221 : vector<1x32x16xf32> to vector<32x16xf32>
    %cst_154 = arith.constant dense<0.000000e+00> : vector<2x16xf32>
    %223 = tpu.matmul %220, %222, %cst_154 {dimension_numbers = #tpu.dot_dimension_numbers<[1], [0], [0], [1], [0, 0, 1, 1], [], []>} : vector<2x32xf32>, vector<32x16xf32>, vector<2x16xf32> -> vector<2x16xf32>
    %224 = arith.addf %219, %223 : vector<2x16xf32>
    %225 = vector.extract_strided_slice %138 {offsets = [34, 0], sizes = [2, 32], strides = [1, 1]} : vector<64x32xf32> to vector<2x32xf32>
    %c17_155 = arith.constant 17 : index
    %c0_156 = arith.constant 0 : index
    %c0_157 = arith.constant 0 : index
    %226 = vector.load %arg5[%c17_155, %c0_156, %c0_157] : memref<25x32x16xf32, #tpu.memory_space<vmem>>, vector<1x32x16xf32>
    %227 = vector.shape_cast %226 : vector<1x32x16xf32> to vector<32x16xf32>
    %cst_158 = arith.constant dense<0.000000e+00> : vector<2x16xf32>
    %228 = tpu.matmul %225, %227, %cst_158 {dimension_numbers = #tpu.dot_dimension_numbers<[1], [0], [0], [1], [0, 0, 1, 1], [], []>} : vector<2x32xf32>, vector<32x16xf32>, vector<2x16xf32> -> vector<2x16xf32>
    %229 = arith.addf %224, %228 : vector<2x16xf32>
    %230 = vector.extract_strided_slice %138 {offsets = [36, 0], sizes = [2, 32], strides = [1, 1]} : vector<64x32xf32> to vector<2x32xf32>
    %c18_159 = arith.constant 18 : index
    %c0_160 = arith.constant 0 : index
    %c0_161 = arith.constant 0 : index
    %231 = vector.load %arg5[%c18_159, %c0_160, %c0_161] : memref<25x32x16xf32, #tpu.memory_space<vmem>>, vector<1x32x16xf32>
    %232 = vector.shape_cast %231 : vector<1x32x16xf32> to vector<32x16xf32>
    %cst_162 = arith.constant dense<0.000000e+00> : vector<2x16xf32>
    %233 = tpu.matmul %230, %232, %cst_162 {dimension_numbers = #tpu.dot_dimension_numbers<[1], [0], [0], [1], [0, 0, 1, 1], [], []>} : vector<2x32xf32>, vector<32x16xf32>, vector<2x16xf32> -> vector<2x16xf32>
    %234 = arith.addf %229, %233 : vector<2x16xf32>
    %235 = vector.extract_strided_slice %138 {offsets = [38, 0], sizes = [2, 32], strides = [1, 1]} : vector<64x32xf32> to vector<2x32xf32>
    %c19_163 = arith.constant 19 : index
    %c0_164 = arith.constant 0 : index
    %c0_165 = arith.constant 0 : index
    %236 = vector.load %arg5[%c19_163, %c0_164, %c0_165] : memref<25x32x16xf32, #tpu.memory_space<vmem>>, vector<1x32x16xf32>
    %237 = vector.shape_cast %236 : vector<1x32x16xf32> to vector<32x16xf32>
    %cst_166 = arith.constant dense<0.000000e+00> : vector<2x16xf32>
    %238 = tpu.matmul %235, %237, %cst_166 {dimension_numbers = #tpu.dot_dimension_numbers<[1], [0], [0], [1], [0, 0, 1, 1], [], []>} : vector<2x32xf32>, vector<32x16xf32>, vector<2x16xf32> -> vector<2x16xf32>
    %239 = arith.addf %234, %238 : vector<2x16xf32>
    %240 = vector.extract_strided_slice %138 {offsets = [40, 0], sizes = [2, 32], strides = [1, 1]} : vector<64x32xf32> to vector<2x32xf32>
    %c20_167 = arith.constant 20 : index
    %c0_168 = arith.constant 0 : index
    %c0_169 = arith.constant 0 : index
    %241 = vector.load %arg5[%c20_167, %c0_168, %c0_169] : memref<25x32x16xf32, #tpu.memory_space<vmem>>, vector<1x32x16xf32>
    %242 = vector.shape_cast %241 : vector<1x32x16xf32> to vector<32x16xf32>
    %cst_170 = arith.constant dense<0.000000e+00> : vector<2x16xf32>
    %243 = tpu.matmul %240, %242, %cst_170 {dimension_numbers = #tpu.dot_dimension_numbers<[1], [0], [0], [1], [0, 0, 1, 1], [], []>} : vector<2x32xf32>, vector<32x16xf32>, vector<2x16xf32> -> vector<2x16xf32>
    %244 = arith.addf %239, %243 : vector<2x16xf32>
    %245 = vector.extract_strided_slice %138 {offsets = [42, 0], sizes = [2, 32], strides = [1, 1]} : vector<64x32xf32> to vector<2x32xf32>
    %c21_171 = arith.constant 21 : index
    %c0_172 = arith.constant 0 : index
    %c0_173 = arith.constant 0 : index
    %246 = vector.load %arg5[%c21_171, %c0_172, %c0_173] : memref<25x32x16xf32, #tpu.memory_space<vmem>>, vector<1x32x16xf32>
    %247 = vector.shape_cast %246 : vector<1x32x16xf32> to vector<32x16xf32>
    %cst_174 = arith.constant dense<0.000000e+00> : vector<2x16xf32>
    %248 = tpu.matmul %245, %247, %cst_174 {dimension_numbers = #tpu.dot_dimension_numbers<[1], [0], [0], [1], [0, 0, 1, 1], [], []>} : vector<2x32xf32>, vector<32x16xf32>, vector<2x16xf32> -> vector<2x16xf32>
    %249 = arith.addf %244, %248 : vector<2x16xf32>
    %250 = vector.extract_strided_slice %138 {offsets = [44, 0], sizes = [2, 32], strides = [1, 1]} : vector<64x32xf32> to vector<2x32xf32>
    %c22_175 = arith.constant 22 : index
    %c0_176 = arith.constant 0 : index
    %c0_177 = arith.constant 0 : index
    %251 = vector.load %arg5[%c22_175, %c0_176, %c0_177] : memref<25x32x16xf32, #tpu.memory_space<vmem>>, vector<1x32x16xf32>
    %252 = vector.shape_cast %251 : vector<1x32x16xf32> to vector<32x16xf32>
    %cst_178 = arith.constant dense<0.000000e+00> : vector<2x16xf32>
    %253 = tpu.matmul %250, %252, %cst_178 {dimension_numbers = #tpu.dot_dimension_numbers<[1], [0], [0], [1], [0, 0, 1, 1], [], []>} : vector<2x32xf32>, vector<32x16xf32>, vector<2x16xf32> -> vector<2x16xf32>
    %254 = arith.addf %249, %253 : vector<2x16xf32>
    %255 = vector.extract_strided_slice %138 {offsets = [46, 0], sizes = [2, 32], strides = [1, 1]} : vector<64x32xf32> to vector<2x32xf32>
    %c23_179 = arith.constant 23 : index
    %c0_180 = arith.constant 0 : index
    %c0_181 = arith.constant 0 : index
    %256 = vector.load %arg5[%c23_179, %c0_180, %c0_181] : memref<25x32x16xf32, #tpu.memory_space<vmem>>, vector<1x32x16xf32>
    %257 = vector.shape_cast %256 : vector<1x32x16xf32> to vector<32x16xf32>
    %cst_182 = arith.constant dense<0.000000e+00> : vector<2x16xf32>
    %258 = tpu.matmul %255, %257, %cst_182 {dimension_numbers = #tpu.dot_dimension_numbers<[1], [0], [0], [1], [0, 0, 1, 1], [], []>} : vector<2x32xf32>, vector<32x16xf32>, vector<2x16xf32> -> vector<2x16xf32>
    %259 = arith.addf %254, %258 : vector<2x16xf32>
    %260 = vector.extract_strided_slice %138 {offsets = [48, 0], sizes = [2, 32], strides = [1, 1]} : vector<64x32xf32> to vector<2x32xf32>
    %c24_183 = arith.constant 24 : index
    %c0_184 = arith.constant 0 : index
    %c0_185 = arith.constant 0 : index
    %261 = vector.load %arg5[%c24_183, %c0_184, %c0_185] : memref<25x32x16xf32, #tpu.memory_space<vmem>>, vector<1x32x16xf32>
    %262 = vector.shape_cast %261 : vector<1x32x16xf32> to vector<32x16xf32>
    %cst_186 = arith.constant dense<0.000000e+00> : vector<2x16xf32>
    %263 = tpu.matmul %260, %262, %cst_186 {dimension_numbers = #tpu.dot_dimension_numbers<[1], [0], [0], [1], [0, 0, 1, 1], [], []>} : vector<2x32xf32>, vector<32x16xf32>, vector<2x16xf32> -> vector<2x16xf32>
    %264 = arith.addf %259, %263 : vector<2x16xf32>
    %c0_187 = arith.constant 0 : index
    %c0_188 = arith.constant 0 : index
    %265 = vector.load %arg6[%c0_187, %c0_188] : memref<1x16xf32, #tpu.memory_space<vmem>>, vector<1x16xf32>
    %266 = vector.broadcast %265 : vector<1x16xf32> to vector<2x16xf32>
    %267 = arith.addf %264, %266 : vector<2x16xf32>
    %cst_189 = arith.constant 0.000000e+00 : f32
    %268 = vector.broadcast %cst_189 : f32 to vector<2x16xf32>
    %269 = arith.maximumf %267, %268 : vector<2x16xf32>
    %c0_190 = arith.constant 0 : index
    %c0_191 = arith.constant 0 : index
    %270 = vector.load %arg8[%c0_190, %c0_191] : memref<16x32xf32, #tpu.memory_space<vmem>>, vector<16x32xf32>
    %cst_192 = arith.constant dense<0.000000e+00> : vector<2x32xf32>
    %271 = tpu.matmul %269, %270, %cst_192 {dimension_numbers = #tpu.dot_dimension_numbers<[1], [0], [0], [1], [0, 0, 1, 1], [], []>} : vector<2x16xf32>, vector<16x32xf32>, vector<2x32xf32> -> vector<2x32xf32>
    %c0_193 = arith.constant 0 : index
    %c0_194 = arith.constant 0 : index
    %272 = vector.load %arg7[%c0_193, %c0_194] : memref<2x12xf32, #tpu.memory_space<vmem>>, vector<2x12xf32>
    %c0_195 = arith.constant 0 : index
    %c0_196 = arith.constant 0 : index
    %273 = vector.load %arg9[%c0_195, %c0_196] : memref<12x32xf32, #tpu.memory_space<vmem>>, vector<12x32xf32>
    %cst_197 = arith.constant dense<0.000000e+00> : vector<2x32xf32>
    %274 = tpu.matmul %272, %273, %cst_197 {dimension_numbers = #tpu.dot_dimension_numbers<[1], [0], [0], [1], [0, 0, 1, 1], [], []>} : vector<2x12xf32>, vector<12x32xf32>, vector<2x32xf32> -> vector<2x32xf32>
    %275 = arith.addf %271, %274 : vector<2x32xf32>
    %c0_198 = arith.constant 0 : index
    %c0_199 = arith.constant 0 : index
    %276 = vector.load %arg10[%c0_198, %c0_199] : memref<1x32xf32, #tpu.memory_space<vmem>>, vector<1x32xf32>
    %277 = vector.broadcast %276 : vector<1x32xf32> to vector<2x32xf32>
    %278 = arith.addf %275, %277 : vector<2x32xf32>
    %279 = math.tanh %278 : vector<2x32xf32>
    %c0_200 = arith.constant 0 : index
    %c0_201 = arith.constant 0 : index
    %280 = vector.load %arg11[%c0_200, %c0_201] : memref<32x32xf32, #tpu.memory_space<vmem>>, vector<32x32xf32>
    %cst_202 = arith.constant dense<0.000000e+00> : vector<2x32xf32>
    %281 = tpu.matmul %279, %280, %cst_202 {dimension_numbers = #tpu.dot_dimension_numbers<[1], [0], [0], [1], [0, 0, 1, 1], [], []>} : vector<2x32xf32>, vector<32x32xf32>, vector<2x32xf32> -> vector<2x32xf32>
    %c0_203 = arith.constant 0 : index
    %c0_204 = arith.constant 0 : index
    %282 = vector.load %arg12[%c0_203, %c0_204] : memref<1x32xf32, #tpu.memory_space<vmem>>, vector<1x32xf32>
    %283 = vector.broadcast %282 : vector<1x32xf32> to vector<2x32xf32>
    %284 = arith.addf %281, %283 : vector<2x32xf32>
    %285 = math.tanh %284 : vector<2x32xf32>
    %c0_205 = arith.constant 0 : index
    %c0_206 = arith.constant 0 : index
    %286 = vector.load %arg13[%c0_205, %c0_206] : memref<32x128xf32, #tpu.memory_space<vmem>>, vector<32x128xf32>
    %cst_207 = arith.constant dense<0.000000e+00> : vector<2x128xf32>
    %287 = tpu.matmul %285, %286, %cst_207 {dimension_numbers = #tpu.dot_dimension_numbers<[1], [0], [0], [1], [0, 0, 1, 1], [], []>} : vector<2x32xf32>, vector<32x128xf32>, vector<2x128xf32> -> vector<2x128xf32>
    %c0_208 = arith.constant 0 : index
    %c0_209 = arith.constant 0 : index
    %288 = vector.load %arg14[%c0_208, %c0_209] : memref<1x128xf32, #tpu.memory_space<vmem>>, vector<1x128xf32>
    %289 = vector.broadcast %288 : vector<1x128xf32> to vector<2x128xf32>
    %290 = arith.addf %287, %289 : vector<2x128xf32>
    %c0_210 = arith.constant 0 : index
    %c0_211 = arith.constant 0 : index
    %291 = vector.load %arg15[%c0_210, %c0_211] : memref<2x128xf32, #tpu.memory_space<vmem>>, vector<2x128xf32>
    tpu.vector_store %arg15[%c0_210, %c0_211], %290 {strides = array<i32>} : memref<2x128xf32, #tpu.memory_space<vmem>>, vector<2x128xf32>,
    return
  }
}

</mosaic_0001>

<bundles_post_ra>
// kernel: semi_combine_forward.1
= control target key start
LH: loop header
LB: loop body
LE: loop exit
PB: predicated region body
PF: predicated region fallthrough
CT: control target
= control target key end

     0   :  { %v14292_v0 = vmov 0.0   ;;  %vm476_vm0 = vcmask 179200   ;;  %vm1077_vm1 = vcmask 1045504   ;;  %vm2363_vm2 = vcmask 523264   ;;  %s14276_s1 = inlined_call_operand.vmem [shape: f32[150,64], index: 1, kind: input, shape index: {}]   ;;  %s14277_s0 = inlined_call_operand.vmem [shape: f32[1600,150], index: 0, kind: input, shape index: {}]   ;;  %s14278_s3 = inlined_call_operand.vmem [shape: f32[25,64,32], index: 3, kind: input, shape index: {}]   ;;  %s14279_s2 = inlined_call_operand.vmem [shape: f32[1,64], index: 2, kind: input, shape index: {}]   ;;  %s14280_s5 = inlined_call_operand.vmem [shape: f32[25,32,16], index: 5, kind: input, shape index: {}]   ;;  %s14281_s4 = inlined_call_operand.vmem [shape: f32[1,32], index: 4, kind: input, shape index: {}]   ;;  %s14282_s9 = inlined_call_operand.vmem [shape: f32[12,32], index: 9, kind: input, shape index: {}]   ;;  %s14283_s7 = inlined_call_operand.vmem [shape: f32[2,12], index: 7, kind: input, shape index: {}]   ;;  %s14284_s8 = inlined_call_operand.vmem [shape: f32[16,32], index: 8, kind: input, shape index: {}]   ;;  %s14285_s6 = inlined_call_operand.vmem [shape: f32[1,16], index: 6, kind: input, shape index: {}]   ;;  %s14286_s11 = inlined_call_operand.vmem [shape: f32[32,32], index: 11, kind: input, shape index: {}]   ;;  %s14287_s10 = inlined_call_operand.vmem [shape: f32[1,32], index: 10, kind: input, shape index: {}]   ;;  %s14288_s13 = inlined_call_operand.vmem [shape: f32[32,128], index: 13, kind: input, shape index: {}]   ;;  %s14289_s12 = inlined_call_operand.vmem [shape: f32[1,32], index: 12, kind: input, shape index: {}]   ;;  %s14290_s14 = inlined_call_operand.vmem [shape: f32[1,128], index: 14, kind: input, shape index: {}]   ;;  %s14291_s15 = inlined_call_operand.vmem [shape: f32[2,128], index: 15, kind: output, shape index: {}]  }
   0x1   :  { %1081 = vmatprep.subr.mxu0 %v14292_v0  ;;  %v465_v1 = vld [vmem:[%s14276_s1 + $0x78] sm:$0xff]  ;;  %v464_v2 = vld [vmem:[%s14276_s1 + $0x70] sm:$0xff]  ;;  %10552 = vmatprep.subr.mxu1 %v14292_v0  ;;  %v463_v3 = vld [vmem:[%s14276_s1 + $0x68] sm:$0xff]  ;;  %vm10601_vm3 = vmmov 0   ;;  %vm5964_vm4 = vcmask 261120   ;;  %vm7944_vm5 = vcmask 1043456  }
   0x2   :  { %1082 = vmatpush1.msra.mxu0 %v465_v1  ;;  %10571 = vmatpush1.msra.mxu1 %v465_v1  ;;  %v462_v4 = vld [vmem:[%s14276_s1 + $0x60] sm:$0xff]  ;;  %v461_v5 = vld [vmem:[%s14276_s1 + $0x58] sm:$0xff]  ;;  %v51_v6 = vld [vmem:[%s14277_s0 + $0x8] sm:$0xff]  ;;  %vm7940_vm6 = vcmask 97280   ;;  %vm8018_vm7 = vcmask 130048  }
   0x3   :  { %1083 = vmatprep.subr.mxu0 %v14292_v0  ;;  %10553 = vmatprep.subr.mxu1 %v14292_v0  ;;  %v460_v7 = vld [vmem:[%s14276_s1 + $0x50] sm:$0xff]  ;;  %v459_v8 = vld [vmem:[%s14276_s1 + $0x48] sm:$0xff]  ;;  %v458_v9 = vld [vmem:[%s14276_s1 + $0x40] sm:$0xff] }
   0x4   :  { %1084 = vmatpush1.msra.mxu0 %v464_v2  ;;  %10572 = vmatpush1.msra.mxu1 %v464_v2  ;;  %v457_v10 = vld [vmem:[%s14276_s1 + $0x38] sm:$0xff]  ;;  %v456_v11 = vld [vmem:[%s14276_s1 + $0x30] sm:$0xff]  ;;  %v455_v12 = vld [vmem:[%s14276_s1 + $0x28] sm:$0xff] }
   0x5   :  { %1085 = vmatprep.subr.mxu0 %v14292_v0  ;;  %10554 = vmatprep.subr.mxu1 %v14292_v0  ;;  %v454_v13 = vld [vmem:[%s14276_s1 + $0x20] sm:$0xff]  ;;  %v453_v14 = vld [vmem:[%s14276_s1 + $0x18] sm:$0xff]  ;;  %v452_v15 = vld [vmem:[%s14276_s1 + $0x10] sm:$0xff] }
   0x6   :  { %1086 = vmatpush1.msra.mxu0 %v463_v3  ;;  %10573 = vmatpush1.msra.mxu1 %v463_v3  ;;  %v451_v16 = vld [vmem:[%s14276_s1 + $0x8] sm:$0xff]  ;;  %v450_v17 = vld [vmem:[%s14276_s1] sm:$0xff]  ;;  %v468_v18 = vld [vmem:[%s14276_s1 + $0x90] sm:$0x3f] }
   0x7   :  { %1087 = vmatprep.subr.mxu0 %v14292_v0  ;;  %10555 = vmatprep.subr.mxu1 %v14292_v0  ;;  %v467_v19 = vld [vmem:[%s14276_s1 + $0x88] sm:$0xff]  ;;  %v466_v20 = vld [vmem:[%s14276_s1 + $0x80] sm:$0xff]  ;;  %v53_v22 = vld [vmem:[%s14277_s0 + $0x18] sm:$0xff] }
   0x8   :  { %1088 = vmatpush1.msra.mxu0 %v462_v4  ;;  %8277 = vmatprep.mubr.msk.f32.mxu0 %vm476_vm0, %v51_v6  ;;  %v50_v21 = vld [vmem:[%s14277_s0] sm:$0xff]  ;;  %v52_v23 = vld [vmem:[%s14277_s0 + $0x10] sm:$0xff]  ;;  %v55_v24 = vld [vmem:[%s14277_s0 + $0x28] sm:$0xff] }
   0x9   :  { %1089 = vmatprep.subr.mxu0 %v14292_v0  ;;  %10574 = vmatpush1.msra.mxu1 %v462_v4  ;;  %v54_v25 = vld [vmem:[%s14277_s0 + $0x20] sm:$0xff]  ;;  %v57_v26 = vld [vmem:[%s14277_s0 + $0x38] sm:$0xff]  ;;  %v56_v27 = vld [vmem:[%s14277_s0 + $0x30] sm:$0xff] }
   0xa   :  { %1090 = vmatpush1.msra.mxu0 %v461_v5  ;;  %10556 = vmatprep.subr.mxu1 %v14292_v0  ;;  %v59_v28 = vld [vmem:[%s14277_s0 + $0x48] sm:$0xff]  ;;  %v58_v29 = vld [vmem:[%s14277_s0 + $0x40] sm:$0xff]  ;;  %v61_v31 = vld [vmem:[%s14277_s0 + $0x58] sm:$0xff] }
   0xb   :  { %1091 = vmatprep.subr.mxu0 %v14292_v0  ;;  %10575 = vmatpush1.msra.mxu1 %v461_v5  ;;  %v407_v30 = vld [vmem:[%s14277_s0 + $0xb28] sm:$0xff]  ;;  %v406_v32 = vld [vmem:[%s14277_s0 + $0xb20] sm:$0xff]  ;;  %v60_v33 = vld [vmem:[%s14277_s0 + $0x50] sm:$0xff] }
   0xc   :  { %1092 = vmatpush1.msra.mxu0 %v460_v7  ;;  %10557 = vmatprep.subr.mxu1 %v14292_v0  ;;  %v409_v34 = vld [vmem:[%s14277_s0 + $0xb38] sm:$0xff]  ;;  %v63_v35 = vld [vmem:[%s14277_s0 + $0x68] sm:$0xff]  ;;  %v408_v36 = vld [vmem:[%s14277_s0 + $0xb30] sm:$0xff] }
   0xd   :  { %1093 = vmatprep.subr.mxu0 %v14292_v0  ;;  %10576 = vmatpush1.msra.mxu1 %v460_v7  ;;  %v62_v37 = vld [vmem:[%s14277_s0 + $0x60] sm:$0xff]  ;;  %v411_v38 = vld [vmem:[%s14277_s0 + $0xb48] sm:$0xff]  ;;  %v65_v39 = vld [vmem:[%s14277_s0 + $0x78] sm:$0xff] }
   0xe   :  { %1094 = vmatpush1.msra.mxu0 %v459_v8  ;;  %10558 = vmatprep.subr.mxu1 %v14292_v0  ;;  %v410_v40 = vld [vmem:[%s14277_s0 + $0xb40] sm:$0xff]  ;;  %v64_v41 = vld [vmem:[%s14277_s0 + $0x70] sm:$0xff]  ;;  %v413_v42 = vld [vmem:[%s14277_s0 + $0xb58] sm:$0xff] }
   0xf   :  { %1095 = vmatprep.subr.mxu0 %v14292_v0  ;;  %10577 = vmatpush1.msra.mxu1 %v459_v8  ;;  %v67_v43 = vld [vmem:[%s14277_s0 + $0x88] sm:$0xff]  ;;  %v412_v44 = vld [vmem:[%s14277_s0 + $0xb50] sm:$0xff]  ;;  %v66_v45 = vld [vmem:[%s14277_s0 + $0x80] sm:$0xff] }
  0x10   :  { %1096 = vmatpush1.msra.mxu0 %v458_v9  ;;  %10559 = vmatprep.subr.mxu1 %v14292_v0  ;;  %v415_v46 = vld [vmem:[%s14277_s0 + $0xb68] sm:$0xff]  ;;  %v69_v47 = vld [vmem:[%s14277_s0 + $0x98] sm:$0xff]  ;;  %v414_v48 = vld [vmem:[%s14277_s0 + $0xb60] sm:$0xff] }
  0x11   :  { %1097 = vmatprep.subr.mxu0 %v14292_v0  ;;  %10578 = vmatpush1.msra.mxu1 %v458_v9  ;;  %v68_v49 = vld [vmem:[%s14277_s0 + $0x90] sm:$0xff]  ;;  %v417_v50 = vld [vmem:[%s14277_s0 + $0xb78] sm:$0xff]  ;;  %v71_v51 = vld [vmem:[%s14277_s0 + $0xa8] sm:$0xff] }
  0x12   :  { %1098 = vmatpush1.msra.mxu0 %v457_v10  ;;  %10560 = vmatprep.subr.mxu1 %v14292_v0  ;;  %v416_v52 = vld [vmem:[%s14277_s0 + $0xb70] sm:$0xff]  ;;  %v70_v53 = vld [vmem:[%s14277_s0 + $0xa0] sm:$0xff]  ;;  %v419_v54 = vld [vmem:[%s14277_s0 + $0xb88] sm:$0xff] }
  0x13   :  { %1099 = vmatprep.subr.mxu0 %v14292_v0  ;;  %10579 = vmatpush1.msra.mxu1 %v457_v10  ;;  %v73_v55 = vld [vmem:[%s14277_s0 + $0xb8] sm:$0xff]  ;;  %v418_v56 = vld [vmem:[%s14277_s0 + $0xb80] sm:$0xff]  ;;  %v72_v57 = vld [vmem:[%s14277_s0 + $0xb0] sm:$0xff] }
  0x14   :  { %1100 = vmatpush1.msra.mxu0 %v456_v11  ;;  %10561 = vmatprep.subr.mxu1 %v14292_v0  ;;  %v421_v58 = vld [vmem:[%s14277_s0 + $0xb98] sm:$0xff]  ;;  %v75_v59 = vld [vmem:[%s14277_s0 + $0xc8] sm:$0xff]  ;;  %v420_v60 = vld [vmem:[%s14277_s0 + $0xb90] sm:$0xff] }
  0x15   :  { %1101 = vmatprep.subr.mxu0 %v14292_v0  ;;  %10580 = vmatpush1.msra.mxu1 %v456_v11  ;;  %v74_v61 = vld [vmem:[%s14277_s0 + $0xc0] sm:$0xff]  ;;  %v423_v62 = vld [vmem:[%s14277_s0 + $0xba8] sm:$0xff]  ;;  %v77_v63 = vld [vmem:[%s14277_s0 + $0xd8] sm:$0xff] }
  0x16   :  { %1102 = vmatpush1.msra.mxu0 %v455_v12  ;;  %10562 = vmatprep.subr.mxu1 %v14292_v0  ;;  %v422_v1 = vld [vmem:[%s14277_s0 + $0xba0] sm:$0xff]  ;;  %v76_v2 = vld [vmem:[%s14277_s0 + $0xd0] sm:$0xff]  ;;  %v425_v3 = vld [vmem:[%s14277_s0 + $0xbb8] sm:$0xff] }
  0x17   :  { %1103 = vmatprep.subr.mxu0 %v14292_v0  ;;  %10581 = vmatpush1.msra.mxu1 %v455_v12  ;;  %v79_v4 = vld [vmem:[%s14277_s0 + $0xe8] sm:$0xff]  ;;  %v424_v5 = vld [vmem:[%s14277_s0 + $0xbb0] sm:$0xff]  ;;  %v78_v6 = vld [vmem:[%s14277_s0 + $0xe0] sm:$0xff] }
  0x18   :  { %1104 = vmatpush1.msra.mxu0 %v454_v13  ;;  %10563 = vmatprep.subr.mxu1 %v14292_v0  ;;  %v427_v7 = vld [vmem:[%s14277_s0 + $0xbc8] sm:$0xff]  ;;  %v81_v8 = vld [vmem:[%s14277_s0 + $0xf8] sm:$0xff]  ;;  %v426_v9 = vld [vmem:[%s14277_s0 + $0xbc0] sm:$0xff] }
  0x19   :  { %1105 = vmatprep.subr.mxu0 %v14292_v0  ;;  %10582 = vmatpush1.msra.mxu1 %v454_v13  ;;  %v80_v10 = vld [vmem:[%s14277_s0 + $0xf0] sm:$0xff]  ;;  %v429_v11 = vld [vmem:[%s14277_s0 + $0xbd8] sm:$0xff]  ;;  %v83_v12 = vld [vmem:[%s14277_s0 + $0x108] sm:$0xff] }
  0x1a   :  { %1106 = vmatpush1.msra.mxu0 %v453_v14  ;;  %10564 = vmatprep.subr.mxu1 %v14292_v0  ;;  %v428_v13 = vld [vmem:[%s14277_s0 + $0xbd0] sm:$0xff] }
  0x1b   :  { %1107 = vmatprep.subr.mxu0 %v14292_v0  ;;  %10583 = vmatpush1.msra.mxu1 %v453_v14  ;;  %v82_v14 = vld [vmem:[%s14277_s0 + $0x100] sm:$0xff] }
  0x1c   :  { %1108 = vmatpush1.msra.mxu0 %v452_v15  ;;  %10565 = vmatprep.subr.mxu1 %v14292_v0 }
  0x1d   :  { %1109 = vmatprep.subr.mxu0 %v14292_v0  ;;  %10584 = vmatpush1.msra.mxu1 %v452_v15  ;;  %v431_v15 = vld [vmem:[%s14277_s0 + $0xbe8] sm:$0xff] }
  0x1e   :  { %1110 = vmatpush1.msra.mxu0 %v451_v16  ;;  %10566 = vmatprep.subr.mxu1 %v14292_v0 }
  0x1f   :  { %1111 = vmatprep.subr.mxu0 %v14292_v0  ;;  %10585 = vmatpush1.msra.mxu1 %v451_v16  ;;  %v85_v16 = vld [vmem:[%s14277_s0 + $0x118] sm:$0xff] }
  0x20   :  { %1112 = vmatpush1.msra.mxu0 %v450_v17  ;;  %10567 = vmatprep.subr.mxu1 %v14292_v0 }
  0x21   :  { %1139 = vmatprep.subr.mxu0 %v14292_v0  ;;  %10586 = vmatpush1.msra.mxu1 %v450_v17  ;;  %v430_v17 = vld [vmem:[%s14277_s0 + $0xbe0] sm:$0xff] }
  0x22   :  { %8276 = vmatpush2.msk.msra.mxu0 %vm1077_vm1, %v468_v18  ;;  %10568 = vmatprep.subr.mxu1 %v14292_v0 }
  0x23   :  { %1141 = vmatprep.subr.mxu0 %v14292_v0  ;;  %10587 = vmatpush2.msk.msra.mxu1 %vm1077_vm1, %v468_v18  ;;  %v84_v18 = vld [vmem:[%s14277_s0 + $0x110] sm:$0xff] }
  0x24   :  { %1142 = vmatpush2.msra.mxu0 %v467_v19  ;;  %10569 = vmatprep.subr.mxu1 %v14292_v0 }
  0x25   :  { %1143 = vmatprep.subr.mxu0 %v14292_v0  ;;  %10588 = vmatpush2.msra.mxu1 %v467_v19  ;;  %v87_v19 = vld [vmem:[%s14277_s0 + $0x128] sm:$0xff] }
  0x26   :  { %1144 = vmatpush2.msra.mxu0 %v466_v20  ;;  %10570 = vmatprep.subr.mxu1 %v14292_v0 }
  0x27   :  { %1146 = vmatmul.mubr.f32.vlgmr.msra.gmra.mxu0 %v50_v21  ;;  %10589 = vmatpush2.msra.mxu1 %v466_v20  ;;  %v433_v20 = vld [vmem:[%s14277_s0 + $0xbf8] sm:$0xff]  ;;  %v432_v21 = vld [vmem:[%s14277_s0 + $0xbf0] sm:$0xff] }
  0x28   :  { %8278 = vmatprep.mubr.msk.f32.mxu0 %vm476_vm0, %v53_v22  ;;  %8455 = vmatprep.mubr.msk.f32.mxu1 %vm476_vm0, %v407_v30  ;;  %v86_v22 = vld [vmem:[%s14277_s0 + $0x120] sm:$0xff] }
  0x29   :  { %2036 = vmatmul.mubr.f32.vlgmr.msra.gmra.mxu1 %v406_v32  ;;  %v90_v30 = vld [vmem:[%s14277_s0 + $0x140] sm:$0xff]  ;;  %v439_v32 = vld [vmem:[%s14277_s0 + $0xc28] sm:$0xff] }
  0x2a   :  { %8456 = vmatprep.mubr.msk.f32.mxu1 %vm476_vm0, %v409_v34  ;;  %v92_v34 = vld [vmem:[%s14277_s0 + $0x150] sm:$0xff] }
  0x2b   :  { %1151 = vmatmul.mubr.f32.gmra.mxu0 %v52_v23  ;;  %v89_v23 = vld [vmem:[%s14277_s0 + $0x138] sm:$0xff] }
  0x2c   :  { %8279 = vmatprep.mubr.msk.f32.mxu0 %vm476_vm0, %v55_v24  ;;  %v435_v24 = vld [vmem:[%s14277_s0 + $0xc08] sm:$0xff] }
  0x2d   :  { %2041 = vmatmul.mubr.f32.gmra.mxu1 %v408_v36  ;;  %v441_v36 = vld [vmem:[%s14277_s0 + $0xc38] sm:$0xff] }
  0x2e   :  { %8457 = vmatprep.mubr.msk.f32.mxu1 %vm476_vm0, %v411_v38  ;;  %v94_v38 = vld [vmem:[%s14277_s0 + $0x160] sm:$0xff] }
  0x2f   :  { %1156 = vmatmul.mubr.f32.gmra.mxu0 %v54_v25  ;;  %v434_v25 = vld [vmem:[%s14277_s0 + $0xc00] sm:$0xff] }
  0x30   :  { %8280 = vmatprep.mubr.msk.f32.mxu0 %vm476_vm0, %v57_v26  ;;  %v88_v26 = vld [vmem:[%s14277_s0 + $0x130] sm:$0xff] }
  0x31   :  { %2046 = vmatmul.mubr.f32.gmra.mxu1 %v410_v40  ;;  %v443_v40 = vld [vmem:[%s14277_s0 + $0xc48] sm:$0xff] }
  0x32   :  { %8458 = vmatprep.mubr.msk.f32.mxu1 %vm476_vm0, %v413_v42  ;;  %v8484_v42 = vld [vmem:[%s14278_s3 + $0x78] sm:$0xff] }
  0x33   :  { %1161 = vmatmul.mubr.f32.gmra.mxu0 %v56_v27  ;;  %v91_v27 = vld [vmem:[%s14277_s0 + $0x148] sm:$0xff]  ;;  %9541 = vmatprep.subr.mxu1 %v8484_v42 }
  0x34   :  { %8281 = vmatprep.mubr.msk.f32.mxu0 %vm476_vm0, %v59_v28  ;;  %v437_v28 = vld [vmem:[%s14277_s0 + $0xc18] sm:$0xff]  ;;  %9542 = vmatpush3.msra.mxu1 %v8484_v42  ;;  %v144_v42 = vld [vmem:[%s14277_s0 + $0x2f0] sm:$0xff] }
  0x35   :  { %2051 = vmatmul.mubr.f32.gmra.mxu1 %v412_v44  ;;  %v99_v44 = vld [vmem:[%s14277_s0 + $0x188] sm:$0xff] }
  0x36   :  { %8459 = vmatprep.mubr.msk.f32.mxu1 %vm476_vm0, %v415_v46  ;;  %v8483_v46 = vld [vmem:[%s14278_s3 + $0x70] sm:$0xff] }
  0x37   :  { %1166 = vmatmul.mubr.f32.gmra.mxu0 %v58_v29  ;;  %v436_v29 = vld [vmem:[%s14277_s0 + $0xc10] sm:$0xff]  ;;  %9543 = vmatprep.subr.mxu1 %v8483_v46 }
  0x38   :  { %8282 = vmatprep.mubr.msk.f32.mxu0 %vm476_vm0, %v61_v31  ;;  %v93_v31 = vld [vmem:[%s14277_s0 + $0x158] sm:$0xff]  ;;  %9544 = vmatpush3.msra.mxu1 %v8483_v46 }
  0x39   :  { %2056 = vmatmul.mubr.f32.gmra.mxu1 %v414_v48  ;;  %v8482_v48 = vld [vmem:[%s14278_s3 + $0x68] sm:$0xff] }
  0x3a   :  { %8460 = vmatprep.mubr.msk.f32.mxu1 %vm476_vm0, %v417_v50  ;;  %v101_v50 = vld [vmem:[%s14277_s0 + $0x198] sm:$0xff]  ;;  %9545 = vmatprep.subr.mxu1 %v8482_v48 }
  0x3b   :  { %1171 = vmatmul.mubr.f32.gmra.mxu0 %v60_v33  ;;  %v438_v33 = vld [vmem:[%s14277_s0 + $0xc20] sm:$0xff]  ;;  %9546 = vmatpush3.msra.mxu1 %v8482_v48 }
  0x3c   :  { %8283 = vmatprep.mubr.msk.f32.mxu0 %vm476_vm0, %v63_v35  ;;  %v95_v35 = vld [vmem:[%s14277_s0 + $0x168] sm:$0xff] }
  0x3d   :  { %2061 = vmatmul.mubr.f32.gmra.mxu1 %v416_v52  ;;  %v8481_v52 = vld [vmem:[%s14278_s3 + $0x60] sm:$0xff] }
  0x3e   :  { %8461 = vmatprep.mubr.msk.f32.mxu1 %vm476_vm0, %v419_v54  ;;  %9547 = vmatprep.subr.mxu1 %v8481_v52  ;;  %v8480_v54 = vld [vmem:[%s14278_s3 + $0x58] sm:$0xff] }
  0x3f   :  { %1176 = vmatmul.mubr.f32.gmra.mxu0 %v62_v37  ;;  %v440_v37 = vld [vmem:[%s14277_s0 + $0xc30] sm:$0xff]  ;;  %9548 = vmatpush3.msra.mxu1 %v8481_v52 }
  0x40   :  { %8284 = vmatprep.mubr.msk.f32.mxu0 %vm476_vm0, %v65_v39  ;;  %v97_v39 = vld [vmem:[%s14277_s0 + $0x178] sm:$0xff]  ;;  %9549 = vmatprep.subr.mxu1 %v8480_v54 }
  0x41   :  { %2066 = vmatmul.mubr.f32.gmra.mxu1 %v418_v56  ;;  %v103_v56 = vld [vmem:[%s14277_s0 + $0x1a8] sm:$0xff] }
  0x42   :  { %8462 = vmatprep.mubr.msk.f32.mxu1 %vm476_vm0, %v421_v58  ;;  %v8479_v58 = vld [vmem:[%s14278_s3 + $0x50] sm:$0xff]  ;;  %9550 = vmatpush3.msra.mxu1 %v8480_v54 }
  0x43   :  { %1181 = vmatmul.mubr.f32.gmra.mxu0 %v64_v41  ;;  %v442_v41 = vld [vmem:[%s14277_s0 + $0xc40] sm:$0xff]  ;;  %9551 = vmatprep.subr.mxu1 %v8479_v58 }
  0x44   :  { %8285 = vmatprep.mubr.msk.f32.mxu0 %vm476_vm0, %v67_v43  ;;  %v96_v43 = vld [vmem:[%s14277_s0 + $0x170] sm:$0xff]  ;;  %9552 = vmatpush3.msra.mxu1 %v8479_v58 }
  0x45   :  { %2071 = vmatmul.mubr.f32.gmra.mxu1 %v420_v60  ;;  %v102_v60 = vld [vmem:[%s14277_s0 + $0x1a0] sm:$0xff] }
  0x46   :  { %8463 = vmatprep.mubr.msk.f32.mxu1 %vm476_vm0, %v423_v62  ;;  %v105_v62 = vld [vmem:[%s14277_s0 + $0x1b8] sm:$0xff] }
  0x47   :  { %1186 = vmatmul.mubr.f32.gmra.mxu0 %v66_v45  ;;  %v445_v45 = vld [vmem:[%s14277_s0 + $0xc58] sm:$0xff] }
  0x48   :  { %8286 = vmatprep.mubr.msk.f32.mxu0 %vm476_vm0, %v69_v47  ;;  %v444_v47 = vld [vmem:[%s14277_s0 + $0xc50] sm:$0xff] }
  0x49   :  { %2076 = vmatmul.mubr.f32.gmra.mxu1 %v422_v1  ;;  %v104_v1 = vld [vmem:[%s14277_s0 + $0x1b0] sm:$0xff] }
  0x4a   :  { %8464 = vmatprep.mubr.msk.f32.mxu1 %vm476_vm0, %v425_v3  ;;  %v106_v3 = vld [vmem:[%s14277_s0 + $0x1c0] sm:$0xff] }
  0x4b   :  { %1191 = vmatmul.mubr.f32.gmra.mxu0 %v68_v49  ;;  %v98_v49 = vld [vmem:[%s14277_s0 + $0x180] sm:$0xff] }
  0x4c   :  { %8287 = vmatprep.mubr.msk.f32.mxu0 %vm476_vm0, %v71_v51  ;;  %v447_v51 = vld [vmem:[%s14277_s0 + $0xc68] sm:$0xff] }
  0x4d   :  { %2081 = vmatmul.mubr.f32.gmra.mxu1 %v424_v5  ;;  %v108_v5 = vld [vmem:[%s14277_s0 + $0x1d0] sm:$0xff] }
  0x4e   :  { %8465 = vmatprep.mubr.msk.f32.mxu1 %vm476_vm0, %v427_v7  ;;  %v11171_v7 = vld [vmem:[%s14278_s3 + $0x38] sm:$0xff] }
  0x4f   :  { %1196 = vmatmul.mubr.f32.gmra.mxu0 %v70_v53  ;;  %v446_v53 = vld [vmem:[%s14277_s0 + $0xc60] sm:$0xff] }
  0x50   :  { %8288 = vmatprep.mubr.msk.f32.mxu0 %vm476_vm0, %v73_v55  ;;  %v100_v55 = vld [vmem:[%s14277_s0 + $0x190] sm:$0xff] }
  0x51   :  { %2086 = vmatmul.mubr.f32.gmra.mxu1 %v426_v9  ;;  %v113_v9 = vld [vmem:[%s14277_s0 + $0x1f8] sm:$0xff] }
  0x52   :  { %8466 = vmatprep.mubr.msk.f32.mxu1 %vm476_vm0, %v429_v11  ;;  %v115_v11 = vld [vmem:[%s14277_s0 + $0x208] sm:$0xff] }
  0x53   :  { %1201 = vmatmul.mubr.f32.gmra.mxu0 %v72_v57  ;;  %v449_v57 = vld [vmem:[%s14277_s0 + $0xc78] sm:$0xff] }
  0x54   :  { %8289 = vmatprep.mubr.msk.f32.mxu0 %vm476_vm0, %v75_v59  ;;  %v448_v59 = vld [vmem:[%s14277_s0 + $0xc70] sm:$0xff] }
  0x55   :  { %2091 = vmatmul.mubr.f32.gmra.mxu1 %v428_v13  ;;  %v117_v13 = vld [vmem:[%s14277_s0 + $0x218] sm:$0xff] }
  0x56   :  { %8467 = vmatprep.mubr.msk.f32.mxu1 %vm476_vm0, %v431_v15  ;;  %v119_v15 = vld [vmem:[%s14277_s0 + $0x228] sm:$0xff] }
  0x57   :  { %1206 = vmatmul.mubr.f32.gmra.mxu0 %v74_v61  ;;  %v8478_v61 = vld [vmem:[%s14278_s3 + $0x48] sm:$0xff] }
  0x58   :  { %8290 = vmatprep.mubr.msk.f32.mxu0 %vm476_vm0, %v77_v63  ;;  %v8477_v63 = vld [vmem:[%s14278_s3 + $0x40] sm:$0xff]  ;;  %9553 = vmatprep.subr.mxu1 %v8478_v61 }
  0x59   :  { %2096 = vmatmul.mubr.f32.gmra.mxu1 %v430_v17  ;;  %v121_v17 = vld [vmem:[%s14277_s0 + $0x238] sm:$0xff] }
  0x5a   :  { %8468 = vmatprep.mubr.msk.f32.mxu1 %vm476_vm0, %v433_v20  ;;  %9554 = vmatpush3.msra.mxu1 %v8478_v61  ;;  %v122_v20 = vld [vmem:[%s14277_s0 + $0x240] sm:$0xff]  ;;  %v157_v61 = vld [vmem:[%s14277_s0 + $0x358] sm:$0xff] }
  0x5b   :  { %1211 = vmatmul.mubr.f32.gmra.mxu0 %v76_v2  ;;  %v107_v2 = vld [vmem:[%s14277_s0 + $0x1c8] sm:$0xff]  ;;  %9555 = vmatprep.subr.mxu1 %v8477_v63 }
  0x5c   :  { %8291 = vmatprep.mubr.msk.f32.mxu0 %vm476_vm0, %v79_v4  ;;  %9556 = vmatpush3.msra.mxu1 %v8477_v63  ;;  %v109_v4 = vld [vmem:[%s14277_s0 + $0x1d8] sm:$0xff]  ;;  %v156_v63 = vld [vmem:[%s14277_s0 + $0x350] sm:$0xff] }
  0x5d   :  { %2101 = vmatmul.mubr.f32.gmra.mxu1 %v432_v21  ;;  %9569 = vmatprep.subr.mxu1 %v11171_v7  ;;  %v125_v21 = vld [vmem:[%s14277_s0 + $0x258] sm:$0xff] }
  0x5e   :  { %8469 = vmatprep.mubr.msk.f32.mxu1 %vm476_vm0, %v435_v24  ;;  %v126_v24 = vld [vmem:[%s14277_s0 + $0x260] sm:$0xff] }
  0x5f   :  { %1216 = vmatmul.mubr.f32.gmra.mxu0 %v78_v6  ;;  %v111_v6 = vld [vmem:[%s14277_s0 + $0x1e8] sm:$0xff] }
  0x60   :  { %8292 = vmatprep.mubr.msk.f32.mxu0 %vm476_vm0, %v81_v8  ;;  %v110_v8 = vld [vmem:[%s14277_s0 + $0x1e0] sm:$0xff] }
  0x61   :  { %2106 = vmatmul.mubr.f32.gmra.mxu1 %v434_v25  ;;  %v129_v25 = vld [vmem:[%s14277_s0 + $0x278] sm:$0xff] }
  0x62   :  { %8470 = vmatprep.mubr.msk.f32.mxu1 %vm476_vm0, %v437_v28  ;;  %v130_v28 = vld [vmem:[%s14277_s0 + $0x280] sm:$0xff] }
  0x63   :  { %1221 = vmatmul.mubr.f32.gmra.mxu0 %v80_v10  ;;  %v112_v10 = vld [vmem:[%s14277_s0 + $0x1f0] sm:$0xff] }
  0x64   :  { %8293 = vmatprep.mubr.msk.f32.mxu0 %vm476_vm0, %v83_v12  ;;  %v114_v12 = vld [vmem:[%s14277_s0 + $0x200] sm:$0xff] }
  0x65   :  { %2111 = vmatmul.mubr.f32.gmra.mxu1 %v436_v29  ;;  %v133_v29 = vld [vmem:[%s14277_s0 + $0x298] sm:$0xff] }
  0x66   :  { %8471 = vmatprep.mubr.msk.f32.mxu1 %vm476_vm0, %v439_v32  ;;  %v134_v32 = vld [vmem:[%s14277_s0 + $0x2a0] sm:$0xff] }
  0x67   :  { %1226 = vmatmul.mubr.f32.gmra.mxu0 %v82_v14  ;;  %v116_v14 = vld [vmem:[%s14277_s0 + $0x210] sm:$0xff] }
  0x68   :  { %8294 = vmatprep.mubr.msk.f32.mxu0 %vm476_vm0, %v85_v16  ;;  %v118_v16 = vld [vmem:[%s14277_s0 + $0x220] sm:$0xff] }
  0x69   :  { %2116 = vmatmul.mubr.f32.gmra.mxu1 %v438_v33  ;;  %v137_v33 = vld [vmem:[%s14277_s0 + $0x2b8] sm:$0xff] }
  0x6a   :  { %8472 = vmatprep.mubr.msk.f32.mxu1 %vm476_vm0, %v441_v36  ;;  %v138_v36 = vld [vmem:[%s14277_s0 + $0x2c0] sm:$0xff] }
  0x6b   :  { %1231 = vmatmul.mubr.f32.gmra.mxu0 %v84_v18  ;;  %v120_v18 = vld [vmem:[%s14277_s0 + $0x230] sm:$0xff] }
  0x6c   :  { %8295 = vmatprep.mubr.msk.f32.mxu0 %vm476_vm0, %v87_v19  ;;  %v123_v19 = vld [vmem:[%s14277_s0 + $0x248] sm:$0xff] }
  0x6d   :  { %2121 = vmatmul.mubr.f32.gmra.mxu1 %v440_v37  ;;  %v141_v37 = vld [vmem:[%s14277_s0 + $0x2d8] sm:$0xff] }
  0x6e   :  { %8473 = vmatprep.mubr.msk.f32.mxu1 %vm476_vm0, %v443_v40  ;;  %v142_v40 = vld [vmem:[%s14277_s0 + $0x2e0] sm:$0xff] }
  0x6f   :  { %1236 = vmatmul.mubr.f32.gmra.mxu0 %v86_v22  ;;  %v124_v22 = vld [vmem:[%s14277_s0 + $0x250] sm:$0xff] }
  0x70   :  { %8296 = vmatprep.mubr.msk.f32.mxu0 %vm476_vm0, %v89_v23  ;;  %v127_v23 = vld [vmem:[%s14277_s0 + $0x268] sm:$0xff] }
  0x71   :  { %2126 = vmatmul.mubr.f32.gmra.mxu1 %v442_v41  ;;  %v145_v41 = vld [vmem:[%s14277_s0 + $0x2f8] sm:$0xff] }
  0x72   :  { %8474 = vmatprep.mubr.msk.f32.mxu1 %vm476_vm0, %v445_v45  ;;  %v149_v45 = vld [vmem:[%s14277_s0 + $0x318] sm:$0xff] }
  0x73   :  { %1241 = vmatmul.mubr.f32.gmra.mxu0 %v88_v26  ;;  %v128_v26 = vld [vmem:[%s14277_s0 + $0x270] sm:$0xff] }
  0x74   :  { %8297 = vmatprep.mubr.msk.f32.mxu0 %vm476_vm0, %v91_v27  ;;  %v131_v27 = vld [vmem:[%s14277_s0 + $0x288] sm:$0xff] }
  0x75   :  { %2131 = vmatmul.mubr.f32.gmra.mxu1 %v444_v47  ;;  %v148_v47 = vld [vmem:[%s14277_s0 + $0x310] sm:$0xff] }
  0x76   :  { %8475 = vmatprep.mubr.msk.f32.mxu1 %vm476_vm0, %v447_v51  ;;  %v150_v51 = vld [vmem:[%s14277_s0 + $0x320] sm:$0xff] }
  0x77   :  { %1246 = vmatmul.mubr.f32.gmra.mxu0 %v90_v30  ;;  %v132_v30 = vld [vmem:[%s14277_s0 + $0x290] sm:$0xff] }
  0x78   :  { %8298 = vmatprep.mubr.msk.f32.mxu0 %vm476_vm0, %v93_v31  ;;  %v135_v31 = vld [vmem:[%s14277_s0 + $0x2a8] sm:$0xff] }
  0x79   :  { %2136 = vmatmul.mubr.f32.gmra.mxu1 %v446_v53  ;;  %v153_v53 = vld [vmem:[%s14277_s0 + $0x338] sm:$0xff] }
  0x7a   :  { %8476 = vmatprep.mubr.msk.f32.mxu1 %vm476_vm0, %v449_v57  ;;  %v155_v57 = vld [vmem:[%s14277_s0 + $0x348] sm:$0xff] }
  0x7b   :  { %1251 = vmatmul.mubr.f32.gmra.mxu0 %v92_v34  ;;  %v136_v34 = vld [vmem:[%s14277_s0 + $0x2b0] sm:$0xff] }
  0x7c   :  { %8299 = vmatprep.mubr.msk.f32.mxu0 %vm476_vm0, %v95_v35  ;;  %v139_v35 = vld [vmem:[%s14277_s0 + $0x2c8] sm:$0xff] }
  0x7d   :  { %2141 = vmatmul.mubr.f32.gmra.mxu1 %v448_v59  ;;  %v154_v59 = vld [vmem:[%s14277_s0 + $0x340] sm:$0xff] }
  0x7f   :  { %1256 = vmatmul.mubr.f32.gmra.mxu0 %v94_v38  ;;  %v140_v38 = vld [vmem:[%s14277_s0 + $0x2d0] sm:$0xff] }
  0x80   :  { %8300 = vmatprep.mubr.msk.f32.mxu0 %vm476_vm0, %v97_v39  ;;  %v143_v39 = vld [vmem:[%s14277_s0 + $0x2e8] sm:$0xff] }
  0x83   :  { %1261 = vmatmul.mubr.f32.gmra.mxu0 %v96_v43  ;;  %v147_v43 = vld [vmem:[%s14277_s0 + $0x308] sm:$0xff] }
  0x84   :  { %8301 = vmatprep.mubr.msk.f32.mxu0 %vm476_vm0, %v99_v44  ;;  %v146_v44 = vld [vmem:[%s14277_s0 + $0x300] sm:$0xff] }
  0x87   :  { %1266 = vmatmul.mubr.f32.gmra.mxu0 %v98_v49  ;;  %v151_v49 = vld [vmem:[%s14277_s0 + $0x328] sm:$0xff] }
  0x88   :  { %8302 = vmatprep.mubr.msk.f32.mxu0 %vm476_vm0, %v101_v50 }
  0x8b   :  { %1271 = vmatmul.mubr.f32.gmra.mxu0 %v100_v55  ;;  %v152_v55 = vld [vmem:[%s14277_s0 + $0x330] sm:$0xff] }
  0x8c   :  { %8303 = vmatprep.mubr.msk.f32.mxu0 %vm476_vm0, %v103_v56 }
  0x8f   :  { %1276 = vmatmul.mubr.f32.gmra.mxu0 %v102_v60 }
  0x90   :  { %8304 = vmatprep.mubr.msk.f32.mxu0 %vm476_vm0, %v105_v62 }
  0x93   :  { %1281 = vmatmul.mubr.f32.gmra.mxu0 %v104_v1 }
  0x94   :  { %8305 = vmatprep.mubr.msk.f32.mxu0 %vm476_vm0, %v107_v2 }
  0x97   :  { %1286 = vmatmul.mubr.f32.gmra.mxu0 %v106_v3  ;;  %v159_v3 = vld [vmem:[%s14277_s0 + $0x368] sm:$0xff] }
  0x98   :  { %8306 = vmatprep.mubr.msk.f32.mxu0 %vm476_vm0, %v109_v4 }
  0x9b   :  { %1291 = vmatmul.mubr.f32.gmra.mxu0 %v108_v5 }
  0x9c   :  { %8307 = vmatprep.mubr.msk.f32.mxu0 %vm476_vm0, %v111_v6  ;;  %v158_v6 = vld [vmem:[%s14277_s0 + $0x360] sm:$0xff] }
  0x9f   :  { %1296 = vmatmul.mubr.f32.gmra.mxu0 %v110_v8 }
  0xa0   :  { %8308 = vmatprep.mubr.msk.f32.mxu0 %vm476_vm0, %v113_v9 }
  0xa3   :  { %1301 = vmatmul.mubr.f32.gmra.mxu0 %v112_v10  ;;  %v161_v10 = vld [vmem:[%s14277_s0 + $0x378] sm:$0xff] }
  0xa4   :  { %8309 = vmatprep.mubr.msk.f32.mxu0 %vm476_vm0, %v115_v11 }
  0xa7   :  { %1306 = vmatmul.mubr.f32.gmra.mxu0 %v114_v12 }
  0xa8   :  { %8310 = vmatprep.mubr.msk.f32.mxu0 %vm476_vm0, %v117_v13  ;;  %v160_v13 = vld [vmem:[%s14277_s0 + $0x370] sm:$0xff] }
  0xab   :  { %1311 = vmatmul.mubr.f32.gmra.mxu0 %v116_v14 }
  0xac   :  { %8311 = vmatprep.mubr.msk.f32.mxu0 %vm476_vm0, %v119_v15 }
  0xaf   :  { %1316 = vmatmul.mubr.f32.gmra.mxu0 %v118_v16  ;;  %v163_v16 = vld [vmem:[%s14277_s0 + $0x388] sm:$0xff] }
  0xb0   :  { %8312 = vmatprep.mubr.msk.f32.mxu0 %vm476_vm0, %v121_v17 }
  0xb3   :  { %1321 = vmatmul.mubr.f32.gmra.mxu0 %v120_v18 }
  0xb4   :  { %8313 = vmatprep.mubr.msk.f32.mxu0 %vm476_vm0, %v123_v19  ;;  %v162_v19 = vld [vmem:[%s14277_s0 + $0x380] sm:$0xff] }
  0xb7   :  { %1326 = vmatmul.mubr.f32.gmra.mxu0 %v122_v20 }
  0xb8   :  { %8314 = vmatprep.mubr.msk.f32.mxu0 %vm476_vm0, %v125_v21 }
  0xbb   :  { %1331 = vmatmul.mubr.f32.gmra.mxu0 %v124_v22  ;;  %v165_v22 = vld [vmem:[%s14277_s0 + $0x398] sm:$0xff] }
  0xbc   :  { %8315 = vmatprep.mubr.msk.f32.mxu0 %vm476_vm0, %v127_v23 }
  0xbf   :  { %1336 = vmatmul.mubr.f32.gmra.mxu0 %v126_v24  ;;  %v11390_v24 = vld [vmem:[%s14279_s2] ss:$0 sm:$0xff] }
  0xc0   :  { %8316 = vmatprep.mubr.msk.f32.mxu0 %vm476_vm0, %v129_v25 }
  0xc3   :  { %1341 = vmatmul.mubr.f32.gmra.mxu0 %v128_v26 }
  0xc4   :  { %8317 = vmatprep.mubr.msk.f32.mxu0 %vm476_vm0, %v131_v27  ;;  %v164_v27 = vld [vmem:[%s14277_s0 + $0x390] sm:$0xff] }
  0xc7   :  { %1346 = vmatmul.mubr.f32.gmra.mxu0 %v130_v28 }
  0xc8   :  { %8318 = vmatprep.mubr.msk.f32.mxu0 %vm476_vm0, %v133_v29 }
  0xcb   :  { %1351 = vmatmul.mubr.f32.gmra.mxu0 %v132_v30  ;;  %v167_v30 = vld [vmem:[%s14277_s0 + $0x3a8] sm:$0xff] }
  0xcc   :  { %8319 = vmatprep.mubr.msk.f32.mxu0 %vm476_vm0, %v135_v31 }
  0xcf   :  { %1356 = vmatmul.mubr.f32.gmra.mxu0 %v134_v32 }
  0xd0   :  { %8320 = vmatprep.mubr.msk.f32.mxu0 %vm476_vm0, %v137_v33 }
  0xd3   :  { %1361 = vmatmul.mubr.f32.gmra.mxu0 %v136_v34 }
  0xd4   :  { %8321 = vmatprep.mubr.msk.f32.mxu0 %vm476_vm0, %v139_v35  ;;  %v166_v35 = vld [vmem:[%s14277_s0 + $0x3a0] sm:$0xff] }
  0xd7   :  { %1366 = vmatmul.mubr.f32.gmra.mxu0 %v138_v36 }
  0xd8   :  { %8322 = vmatprep.mubr.msk.f32.mxu0 %vm476_vm0, %v141_v37 }
  0xdb   :  { %1371 = vmatmul.mubr.f32.gmra.mxu0 %v140_v38  ;;  %v169_v38 = vld [vmem:[%s14277_s0 + $0x3b8] sm:$0xff] }
  0xdc   :  { %8323 = vmatprep.mubr.msk.f32.mxu0 %vm476_vm0, %v143_v39 }
  0xdf   :  { %1376 = vmatmul.mubr.f32.gmra.mxu0 %v142_v40 }
  0xe0   :  { %8324 = vmatprep.mubr.msk.f32.mxu0 %vm476_vm0, %v145_v41 }
  0xe3   :  { %1381 = vmatmul.mubr.f32.gmra.mxu0 %v144_v42  ;;  %v2352_v42 = vld [vmem:[%s14278_s3 + $0x30] sm:$0xff] }
  0xe4   :  { %8325 = vmatprep.mubr.msk.f32.mxu0 %vm476_vm0, %v147_v43 }
  0xe7   :  { %v11307_v46 = vpop.f32.mrf.mxu0  ;;  %1386 = vmatmul.mubr.f32.gmra.mxu0 %v146_v44  ;;  %v168_v44 = vld [vmem:[%s14277_s0 + $0x3b0] sm:$0xff] }
  0xe8   :  { %8326 = vmatprep.mubr.msk.f32.mxu0 %vm476_vm0, %v149_v45 }
  0xe9   :  { %v1149_v48 = vpop.f32.mrf.mxu0  ;;  %v11349_v1 = vpop.f32.mrf.mxu1 }
  0xea   :  { %v171_v48 = vld [vmem:[%s14277_s0 + $0x3c8] sm:$0xff] }
  0xeb   :  { %v11316_v50 = vpop.f32.mrf.mxu0  ;;  %1391 = vmatmul.mubr.f32.gmra.mxu0 %v148_v47  ;;  %v2039_v4 = vpop.f32.mrf.mxu1 }
  0xec   :  { %8327 = vmatprep.mubr.msk.f32.mxu0 %vm476_vm0, %v151_v49 }
  0xed   :  { %v1154_v52 = vpop.f32.mrf.mxu0  ;;  %v11360_v8 = vpop.f32.mrf.mxu1 }
  0xef   :  { %v11325_v54 = vpop.f32.mrf.mxu0  ;;  %1396 = vmatmul.mubr.f32.gmra.mxu0 %v150_v51  ;;  %v2044_v11 = vpop.f32.mrf.mxu1  ;;  %v2351_v51 = vld [vmem:[%s14278_s3 + $0x28] sm:$0xff] }
  0xf0   :  { %8328 = vmatprep.mubr.msk.f32.mxu0 %vm476_vm0, %v153_v53  ;;  %v175_v11 = vld [vmem:[%s14277_s0 + $0x3e8] sm:$0xff] }
  0xf1   :  { %v1159_v56 = vpop.f32.mrf.mxu0  ;;  %v11371_v14 = vpop.f32.mrf.mxu1 }
  0xf2   :  { %v2350_v56 = vld [vmem:[%s14278_s3 + $0x20] sm:$0xff] }
  0xf3   :  { %v11334_v58 = vpop.f32.mrf.mxu0  ;;  %1401 = vmatmul.mubr.f32.gmra.mxu0 %v152_v55  ;;  %v2049_v17 = vpop.f32.mrf.mxu1 }
  0xf4   :  { %8329 = vmatprep.mubr.msk.f32.mxu0 %vm476_vm0, %v155_v57 }
  0xf5   :  { %v1164_v60 = vpop.f32.mrf.mxu0  ;;  %v11382_v20 = vpop.f32.mrf.mxu1 }
  0xf6   :  { %v173_v60 = vld [vmem:[%s14277_s0 + $0x3d8] sm:$0xff] }
  0xf7   :  { %v11343_v62 = vpop.f32.mrf.mxu0  ;;  %1406 = vmatmul.mubr.f32.gmra.mxu0 %v154_v59  ;;  %v2054_v23 = vpop.f32.mrf.mxu1 }
  0xf8   :  { %8330 = vmatprep.mubr.msk.f32.mxu0 %vm476_vm0, %v157_v61 }
  0xf9   :  { %v1169_v2 = vpop.f32.mrf.mxu0  ;;  %v11397_v28 = vpop.f32.mrf.mxu1 }
  0xfb   :  { %v11354_v5 = vpop.f32.mrf.mxu0  ;;  %1411 = vmatmul.mubr.f32.gmra.mxu0 %v156_v63  ;;  %v2059_v32 = vpop.f32.mrf.mxu1 }
  0xfc   :  { %8331 = vmatprep.mubr.msk.f32.mxu0 %vm476_vm0, %v159_v3  ;;  %v2349_v3 = vld [vmem:[%s14278_s3 + $0x18] sm:$0xff] }
  0xfd   :  { %v1174_v9 = vpop.f32.mrf.mxu0  ;;  %v11408_v36 = vpop.f32.mrf.mxu1 }
  0xff   :  { %v11365_v12 = vpop.f32.mrf.mxu0  ;;  %1416 = vmatmul.mubr.f32.gmra.mxu0 %v158_v6  ;;  %v2064_v40 = vpop.f32.mrf.mxu1  ;;  %v172_v6 = vld [vmem:[%s14277_s0 + $0x3d0] sm:$0xff] }
 0x100   :  { %8332 = vmatprep.mubr.msk.f32.mxu0 %vm476_vm0, %v161_v10 }
 0x101   :  { %v1179_v15 = vpop.f32.mrf.mxu0  ;;  %v11422_v45 = vpop.f32.mrf.mxu1 }
 0x102   :  { %v2348_v15 = vld [vmem:[%s14278_s3 + $0x10] sm:$0xff] }
 0x103   :  { %v11376_v18 = vpop.f32.mrf.mxu0  ;;  %1421 = vmatmul.mubr.f32.gmra.mxu0 %v160_v13  ;;  %v2069_v52 = vpop.f32.mrf.mxu1 }
 0x104   :  { %8333 = vmatprep.mubr.msk.f32.mxu0 %vm476_vm0, %v163_v16 }
 0x105   :  { %v1184_v21 = vpop.f32.mrf.mxu0  ;;  %v11440_v57 = vpop.f32.mrf.mxu1 }
 0x106   :  { %v174_v21 = vld [vmem:[%s14277_s0 + $0x3e0] sm:$0xff] }
 0x107   :  { %v1187_v25 = vpop.f32.mrf.mxu0  ;;  %1426 = vmatmul.mubr.f32.gmra.mxu0 %v162_v19  ;;  %v2074_v63 = vpop.f32.mrf.mxu1 }
 0x108   :  { %v1188_v26 = vadd.f32 %v11390_v24, %v1187_v25  ;;  %8334 = vmatprep.mubr.msk.f32.mxu0 %vm476_vm0, %v165_v22  ;;  %v2347_v22 = vld [vmem:[%s14278_s3 + $0x8] sm:$0xff] }
 0x109   :  { %v1189_v29 = vpop.f32.mrf.mxu0  ;;  %v11454_v9 = vpop.f32.mrf.mxu1 }
 0x10a   :  { %v2154_v31 = vmax.f32 %v1188_v26, 0.0  ;;  %v177_v26 = vld [vmem:[%s14277_s0 + $0x3f8] sm:$0xff] }
 0x10b   :  { %v1192_v33 = vpop.f32.mrf.mxu0  ;;  %1431 = vmatmul.mubr.f32.gmra.mxu0 %v164_v27  ;;  %v2079_v16 = vpop.f32.mrf.mxu1 }
 0x10c   :  { %v1193_v34 = vadd.f32 %v11390_v24, %v1192_v33  ;;  %9557 = vmatprep.mubr.msk.f32.mxu1 %vm2363_vm2, %v2154_v31  ;;  %8335 = vmatprep.mubr.msk.f32.mxu0 %vm476_vm0, %v167_v30  ;;  %v2346_v31 = vld [vmem:[%s14278_s3] sm:$0xff]  ;;  %v176_v33 = vld [vmem:[%s14277_s0 + $0x3f0] sm:$0xff] }
 0x10d   :  { %v1194_v37 = vpop.f32.mrf.mxu0  ;;  %v11471_v23 = vpop.f32.mrf.mxu1 }
 0x10e   :  { %v2155_v39 = vmax.f32 %v1193_v34, 0.0  ;;  %v179_v37 = vld [vmem:[%s14277_s0 + $0x408] sm:$0xff] }
 0x10f   :  { %v1197_v41 = vpop.f32.mrf.mxu0  ;;  %1436 = vmatmul.mubr.f32.gmra.mxu0 %v166_v35  ;;  %v2084_v29 = vpop.f32.mrf.mxu1 }
 0x110   :  { %v1198_v43 = vadd.f32 %v11390_v24, %v1197_v41  ;;  %9558 = vmatmul.mubr.msk.f32.vlgmr.msra.gmra.mxu1 %vm2363_vm2, %v2155_v39  ;;  %8336 = vmatprep.mubr.msk.f32.mxu0 %vm476_vm0, %v169_v38  ;;  %v8508_v39 = vld [vmem:[%s14278_s3 + $0xb8] sm:$0xff]  ;;  %v1148_v41 = vadd.f32 %v11390_v24, %v11307_v46 }
 0x111   :  { %v1199_v47 = vpop.f32.mrf.mxu0  ;;  %9570 = vmatpush3.msra.mxu1 %v11171_v7  ;;  %v170_v7 = vld [vmem:[%s14277_s0 + $0x3c0] sm:$0xff]  ;;  %v11485_v34 = vpop.f32.mrf.mxu1  ;;  %v181_v46 = vld [vmem:[%s14277_s0 + $0x418] sm:$0xff] }
 0x112   :  { %v2156_v49 = vmax.f32 %v1198_v43, 0.0  ;;  %9571 = vmatprep.subr.mxu1 %v2352_v42 }
 0x113   :  { %v1202_v53 = vpop.f32.mrf.mxu0  ;;  %1441 = vmatmul.mubr.f32.gmra.mxu0 %v168_v44  ;;  %9572 = vmatpush3.msra.mxu1 %v2352_v42  ;;  %v2089_v40 = vpop.f32.mrf.mxu1  ;;  %v178_v44 = vld [vmem:[%s14277_s0 + $0x400] sm:$0xff] }
 0x114   :  { %v1203_v55 = vadd.f32 %v11390_v24, %v1202_v53  ;;  %9560 = vmatprep.mubr.msk.f32.mxu1 %vm2363_vm2, %v2156_v49  ;;  %8337 = vmatprep.mubr.msk.f32.mxu0 %vm476_vm0, %v171_v48  ;;  %v1153_v49 = vadd.f32 %v11390_v24, %v11316_v50  ;;  %v2146_v53 = vmax.f32 %v1148_v41, 0.0  ;;  %v183_v50 = vld [vmem:[%s14277_s0 + $0x428] sm:$0xff] }
 0x115   :  { %v1204_v59 = vpop.f32.mrf.mxu0  ;;  %9573 = vmatprep.subr.mxu1 %v2351_v51  ;;  %v11501_v47 = vpop.f32.mrf.mxu1  ;;  %v8502_v41 = vld [vmem:[%s14278_s3 + $0x88] sm:$0xff] }
 0x116   :  { %v2157_v61 = vmax.f32 %v1203_v55, 0.0  ;;  %9574 = vmatpush3.msra.mxu1 %v2351_v51  ;;  %v1158_v55 = vadd.f32 %v11390_v24, %v11325_v54  ;;  %v2147_v54 = vmax.f32 %v1153_v49, 0.0 }
 0x117   :  { %v1207_v2 = vpop.f32.mrf.mxu0  ;;  %1446 = vmatmul.mubr.f32.gmra.mxu0 %v170_v7  ;;  %9575 = vmatprep.subr.mxu1 %v2350_v56  ;;  %v2094_v52 = vpop.f32.mrf.mxu1 }
 0x118   :  { %v1208_v4 = vadd.f32 %v11390_v24, %v1207_v2  ;;  %9561 = vmatmul.mubr.msk.f32.gmra.mxu1 %vm2363_vm2, %v2157_v61  ;;  %8338 = vmatprep.mubr.msk.f32.mxu0 %vm476_vm0, %v173_v60  ;;  %v1163_v61 = vadd.f32 %v11390_v24, %v11334_v58  ;;  %v2148_v2 = vmax.f32 %v1158_v55, 0.0  ;;  %v8501_v52 = vld [vmem:[%s14278_s3 + $0x80] sm:$0xff] }
 0x119   :  { %v1209_v10 = vpop.f32.mrf.mxu0  ;;  %9576 = vmatpush3.msra.mxu1 %v2350_v56  ;;  %v180_v56 = vld [vmem:[%s14277_s0 + $0x410] sm:$0xff]  ;;  %v11515_v59 = vpop.f32.mrf.mxu1 }
 0x11a   :  { %v2158_v13 = vmax.f32 %v1208_v4, 0.0  ;;  %9577 = vmatprep.subr.mxu1 %v2349_v3  ;;  %v182_v10 = vld [vmem:[%s14277_s0 + $0x420] sm:$0xff] }
 0x11b   :  { %v1212_v17 = vpop.f32.mrf.mxu0  ;;  %1451 = vmatmul.mubr.f32.gmra.mxu0 %v172_v6  ;;  %9578 = vmatpush3.msra.mxu1 %v2349_v3  ;;  %v2099_v63 = vpop.f32.mrf.mxu1  ;;  %v1168_v3 = vadd.f32 %v11390_v24, %v11343_v62  ;;  %v8507_v6 = vld [vmem:[%s14278_s3 + $0xb0] sm:$0xff]  ;;  %v8506_v62 = vld [vmem:[%s14278_s3 + $0xa8] sm:$0xff] }
 0x11c   :  { %v1213_v19 = vadd.f32 %v11390_v24, %v1212_v17  ;;  %9563 = vmatprep.mubr.msk.f32.mxu1 %vm2363_vm2, %v2158_v13  ;;  %8339 = vmatprep.mubr.msk.f32.mxu0 %vm476_vm0, %v175_v11  ;;  %v2149_v13 = vmax.f32 %v1163_v61, 0.0 }
 0x11d   :  { %v1214_v25 = vpop.f32.mrf.mxu0  ;;  %9579 = vmatprep.subr.mxu1 %v2348_v15  ;;  %v11533_v58 = vpop.f32.mrf.mxu1  ;;  %v2150_v17 = vmax.f32 %v1168_v3, 0.0 }
 0x11e   :  { %v2159_v27 = vmax.f32 %v1213_v19, 0.0  ;;  %9580 = vmatpush3.msra.mxu1 %v2348_v15  ;;  %v1173_v15 = vadd.f32 %v11390_v24, %v11354_v5  ;;  %v1178_v19 = vadd.f32 %v11390_v24, %v11365_v12  ;;  %v8505_v25 = vld [vmem:[%s14278_s3 + $0xa0] sm:$0xff]  ;;  %v184_v5 = vld [vmem:[%s14277_s0 + $0x430] sm:$0xff] }
 0x11f   :  { %v1217_v30 = vpop.f32.mrf.mxu0  ;;  %1456 = vmatmul.mubr.f32.gmra.mxu0 %v174_v21  ;;  %9581 = vmatprep.subr.mxu1 %v2347_v22  ;;  %v2104_v16 = vpop.f32.mrf.mxu1 }
 0x120   :  { %v1218_v32 = vadd.f32 %v11390_v24, %v1217_v30  ;;  %9564 = vmatmul.mubr.msk.f32.gmra.mxu1 %vm2363_vm2, %v2159_v27  ;;  %8340 = vmatprep.mubr.msk.f32.mxu0 %vm476_vm0, %v177_v26  ;;  %v8504_v27 = vld [vmem:[%s14278_s3 + $0x98] sm:$0xff]  ;;  %v2151_v29 = vmax.f32 %v1173_v15, 0.0  ;;  %v1183_v30 = vadd.f32 %v11390_v24, %v11376_v18  ;;  %v186_v18 = vld [vmem:[%s14277_s0 + $0x440] sm:$0xff] }
 0x121   :  { %v1219_v35 = vpop.f32.mrf.mxu0  ;;  %9582 = vmatpush3.msra.mxu1 %v2347_v22  ;;  %v185_v22 = vld [vmem:[%s14277_s0 + $0x438] sm:$0xff]  ;;  %v11553_v26 = vpop.f32.mrf.mxu1 }
 0x122   :  { %v2160_v38 = vmax.f32 %v1218_v32, 0.0  ;;  %9583 = vmatprep.subr.mxu1 %v2346_v31  ;;  %v2152_v32 = vmax.f32 %v1178_v19, 0.0 }
 0x123   :  { %v1222_v42 = vpop.f32.mrf.mxu0  ;;  %1461 = vmatmul.mubr.f32.gmra.mxu0 %v176_v33  ;;  %9584 = vmatpush3.msra.mxu1 %v2346_v31  ;;  %v2109_v31 = vpop.f32.mrf.mxu1 }
 0x124   :  { %v1223_v43 = vadd.f32 %v11390_v24, %v1222_v42  ;;  %9566 = vmatprep.mubr.msk.f32.mxu1 %vm2363_vm2, %v2160_v38  ;;  %8341 = vmatprep.mubr.msk.f32.mxu0 %vm476_vm0, %v179_v37  ;;  %v187_v37 = vld [vmem:[%s14277_s0 + $0x448] sm:$0xff]  ;;  %v8503_v38 = vld [vmem:[%s14278_s3 + $0x90] sm:$0xff]  ;;  %v2153_v42 = vmax.f32 %v1183_v30, 0.0  ;;  %v8521_v31 = vld [vmem:[%s14278_s3 + $0xe0] sm:$0xff] }
 0x125   :  { %v1224_v48 = vpop.f32.mrf.mxu0  ;;  %9597 = vmatprep.subr.mxu1 %v8508_v39 }
 0x126   :  { %v2161_v51 = vmax.f32 %v1223_v43, 0.0 }
 0x127   :  { %v1227_v7 = vpop.f32.mrf.mxu0  ;;  %1466 = vmatmul.mubr.f32.gmra.mxu0 %v178_v44 }
 0x128   :  { %9567 = vmatmul.mubr.msk.f32.gmra.mxu1 %vm2363_vm2, %v2161_v51  ;;  %8342 = vmatprep.mubr.msk.f32.mxu0 %vm476_vm0, %v181_v46  ;;  %v1228_v33 = vadd.f32 %v11390_v24, %v1227_v7  ;;  %v189_v51 = vld [vmem:[%s14277_s0 + $0x458] sm:$0xff] }
 0x129   :  { %v1229_v60 = vpop.f32.mrf.mxu0  ;;  %9585 = vmatprep.mubr.msk.f32.mxu1 %vm2363_vm2, %v2146_v53  ;;  %v188_v53 = vld [vmem:[%s14277_s0 + $0x450] sm:$0xff] }
 0x12a   :  { %v2162_v48 = vmax.f32 %v1228_v33, 0.0 }
 0x12b   :  { %v1232_v4 = vpop.f32.mrf.mxu0  ;;  %1471 = vmatmul.mubr.f32.gmra.mxu0 %v180_v56  ;;  %v191_v56 = vld [vmem:[%s14277_s0 + $0x468] sm:$0xff] }
 0x12c   :  { %9586 = vmatmul.mubr.msk.f32.vlgmr.msra.gmra.mxu1 %vm2363_vm2, %v2147_v54  ;;  %8343 = vmatprep.mubr.msk.f32.mxu0 %vm476_vm0, %v183_v50  ;;  %v1233_v43 = vadd.f32 %v11390_v24, %v1232_v4  ;;  %v8524_v54 = vld [vmem:[%s14278_s3 + $0xf8] sm:$0xff]  ;;  %v190_v4 = vld [vmem:[%s14277_s0 + $0x460] sm:$0xff] }
 0x12d   :  { %v1234_v11 = vpop.f32.mrf.mxu0  ;;  %9588 = vmatprep.mubr.msk.f32.mxu1 %vm2363_vm2, %v2148_v2  ;;  %9598 = vmatpush3.msra.mxu1 %v8508_v39  ;;  %v11573_v39 = vpop.f32.mrf.mxu1 }
 0x12e   :  { %9599 = vmatprep.subr.mxu1 %v8507_v6  ;;  %v2163_v60 = vmax.f32 %v1233_v43, 0.0 }
 0x12f   :  { %v1237_v21 = vpop.f32.mrf.mxu0  ;;  %1476 = vmatmul.mubr.f32.gmra.mxu0 %v182_v10  ;;  %9600 = vmatpush3.msra.mxu1 %v8507_v6  ;;  %v2114_v44 = vpop.f32.mrf.mxu1  ;;  %v8523_v6 = vld [vmem:[%s14278_s3 + $0xf0] sm:$0xff] }
 0x130   :  { %9589 = vmatmul.mubr.msk.f32.gmra.mxu1 %vm2363_vm2, %v2149_v13  ;;  %9601 = vmatprep.subr.mxu1 %v8506_v62  ;;  %v1238_v46 = vadd.f32 %v11390_v24, %v1237_v21  ;;  %v8522_v21 = vld [vmem:[%s14278_s3 + $0xe8] sm:$0xff] }
 0x131   :  { %v1239_v12 = vpop.f32.mrf.mxu0  ;;  %9591 = vmatprep.mubr.msk.f32.mxu1 %vm2363_vm2, %v2150_v17  ;;  %9602 = vmatpush3.msra.mxu1 %v8506_v62  ;;  %v11592_v55 = vpop.f32.mrf.mxu1  ;;  %v193_v62 = vld [vmem:[%s14277_s0 + $0x478] sm:$0xff] }
 0x132   :  { %8344 = vmatprep.mubr.msk.f32.mxu0 %vm476_vm0, %v185_v22  ;;  %9603 = vmatprep.subr.mxu1 %v8505_v25  ;;  %v2164_v63 = vmax.f32 %v1238_v46, 0.0 }
 0x133   :  { %v1242_v35 = vpop.f32.mrf.mxu0  ;;  %1481 = vmatmul.mubr.f32.gmra.mxu0 %v184_v5  ;;  %9604 = vmatpush3.msra.mxu1 %v8505_v25  ;;  %v2119_v61 = vpop.f32.mrf.mxu1  ;;  %v192_v25 = vld [vmem:[%s14277_s0 + $0x470] sm:$0xff] }
 0x134   :  { %9592 = vmatmul.mubr.msk.f32.gmra.mxu1 %vm2363_vm2, %v2151_v29  ;;  %9605 = vmatprep.subr.mxu1 %v8504_v27  ;;  %v1243_v50 = vadd.f32 %v11390_v24, %v1242_v35 }
 0x135   :  { %v1244_v40 = vpop.f32.mrf.mxu0  ;;  %9594 = vmatprep.mubr.msk.f32.mxu1 %vm2363_vm2, %v2152_v32  ;;  %9606 = vmatpush3.msra.mxu1 %v8504_v27  ;;  %v11612_v10 = vpop.f32.mrf.mxu1  ;;  %v195_v27 = vld [vmem:[%s14277_s0 + $0x488] sm:$0xff] }
 0x136   :  { %8345 = vmatprep.mubr.msk.f32.mxu0 %vm476_vm0, %v187_v37  ;;  %9607 = vmatprep.subr.mxu1 %v8503_v38  ;;  %v2165_v13 = vmax.f32 %v1243_v50, 0.0  ;;  %v194_v37 = vld [vmem:[%s14277_s0 + $0x480] sm:$0xff] }
 0x137   :  { %v1247_v49 = vpop.f32.mrf.mxu0  ;;  %1486 = vmatmul.mubr.f32.gmra.mxu0 %v186_v18  ;;  %9608 = vmatpush3.msra.mxu1 %v8503_v38  ;;  %v2124_v16 = vpop.f32.mrf.mxu1  ;;  %v8520_v38 = vld [vmem:[%s14278_s3 + $0xd8] sm:$0xff] }
 0x138   :  { %9595 = vmatmul.mubr.msk.f32.gmra.mxu1 %vm2363_vm2, %v2153_v42  ;;  %9609 = vmatprep.subr.mxu1 %v8502_v41  ;;  %v1248_v2 = vadd.f32 %v11390_v24, %v1247_v49  ;;  %v196_v49 = vld [vmem:[%s14277_s0 + $0x490] sm:$0xff] }
 0x139   :  { %v1249_v7 = vpop.f32.mrf.mxu0  ;;  %9610 = vmatpush3.msra.mxu1 %v8502_v41  ;;  %9613 = vmatprep.mubr.msk.f32.mxu1 %vm2363_vm2, %v2162_v48  ;;  %v11628_v5 = vpop.f32.mrf.mxu1  ;;  %v197_v41 = vld [vmem:[%s14277_s0 + $0x498] sm:$0xff]  ;;  %v8519_v48 = vld [vmem:[%s14278_s3 + $0xd0] sm:$0xff] }
 0x13a   :  { %8346 = vmatprep.mubr.msk.f32.mxu0 %vm476_vm0, %v189_v51  ;;  %9611 = vmatprep.subr.mxu1 %v8501_v52  ;;  %v2166_v17 = vmax.f32 %v1248_v2, 0.0  ;;  %v200_v16 = vld [vmem:[%s14277_s0 + $0x4b0] sm:$0xff] }
 0x13b   :  { %v1252_v3 = vpop.f32.mrf.mxu0  ;;  %1491 = vmatmul.mubr.f32.gmra.mxu0 %v188_v53  ;;  %9612 = vmatpush3.msra.mxu1 %v8501_v52  ;;  %v2129_v32 = vpop.f32.mrf.mxu1  ;;  %v8518_v53 = vld [vmem:[%s14278_s3 + $0xc8] sm:$0xff] }
 0x13c   :  { %9614 = vmatmul.mubr.msk.f32.vlgmr.msra.gmra.mxu1 %vm2363_vm2, %v2163_v60  ;;  %8347 = vmatprep.mubr.msk.f32.mxu0 %vm476_vm0, %v191_v56  ;;  %v1253_v15 = vadd.f32 %v11390_v24, %v1252_v3  ;;  %v199_v56 = vld [vmem:[%s14277_s0 + $0x4a8] sm:$0xff]  ;;  %v201_v3 = vld [vmem:[%s14277_s0 + $0x4b8] sm:$0xff] }
 0x13d   :  { %v1254_v11 = vpop.f32.mrf.mxu0  ;;  %9616 = vmatprep.mubr.msk.f32.mxu1 %vm2363_vm2, %v2164_v63  ;;  %9625 = vmatprep.subr.mxu1 %v8524_v54  ;;  %v11646_v18 = vpop.f32.mrf.mxu1  ;;  %v198_v63 = vld [vmem:[%s14277_s0 + $0x4a0] sm:$0xff] }
 0x13e   :  { %9626 = vmatpush3.msra.mxu1 %v8524_v54  ;;  %v2167_v29 = vmax.f32 %v1253_v15, 0.0  ;;  %v8517_v54 = vld [vmem:[%s14278_s3 + $0xc0] sm:$0xff]  ;;  %v8540_v11 = vld [vmem:[%s14278_s3 + $0x138] sm:$0xff] }
 0x13f   :  { %v1257_v19 = vpop.f32.mrf.mxu0  ;;  %1496 = vmatmul.mubr.f32.gmra.mxu0 %v190_v4  ;;  %9627 = vmatprep.subr.mxu1 %v8523_v6  ;;  %v2134_v43 = vpop.f32.mrf.mxu1 }
 0x140   :  { %v1258_v22 = vadd.f32 %v11390_v24, %v1257_v19  ;;  %9617 = vmatmul.mubr.msk.f32.gmra.mxu1 %vm2363_vm2, %v2165_v13  ;;  %8348 = vmatprep.mubr.msk.f32.mxu0 %vm476_vm0, %v193_v62 }
 0x141   :  { %v1259_v12 = vpop.f32.mrf.mxu0  ;;  %9619 = vmatprep.mubr.msk.f32.mxu1 %vm2363_vm2, %v2166_v17  ;;  %9628 = vmatpush3.msra.mxu1 %v8523_v6  ;;  %v11661_v51 = vpop.f32.mrf.mxu1  ;;  %v8539_v17 = vld [vmem:[%s14278_s3 + $0x130] sm:$0xff] }
 0x142   :  { %v2168_v30 = vmax.f32 %v1258_v22, 0.0  ;;  %9629 = vmatprep.subr.mxu1 %v8522_v21  ;;  %v8538_v12 = vld [vmem:[%s14278_s3 + $0x128] sm:$0xff] }
 0x143   :  { %v1262_v33 = vpop.f32.mrf.mxu0  ;;  %1501 = vmatmul.mubr.f32.gmra.mxu0 %v192_v25  ;;  %9630 = vmatpush3.msra.mxu1 %v8522_v21  ;;  %v2139_v60 = vpop.f32.mrf.mxu1  ;;  %v203_v21 = vld [vmem:[%s14277_s0 + $0x4c8] sm:$0xff] }
 0x144   :  { %v1263_v35 = vadd.f32 %v11390_v24, %v1262_v33  ;;  %9620 = vmatmul.mubr.msk.f32.gmra.mxu1 %vm2363_vm2, %v2167_v29  ;;  %8349 = vmatprep.mubr.msk.f32.mxu0 %vm476_vm0, %v195_v27  ;;  %v202_v29 = vld [vmem:[%s14277_s0 + $0x4c0] sm:$0xff] }
 0x145   :  { %v1264_v40 = vpop.f32.mrf.mxu0  ;;  %9622 = vmatprep.mubr.msk.f32.mxu1 %vm2363_vm2, %v2168_v30  ;;  %9631 = vmatprep.subr.mxu1 %v8521_v31  ;;  %v11681_v4 = vpop.f32.mrf.mxu1  ;;  %v8537_v33 = vld [vmem:[%s14278_s3 + $0x120] sm:$0xff] }
 0x146   :  { %v2169_v42 = vmax.f32 %v1263_v35, 0.0  ;;  %9632 = vmatpush3.msra.mxu1 %v8521_v31  ;;  %v205_v31 = vld [vmem:[%s14277_s0 + $0x4d8] sm:$0xff] }
 0x147   :  { %v1267_v44 = vpop.f32.mrf.mxu0  ;;  %1506 = vmatmul.mubr.f32.gmra.mxu0 %v194_v37  ;;  %9633 = vmatprep.subr.mxu1 %v8520_v38  ;;  %v2144_v13 = vpop.f32.mrf.mxu1  ;;  %v8536_v40 = vld [vmem:[%s14278_s3 + $0x118] sm:$0xff] }
 0x148   :  { %v1268_v46 = vadd.f32 %v11390_v24, %v1267_v44  ;;  %9623 = vmatmul.mubr.msk.f32.gmra.mxu1 %vm2363_vm2, %v2169_v42  ;;  %8350 = vmatprep.mubr.msk.f32.mxu0 %vm476_vm0, %v197_v41  ;;  %v207_v42 = vld [vmem:[%s14277_s0 + $0x4e8] sm:$0xff]  ;;  %v210_v13 = vld [vmem:[%s14277_s0 + $0x500] sm:$0xff] }
 0x149   :  { %v1269_v52 = vpop.f32.mrf.mxu0  ;;  %9634 = vmatpush3.msra.mxu1 %v8520_v38  ;;  %v204_v38 = vld [vmem:[%s14277_s0 + $0x4d0] sm:$0xff] }
 0x14a   :  { %v2170_v7 = vmax.f32 %v1268_v46, 0.0  ;;  %9635 = vmatprep.subr.mxu1 %v8519_v48 }
 0x14b   :  { %v1272_v50 = vpop.f32.mrf.mxu0  ;;  %1511 = vmatmul.mubr.f32.gmra.mxu0 %v196_v49  ;;  %9636 = vmatpush3.msra.mxu1 %v8519_v48  ;;  %v8535_v48 = vld [vmem:[%s14278_s3 + $0x110] sm:$0xff]  ;;  %v206_v49 = vld [vmem:[%s14277_s0 + $0x4e0] sm:$0xff] }
 0x14c   :  { %v1273_v61 = vadd.f32 %v11390_v24, %v1272_v50  ;;  %9637 = vmatprep.subr.mxu1 %v8518_v53  ;;  %9641 = vmatprep.mubr.msk.f32.mxu1 %vm2363_vm2, %v2170_v7 }
 0x14d   :  { %v1274_v2 = vpop.f32.mrf.mxu0  ;;  %9638 = vmatpush3.msra.mxu1 %v8518_v53  ;;  %8351 = vmatprep.mubr.msk.f32.mxu0 %vm476_vm0, %v199_v56  ;;  %v209_v53 = vld [vmem:[%s14277_s0 + $0x4f8] sm:$0xff]  ;;  %v8534_v56 = vld [vmem:[%s14278_s3 + $0x108] sm:$0xff] }
 0x14e   :  { %v2171_v6 = vmax.f32 %v1273_v61, 0.0  ;;  %9639 = vmatprep.subr.mxu1 %v8517_v54  ;;  %v8533_v61 = vld [vmem:[%s14278_s3 + $0x100] sm:$0xff]  ;;  %v211_v2 = vld [vmem:[%s14277_s0 + $0x508] sm:$0xff] }
 0x14f   :  { %v1277_v62 = vpop.f32.mrf.mxu0  ;;  %1516 = vmatmul.mubr.f32.gmra.mxu0 %v198_v63  ;;  %9640 = vmatpush3.msra.mxu1 %v8517_v54  ;;  %v208_v54 = vld [vmem:[%s14277_s0 + $0x4f0] sm:$0xff] }
 0x150   :  { %v1278_v15 = vadd.f32 %v11390_v24, %v1277_v62  ;;  %9642 = vmatmul.mubr.msk.f32.vlgmr.msra.gmra.mxu1 %vm2363_vm2, %v2171_v6  ;;  %8352 = vmatprep.mubr.msk.f32.mxu0 %vm476_vm0, %v201_v3 }
 0x151   :  { %v1279_v19 = vpop.f32.mrf.mxu0  ;;  %9653 = vmatprep.subr.mxu1 %v8540_v11 }
 0x152   :  { %v2172_v22 = vmax.f32 %v1278_v15, 0.0  ;;  %9654 = vmatpush3.msra.mxu1 %v8540_v11  ;;  %v8556_v11 = vld [vmem:[%s14278_s3 + $0x178] sm:$0xff] }
 0x153   :  { %v1282_v25 = vpop.f32.mrf.mxu0  ;;  %1521 = vmatmul.mubr.f32.gmra.mxu0 %v200_v16  ;;  %9655 = vmatprep.subr.mxu1 %v8539_v17  ;;  %v213_v16 = vld [vmem:[%s14277_s0 + $0x518] sm:$0xff] }
 0x154   :  { %v1283_v27 = vadd.f32 %v11390_v24, %v1282_v25  ;;  %9644 = vmatprep.mubr.msk.f32.mxu1 %vm2363_vm2, %v2172_v22  ;;  %8353 = vmatprep.mubr.msk.f32.mxu0 %vm476_vm0, %v203_v21  ;;  %v212_v22 = vld [vmem:[%s14277_s0 + $0x510] sm:$0xff] }
 0x155   :  { %v1284_v30 = vpop.f32.mrf.mxu0  ;;  %9656 = vmatpush3.msra.mxu1 %v8539_v17 }
 0x156   :  { %v2173_v32 = vmax.f32 %v1283_v27, 0.0  ;;  %9657 = vmatprep.subr.mxu1 %v8538_v12 }
 0x157   :  { %v1287_v35 = vpop.f32.mrf.mxu0  ;;  %1526 = vmatmul.mubr.f32.gmra.mxu0 %v202_v29  ;;  %9658 = vmatpush3.msra.mxu1 %v8538_v12  ;;  %v215_v12 = vld [vmem:[%s14277_s0 + $0x528] sm:$0xff] }
 0x158   :  { %v1288_v37 = vadd.f32 %v11390_v24, %v1287_v35  ;;  %9645 = vmatmul.mubr.msk.f32.gmra.mxu1 %vm2363_vm2, %v2173_v32  ;;  %8354 = vmatprep.mubr.msk.f32.mxu0 %vm476_vm0, %v205_v31  ;;  %v214_v31 = vld [vmem:[%s14277_s0 + $0x520] sm:$0xff] }
 0x159   :  { %v1289_v41 = vpop.f32.mrf.mxu0  ;;  %9659 = vmatprep.subr.mxu1 %v8537_v33 }
 0x15a   :  { %v2174_v43 = vmax.f32 %v1288_v37, 0.0  ;;  %9660 = vmatpush3.msra.mxu1 %v8537_v33  ;;  %v217_v33 = vld [vmem:[%s14277_s0 + $0x538] sm:$0xff]  ;;  %v216_v41 = vld [vmem:[%s14277_s0 + $0x530] sm:$0xff] }
 0x15b   :  { %v1292_v44 = vpop.f32.mrf.mxu0  ;;  %1531 = vmatmul.mubr.f32.gmra.mxu0 %v204_v38  ;;  %9661 = vmatprep.subr.mxu1 %v8536_v40  ;;  %v8555_v38 = vld [vmem:[%s14278_s3 + $0x170] sm:$0xff] }
 0x15c   :  { %v1293_v46 = vadd.f32 %v11390_v24, %v1292_v44  ;;  %9647 = vmatprep.mubr.msk.f32.mxu1 %vm2363_vm2, %v2174_v43  ;;  %8355 = vmatprep.mubr.msk.f32.mxu0 %vm476_vm0, %v207_v42  ;;  %v219_v43 = vld [vmem:[%s14277_s0 + $0x548] sm:$0xff] }
 0x15d   :  { %v1294_v52 = vpop.f32.mrf.mxu0  ;;  %9662 = vmatpush3.msra.mxu1 %v8536_v40 }
 0x15e   :  { %v2175_v7 = vmax.f32 %v1293_v46, 0.0  ;;  %9663 = vmatprep.subr.mxu1 %v8535_v48  ;;  %v218_v52 = vld [vmem:[%s14277_s0 + $0x540] sm:$0xff] }
 0x15f   :  { %v1297_v60 = vpop.f32.mrf.mxu0  ;;  %1536 = vmatmul.mubr.f32.gmra.mxu0 %v206_v49  ;;  %9664 = vmatpush3.msra.mxu1 %v8535_v48  ;;  %v8554_v48 = vld [vmem:[%s14278_s3 + $0x168] sm:$0xff] }
 0x160   :  { %v1298_v50 = vadd.f32 %v11390_v24, %v1297_v60  ;;  %9648 = vmatmul.mubr.msk.f32.gmra.mxu1 %vm2363_vm2, %v2175_v7  ;;  %8356 = vmatprep.mubr.msk.f32.mxu0 %vm476_vm0, %v209_v53  ;;  %v8553_v53 = vld [vmem:[%s14278_s3 + $0x160] sm:$0xff] }
 0x161   :  { %v1299_v63 = vpop.f32.mrf.mxu0  ;;  %9665 = vmatprep.subr.mxu1 %v8534_v56 }
 0x162   :  { %v2176_v3 = vmax.f32 %v1298_v50, 0.0  ;;  %9666 = vmatpush3.msra.mxu1 %v8534_v56  ;;  %v221_v56 = vld [vmem:[%s14277_s0 + $0x558] sm:$0xff]  ;;  %v220_v63 = vld [vmem:[%s14277_s0 + $0x550] sm:$0xff] }
 0x163   :  { %v1302_v6 = vpop.f32.mrf.mxu0  ;;  %1541 = vmatmul.mubr.f32.gmra.mxu0 %v208_v54  ;;  %9667 = vmatprep.subr.mxu1 %v8533_v61  ;;  %v8552_v54 = vld [vmem:[%s14278_s3 + $0x158] sm:$0xff] }
 0x164   :  { %v1303_v62 = vadd.f32 %v11390_v24, %v1302_v6  ;;  %9650 = vmatprep.mubr.msk.f32.mxu1 %vm2363_vm2, %v2176_v3  ;;  %8357 = vmatprep.mubr.msk.f32.mxu0 %vm476_vm0, %v211_v2  ;;  %v223_v3 = vld [vmem:[%s14277_s0 + $0x568] sm:$0xff] }
 0x165   :  { %v1304_v15 = vpop.f32.mrf.mxu0  ;;  %9668 = vmatpush3.msra.mxu1 %v8533_v61 }
 0x166   :  { %v2177_v17 = vmax.f32 %v1303_v62, 0.0  ;;  %9681 = vmatprep.subr.mxu1 %v8556_v11  ;;  %v222_v15 = vld [vmem:[%s14277_s0 + $0x560] sm:$0xff] }
 0x167   :  { %v1307_v19 = vpop.f32.mrf.mxu0  ;;  %1546 = vmatmul.mubr.f32.gmra.mxu0 %v210_v13 }
 0x168   :  { %v1308_v21 = vadd.f32 %v11390_v24, %v1307_v19  ;;  %9651 = vmatmul.mubr.msk.f32.gmra.mxu1 %vm2363_vm2, %v2177_v17  ;;  %8358 = vmatprep.mubr.msk.f32.mxu0 %vm476_vm0, %v213_v16  ;;  %v8550_v16 = vld [vmem:[%s14278_s3 + $0x148] sm:$0xff]  ;;  %v225_v19 = vld [vmem:[%s14277_s0 + $0x578] sm:$0xff] }
 0x169   :  { %v1309_v25 = vpop.f32.mrf.mxu0 }
 0x16a   :  { %v2178_v27 = vmax.f32 %v1308_v21, 0.0  ;;  %v8549_v25 = vld [vmem:[%s14278_s3 + $0x140] sm:$0xff] }
 0x16b   :  { %v1312_v29 = vpop.f32.mrf.mxu0  ;;  %1551 = vmatmul.mubr.f32.gmra.mxu0 %v212_v22 }
 0x16c   :  { %v1313_v30 = vadd.f32 %v11390_v24, %v1312_v29  ;;  %9669 = vmatprep.mubr.msk.f32.mxu1 %vm2363_vm2, %v2178_v27  ;;  %8359 = vmatprep.mubr.msk.f32.mxu0 %vm476_vm0, %v215_v12  ;;  %v224_v27 = vld [vmem:[%s14277_s0 + $0x570] sm:$0xff] }
 0x16d   :  { %v1314_v32 = vpop.f32.mrf.mxu0 }
 0x16e   :  { %v2179_v35 = vmax.f32 %v1313_v30, 0.0  ;;  %v227_v30 = vld [vmem:[%s14277_s0 + $0x588] sm:$0xff]  ;;  %v8572_v32 = vld [vmem:[%s14278_s3 + $0x1b8] sm:$0xff] }
 0x16f   :  { %v1317_v37 = vpop.f32.mrf.mxu0  ;;  %1556 = vmatmul.mubr.f32.gmra.mxu0 %v214_v31 }
 0x170   :  { %v1318_v40 = vadd.f32 %v11390_v24, %v1317_v37  ;;  %9670 = vmatmul.mubr.msk.f32.vlgmr.msra.gmra.mxu1 %vm2363_vm2, %v2179_v35  ;;  %8360 = vmatprep.mubr.msk.f32.mxu0 %vm476_vm0, %v217_v33  ;;  %v226_v37 = vld [vmem:[%s14277_s0 + $0x580] sm:$0xff] }
 0x171   :  { %v1319_v42 = vpop.f32.mrf.mxu0  ;;  %9682 = vmatpush3.msra.mxu1 %v8556_v11  ;;  %v8551_v11 = vld [vmem:[%s14278_s3 + $0x150] sm:$0xff] }
 0x172   :  { %v2180_v44 = vmax.f32 %v1318_v40, 0.0  ;;  %9683 = vmatprep.subr.mxu1 %v8555_v38  ;;  %v229_v40 = vld [vmem:[%s14277_s0 + $0x598] sm:$0xff] }
 0x173   :  { %v1322_v46 = vpop.f32.mrf.mxu0  ;;  %1561 = vmatmul.mubr.f32.gmra.mxu0 %v216_v41  ;;  %9684 = vmatpush3.msra.mxu1 %v8555_v38 }
 0x174   :  { %v1323_v49 = vadd.f32 %v11390_v24, %v1322_v46  ;;  %9672 = vmatprep.mubr.msk.f32.mxu1 %vm2363_vm2, %v2180_v44  ;;  %8361 = vmatprep.mubr.msk.f32.mxu0 %vm476_vm0, %v219_v43  ;;  %v228_v44 = vld [vmem:[%s14277_s0 + $0x590] sm:$0xff]  ;;  %v231_v46 = vld [vmem:[%s14277_s0 + $0x5a8] sm:$0xff] }
 0x175   :  { %v1324_v7 = vpop.f32.mrf.mxu0  ;;  %9685 = vmatprep.subr.mxu1 %v8554_v48 }
 0x176   :  { %v2181_v60 = vmax.f32 %v1323_v49, 0.0  ;;  %9686 = vmatpush3.msra.mxu1 %v8554_v48  ;;  %v230_v7 = vld [vmem:[%s14277_s0 + $0x5a0] sm:$0xff] }
 0x177   :  { %v1327_v50 = vpop.f32.mrf.mxu0  ;;  %1566 = vmatmul.mubr.f32.gmra.mxu0 %v218_v52  ;;  %9687 = vmatprep.subr.mxu1 %v8553_v53 }
 0x178   :  { %v1328_v61 = vadd.f32 %v11390_v24, %v1327_v50  ;;  %9673 = vmatmul.mubr.msk.f32.gmra.mxu1 %vm2363_vm2, %v2181_v60  ;;  %8362 = vmatprep.mubr.msk.f32.mxu0 %vm476_vm0, %v221_v56  ;;  %v233_v60 = vld [vmem:[%s14277_s0 + $0x5b8] sm:$0xff] }
 0x179   :  { %v1329_v2 = vpop.f32.mrf.mxu0  ;;  %9688 = vmatpush3.msra.mxu1 %v8553_v53 }
 0x17a   :  { %v2182_v6 = vmax.f32 %v1328_v61, 0.0  ;;  %9689 = vmatprep.subr.mxu1 %v8552_v54  ;;  %v8571_v61 = vld [vmem:[%s14278_s3 + $0x1b0] sm:$0xff] }
 0x17b   :  { %v1332_v62 = vpop.f32.mrf.mxu0  ;;  %1571 = vmatmul.mubr.f32.gmra.mxu0 %v220_v63  ;;  %9690 = vmatpush3.msra.mxu1 %v8552_v54  ;;  %v232_v2 = vld [vmem:[%s14277_s0 + $0x5b0] sm:$0xff] }
 0x17c   :  { %v1333_v13 = vadd.f32 %v11390_v24, %v1332_v62  ;;  %9675 = vmatprep.mubr.msk.f32.mxu1 %vm2363_vm2, %v2182_v6  ;;  %8363 = vmatprep.mubr.msk.f32.mxu0 %vm476_vm0, %v223_v3  ;;  %v235_v6 = vld [vmem:[%s14277_s0 + $0x5c8] sm:$0xff] }
 0x17d   :  { %v1334_v17 = vpop.f32.mrf.mxu0  ;;  %9691 = vmatprep.subr.mxu1 %v8551_v11  ;;  %v8570_v62 = vld [vmem:[%s14278_s3 + $0x1a8] sm:$0xff] }
 0x17e   :  { %v2183_v21 = vmax.f32 %v1333_v13, 0.0  ;;  %9692 = vmatpush3.msra.mxu1 %v8551_v11  ;;  %v8569_v17 = vld [vmem:[%s14278_s3 + $0x1a0] sm:$0xff] }
 0x17f   :  { %v1337_v22 = vpop.f32.mrf.mxu0  ;;  %1576 = vmatmul.mubr.f32.gmra.mxu0 %v222_v15  ;;  %9693 = vmatprep.subr.mxu1 %v8550_v16 }
 0x180   :  { %v1338_v12 = vadd.f32 %v11390_v24, %v1337_v22  ;;  %9676 = vmatmul.mubr.msk.f32.gmra.mxu1 %vm2363_vm2, %v2183_v21  ;;  %8364 = vmatprep.mubr.msk.f32.mxu0 %vm476_vm0, %v225_v19  ;;  %v237_v21 = vld [vmem:[%s14277_s0 + $0x5d8] sm:$0xff] }
 0x181   :  { %v1339_v29 = vpop.f32.mrf.mxu0  ;;  %9694 = vmatpush3.msra.mxu1 %v8550_v16  ;;  %v234_v16 = vld [vmem:[%s14277_s0 + $0x5c0] sm:$0xff] }
 0x182   :  { %v2184_v31 = vmax.f32 %v1338_v12, 0.0  ;;  %9695 = vmatprep.subr.mxu1 %v8549_v25  ;;  %v11911_v12 = vld [vmem:[%s14279_s2] ss:$0 sm:$0xff]  ;;  %v236_v29 = vld [vmem:[%s14277_s0 + $0x5d0] sm:$0xff] }
 0x183   :  { %v1342_v33 = vpop.f32.mrf.mxu0  ;;  %1581 = vmatmul.mubr.f32.gmra.mxu0 %v224_v27  ;;  %9696 = vmatpush3.msra.mxu1 %v8549_v25  ;;  %v8568_v25 = vld [vmem:[%s14278_s3 + $0x198] sm:$0xff] }
 0x184   :  { %v1343_v35 = vadd.f32 %v11390_v24, %v1342_v33  ;;  %9678 = vmatprep.mubr.msk.f32.mxu1 %vm2363_vm2, %v2184_v31  ;;  %8365 = vmatprep.mubr.msk.f32.mxu0 %vm476_vm0, %v227_v30  ;;  %v239_v31 = vld [vmem:[%s14277_s0 + $0x5e8] sm:$0xff]  ;;  %v8567_v33 = vld [vmem:[%s14278_s3 + $0x190] sm:$0xff] }
 0x185   :  { %v1344_v38 = vpop.f32.mrf.mxu0  ;;  %9709 = vmatprep.subr.mxu1 %v8572_v32 }
 0x186   :  { %v2185_v41 = vmax.f32 %v1343_v35, 0.0  ;;  %v238_v38 = vld [vmem:[%s14277_s0 + $0x5e0] sm:$0xff] }
 0x187   :  { %v1347_v42 = vpop.f32.mrf.mxu0  ;;  %1586 = vmatmul.mubr.f32.gmra.mxu0 %v226_v37 }
 0x188   :  { %v1348_v43 = vadd.f32 %v11390_v24, %v1347_v42  ;;  %9679 = vmatmul.mubr.msk.f32.gmra.mxu1 %vm2363_vm2, %v2185_v41  ;;  %8366 = vmatprep.mubr.msk.f32.mxu0 %vm476_vm0, %v229_v40  ;;  %v8566_v40 = vld [vmem:[%s14278_s3 + $0x188] sm:$0xff]  ;;  %v241_v42 = vld [vmem:[%s14277_s0 + $0x5f8] sm:$0xff] }
 0x189   :  { %v1349_v48 = vpop.f32.mrf.mxu0 }
 0x18a   :  { %v2186_v49 = vmax.f32 %v1348_v43, 0.0  ;;  %v8565_v48 = vld [vmem:[%s14278_s3 + $0x180] sm:$0xff] }
 0x18b   :  { %v1352_v52 = vpop.f32.mrf.mxu0  ;;  %1591 = vmatmul.mubr.f32.gmra.mxu0 %v228_v44 }
 0x18c   :  { %v1353_v53 = vadd.f32 %v11390_v24, %v1352_v52  ;;  %9697 = vmatprep.mubr.msk.f32.mxu1 %vm2363_vm2, %v2186_v49  ;;  %8367 = vmatprep.mubr.msk.f32.mxu0 %vm476_vm0, %v231_v46  ;;  %v240_v49 = vld [vmem:[%s14277_s0 + $0x5f0] sm:$0xff] }
 0x18d   :  { %v1354_v56 = vpop.f32.mrf.mxu0 }
 0x18e   :  { %v2187_v50 = vmax.f32 %v1353_v53, 0.0  ;;  %v243_v53 = vld [vmem:[%s14277_s0 + $0x608] sm:$0xff]  ;;  %v8588_v56 = vld [vmem:[%s14278_s3 + $0x1f8] sm:$0xff] }
 0x18f   :  { %v1357_v54 = vpop.f32.mrf.mxu0  ;;  %1596 = vmatmul.mubr.f32.gmra.mxu0 %v230_v7 }
 0x190   :  { %v1358_v63 = vadd.f32 %v11390_v24, %v1357_v54  ;;  %9698 = vmatmul.mubr.msk.f32.vlgmr.msra.gmra.mxu1 %vm2363_vm2, %v2187_v50  ;;  %8368 = vmatprep.mubr.msk.f32.mxu0 %vm476_vm0, %v233_v60  ;;  %v242_v54 = vld [vmem:[%s14277_s0 + $0x600] sm:$0xff] }
 0x191   :  { %v1359_v3 = vpop.f32.mrf.mxu0  ;;  %9710 = vmatpush3.msra.mxu1 %v8572_v32 }
 0x192   :  { %v2188_v11 = vmax.f32 %v1358_v63, 0.0  ;;  %9711 = vmatprep.subr.mxu1 %v8571_v61  ;;  %v245_v63 = vld [vmem:[%s14277_s0 + $0x618] sm:$0xff] }
 0x193   :  { %v1362_v13 = vpop.f32.mrf.mxu0  ;;  %1601 = vmatmul.mubr.f32.gmra.mxu0 %v232_v2  ;;  %9712 = vmatpush3.msra.mxu1 %v8571_v61 }
 0x194   :  { %v1363_v15 = vadd.f32 %v11390_v24, %v1362_v13  ;;  %9700 = vmatprep.mubr.msk.f32.mxu1 %vm2363_vm2, %v2188_v11  ;;  %8369 = vmatprep.mubr.msk.f32.mxu0 %vm476_vm0, %v235_v6  ;;  %v244_v11 = vld [vmem:[%s14277_s0 + $0x610] sm:$0xff]  ;;  %v247_v13 = vld [vmem:[%s14277_s0 + $0x628] sm:$0xff] }
 0x195   :  { %v1364_v19 = vpop.f32.mrf.mxu0  ;;  %9713 = vmatprep.subr.mxu1 %v8570_v62 }
 0x196   :  { %v2189_v22 = vmax.f32 %v1363_v15, 0.0  ;;  %9714 = vmatpush3.msra.mxu1 %v8570_v62  ;;  %v246_v19 = vld [vmem:[%s14277_s0 + $0x620] sm:$0xff] }
 0x197   :  { %v1367_v24 = vpop.f32.mrf.mxu0  ;;  %1606 = vmatmul.mubr.f32.gmra.mxu0 %v234_v16  ;;  %9715 = vmatprep.subr.mxu1 %v8569_v17 }
 0x198   :  { %v1368_v27 = vadd.f32 %v11911_v12, %v1367_v24  ;;  %9701 = vmatmul.mubr.msk.f32.gmra.mxu1 %vm2363_vm2, %v2189_v22  ;;  %8370 = vmatprep.mubr.msk.f32.mxu0 %vm476_vm0, %v237_v21  ;;  %v249_v22 = vld [vmem:[%s14277_s0 + $0x638] sm:$0xff] }
 0x199   :  { %v1369_v30 = vpop.f32.mrf.mxu0  ;;  %9716 = vmatpush3.msra.mxu1 %v8569_v17 }
 0x19a   :  { %v2190_v32 = vmax.f32 %v1368_v27, 0.0  ;;  %9717 = vmatprep.subr.mxu1 %v8568_v25  ;;  %v8587_v27 = vld [vmem:[%s14278_s3 + $0x1f0] sm:$0xff] }
 0x19b   :  { %v1372_v35 = vpop.f32.mrf.mxu0  ;;  %1611 = vmatmul.mubr.f32.gmra.mxu0 %v236_v29  ;;  %9718 = vmatpush3.msra.mxu1 %v8568_v25  ;;  %v248_v30 = vld [vmem:[%s14277_s0 + $0x630] sm:$0xff] }
 0x19c   :  { %v1373_v37 = vadd.f32 %v11911_v12, %v1372_v35  ;;  %9703 = vmatprep.mubr.msk.f32.mxu1 %vm2363_vm2, %v2190_v32  ;;  %8371 = vmatprep.mubr.msk.f32.mxu0 %vm476_vm0, %v239_v31  ;;  %v251_v32 = vld [vmem:[%s14277_s0 + $0x648] sm:$0xff] }
 0x19d   :  { %v1374_v41 = vpop.f32.mrf.mxu0  ;;  %9719 = vmatprep.subr.mxu1 %v8567_v33  ;;  %v8586_v35 = vld [vmem:[%s14278_s3 + $0x1e8] sm:$0xff] }
 0x19e   :  { %v2191_v43 = vmax.f32 %v1373_v37, 0.0  ;;  %9720 = vmatpush3.msra.mxu1 %v8567_v33  ;;  %v8585_v41 = vld [vmem:[%s14278_s3 + $0x1e0] sm:$0xff] }
 0x19f   :  { %v1377_v44 = vpop.f32.mrf.mxu0  ;;  %1616 = vmatmul.mubr.f32.gmra.mxu0 %v238_v38  ;;  %9721 = vmatprep.subr.mxu1 %v8566_v40 }
 0x1a0   :  { %v1378_v46 = vadd.f32 %v11911_v12, %v1377_v44  ;;  %9704 = vmatmul.mubr.msk.f32.gmra.mxu1 %vm2363_vm2, %v2191_v43  ;;  %8372 = vmatprep.mubr.msk.f32.mxu0 %vm476_vm0, %v241_v42  ;;  %v253_v43 = vld [vmem:[%s14277_s0 + $0x658] sm:$0xff] }
 0x1a1   :  { %v1379_v52 = vpop.f32.mrf.mxu0  ;;  %9722 = vmatpush3.msra.mxu1 %v8566_v40  ;;  %v250_v40 = vld [vmem:[%s14277_s0 + $0x640] sm:$0xff] }
 0x1a2   :  { %v2192_v7 = vmax.f32 %v1378_v46, 0.0  ;;  %9723 = vmatprep.subr.mxu1 %v8565_v48  ;;  %v8584_v46 = vld [vmem:[%s14278_s3 + $0x1d8] sm:$0xff]  ;;  %v252_v52 = vld [vmem:[%s14277_s0 + $0x650] sm:$0xff] }
 0x1a3   :  { %v1382_v60 = vpop.f32.mrf.mxu0  ;;  %1621 = vmatmul.mubr.f32.gmra.mxu0 %v240_v49  ;;  %9724 = vmatpush3.msra.mxu1 %v8565_v48 }
 0x1a4   :  { %v1383_v50 = vadd.f32 %v11911_v12, %v1382_v60  ;;  %9706 = vmatprep.mubr.msk.f32.mxu1 %vm2363_vm2, %v2192_v7  ;;  %8373 = vmatprep.mubr.msk.f32.mxu0 %vm476_vm0, %v243_v53  ;;  %v255_v7 = vld [vmem:[%s14277_s0 + $0x668] sm:$0xff]  ;;  %v8583_v60 = vld [vmem:[%s14278_s3 + $0x1d0] sm:$0xff] }
 0x1a5   :  { %v1384_v61 = vpop.f32.mrf.mxu0  ;;  %9737 = vmatprep.subr.mxu1 %v8588_v56 }
 0x1a6   :  { %v2193_v2 = vmax.f32 %v1383_v50, 0.0  ;;  %v254_v61 = vld [vmem:[%s14277_s0 + $0x660] sm:$0xff] }
 0x1a7   :  { %v1387_v3 = vpop.f32.mrf.mxu0  ;;  %1626 = vmatmul.mubr.f32.gmra.mxu0 %v242_v54 }
 0x1a8   :  { %v1388_v6 = vadd.f32 %v11911_v12, %v1387_v3  ;;  %9707 = vmatmul.mubr.msk.f32.gmra.mxu1 %vm2363_vm2, %v2193_v2  ;;  %8374 = vmatprep.mubr.msk.f32.mxu0 %vm476_vm0, %v245_v63  ;;  %v8582_v63 = vld [vmem:[%s14278_s3 + $0x1c8] sm:$0xff]  ;;  %v257_v3 = vld [vmem:[%s14277_s0 + $0x678] sm:$0xff] }
 0x1a9   :  { %v1389_v62 = vpop.f32.mrf.mxu0 }
 0x1aa   :  { %v2194_v15 = vmax.f32 %v1388_v6, 0.0  ;;  %v8581_v62 = vld [vmem:[%s14278_s3 + $0x1c0] sm:$0xff] }
 0x1ab   :  { %v1392_v16 = vpop.f32.mrf.mxu0  ;;  %1631 = vmatmul.mubr.f32.gmra.mxu0 %v244_v11 }
 0x1ac   :  { %v1393_v17 = vadd.f32 %v11911_v12, %v1392_v16  ;;  %9725 = vmatprep.mubr.msk.f32.mxu1 %vm2363_vm2, %v2194_v15  ;;  %8375 = vmatprep.mubr.msk.f32.mxu0 %vm476_vm0, %v247_v13  ;;  %v256_v15 = vld [vmem:[%s14277_s0 + $0x670] sm:$0xff] }
 0x1ad   :  { %v1394_v21 = vpop.f32.mrf.mxu0 }
 0x1ae   :  { %v2195_v24 = vmax.f32 %v1393_v17, 0.0  ;;  %v259_v17 = vld [vmem:[%s14277_s0 + $0x688] sm:$0xff]  ;;  %v8604_v21 = vld [vmem:[%s14278_s3 + $0x238] sm:$0xff] }
 0x1af   :  { %v1397_v25 = vpop.f32.mrf.mxu0  ;;  %1636 = vmatmul.mubr.f32.gmra.mxu0 %v246_v19 }
 0x1b0   :  { %v1398_v29 = vadd.f32 %v11911_v12, %v1397_v25  ;;  %9726 = vmatmul.mubr.msk.f32.vlgmr.msra.gmra.mxu1 %vm2363_vm2, %v2195_v24  ;;  %8376 = vmatprep.mubr.msk.f32.mxu0 %vm476_vm0, %v249_v22  ;;  %v258_v25 = vld [vmem:[%s14277_s0 + $0x680] sm:$0xff] }
 0x1b1   :  { %v1399_v31 = vpop.f32.mrf.mxu0  ;;  %9738 = vmatpush3.msra.mxu1 %v8588_v56 }
 0x1b2   :  { %v2196_v33 = vmax.f32 %v1398_v29, 0.0  ;;  %9739 = vmatprep.subr.mxu1 %v8587_v27  ;;  %v261_v29 = vld [vmem:[%s14277_s0 + $0x698] sm:$0xff] }
 0x1b3   :  { %v1402_v37 = vpop.f32.mrf.mxu0  ;;  %1641 = vmatmul.mubr.f32.gmra.mxu0 %v248_v30  ;;  %9740 = vmatpush3.msra.mxu1 %v8587_v27 }
 0x1b4   :  { %v1403_v38 = vadd.f32 %v11911_v12, %v1402_v37  ;;  %9728 = vmatprep.mubr.msk.f32.mxu1 %vm2363_vm2, %v2196_v33  ;;  %8377 = vmatprep.mubr.msk.f32.mxu0 %vm476_vm0, %v251_v32  ;;  %v260_v33 = vld [vmem:[%s14277_s0 + $0x690] sm:$0xff]  ;;  %v263_v37 = vld [vmem:[%s14277_s0 + $0x6a8] sm:$0xff] }
 0x1b5   :  { %v1404_v42 = vpop.f32.mrf.mxu0  ;;  %9741 = vmatprep.subr.mxu1 %v8586_v35 }
 0x1b6   :  { %v2197_v44 = vmax.f32 %v1403_v38, 0.0  ;;  %9742 = vmatpush3.msra.mxu1 %v8586_v35  ;;  %v262_v42 = vld [vmem:[%s14277_s0 + $0x6a0] sm:$0xff] }
 0x1b7   :  { %v1407_v48 = vpop.f32.mrf.mxu0  ;;  %1646 = vmatmul.mubr.f32.gmra.mxu0 %v250_v40  ;;  %9743 = vmatprep.subr.mxu1 %v8585_v41 }
 0x1b8   :  { %v1408_v49 = vadd.f32 %v11911_v12, %v1407_v48  ;;  %9729 = vmatmul.mubr.msk.f32.gmra.mxu1 %vm2363_vm2, %v2197_v44  ;;  %8378 = vmatprep.mubr.msk.f32.mxu0 %vm476_vm0, %v253_v43  ;;  %v265_v44 = vld [vmem:[%s14277_s0 + $0x6b8] sm:$0xff] }
 0x1b9   :  { %v1409_v53 = vpop.f32.mrf.mxu0  ;;  %9744 = vmatpush3.msra.mxu1 %v8585_v41 }
 0x1ba   :  { %v2198_v56 = vmax.f32 %v1408_v49, 0.0  ;;  %9745 = vmatprep.subr.mxu1 %v8584_v46  ;;  %v8603_v49 = vld [vmem:[%s14278_s3 + $0x230] sm:$0xff] }
 0x1bb   :  { %v1412_v50 = vpop.f32.mrf.mxu0  ;;  %1651 = vmatmul.mubr.f32.gmra.mxu0 %v252_v52  ;;  %9746 = vmatpush3.msra.mxu1 %v8584_v46  ;;  %v264_v53 = vld [vmem:[%s14277_s0 + $0x6b0] sm:$0xff] }
 0x1bc   :  { %v1413_v54 = vadd.f32 %v11911_v12, %v1412_v50  ;;  %9731 = vmatprep.mubr.msk.f32.mxu1 %vm2363_vm2, %v2198_v56  ;;  %8379 = vmatprep.mubr.msk.f32.mxu0 %vm476_vm0, %v255_v7  ;;  %v267_v56 = vld [vmem:[%s14277_s0 + $0x6c8] sm:$0xff] }
 0x1bd   :  { %v1414_v2 = vpop.f32.mrf.mxu0  ;;  %9747 = vmatprep.subr.mxu1 %v8583_v60  ;;  %v8602_v50 = vld [vmem:[%s14278_s3 + $0x228] sm:$0xff] }
 0x1be   :  { %v2199_v6 = vmax.f32 %v1413_v54, 0.0  ;;  %9748 = vmatpush3.msra.mxu1 %v8583_v60  ;;  %v8601_v2 = vld [vmem:[%s14278_s3 + $0x220] sm:$0xff] }
 0x1bf   :  { %v1417_v11 = vpop.f32.mrf.mxu0  ;;  %1656 = vmatmul.mubr.f32.gmra.mxu0 %v254_v61  ;;  %9749 = vmatprep.subr.mxu1 %v8582_v63 }
 0x1c0   :  { %v1418_v13 = vadd.f32 %v11911_v12, %v1417_v11  ;;  %9732 = vmatmul.mubr.msk.f32.gmra.mxu1 %vm2363_vm2, %v2199_v6  ;;  %8380 = vmatprep.mubr.msk.f32.mxu0 %vm476_vm0, %v257_v3  ;;  %v269_v6 = vld [vmem:[%s14277_s0 + $0x6d8] sm:$0xff] }
 0x1c1   :  { %v1419_v16 = vpop.f32.mrf.mxu0  ;;  %9750 = vmatpush3.msra.mxu1 %v8582_v63  ;;  %v266_v63 = vld [vmem:[%s14277_s0 + $0x6c0] sm:$0xff] }
 0x1c2   :  { %v2200_v19 = vmax.f32 %v1418_v13, 0.0  ;;  %9751 = vmatprep.subr.mxu1 %v8581_v62 }
 0x1c3   :  { %v1422_v22 = vpop.f32.mrf.mxu0  ;;  %1661 = vmatmul.mubr.f32.gmra.mxu0 %v256_v15  ;;  %9752 = vmatpush3.msra.mxu1 %v8581_v62  ;;  %v8600_v15 = vld [vmem:[%s14278_s3 + $0x218] sm:$0xff] }
 0x1c4   :  { %v1423_v24 = vadd.f32 %v11911_v12, %v1422_v22  ;;  %9734 = vmatprep.mubr.msk.f32.mxu1 %vm2363_vm2, %v2200_v19  ;;  %8381 = vmatprep.mubr.msk.f32.mxu0 %vm476_vm0, %v259_v17  ;;  %v268_v17 = vld [vmem:[%s14277_s0 + $0x6d0] sm:$0xff] }
 0x1c5   :  { %v1424_v27 = vpop.f32.mrf.mxu0  ;;  %9765 = vmatprep.subr.mxu1 %v8604_v21 }
 0x1c6   :  { %v2201_v30 = vmax.f32 %v1423_v24, 0.0 }
 0x1c7   :  { %v1427_v31 = vpop.f32.mrf.mxu0  ;;  %1666 = vmatmul.mubr.f32.gmra.mxu0 %v258_v25  ;;  %v8599_v25 = vld [vmem:[%s14278_s3 + $0x210] sm:$0xff] }
 0x1c8   :  { %v1428_v32 = vadd.f32 %v11911_v12, %v1427_v31  ;;  %9735 = vmatmul.mubr.msk.f32.gmra.mxu1 %vm2363_vm2, %v2201_v30  ;;  %8382 = vmatprep.mubr.msk.f32.mxu0 %vm476_vm0, %v261_v29  ;;  %v270_v31 = vld [vmem:[%s14277_s0 + $0x6e0] sm:$0xff] }
 0x1c9   :  { %v1429_v35 = vpop.f32.mrf.mxu0 }
 0x1ca   :  { %v2202_v38 = vmax.f32 %v1428_v32, 0.0  ;;  %v8598_v32 = vld [vmem:[%s14278_s3 + $0x208] sm:$0xff]  ;;  %v273_v35 = vld [vmem:[%s14277_s0 + $0x6f8] sm:$0xff] }
 0x1cb   :  { %v1432_v40 = vpop.f32.mrf.mxu0  ;;  %1671 = vmatmul.mubr.f32.gmra.mxu0 %v260_v33 }
 0x1cc   :  { %v1433_v41 = vadd.f32 %v11911_v12, %v1432_v40  ;;  %9753 = vmatprep.mubr.msk.f32.mxu1 %vm2363_vm2, %v2202_v38  ;;  %8383 = vmatprep.mubr.msk.f32.mxu0 %vm476_vm0, %v263_v37  ;;  %v8597_v40 = vld [vmem:[%s14278_s3 + $0x200] sm:$0xff] }
 0x1cd   :  { %v1434_v43 = vpop.f32.mrf.mxu0 }
 0x1ce   :  { %v2203_v48 = vmax.f32 %v1433_v41, 0.0  ;;  %v272_v43 = vld [vmem:[%s14277_s0 + $0x6f0] sm:$0xff] }
 0x1cf   :  { %v1437_v46 = vpop.f32.mrf.mxu0  ;;  %1676 = vmatmul.mubr.f32.gmra.mxu0 %v262_v42 }
 0x1d0   :  { %v1438_v52 = vadd.f32 %v11911_v12, %v1437_v46  ;;  %9754 = vmatmul.mubr.msk.f32.vlgmr.msra.gmra.mxu1 %vm2363_vm2, %v2203_v48  ;;  %8384 = vmatprep.mubr.msk.f32.mxu0 %vm476_vm0, %v265_v44  ;;  %v12102_v11 = vpop.f32.mrf.mxu1  ;;  %v275_v48 = vld [vmem:[%s14277_s0 + $0x708] sm:$0xff] }
 0x1d1   :  { %v1439_v7 = vpop.f32.mrf.mxu0  ;;  %9766 = vmatpush3.msra.mxu1 %v8604_v21  ;;  %v271_v21 = vld [vmem:[%s14277_s0 + $0x6e8] sm:$0xff] }
 0x1d2   :  { %v2204_v60 = vmax.f32 %v1438_v52, 0.0  ;;  %9767 = vmatprep.subr.mxu1 %v8603_v49  ;;  %v12116_v22 = vpop.f32.mrf.mxu1  ;;  %v8620_v52 = vld [vmem:[%s14278_s3 + $0x278] sm:$0xff] }
 0x1d3   :  { %v1442_v54 = vpop.f32.mrf.mxu0  ;;  %1681 = vmatmul.mubr.f32.gmra.mxu0 %v264_v53  ;;  %9768 = vmatpush3.msra.mxu1 %v8603_v49  ;;  %14294 = vst [vmem:[#allocation2_spill] sm:$0xff] %v12116_v22 }
 0x1d4   :  { %v1443_v61 = vadd.f32 %v11911_v12, %v1442_v54  ;;  %9756 = vmatprep.mubr.msk.f32.mxu1 %vm2363_vm2, %v2204_v60  ;;  %8385 = vmatprep.mubr.msk.f32.mxu0 %vm476_vm0, %v267_v56  ;;  %v274_v56 = vld [vmem:[%s14277_s0 + $0x700] sm:$0xff] }
 0x1d5   :  { %v1444_v3 = vpop.f32.mrf.mxu0  ;;  %9769 = vmatprep.subr.mxu1 %v8602_v50 }
 0x1d6   :  { %v2205_v62 = vmax.f32 %v1443_v61, 0.0  ;;  %9770 = vmatpush3.msra.mxu1 %v8602_v50  ;;  %v277_v50 = vld [vmem:[%s14277_s0 + $0x718] sm:$0xff] }
 0x1d7   :  { %v1447_v13 = vpop.f32.mrf.mxu0  ;;  %1686 = vmatmul.mubr.f32.gmra.mxu0 %v266_v63  ;;  %9771 = vmatprep.subr.mxu1 %v8601_v2 }
 0x1d8   :  { %v1448_v16 = vadd.f32 %v11911_v12, %v1447_v13  ;;  %9757 = vmatmul.mubr.msk.f32.gmra.mxu1 %vm2363_vm2, %v2205_v62  ;;  %8386 = vmatprep.mubr.msk.f32.mxu0 %vm476_vm0, %v269_v6  ;;  %v12121_v29 = vpop.f32.mrf.mxu1  ;;  %v276_v6 = vld [vmem:[%s14277_s0 + $0x710] sm:$0xff]  ;;  %v279_v13 = vld [vmem:[%s14277_s0 + $0x728] sm:$0xff] }
 0x1d9   :  { %v1449_v19 = vpop.f32.mrf.mxu0  ;;  %9772 = vmatpush3.msra.mxu1 %v8601_v2 }
 0x1da   :  { %v2206_v24 = vmax.f32 %v1448_v16, 0.0  ;;  %9773 = vmatprep.subr.mxu1 %v8600_v15  ;;  %v12138_v41 = vpop.f32.mrf.mxu1 }
 0x1db   :  { %v1452_v27 = vpop.f32.mrf.mxu0  ;;  %1691 = vmatmul.mubr.f32.gmra.mxu0 %v268_v17  ;;  %9774 = vmatpush3.msra.mxu1 %v8600_v15 }
 0x1dc   :  { %v1453_v30 = vadd.f32 %v11911_v12, %v1452_v27  ;;  %9759 = vmatprep.mubr.msk.f32.mxu1 %vm2363_vm2, %v2206_v24  ;;  %8387 = vmatprep.mubr.msk.f32.mxu0 %vm476_vm0, %v271_v21  ;;  %v278_v24 = vld [vmem:[%s14277_s0 + $0x720] sm:$0xff] }
 0x1dd   :  { %v1454_v33 = vpop.f32.mrf.mxu0  ;;  %9775 = vmatprep.subr.mxu1 %v8599_v25 }
 0x1de   :  { %v2207_v37 = vmax.f32 %v1453_v30, 0.0  ;;  %9776 = vmatpush3.msra.mxu1 %v8599_v25  ;;  %v281_v30 = vld [vmem:[%s14277_s0 + $0x738] sm:$0xff] }
 0x1df   :  { %v1457_v38 = vpop.f32.mrf.mxu0  ;;  %1696 = vmatmul.mubr.f32.gmra.mxu0 %v270_v31  ;;  %9777 = vmatprep.subr.mxu1 %v8598_v32 }
 0x1e0   :  { %v1458_v42 = vadd.f32 %v11911_v12, %v1457_v38  ;;  %9760 = vmatmul.mubr.msk.f32.gmra.mxu1 %vm2363_vm2, %v2207_v37  ;;  %8388 = vmatprep.mubr.msk.f32.mxu0 %vm476_vm0, %v273_v35  ;;  %v12149_v49 = vpop.f32.mrf.mxu1  ;;  %v8619_v35 = vld [vmem:[%s14278_s3 + $0x270] sm:$0xff] }
 0x1e1   :  { %v1459_v44 = vpop.f32.mrf.mxu0  ;;  %9778 = vmatpush3.msra.mxu1 %v8598_v32 }
 0x1e2   :  { %v2208_v46 = vmax.f32 %v1458_v42, 0.0  ;;  %9779 = vmatprep.subr.mxu1 %v8597_v40  ;;  %v12163_v54 = vpop.f32.mrf.mxu1 }
 0x1e3   :  { %v1462_v53 = vpop.f32.mrf.mxu0  ;;  %1701 = vmatmul.mubr.f32.gmra.mxu0 %v272_v43  ;;  %9780 = vmatpush3.msra.mxu1 %v8597_v40  ;;  %v283_v43 = vld [vmem:[%s14277_s0 + $0x748] sm:$0xff] }
 0x1e4   :  { %v1463_v7 = vadd.f32 %v11911_v12, %v1462_v53  ;;  %9762 = vmatprep.mubr.msk.f32.mxu1 %vm2363_vm2, %v2208_v46  ;;  %8389 = vmatprep.mubr.msk.f32.mxu0 %vm476_vm0, %v275_v48  ;;  %v8618_v46 = vld [vmem:[%s14278_s3 + $0x268] sm:$0xff] }
 0x1e5   :  { %v1464_v60 = vpop.f32.mrf.mxu0  ;;  %9793 = vmatprep.subr.mxu1 %v8620_v52 }
 0x1e6   :  { %v2209_v61 = vmax.f32 %v1463_v7, 0.0 }
 0x1e7   :  { %v1467_v63 = vpop.f32.mrf.mxu0  ;;  %1706 = vmatmul.mubr.f32.gmra.mxu0 %v274_v56  ;;  %v8617_v56 = vld [vmem:[%s14278_s3 + $0x260] sm:$0xff] }
 0x1e8   :  { %v1468_v2 = vadd.f32 %v11911_v12, %v1467_v63  ;;  %v9568_v3 = vpop.f32.mrf.mxu1  ;;  %9763 = vmatmul.mubr.msk.f32.gmra.mxu1 %vm2363_vm2, %v2209_v61  ;;  %8390 = vmatprep.mubr.msk.f32.mxu0 %vm476_vm0, %v277_v50  ;;  %v285_v61 = vld [vmem:[%s14277_s0 + $0x758] sm:$0xff] }
 0x1e9   :  { %v1469_v62 = vpop.f32.mrf.mxu0 }
 0x1ea   :  { %v2210_v15 = vmax.f32 %v1468_v2, 0.0  ;;  %v12174_v16 = vpop.f32.mrf.mxu1 }
 0x1eb   :  { %v1472_v17 = vpop.f32.mrf.mxu0  ;;  %1711 = vmatmul.mubr.f32.gmra.mxu0 %v276_v6  ;;  %v8616_v6 = vld [vmem:[%s14278_s3 + $0x258] sm:$0xff] }
 0x1ec   :  { %v1473_v19 = vadd.f32 %v11911_v12, %v1472_v17  ;;  %v9587_v21 = vpop.f32.mrf.mxu1  ;;  %9781 = vmatprep.mubr.msk.f32.mxu1 %vm2363_vm2, %v2210_v15  ;;  %8391 = vmatprep.mubr.msk.f32.mxu0 %vm476_vm0, %v279_v13  ;;  %v284_v13 = vld [vmem:[%s14277_s0 + $0x750] sm:$0xff]  ;;  %v287_v17 = vld [vmem:[%s14277_s0 + $0x768] sm:$0xff] }
 0x1ed   :  { %v2588_v25 = vadd.f32 %v9587_v21, %v12102_v11  ;;  %v1474_v27 = vpop.f32.mrf.mxu0  ;;  %v280_v11 = vld [vmem:[%s14277_s0 + $0x730] sm:$0xff] }
 0x1ee   :  { %v2211_v31 = vmax.f32 %v1473_v19, 0.0  ;;  %v12186_v32 = vpop.f32.mrf.mxu1 }
 0x1ef   :  { %14295 = vst [vmem:[#allocation3_spill] sm:$0xff] %v12186_v32  ;;  %v1477_v33 = vpop.f32.mrf.mxu0  ;;  %1716 = vmatmul.mubr.f32.gmra.mxu0 %v278_v24  ;;  %v8615_v24 = vld [vmem:[%s14278_s3 + $0x250] sm:$0xff] }
 0x1f0   :  { %v1478_v37 = vadd.f32 %v11911_v12, %v1477_v33  ;;  %v9590_v38 = vpop.f32.mrf.mxu1  ;;  %9782 = vmatmul.mubr.msk.f32.vlgmr.msra.gmra.mxu1 %vm2363_vm2, %v2211_v31  ;;  %8392 = vmatprep.mubr.msk.f32.mxu0 %vm476_vm0, %v281_v30  ;;  %v286_v33 = vld [vmem:[%s14277_s0 + $0x760] sm:$0xff] }
 0x1f1   :  { %v12198_v40 = vadd.f32 %v9590_v38, %v12121_v29  ;;  %v1479_v42 = vpop.f32.mrf.mxu0  ;;  %9794 = vmatpush3.msra.mxu1 %v8620_v52  ;;  %v282_v52 = vld [vmem:[%s14277_s0 + $0x740] sm:$0xff] }
 0x1f2   :  { %v2212_v44 = vmax.f32 %v1478_v37, 0.0  ;;  %v12203_v48 = vpop.f32.mrf.mxu1  ;;  %9795 = vmatprep.subr.mxu1 %v8619_v35 }
 0x1f3   :  { %v1482_v53 = vpop.f32.mrf.mxu0  ;;  %1721 = vmatmul.mubr.f32.gmra.mxu0 %v280_v11  ;;  %9796 = vmatpush3.msra.mxu1 %v8619_v35  ;;  %v8614_v35 = vld [vmem:[%s14278_s3 + $0x248] sm:$0xff]  ;;  %v289_v11 = vld [vmem:[%s14277_s0 + $0x778] sm:$0xff] }
 0x1f4   :  { %v1483_v29 = vadd.f32 %v11911_v12, %v1482_v53  ;;  %v9593_v7 = vpop.f32.mrf.mxu1  ;;  %9784 = vmatprep.mubr.msk.f32.mxu1 %vm2363_vm2, %v2212_v44  ;;  %8393 = vmatprep.mubr.msk.f32.mxu0 %vm476_vm0, %v283_v43 }
 0x1f5   :  { %v12218_v60 = vadd.f32 %v9593_v7, %v12149_v49  ;;  %v1484_v50 = vpop.f32.mrf.mxu0  ;;  %9797 = vmatprep.subr.mxu1 %v8618_v46 }
 0x1f6   :  { %v2213_v63 = vmax.f32 %v1483_v29, 0.0  ;;  %v12223_v2 = vpop.f32.mrf.mxu1  ;;  %9798 = vmatpush3.msra.mxu1 %v8618_v46  ;;  %v8613_v46 = vld [vmem:[%s14278_s3 + $0x240] sm:$0xff]  ;;  %v288_v29 = vld [vmem:[%s14277_s0 + $0x770] sm:$0xff] }
 0x1f7   :  { %v1487_v3 = vpop.f32.mrf.mxu0  ;;  %1726 = vmatmul.mubr.f32.gmra.mxu0 %v282_v52  ;;  %9799 = vmatprep.subr.mxu1 %v8617_v56 }
 0x1f8   :  { %v1488_v49 = vadd.f32 %v11911_v12, %v1487_v3  ;;  %v9596_v62 = vpop.f32.mrf.mxu1  ;;  %9785 = vmatmul.mubr.msk.f32.gmra.mxu1 %vm2363_vm2, %v2213_v63  ;;  %8394 = vmatprep.mubr.msk.f32.mxu0 %vm476_vm0, %v285_v61  ;;  %v8636_v63 = vld [vmem:[%s14278_s3 + $0x2b8] sm:$0xff] }
 0x1f9   :  { %v1489_v15 = vpop.f32.mrf.mxu0  ;;  %9800 = vmatpush3.msra.mxu1 %v8617_v56  ;;  %v291_v56 = vld [vmem:[%s14277_s0 + $0x788] sm:$0xff] }
 0x1fa   :  { %v2214_v19 = vmax.f32 %v1488_v49, 0.0  ;;  %v12237_v21 = vpop.f32.mrf.mxu1  ;;  %9801 = vmatprep.subr.mxu1 %v8616_v6  ;;  %v290_v49 = vld [vmem:[%s14277_s0 + $0x780] sm:$0xff]  ;;  %v293_v15 = vld [vmem:[%s14277_s0 + $0x798] sm:$0xff] }
 0x1fb   :  { %v1492_v27 = vpop.f32.mrf.mxu0  ;;  %1731 = vmatmul.mubr.f32.gmra.mxu0 %v284_v13  ;;  %9802 = vmatpush3.msra.mxu1 %v8616_v6 }
 0x1fc   :  { %v1493_v30 = vadd.f32 %v11911_v12, %v1492_v27  ;;  %v9615_v31 = vpop.f32.mrf.mxu1  ;;  %9787 = vmatprep.mubr.msk.f32.mxu1 %vm2363_vm2, %v2214_v19  ;;  %8395 = vmatprep.mubr.msk.f32.mxu0 %vm476_vm0, %v287_v17 }
 0x1fd   :  { %v12251_v37 = vadd.f32 %v9615_v31, %v2588_v25  ;;  %v1494_v38 = vpop.f32.mrf.mxu0  ;;  %9803 = vmatprep.subr.mxu1 %v8615_v24 }
 0x1fe   :  { %v2215_v42 = vmax.f32 %v1493_v30, 0.0  ;;  %v12256_v43 = vpop.f32.mrf.mxu1  ;;  %9804 = vmatpush3.msra.mxu1 %v8615_v24 }
 0x1ff   :  { %14296 = vst [vmem:[#allocation4_spill] sm:$0xff] %v12256_v43  ;;  %v1497_v44 = vpop.f32.mrf.mxu0  ;;  %1736 = vmatmul.mubr.f32.gmra.mxu0 %v286_v33  ;;  %9805 = vmatprep.subr.mxu1 %v8614_v35  ;;  %v295_v33 = vld [vmem:[%s14277_s0 + $0x7a8] sm:$0xff] }
 0x200   :  { %v1498_v25 = vadd.f32 %v11911_v12, %v1497_v44  ;;  %v9618_v53 = vpop.f32.mrf.mxu1  ;;  %9788 = vmatmul.mubr.msk.f32.gmra.mxu1 %vm2363_vm2, %v2215_v42  ;;  %8396 = vmatprep.mubr.msk.f32.mxu0 %vm476_vm0, %v289_v11  ;;  %v294_v42 = vld [vmem:[%s14277_s0 + $0x7a0] sm:$0xff] }
 0x201   :  { %v12268_v7 = vadd.f32 %v9618_v53, %v12198_v40  ;;  %v1499_v52 = vpop.f32.mrf.mxu0  ;;  %9806 = vmatpush3.msra.mxu1 %v8614_v35 }
 0x202   :  { %v2216_v50 = vmax.f32 %v1498_v25, 0.0  ;;  %v12273_v61 = vpop.f32.mrf.mxu1  ;;  %9807 = vmatprep.subr.mxu1 %v8613_v46  ;;  %v8635_v52 = vld [vmem:[%s14278_s3 + $0x2b0] sm:$0xff] }
 0x203   :  { %v1502_v3 = vpop.f32.mrf.mxu0  ;;  %1741 = vmatmul.mubr.f32.gmra.mxu0 %v288_v29  ;;  %9808 = vmatpush3.msra.mxu1 %v8613_v46  ;;  %v297_v46 = vld [vmem:[%s14277_s0 + $0x7b8] sm:$0xff] }
 0x204   :  { %v1503_v40 = vadd.f32 %v11911_v12, %v1502_v3  ;;  %v9621_v6 = vpop.f32.mrf.mxu1  ;;  %9790 = vmatprep.mubr.msk.f32.mxu1 %vm2363_vm2, %v2216_v50  ;;  %8397 = vmatprep.mubr.msk.f32.mxu0 %vm476_vm0, %v291_v56  ;;  %v296_v3 = vld [vmem:[%s14277_s0 + $0x7b0] sm:$0xff] }
 0x205   :  { %v12285_v62 = vadd.f32 %v9621_v6, %v12218_v60  ;;  %v1504_v13 = vpop.f32.mrf.mxu0  ;;  %9821 = vmatprep.subr.mxu1 %v8636_v63  ;;  %v292_v60 = vld [vmem:[%s14277_s0 + $0x790] sm:$0xff] }
 0x206   :  { %v2217_v17 = vmax.f32 %v1503_v40, 0.0  ;;  %v12290_v19 = vpop.f32.mrf.mxu1 }
 0x207   :  { %v1507_v24 = vpop.f32.mrf.mxu0  ;;  %1746 = vmatmul.mubr.f32.gmra.mxu0 %v290_v49  ;;  %v299_v49 = vld [vmem:[%s14277_s0 + $0x7c8] sm:$0xff] }
 0x208   :  { %v1508_v27 = vadd.f32 %v11911_v12, %v1507_v24  ;;  %v9624_v30 = vpop.f32.mrf.mxu1  ;;  %9791 = vmatmul.mubr.msk.f32.gmra.mxu1 %vm2363_vm2, %v2217_v17  ;;  %8398 = vmatprep.mubr.msk.f32.mxu0 %vm476_vm0, %v293_v15  ;;  %v8634_v15 = vld [vmem:[%s14278_s3 + $0x2a8] sm:$0xff] }
 0x209   :  { %v1509_v31 = vpop.f32.mrf.mxu0  ;;  %v301_v30 = vld [vmem:[%s14277_s0 + $0x7d8] sm:$0xff] }
 0x20a   :  { %v2218_v35 = vmax.f32 %v1508_v27, 0.0  ;;  %v12310_v25 = vpop.f32.mrf.mxu1 }
 0x20b   :  { %v1512_v38 = vpop.f32.mrf.mxu0  ;;  %1751 = vmatmul.mubr.f32.gmra.mxu0 %v292_v60 }
 0x20c   :  { %v1513_v11 = vadd.f32 %v11911_v12, %v1512_v38  ;;  %9809 = vmatprep.mubr.msk.f32.mxu1 %vm2363_vm2, %v2218_v35  ;;  %8399 = vmatprep.mubr.msk.f32.mxu0 %vm476_vm0, %v295_v33  ;;  %v8632_v35 = vld [vmem:[%s14278_s3 + $0x298] sm:$0xff] }
 0x20d   :  { %v1514_v44 = vpop.f32.mrf.mxu0 }
 0x20e   :  { %v2219_v53 = vmax.f32 %v1513_v11, 0.0 }
 0x20f   :  { %v1517_v29 = vpop.f32.mrf.mxu0  ;;  %1756 = vmatmul.mubr.f32.gmra.mxu0 %v294_v42  ;;  %v300_v42 = vld [vmem:[%s14277_s0 + $0x7d0] sm:$0xff] }
 0x210   :  { %v1518_v56 = vadd.f32 %v11911_v12, %v1517_v29  ;;  %v9643_v50 = vpop.f32.mrf.mxu1  ;;  %9810 = vmatmul.mubr.msk.f32.vlgmr.msra.gmra.mxu1 %vm2363_vm2, %v2219_v53  ;;  %8400 = vmatprep.mubr.msk.f32.mxu0 %vm476_vm0, %v297_v46  ;;  %v303_v53 = vld [vmem:[%s14277_s0 + $0x7e8] sm:$0xff] }
 0x211   :  { %v12322_v40 = vadd.f32 %v9643_v50, %v12251_v37  ;;  %v1519_v6 = vpop.f32.mrf.mxu0  ;;  %9822 = vmatpush3.msra.mxu1 %v8636_v63  ;;  %v298_v37 = vld [vmem:[%s14277_s0 + $0x7c0] sm:$0xff] }
 0x212   :  { %v2220_v13 = vmax.f32 %v1518_v56, 0.0  ;;  %9823 = vmatprep.subr.mxu1 %v8635_v52  ;;  %v8633_v63 = vld [vmem:[%s14278_s3 + $0x2a0] sm:$0xff]  ;;  %v12342_v60 = vpop.f32.mrf.mxu1 }
 0x213   :  { %v1522_v17 = vpop.f32.mrf.mxu0  ;;  %1761 = vmatmul.mubr.f32.gmra.mxu0 %v296_v3  ;;  %9824 = vmatpush3.msra.mxu1 %v8635_v52  ;;  %14297 = vst [vmem:[#allocation5_spill] sm:$0xff] %v12342_v60  ;;  %v8631_v52 = vld [vmem:[%s14278_s3 + $0x290] sm:$0xff]  ;;  %v8630_v3 = vld [vmem:[%s14278_s3 + $0x288] sm:$0xff] }
 0x214   :  { %v1523_v24 = vadd.f32 %v11911_v12, %v1522_v17  ;;  %9812 = vmatprep.mubr.msk.f32.mxu1 %vm2363_vm2, %v2220_v13  ;;  %8401 = vmatprep.mubr.msk.f32.mxu0 %vm476_vm0, %v299_v49  ;;  %v305_v49 = vld [vmem:[%s14277_s0 + $0x7f8] sm:$0xff] }
 0x215   :  { %v1524_v27 = vpop.f32.mrf.mxu0  ;;  %9825 = vmatprep.subr.mxu1 %v8634_v15 }
 0x216   :  { %v2221_v31 = vmax.f32 %v1523_v24, 0.0  ;;  %9826 = vmatpush3.msra.mxu1 %v8634_v15  ;;  %v8629_v24 = vld [vmem:[%s14278_s3 + $0x280] sm:$0xff]  ;;  %v304_v27 = vld [vmem:[%s14277_s0 + $0x7f0] sm:$0xff] }
 0x217   :  { %v1527_v33 = vpop.f32.mrf.mxu0  ;;  %1766 = vmatmul.mubr.f32.gmra.mxu0 %v298_v37  ;;  %9827 = vmatprep.subr.mxu1 %v8633_v63 }
 0x218   :  { %v1528_v38 = vadd.f32 %v11911_v12, %v1527_v33  ;;  %v9646_v11 = vpop.f32.mrf.mxu1  ;;  %9813 = vmatmul.mubr.msk.f32.gmra.mxu1 %vm2363_vm2, %v2221_v31  ;;  %8402 = vmatprep.mubr.msk.f32.mxu0 %vm476_vm0, %v301_v30  ;;  %v307_v33 = vld [vmem:[%s14277_s0 + $0x808] sm:$0xff] }
 0x219   :  { %v12354_v44 = vadd.f32 %v9646_v11, %v12268_v7  ;;  %v1529_v46 = vpop.f32.mrf.mxu0  ;;  %9828 = vmatpush3.msra.mxu1 %v8633_v63  ;;  %v302_v7 = vld [vmem:[%s14277_s0 + $0x7e0] sm:$0xff] }
 0x21a   :  { %v2222_v29 = vmax.f32 %v1528_v38, 0.0  ;;  %9829 = vmatprep.subr.mxu1 %v8632_v35  ;;  %v12374_v13 = vpop.f32.mrf.mxu1  ;;  %v8652_v38 = vld [vmem:[%s14278_s3 + $0x2f8] sm:$0xff] }
 0x21b   :  { %v1532_v56 = vpop.f32.mrf.mxu0  ;;  %1771 = vmatmul.mubr.f32.gmra.mxu0 %v300_v42  ;;  %9830 = vmatpush3.msra.mxu1 %v8632_v35 }
 0x21c   :  { %v1533_v50 = vadd.f32 %v11911_v12, %v1532_v56  ;;  %9815 = vmatprep.mubr.msk.f32.mxu1 %vm2363_vm2, %v2222_v29  ;;  %8403 = vmatprep.mubr.msk.f32.mxu0 %vm476_vm0, %v303_v53  ;;  %v309_v53 = vld [vmem:[%s14277_s0 + $0x818] sm:$0xff] }
 0x21d   :  { %v1534_v6 = vpop.f32.mrf.mxu0  ;;  %9831 = vmatprep.subr.mxu1 %v8631_v52 }
 0x21e   :  { %v2223_v15 = vmax.f32 %v1533_v50, 0.0  ;;  %9832 = vmatpush3.msra.mxu1 %v8631_v52 }
 0x21f   :  { %v1537_v17 = vpop.f32.mrf.mxu0  ;;  %1776 = vmatmul.mubr.f32.gmra.mxu0 %v302_v7  ;;  %9833 = vmatprep.subr.mxu1 %v8630_v3 }
 0x220   :  { %v1538_v37 = vadd.f32 %v11911_v12, %v1537_v17  ;;  %v9649_v63 = vpop.f32.mrf.mxu1  ;;  %9816 = vmatmul.mubr.msk.f32.gmra.mxu1 %vm2363_vm2, %v2223_v15  ;;  %8404 = vmatprep.mubr.msk.f32.mxu0 %vm476_vm0, %v305_v49  ;;  %v311_v49 = vld [vmem:[%s14277_s0 + $0x828] sm:$0xff] }
 0x221   :  { %v12386_v30 = vadd.f32 %v9649_v63, %v12285_v62  ;;  %v1539_v31 = vpop.f32.mrf.mxu0  ;;  %9834 = vmatpush3.msra.mxu1 %v8630_v3  ;;  %v306_v62 = vld [vmem:[%s14277_s0 + $0x800] sm:$0xff]  ;;  %v308_v3 = vld [vmem:[%s14277_s0 + $0x810] sm:$0xff] }
 0x222   :  { %v2224_v35 = vmax.f32 %v1538_v37, 0.0  ;;  %9835 = vmatprep.subr.mxu1 %v8629_v24  ;;  %v12403_v29 = vpop.f32.mrf.mxu1  ;;  %v310_v37 = vld [vmem:[%s14277_s0 + $0x820] sm:$0xff] }
 0x223   :  { %v1542_v11 = vpop.f32.mrf.mxu0  ;;  %1781 = vmatmul.mubr.f32.gmra.mxu0 %v304_v27  ;;  %9836 = vmatpush3.msra.mxu1 %v8629_v24  ;;  %v313_v27 = vld [vmem:[%s14277_s0 + $0x838] sm:$0xff] }
 0x224   :  { %v1543_v42 = vadd.f32 %v11911_v12, %v1542_v11  ;;  %9818 = vmatprep.mubr.msk.f32.mxu1 %vm2363_vm2, %v2224_v35  ;;  %8405 = vmatprep.mubr.msk.f32.mxu0 %vm476_vm0, %v307_v33  ;;  %v8651_v11 = vld [vmem:[%s14278_s3 + $0x2f0] sm:$0xff] }
 0x225   :  { %v1544_v46 = vpop.f32.mrf.mxu0  ;;  %9849 = vmatprep.subr.mxu1 %v8652_v38 }
 0x226   :  { %v2225_v52 = vmax.f32 %v1543_v42, 0.0  ;;  %v312_v46 = vld [vmem:[%s14277_s0 + $0x830] sm:$0xff] }
 0x227   :  { %v1547_v56 = vpop.f32.mrf.mxu0  ;;  %1786 = vmatmul.mubr.f32.gmra.mxu0 %v306_v62 }
 0x228   :  { %v1548_v50 = vadd.f32 %v11911_v12, %v1547_v56  ;;  %v9652_v7 = vpop.f32.mrf.mxu1  ;;  %9819 = vmatmul.mubr.msk.f32.gmra.mxu1 %vm2363_vm2, %v2225_v52  ;;  %8406 = vmatprep.mubr.msk.f32.mxu0 %vm476_vm0, %v309_v53  ;;  %v315_v56 = vld [vmem:[%s14277_s0 + $0x848] sm:$0xff] }
 0x229   :  { %v1549_v6 = vpop.f32.mrf.mxu0  ;;  %v8650_v7 = vld [vmem:[%s14278_s3 + $0x2e8] sm:$0xff] }
 0x22a   :  { %v2226_v15 = vmax.f32 %v1548_v50, 0.0  ;;  %v12423_v31 = vpop.f32.mrf.mxu1 }
 0x22b   :  { %v1552_v17 = vpop.f32.mrf.mxu0  ;;  %1791 = vmatmul.mubr.f32.gmra.mxu0 %v308_v3 }
 0x22c   :  { %v1553_v24 = vadd.f32 %v11911_v12, %v1552_v17  ;;  %9837 = vmatprep.mubr.msk.f32.mxu1 %vm2363_vm2, %v2226_v15  ;;  %8407 = vmatprep.mubr.msk.f32.mxu0 %vm476_vm0, %v311_v49  ;;  %v317_v15 = vld [vmem:[%s14277_s0 + $0x858] sm:$0xff] }
 0x22d   :  { %v1554_v63 = vpop.f32.mrf.mxu0 }
 0x22e   :  { %v2227_v33 = vmax.f32 %v1553_v24, 0.0  ;;  %v12463_v63 = vld [vmem:[%s14279_s2] ss:$0 sm:$0xff] }
 0x22f   :  { %v1557_v35 = vpop.f32.mrf.mxu0  ;;  %1796 = vmatmul.mubr.f32.gmra.mxu0 %v310_v37  ;;  %v8648_v37 = vld [vmem:[%s14278_s3 + $0x2d8] sm:$0xff] }
 0x230   :  { %v1558_v42 = vadd.f32 %v11911_v12, %v1557_v35  ;;  %v9671_v62 = vpop.f32.mrf.mxu1  ;;  %9838 = vmatmul.mubr.msk.f32.vlgmr.msra.gmra.mxu1 %vm2363_vm2, %v2227_v33  ;;  %8408 = vmatprep.mubr.msk.f32.mxu0 %vm476_vm0, %v313_v27  ;;  %v316_v35 = vld [vmem:[%s14277_s0 + $0x850] sm:$0xff] }
 0x231   :  { %v12435_v53 = vadd.f32 %v9671_v62, %v12322_v40  ;;  %v1559_v52 = vpop.f32.mrf.mxu0  ;;  %9850 = vmatpush3.msra.mxu1 %v8652_v38  ;;  %v314_v40 = vld [vmem:[%s14277_s0 + $0x840] sm:$0xff]  ;;  %v319_v62 = vld [vmem:[%s14277_s0 + $0x868] sm:$0xff] }
 0x232   :  { %v2228_v50 = vmax.f32 %v1558_v42, 0.0  ;;  %9851 = vmatprep.subr.mxu1 %v8651_v11  ;;  %v8649_v38 = vld [vmem:[%s14278_s3 + $0x2e0] sm:$0xff]  ;;  %v12455_v17 = vpop.f32.mrf.mxu1  ;;  %v8647_v52 = vld [vmem:[%s14278_s3 + $0x2d0] sm:$0xff] }
 0x233   :  { %v1562_v3 = vpop.f32.mrf.mxu0  ;;  %1801 = vmatmul.mubr.f32.gmra.mxu0 %v312_v46  ;;  %9852 = vmatpush3.msra.mxu1 %v8651_v11  ;;  %14298 = vst [vmem:[#allocation6_spill] sm:$0xff] %v12455_v17 }
 0x234   :  { %v1563_v6 = vadd.f32 %v11911_v12, %v1562_v3  ;;  %9840 = vmatprep.mubr.msk.f32.mxu1 %vm2363_vm2, %v2228_v50  ;;  %8409 = vmatprep.mubr.msk.f32.mxu0 %vm476_vm0, %v315_v56 }
 0x235   :  { %v1564_v49 = vpop.f32.mrf.mxu0  ;;  %9853 = vmatprep.subr.mxu1 %v8650_v7 }
 0x236   :  { %v2229_v12 = vmax.f32 %v1563_v6, 0.0  ;;  %9854 = vmatpush3.msra.mxu1 %v8650_v7  ;;  %v8646_v7 = vld [vmem:[%s14278_s3 + $0x2c8] sm:$0xff]  ;;  %v321_v6 = vld [vmem:[%s14277_s0 + $0x878] sm:$0xff] }
 0x237   :  { %v1567_v24 = vpop.f32.mrf.mxu0  ;;  %1806 = vmatmul.mubr.f32.gmra.mxu0 %v314_v40  ;;  %9855 = vmatprep.subr.mxu1 %v8649_v38 }
 0x238   :  { %v1568_v27 = vadd.f32 %v12463_v63, %v1567_v24  ;;  %v9674_v33 = vpop.f32.mrf.mxu1  ;;  %9841 = vmatmul.mubr.msk.f32.gmra.mxu1 %vm2363_vm2, %v2229_v12  ;;  %8410 = vmatprep.mubr.msk.f32.mxu0 %vm476_vm0, %v317_v15  ;;  %v8645_v15 = vld [vmem:[%s14278_s3 + $0x2c0] sm:$0xff] }
 0x239   :  { %v12472_v11 = vadd.f32 %v9674_v33, %v12354_v44  ;;  %v1569_v42 = vpop.f32.mrf.mxu0  ;;  %9856 = vmatpush3.msra.mxu1 %v8649_v38  ;;  %v318_v44 = vld [vmem:[%s14277_s0 + $0x860] sm:$0xff] }
 0x23a   :  { %v2230_v46 = vmax.f32 %v1568_v27, 0.0  ;;  %9857 = vmatprep.subr.mxu1 %v8648_v37  ;;  %v12492_v40 = vpop.f32.mrf.mxu1 }
 0x23b   :  { %v1572_v56 = vpop.f32.mrf.mxu0  ;;  %1811 = vmatmul.mubr.f32.gmra.mxu0 %v316_v35  ;;  %9858 = vmatpush3.msra.mxu1 %v8648_v37  ;;  %v320_v37 = vld [vmem:[%s14277_s0 + $0x870] sm:$0xff]  ;;  %v323_v35 = vld [vmem:[%s14277_s0 + $0x888] sm:$0xff] }
 0x23c   :  { %v1573_v50 = vadd.f32 %v12463_v63, %v1572_v56  ;;  %9843 = vmatprep.mubr.msk.f32.mxu1 %vm2363_vm2, %v2230_v46  ;;  %8411 = vmatprep.mubr.msk.f32.mxu0 %vm476_vm0, %v319_v62  ;;  %v8668_v62 = vld [vmem:[%s14278_s3 + $0x338] sm:$0xff] }
 0x23d   :  { %v1574_v3 = vpop.f32.mrf.mxu0  ;;  %9859 = vmatprep.subr.mxu1 %v8647_v52 }
 0x23e   :  { %v2231_v38 = vmax.f32 %v1573_v50, 0.0  ;;  %9860 = vmatpush3.msra.mxu1 %v8647_v52  ;;  %v325_v50 = vld [vmem:[%s14277_s0 + $0x898] sm:$0xff] }
 0x23f   :  { %v1577_v49 = vpop.f32.mrf.mxu0  ;;  %1816 = vmatmul.mubr.f32.gmra.mxu0 %v318_v44  ;;  %9861 = vmatprep.subr.mxu1 %v8646_v7 }
 0x240   :  { %v1578_v12 = vadd.f32 %v12463_v63, %v1577_v49  ;;  %v9677_v24 = vpop.f32.mrf.mxu1  ;;  %9844 = vmatmul.mubr.msk.f32.gmra.mxu1 %vm2363_vm2, %v2231_v38  ;;  %8412 = vmatprep.mubr.msk.f32.mxu0 %vm476_vm0, %v321_v6  ;;  %v324_v49 = vld [vmem:[%s14277_s0 + $0x890] sm:$0xff] }
 0x241   :  { %v12504_v27 = vadd.f32 %v9677_v24, %v12386_v30  ;;  %v1579_v33 = vpop.f32.mrf.mxu0  ;;  %9862 = vmatpush3.msra.mxu1 %v8646_v7  ;;  %v322_v30 = vld [vmem:[%s14277_s0 + $0x880] sm:$0xff] }
 0x242   :  { %v2232_v42 = vmax.f32 %v1578_v12, 0.0  ;;  %9863 = vmatprep.subr.mxu1 %v8645_v15  ;;  %v12521_v44 = vpop.f32.mrf.mxu1  ;;  %v327_v12 = vld [vmem:[%s14277_s0 + $0x8a8] sm:$0xff] }
 0x243   :  { %v1582_v46 = vpop.f32.mrf.mxu0  ;;  %1821 = vmatmul.mubr.f32.gmra.mxu0 %v320_v37  ;;  %9864 = vmatpush3.msra.mxu1 %v8645_v15 }
 0x244   :  { %v1583_v52 = vadd.f32 %v12463_v63, %v1582_v46  ;;  %9846 = vmatprep.mubr.msk.f32.mxu1 %vm2363_vm2, %v2232_v42  ;;  %8413 = vmatprep.mubr.msk.f32.mxu0 %vm476_vm0, %v323_v35  ;;  %v326_v35 = vld [vmem:[%s14277_s0 + $0x8a0] sm:$0xff]  ;;  %v329_v46 = vld [vmem:[%s14277_s0 + $0x8b8] sm:$0xff] }
 0x245   :  { %v1584_v56 = vpop.f32.mrf.mxu0  ;;  %9877 = vmatprep.subr.mxu1 %v8668_v62 }
 0x246   :  { %v2233_v7 = vmax.f32 %v1583_v52, 0.0 }
 0x247   :  { %v1587_v3 = vpop.f32.mrf.mxu0  ;;  %1826 = vmatmul.mubr.f32.gmra.mxu0 %v322_v30 }
 0x248   :  { %v1588_v6 = vadd.f32 %v12463_v63, %v1587_v3  ;;  %v9680_v38 = vpop.f32.mrf.mxu1  ;;  %9847 = vmatmul.mubr.msk.f32.gmra.mxu1 %vm2363_vm2, %v2233_v7  ;;  %8414 = vmatprep.mubr.msk.f32.mxu0 %vm476_vm0, %v325_v50  ;;  %v8667_v50 = vld [vmem:[%s14278_s3 + $0x330] sm:$0xff] }
 0x249   :  { %v1589_v15 = vpop.f32.mrf.mxu0 }
 0x24a   :  { %v2234_v24 = vmax.f32 %v1588_v6, 0.0  ;;  %v12541_v52 = vpop.f32.mrf.mxu1  ;;  %v328_v6 = vld [vmem:[%s14277_s0 + $0x8b0] sm:$0xff]  ;;  %v331_v15 = vld [vmem:[%s14277_s0 + $0x8c8] sm:$0xff] }
 0x24b   :  { %v1592_v37 = vpop.f32.mrf.mxu0  ;;  %1831 = vmatmul.mubr.f32.gmra.mxu0 %v324_v49  ;;  %14299 = vst [vmem:[#allocation7_spill] sm:$0xff] %v12541_v52 }
 0x24c   :  { %v1593_v33 = vadd.f32 %v12463_v63, %v1592_v37  ;;  %9865 = vmatprep.mubr.msk.f32.mxu1 %vm2363_vm2, %v2234_v24  ;;  %8415 = vmatprep.mubr.msk.f32.mxu0 %vm476_vm0, %v327_v12  ;;  %v8666_v24 = vld [vmem:[%s14278_s3 + $0x328] sm:$0xff] }
 0x24d   :  { %v1594_v42 = vpop.f32.mrf.mxu0 }
 0x24e   :  { %v2235_v30 = vmax.f32 %v1593_v33, 0.0  ;;  %v333_v42 = vld [vmem:[%s14277_s0 + $0x8d8] sm:$0xff] }
 0x24f   :  { %v1597_v56 = vpop.f32.mrf.mxu0  ;;  %1836 = vmatmul.mubr.f32.gmra.mxu0 %v326_v35 }
 0x250   :  { %v1598_v7 = vadd.f32 %v12463_v63, %v1597_v56  ;;  %v9699_v3 = vpop.f32.mrf.mxu1  ;;  %9866 = vmatmul.mubr.msk.f32.vlgmr.msra.gmra.mxu1 %vm2363_vm2, %v2235_v30  ;;  %8416 = vmatprep.mubr.msk.f32.mxu0 %vm476_vm0, %v329_v46 }
 0x251   :  { %v12553_v38 = vadd.f32 %v9699_v3, %v12435_v53  ;;  %v1599_v49 = vpop.f32.mrf.mxu0  ;;  %9878 = vmatpush3.msra.mxu1 %v8668_v62  ;;  %v330_v53 = vld [vmem:[%s14277_s0 + $0x8c0] sm:$0xff] }
 0x252   :  { %v2236_v12 = vmax.f32 %v1598_v7, 0.0  ;;  %9879 = vmatprep.subr.mxu1 %v8667_v50  ;;  %v8665_v62 = vld [vmem:[%s14278_s3 + $0x320] sm:$0xff]  ;;  %v12573_v46 = vpop.f32.mrf.mxu1 }
 0x253   :  { %v1602_v37 = vpop.f32.mrf.mxu0  ;;  %1841 = vmatmul.mubr.f32.gmra.mxu0 %v328_v6  ;;  %9880 = vmatpush3.msra.mxu1 %v8667_v50  ;;  %14300 = vst [vmem:[#allocation8_spill] sm:$0xff] %v12573_v46  ;;  %v8664_v50 = vld [vmem:[%s14278_s3 + $0x318] sm:$0xff]  ;;  %v332_v6 = vld [vmem:[%s14277_s0 + $0x8d0] sm:$0xff] }
 0x254   :  { %v1603_v33 = vadd.f32 %v12463_v63, %v1602_v37  ;;  %9868 = vmatprep.mubr.msk.f32.mxu1 %vm2363_vm2, %v2236_v12  ;;  %8417 = vmatprep.mubr.msk.f32.mxu0 %vm476_vm0, %v331_v15  ;;  %v335_v12 = vld [vmem:[%s14277_s0 + $0x8e8] sm:$0xff]  ;;  %v8663_v37 = vld [vmem:[%s14278_s3 + $0x310] sm:$0xff] }
 0x255   :  { %v1604_v35 = vpop.f32.mrf.mxu0  ;;  %9881 = vmatprep.subr.mxu1 %v8666_v24 }
 0x256   :  { %v2237_v30 = vmax.f32 %v1603_v33, 0.0  ;;  %9882 = vmatpush3.msra.mxu1 %v8666_v24 }
 0x257   :  { %v1607_v56 = vpop.f32.mrf.mxu0  ;;  %1846 = vmatmul.mubr.f32.gmra.mxu0 %v330_v53  ;;  %9883 = vmatprep.subr.mxu1 %v8665_v62 }
 0x258   :  { %v1608_v7 = vadd.f32 %v12463_v63, %v1607_v56  ;;  %v9702_v3 = vpop.f32.mrf.mxu1  ;;  %9869 = vmatmul.mubr.msk.f32.gmra.mxu1 %vm2363_vm2, %v2237_v30  ;;  %8418 = vmatprep.mubr.msk.f32.mxu0 %vm476_vm0, %v333_v42  ;;  %v337_v42 = vld [vmem:[%s14277_s0 + $0x8f8] sm:$0xff] }
 0x259   :  { %v12585_v49 = vadd.f32 %v9702_v3, %v12472_v11  ;;  %v1609_v15 = vpop.f32.mrf.mxu0  ;;  %9884 = vmatpush3.msra.mxu1 %v8665_v62  ;;  %v334_v11 = vld [vmem:[%s14277_s0 + $0x8e0] sm:$0xff]  ;;  %v8662_v62 = vld [vmem:[%s14278_s3 + $0x308] sm:$0xff] }
 0x25a   :  { %v2238_v24 = vmax.f32 %v1608_v7, 0.0  ;;  %9885 = vmatprep.subr.mxu1 %v8664_v50  ;;  %v12605_v30 = vpop.f32.mrf.mxu1  ;;  %v8661_v7 = vld [vmem:[%s14278_s3 + $0x300] sm:$0xff]  ;;  %v336_v15 = vld [vmem:[%s14277_s0 + $0x8f0] sm:$0xff] }
 0x25b   :  { %v1612_v33 = vpop.f32.mrf.mxu0  ;;  %1851 = vmatmul.mubr.f32.gmra.mxu0 %v332_v6  ;;  %9886 = vmatpush3.msra.mxu1 %v8664_v50 }
 0x25c   :  { %v1613_v53 = vadd.f32 %v12463_v63, %v1612_v33  ;;  %9871 = vmatprep.mubr.msk.f32.mxu1 %vm2363_vm2, %v2238_v24  ;;  %8419 = vmatprep.mubr.msk.f32.mxu0 %vm476_vm0, %v335_v12 }
 0x25d   :  { %v1614_v35 = vpop.f32.mrf.mxu0  ;;  %9887 = vmatprep.subr.mxu1 %v8663_v37 }
 0x25e   :  { %v2239_v56 = vmax.f32 %v1613_v53, 0.0  ;;  %9888 = vmatpush3.msra.mxu1 %v8663_v37  ;;  %v339_v37 = vld [vmem:[%s14277_s0 + $0x908] sm:$0xff]  ;;  %v8684_v53 = vld [vmem:[%s14278_s3 + $0x378] sm:$0xff] }
 0x25f   :  { %v1617_v50 = vpop.f32.mrf.mxu0  ;;  %1856 = vmatmul.mubr.f32.gmra.mxu0 %v334_v11  ;;  %9889 = vmatprep.subr.mxu1 %v8662_v62 }
 0x260   :  { %v1618_v3 = vadd.f32 %v12463_v63, %v1617_v50  ;;  %v9705_v6 = vpop.f32.mrf.mxu1  ;;  %9872 = vmatmul.mubr.msk.f32.gmra.mxu1 %vm2363_vm2, %v2239_v56  ;;  %8420 = vmatprep.mubr.msk.f32.mxu0 %vm476_vm0, %v337_v42  ;;  %v341_v42 = vld [vmem:[%s14277_s0 + $0x918] sm:$0xff] }
 0x261   :  { %v12617_v12 = vadd.f32 %v9705_v6, %v12504_v27  ;;  %v1619_v24 = vpop.f32.mrf.mxu0  ;;  %9890 = vmatpush3.msra.mxu1 %v8662_v62  ;;  %v338_v27 = vld [vmem:[%s14277_s0 + $0x900] sm:$0xff] }
 0x262   :  { %v2240_v33 = vmax.f32 %v1618_v3, 0.0  ;;  %9891 = vmatprep.subr.mxu1 %v8661_v7  ;;  %v12634_v56 = vpop.f32.mrf.mxu1 }
 0x263   :  { %v1622_v11 = vpop.f32.mrf.mxu0  ;;  %1861 = vmatmul.mubr.f32.gmra.mxu0 %v336_v15  ;;  %9892 = vmatpush3.msra.mxu1 %v8661_v7  ;;  %v340_v15 = vld [vmem:[%s14277_s0 + $0x910] sm:$0xff] }
 0x264   :  { %v1623_v35 = vadd.f32 %v12463_v63, %v1622_v11  ;;  %9874 = vmatprep.mubr.msk.f32.mxu1 %vm2363_vm2, %v2240_v33  ;;  %8421 = vmatprep.mubr.msk.f32.mxu0 %vm476_vm0, %v339_v37  ;;  %v343_v37 = vld [vmem:[%s14277_s0 + $0x928] sm:$0xff] }
 0x265   :  { %v1624_v62 = vpop.f32.mrf.mxu0  ;;  %9905 = vmatprep.subr.mxu1 %v8684_v53 }
 0x266   :  { %v2241_v50 = vmax.f32 %v1623_v35, 0.0 }
 0x267   :  { %v1627_v7 = vpop.f32.mrf.mxu0  ;;  %1866 = vmatmul.mubr.f32.gmra.mxu0 %v338_v27  ;;  %v342_v27 = vld [vmem:[%s14277_s0 + $0x920] sm:$0xff] }
 0x268   :  { %v1628_v3 = vadd.f32 %v12463_v63, %v1627_v7  ;;  %v9708_v6 = vpop.f32.mrf.mxu1  ;;  %9875 = vmatmul.mubr.msk.f32.gmra.mxu1 %vm2363_vm2, %v2241_v50  ;;  %8422 = vmatprep.mubr.msk.f32.mxu0 %vm476_vm0, %v341_v42  ;;  %v345_v42 = vld [vmem:[%s14277_s0 + $0x938] sm:$0xff] }
 0x269   :  { %v1629_v24 = vpop.f32.mrf.mxu0  ;;  %v8683_v6 = vld [vmem:[%s14278_s3 + $0x370] sm:$0xff] }
 0x26a   :  { %v2242_v33 = vmax.f32 %v1628_v3, 0.0  ;;  %v12654_v50 = vpop.f32.mrf.mxu1 }
 0x26b   :  { %v1632_v11 = vpop.f32.mrf.mxu0  ;;  %1871 = vmatmul.mubr.f32.gmra.mxu0 %v340_v15  ;;  %14301 = vst [vmem:[#allocation9_spill] sm:$0xff] %v12654_v50 }
 0x26c   :  { %v1633_v35 = vadd.f32 %v12463_v63, %v1632_v11  ;;  %9893 = vmatprep.mubr.msk.f32.mxu1 %vm2363_vm2, %v2242_v33  ;;  %8423 = vmatprep.mubr.msk.f32.mxu0 %vm476_vm0, %v343_v37  ;;  %v344_v37 = vld [vmem:[%s14277_s0 + $0x930] sm:$0xff] }
 0x26d   :  { %v1634_v62 = vpop.f32.mrf.mxu0 }
 0x26e   :  { %v2243_v7 = vmax.f32 %v1633_v35, 0.0  ;;  %v347_v35 = vld [vmem:[%s14277_s0 + $0x948] sm:$0xff] }
 0x26f   :  { %v1637_v3 = vpop.f32.mrf.mxu0  ;;  %1876 = vmatmul.mubr.f32.gmra.mxu0 %v342_v27  ;;  %v8682_v62 = vld [vmem:[%s14278_s3 + $0x368] sm:$0xff] }
 0x270   :  { %v1638_v15 = vadd.f32 %v12463_v63, %v1637_v3  ;;  %v9727_v24 = vpop.f32.mrf.mxu1  ;;  %9894 = vmatmul.mubr.msk.f32.vlgmr.msra.gmra.mxu1 %vm2363_vm2, %v2243_v7  ;;  %8424 = vmatprep.mubr.msk.f32.mxu0 %vm476_vm0, %v345_v42 }
 0x271   :  { %v12666_v33 = vadd.f32 %v9727_v24, %v12553_v38  ;;  %v1639_v11 = vpop.f32.mrf.mxu0  ;;  %9906 = vmatpush3.msra.mxu1 %v8684_v53  ;;  %v346_v38 = vld [vmem:[%s14277_s0 + $0x940] sm:$0xff] }
 0x272   :  { %v2244_v27 = vmax.f32 %v1638_v15, 0.0  ;;  %9907 = vmatprep.subr.mxu1 %v8683_v6  ;;  %v8681_v53 = vld [vmem:[%s14278_s3 + $0x360] sm:$0xff]  ;;  %v349_v15 = vld [vmem:[%s14277_s0 + $0x958] sm:$0xff] }
 0x273   :  { %v1642_v42 = vpop.f32.mrf.mxu0  ;;  %1881 = vmatmul.mubr.f32.gmra.mxu0 %v344_v37  ;;  %9908 = vmatpush3.msra.mxu1 %v8683_v6  ;;  %v12686_v6 = vpop.f32.mrf.mxu1  ;;  %v8680_v11 = vld [vmem:[%s14278_s3 + $0x358] sm:$0xff] }
 0x274   :  { %v1643_v7 = vadd.f32 %v12463_v63, %v1642_v42  ;;  %9896 = vmatprep.mubr.msk.f32.mxu1 %vm2363_vm2, %v2244_v27  ;;  %8425 = vmatprep.mubr.msk.f32.mxu0 %vm476_vm0, %v347_v35  ;;  %14302 = vst [vmem:[#allocation10_spill] sm:$0xff] %v12686_v6  ;;  %v348_v42 = vld [vmem:[%s14277_s0 + $0x950] sm:$0xff] }
 0x275   :  { %v1644_v3 = vpop.f32.mrf.mxu0  ;;  %9909 = vmatprep.subr.mxu1 %v8682_v62 }
 0x276   :  { %v2245_v24 = vmax.f32 %v1643_v7, 0.0  ;;  %9910 = vmatpush3.msra.mxu1 %v8682_v62 }
 0x277   :  { %v1647_v37 = vpop.f32.mrf.mxu0  ;;  %1886 = vmatmul.mubr.f32.gmra.mxu0 %v346_v38  ;;  %9911 = vmatprep.subr.mxu1 %v8681_v53  ;;  %v351_v38 = vld [vmem:[%s14277_s0 + $0x968] sm:$0xff] }
 0x278   :  { %v1648_v35 = vadd.f32 %v12463_v63, %v1647_v37  ;;  %v9730_v27 = vpop.f32.mrf.mxu1  ;;  %9897 = vmatmul.mubr.msk.f32.gmra.mxu1 %vm2363_vm2, %v2245_v24  ;;  %8426 = vmatprep.mubr.msk.f32.mxu0 %vm476_vm0, %v349_v15  ;;  %v8679_v24 = vld [vmem:[%s14278_s3 + $0x350] sm:$0xff] }
 0x279   :  { %v12698_v62 = vadd.f32 %v9730_v27, %v12585_v49  ;;  %v1649_v7 = vpop.f32.mrf.mxu0  ;;  %9912 = vmatpush3.msra.mxu1 %v8681_v53  ;;  %v350_v49 = vld [vmem:[%s14277_s0 + $0x960] sm:$0xff]  ;;  %v8678_v53 = vld [vmem:[%s14278_s3 + $0x348] sm:$0xff]  ;;  %v353_v27 = vld [vmem:[%s14277_s0 + $0x978] sm:$0xff] }
 0x27a   :  { %v2246_v3 = vmax.f32 %v1648_v35, 0.0  ;;  %9913 = vmatprep.subr.mxu1 %v8680_v11 }
 0x27b   :  { %v1652_v15 = vpop.f32.mrf.mxu0  ;;  %1891 = vmatmul.mubr.f32.gmra.mxu0 %v348_v42  ;;  %9914 = vmatpush3.msra.mxu1 %v8680_v11  ;;  %v12718_v11 = vpop.f32.mrf.mxu1 }
 0x27c   :  { %v1653_v37 = vadd.f32 %v12463_v63, %v1652_v15  ;;  %9899 = vmatprep.mubr.msk.f32.mxu1 %vm2363_vm2, %v2246_v3  ;;  %8427 = vmatprep.mubr.msk.f32.mxu0 %vm476_vm0, %v351_v38  ;;  %v8677_v38 = vld [vmem:[%s14278_s3 + $0x340] sm:$0xff] }
 0x27d   :  { %v1654_v35 = vpop.f32.mrf.mxu0  ;;  %9915 = vmatprep.subr.mxu1 %v8679_v24 }
 0x27e   :  { %v2247_v42 = vmax.f32 %v1653_v37, 0.0  ;;  %9916 = vmatpush3.msra.mxu1 %v8679_v24  ;;  %v352_v35 = vld [vmem:[%s14277_s0 + $0x970] sm:$0xff] }
 0x27f   :  { %v1657_v7 = vpop.f32.mrf.mxu0  ;;  %1896 = vmatmul.mubr.f32.gmra.mxu0 %v350_v49  ;;  %9917 = vmatprep.subr.mxu1 %v8678_v53  ;;  %v355_v49 = vld [vmem:[%s14277_s0 + $0x988] sm:$0xff] }
 0x280   :  { %v1658_v3 = vadd.f32 %v12463_v63, %v1657_v7  ;;  %v9733_v15 = vpop.f32.mrf.mxu1  ;;  %9900 = vmatmul.mubr.msk.f32.gmra.mxu1 %vm2363_vm2, %v2247_v42  ;;  %8428 = vmatprep.mubr.msk.f32.mxu0 %vm476_vm0, %v353_v27  ;;  %v8700_v42 = vld [vmem:[%s14278_s3 + $0x3b8] sm:$0xff] }
 0x281   :  { %v12730_v24 = vadd.f32 %v9733_v15, %v12617_v12  ;;  %v1659_v37 = vpop.f32.mrf.mxu0  ;;  %9918 = vmatpush3.msra.mxu1 %v8678_v53  ;;  %v354_v12 = vld [vmem:[%s14277_s0 + $0x980] sm:$0xff] }
 0x282   :  { %v2248_v0 = vmax.f32 %v1658_v3, 0.0  ;;  %9919 = vmatprep.subr.mxu1 %v8677_v38  ;;  %v357_v3 = vld [vmem:[%s14277_s0 + $0x998] sm:$0xff]  ;;  %v12747_v15 = vpop.f32.mrf.mxu1 }
 0x283   :  { %v1662_v27 = vpop.f32.mrf.mxu0  ;;  %1901 = vmatmul.mubr.f32.gmra.mxu0 %v352_v35  ;;  %9920 = vmatpush3.msra.mxu1 %v8677_v38 }
 0x284   :  { %v1663_v7 = vadd.f32 %v12463_v63, %v1662_v27  ;;  %9902 = vmatprep.mubr.msk.f32.mxu1 %vm2363_vm2, %v2248_v0  ;;  %8429 = vmatprep.mubr.msk.f32.mxu0 %vm476_vm0, %v355_v49  ;;  %v356_v49 = vld [vmem:[%s14277_s0 + $0x990] sm:$0xff] }
 0x285   :  { %v1664_v53 = vpop.f32.mrf.mxu0  ;;  %9933 = vmatprep.subr.mxu1 %v8700_v42 }
 0x286   :  { %v2249_v35 = vmax.f32 %v1663_v7, 0.0  ;;  %v359_v53 = vld [vmem:[%s14277_s0 + $0x9a8] sm:$0xff] }
 0x287   :  { %v1667_v38 = vpop.f32.mrf.mxu0  ;;  %1906 = vmatmul.mubr.f32.gmra.mxu0 %v354_v12 }
 0x288   :  { %v1668_v37 = vadd.f32 %v12463_v63, %v1667_v38  ;;  %v9736_v0 = vpop.f32.mrf.mxu1  ;;  %9903 = vmatmul.mubr.msk.f32.gmra.mxu1 %vm2363_vm2, %v2249_v35  ;;  %8430 = vmatprep.mubr.msk.f32.mxu0 %vm476_vm0, %v357_v3  ;;  %v358_v3 = vld [vmem:[%s14277_s0 + $0x9a0] sm:$0xff]  ;;  %v361_v38 = vld [vmem:[%s14277_s0 + $0x9b8] sm:$0xff] }
 0x289   :  { %v1669_v27 = vpop.f32.mrf.mxu0 }
 0x28a   :  { %v2250_v6 = vmax.f32 %v1668_v37, 0.0  ;;  %v12767_v0 = vpop.f32.mrf.mxu1 }
 0x28b   :  { %v1672_v7 = vpop.f32.mrf.mxu0  ;;  %1911 = vmatmul.mubr.f32.gmra.mxu0 %v356_v49  ;;  %14303 = vst [vmem:[#allocation11_spill] sm:$0xff] %v12767_v0 }
 0x28c   :  { %v1673_v12 = vadd.f32 %v12463_v63, %v1672_v7  ;;  %9921 = vmatprep.mubr.msk.f32.mxu1 %vm2363_vm2, %v2250_v6  ;;  %8431 = vmatprep.mubr.msk.f32.mxu0 %vm476_vm0, %v359_v53  ;;  %v8699_v6 = vld [vmem:[%s14278_s3 + $0x3b0] sm:$0xff] }
 0x28d   :  { %v1674_v35 = vpop.f32.mrf.mxu0  ;;  %v360_v7 = vld [vmem:[%s14277_s0 + $0x9b0] sm:$0xff] }
 0x28e   :  { %v2251_v37 = vmax.f32 %v1673_v12, 0.0 }
 0x28f   :  { %v1677_v27 = vpop.f32.mrf.mxu0  ;;  %1916 = vmatmul.mubr.f32.gmra.mxu0 %v358_v3  ;;  %v363_v3 = vld [vmem:[%s14277_s0 + $0x9c8] sm:$0xff] }
 0x290   :  { %v1678_v49 = vadd.f32 %v12463_v63, %v1677_v27  ;;  %v9755_v53 = vpop.f32.mrf.mxu1  ;;  %9922 = vmatmul.mubr.msk.f32.vlgmr.msra.gmra.mxu1 %vm2363_vm2, %v2251_v37  ;;  %8432 = vmatprep.mubr.msk.f32.mxu0 %vm476_vm0, %v361_v38  ;;  %v8698_v37 = vld [vmem:[%s14278_s3 + $0x3a8] sm:$0xff] }
 0x291   :  { %v12779_v35 = vadd.f32 %v9755_v53, %v12666_v33  ;;  %v1679_v12 = vpop.f32.mrf.mxu0  ;;  %9934 = vmatpush3.msra.mxu1 %v8700_v42  ;;  %v362_v33 = vld [vmem:[%s14277_s0 + $0x9c0] sm:$0xff]  ;;  %v365_v53 = vld [vmem:[%s14277_s0 + $0x9d8] sm:$0xff] }
 0x292   :  { %v2252_v46 = vmax.f32 %v1678_v49, 0.0  ;;  %9935 = vmatprep.subr.mxu1 %v8699_v6  ;;  %v8697_v42 = vld [vmem:[%s14278_s3 + $0x3a0] sm:$0xff]  ;;  %v8696_v12 = vld [vmem:[%s14278_s3 + $0x398] sm:$0xff] }
 0x293   :  { %v1682_v38 = vpop.f32.mrf.mxu0  ;;  %1921 = vmatmul.mubr.f32.gmra.mxu0 %v360_v7  ;;  %9936 = vmatpush3.msra.mxu1 %v8699_v6  ;;  %v12799_v6 = vpop.f32.mrf.mxu1 }
 0x294   :  { %v1683_v27 = vadd.f32 %v12463_v63, %v1682_v38  ;;  %9924 = vmatprep.mubr.msk.f32.mxu1 %vm2363_vm2, %v2252_v46  ;;  %8433 = vmatprep.mubr.msk.f32.mxu0 %vm476_vm0, %v363_v3  ;;  %14304 = vst [vmem:[#allocation12_spill] sm:$0xff] %v12799_v6 }
 0x295   :  { %v1684_v49 = vpop.f32.mrf.mxu0  ;;  %9937 = vmatprep.subr.mxu1 %v8698_v37 }
 0x296   :  { %v2253_v7 = vmax.f32 %v1683_v27, 0.0  ;;  %9938 = vmatpush3.msra.mxu1 %v8698_v37  ;;  %v364_v49 = vld [vmem:[%s14277_s0 + $0x9d0] sm:$0xff] }
 0x297   :  { %v1687_v46 = vpop.f32.mrf.mxu0  ;;  %1926 = vmatmul.mubr.f32.gmra.mxu0 %v362_v33  ;;  %9939 = vmatprep.subr.mxu1 %v8697_v42  ;;  %v367_v33 = vld [vmem:[%s14277_s0 + $0x9e8] sm:$0xff] }
 0x298   :  { %v1688_v3 = vadd.f32 %v12463_v63, %v1687_v46  ;;  %v9758_v38 = vpop.f32.mrf.mxu1  ;;  %9925 = vmatmul.mubr.msk.f32.gmra.mxu1 %vm2363_vm2, %v2253_v7  ;;  %8434 = vmatprep.mubr.msk.f32.mxu0 %vm476_vm0, %v365_v53  ;;  %v8695_v7 = vld [vmem:[%s14278_s3 + $0x390] sm:$0xff] }
 0x299   :  { %v12811_v37 = vadd.f32 %v9758_v38, %v12698_v62  ;;  %v1689_v27 = vpop.f32.mrf.mxu0  ;;  %9940 = vmatpush3.msra.mxu1 %v8697_v42  ;;  %v366_v62 = vld [vmem:[%s14277_s0 + $0x9e0] sm:$0xff]  ;;  %v8694_v42 = vld [vmem:[%s14278_s3 + $0x388] sm:$0xff]  ;;  %v369_v38 = vld [vmem:[%s14277_s0 + $0x9f8] sm:$0xff] }
 0x29a   :  { %v2254_v6 = vmax.f32 %v1688_v3, 0.0  ;;  %9941 = vmatprep.subr.mxu1 %v8696_v12  ;;  %v8693_v27 = vld [vmem:[%s14278_s3 + $0x380] sm:$0xff] }
 0x29b   :  { %v1692_v53 = vpop.f32.mrf.mxu0  ;;  %1931 = vmatmul.mubr.f32.gmra.mxu0 %v364_v49  ;;  %9942 = vmatpush3.msra.mxu1 %v8696_v12  ;;  %v12831_v12 = vpop.f32.mrf.mxu1 }
 0x29c   :  { %v1693_v46 = vadd.f32 %v12463_v63, %v1692_v53  ;;  %9927 = vmatprep.mubr.msk.f32.mxu1 %vm2363_vm2, %v2254_v6  ;;  %8435 = vmatprep.mubr.msk.f32.mxu0 %vm476_vm0, %v367_v33 }
 0x29d   :  { %v1694_v3 = vpop.f32.mrf.mxu0  ;;  %9943 = vmatprep.subr.mxu1 %v8695_v7 }
 0x29e   :  { %v2255_v49 = vmax.f32 %v1693_v46, 0.0  ;;  %9944 = vmatpush3.msra.mxu1 %v8695_v7  ;;  %v368_v3 = vld [vmem:[%s14277_s0 + $0x9f0] sm:$0xff] }
 0x29f   :  { %v1697_v6 = vpop.f32.mrf.mxu0  ;;  %1936 = vmatmul.mubr.f32.gmra.mxu0 %v366_v62  ;;  %9945 = vmatprep.subr.mxu1 %v8694_v42  ;;  %v371_v62 = vld [vmem:[%s14277_s0 + $0xa08] sm:$0xff] }
 0x2a0   :  { %v1698_v33 = vadd.f32 %v12463_v63, %v1697_v6  ;;  %v9761_v53 = vpop.f32.mrf.mxu1  ;;  %9928 = vmatmul.mubr.msk.f32.gmra.mxu1 %vm2363_vm2, %v2255_v49  ;;  %8436 = vmatprep.mubr.msk.f32.mxu0 %vm476_vm0, %v369_v38  ;;  %v8716_v49 = vld [vmem:[%s14278_s3 + $0x3f8] sm:$0xff] }
 0x2a1   :  { %v12843_v7 = vadd.f32 %v9761_v53, %v12730_v24  ;;  %v1699_v46 = vpop.f32.mrf.mxu0  ;;  %9946 = vmatpush3.msra.mxu1 %v8694_v42  ;;  %v370_v24 = vld [vmem:[%s14277_s0 + $0xa00] sm:$0xff] }
 0x2a2   :  { %v2256_v17 = vmax.f32 %v1698_v33, 0.0  ;;  %9947 = vmatprep.subr.mxu1 %v8693_v27  ;;  %v373_v33 = vld [vmem:[%s14277_s0 + $0xa18] sm:$0xff]  ;;  %v12860_v53 = vpop.f32.mrf.mxu1 }
 0x2a3   :  { %v1702_v38 = vpop.f32.mrf.mxu0  ;;  %1941 = vmatmul.mubr.f32.gmra.mxu0 %v368_v3  ;;  %9948 = vmatpush3.msra.mxu1 %v8693_v27 }
 0x2a4   :  { %v1703_v6 = vadd.f32 %v12463_v63, %v1702_v38  ;;  %9930 = vmatprep.mubr.msk.f32.mxu1 %vm2363_vm2, %v2256_v17  ;;  %8437 = vmatprep.mubr.msk.f32.mxu0 %vm476_vm0, %v371_v62  ;;  %v372_v62 = vld [vmem:[%s14277_s0 + $0xa10] sm:$0xff] }
 0x2a5   :  { %v1704_v42 = vpop.f32.mrf.mxu0  ;;  %9961 = vmatprep.subr.mxu1 %v8716_v49 }
 0x2a6   :  { %v2257_v3 = vmax.f32 %v1703_v6, 0.0  ;;  %v375_v42 = vld [vmem:[%s14277_s0 + $0xa28] sm:$0xff] }
 0x2a7   :  { %v1707_v27 = vpop.f32.mrf.mxu0  ;;  %1946 = vmatmul.mubr.f32.gmra.mxu0 %v370_v24 }
 0x2a8   :  { %v1708_v46 = vadd.f32 %v12463_v63, %v1707_v27  ;;  %v9764_v17 = vpop.f32.mrf.mxu1  ;;  %9931 = vmatmul.mubr.msk.f32.gmra.mxu1 %vm2363_vm2, %v2257_v3  ;;  %8438 = vmatprep.mubr.msk.f32.mxu0 %vm476_vm0, %v373_v33  ;;  %v374_v33 = vld [vmem:[%s14277_s0 + $0xa20] sm:$0xff]  ;;  %v377_v27 = vld [vmem:[%s14277_s0 + $0xa38] sm:$0xff] }
 0x2a9   :  { %v1709_v38 = vpop.f32.mrf.mxu0 }
 0x2aa   :  { %v2258_v0 = vmax.f32 %v1708_v46, 0.0  ;;  %v12880_v17 = vpop.f32.mrf.mxu1 }
 0x2ab   :  { %v1712_v6 = vpop.f32.mrf.mxu0  ;;  %1951 = vmatmul.mubr.f32.gmra.mxu0 %v372_v62  ;;  %14305 = vst [vmem:[#allocation13_spill] sm:$0xff] %v12880_v17 }
 0x2ac   :  { %v1713_v24 = vadd.f32 %v12463_v63, %v1712_v6  ;;  %9949 = vmatprep.mubr.msk.f32.mxu1 %vm2363_vm2, %v2258_v0  ;;  %8439 = vmatprep.mubr.msk.f32.mxu0 %vm476_vm0, %v375_v42  ;;  %v8715_v0 = vld [vmem:[%s14278_s3 + $0x3f0] sm:$0xff] }
 0x2ad   :  { %v1714_v3 = vpop.f32.mrf.mxu0  ;;  %v376_v6 = vld [vmem:[%s14277_s0 + $0xa30] sm:$0xff] }
 0x2ae   :  { %v2259_v46 = vmax.f32 %v1713_v24, 0.0 }
 0x2af   :  { %v1717_v38 = vpop.f32.mrf.mxu0  ;;  %1956 = vmatmul.mubr.f32.gmra.mxu0 %v374_v33  ;;  %v379_v33 = vld [vmem:[%s14277_s0 + $0xa48] sm:$0xff] }
 0x2b0   :  { %v1718_v62 = vadd.f32 %v12463_v63, %v1717_v38  ;;  %v9783_v42 = vpop.f32.mrf.mxu1  ;;  %9950 = vmatmul.mubr.msk.f32.vlgmr.msra.gmra.mxu1 %vm2363_vm2, %v2259_v46  ;;  %8440 = vmatprep.mubr.msk.f32.mxu0 %vm476_vm0, %v377_v27  ;;  %v8714_v46 = vld [vmem:[%s14278_s3 + $0x3e8] sm:$0xff] }
 0x2b1   :  { %v12892_v3 = vadd.f32 %v9783_v42, %v12779_v35  ;;  %v1719_v24 = vpop.f32.mrf.mxu0  ;;  %9962 = vmatpush3.msra.mxu1 %v8716_v49  ;;  %v378_v35 = vld [vmem:[%s14277_s0 + $0xa40] sm:$0xff]  ;;  %v381_v42 = vld [vmem:[%s14277_s0 + $0xa58] sm:$0xff] }
 0x2b2   :  { %v2260_v17 = vmax.f32 %v1718_v62, 0.0  ;;  %9963 = vmatprep.subr.mxu1 %v8715_v0  ;;  %v8713_v49 = vld [vmem:[%s14278_s3 + $0x3e0] sm:$0xff]  ;;  %v8712_v24 = vld [vmem:[%s14278_s3 + $0x3d8] sm:$0xff] }
 0x2b3   :  { %v1722_v27 = vpop.f32.mrf.mxu0  ;;  %1961 = vmatmul.mubr.f32.gmra.mxu0 %v376_v6  ;;  %9964 = vmatpush3.msra.mxu1 %v8715_v0  ;;  %v12912_v0 = vpop.f32.mrf.mxu1 }
 0x2b4   :  { %v1723_v38 = vadd.f32 %v12463_v63, %v1722_v27  ;;  %9952 = vmatprep.mubr.msk.f32.mxu1 %vm2363_vm2, %v2260_v17  ;;  %8441 = vmatprep.mubr.msk.f32.mxu0 %vm476_vm0, %v379_v33  ;;  %14306 = vst [vmem:[#allocation14_spill] sm:$0xff] %v12912_v0 }
 0x2b5   :  { %v1724_v62 = vpop.f32.mrf.mxu0  ;;  %9965 = vmatprep.subr.mxu1 %v8714_v46 }
 0x2b6   :  { %v2261_v6 = vmax.f32 %v1723_v38, 0.0  ;;  %9966 = vmatpush3.msra.mxu1 %v8714_v46  ;;  %v380_v62 = vld [vmem:[%s14277_s0 + $0xa50] sm:$0xff] }
 0x2b7   :  { %v1727_v17 = vpop.f32.mrf.mxu0  ;;  %1966 = vmatmul.mubr.f32.gmra.mxu0 %v378_v35  ;;  %9967 = vmatprep.subr.mxu1 %v8713_v49  ;;  %v383_v35 = vld [vmem:[%s14277_s0 + $0xa68] sm:$0xff] }
 0x2b8   :  { %v1728_v33 = vadd.f32 %v12463_v63, %v1727_v17  ;;  %v9786_v27 = vpop.f32.mrf.mxu1  ;;  %9953 = vmatmul.mubr.msk.f32.gmra.mxu1 %vm2363_vm2, %v2261_v6  ;;  %8442 = vmatprep.mubr.msk.f32.mxu0 %vm476_vm0, %v381_v42  ;;  %v8711_v6 = vld [vmem:[%s14278_s3 + $0x3d0] sm:$0xff] }
 0x2b9   :  { %v12924_v46 = vadd.f32 %v9786_v27, %v12811_v37  ;;  %v1729_v38 = vpop.f32.mrf.mxu0  ;;  %9968 = vmatpush3.msra.mxu1 %v8713_v49  ;;  %v382_v37 = vld [vmem:[%s14277_s0 + $0xa60] sm:$0xff]  ;;  %v8710_v49 = vld [vmem:[%s14278_s3 + $0x3c8] sm:$0xff]  ;;  %v385_v27 = vld [vmem:[%s14277_s0 + $0xa78] sm:$0xff] }
 0x2ba   :  { %v2262_v0 = vmax.f32 %v1728_v33, 0.0  ;;  %9969 = vmatprep.subr.mxu1 %v8712_v24  ;;  %v8709_v38 = vld [vmem:[%s14278_s3 + $0x3c0] sm:$0xff] }
 0x2bb   :  { %v1732_v42 = vpop.f32.mrf.mxu0  ;;  %1971 = vmatmul.mubr.f32.gmra.mxu0 %v380_v62  ;;  %9970 = vmatpush3.msra.mxu1 %v8712_v24  ;;  %v12944_v24 = vpop.f32.mrf.mxu1 }
 0x2bc   :  { %v1733_v17 = vadd.f32 %v12463_v63, %v1732_v42  ;;  %9955 = vmatprep.mubr.msk.f32.mxu1 %vm2363_vm2, %v2262_v0  ;;  %8443 = vmatprep.mubr.msk.f32.mxu0 %vm476_vm0, %v383_v35 }
 0x2bd   :  { %v1734_v33 = vpop.f32.mrf.mxu0  ;;  %9971 = vmatprep.subr.mxu1 %v8711_v6 }
 0x2be   :  { %v2263_v62 = vmax.f32 %v1733_v17, 0.0  ;;  %9972 = vmatpush3.msra.mxu1 %v8711_v6  ;;  %v384_v33 = vld [vmem:[%s14277_s0 + $0xa70] sm:$0xff] }
 0x2bf   :  { %v1737_v0 = vpop.f32.mrf.mxu0  ;;  %1976 = vmatmul.mubr.f32.gmra.mxu0 %v382_v37  ;;  %9973 = vmatprep.subr.mxu1 %v8710_v49  ;;  %v387_v37 = vld [vmem:[%s14277_s0 + $0xa88] sm:$0xff] }
 0x2c0   :  { %v1738_v35 = vadd.f32 %v12463_v63, %v1737_v0  ;;  %v9789_v42 = vpop.f32.mrf.mxu1  ;;  %9956 = vmatmul.mubr.msk.f32.gmra.mxu1 %vm2363_vm2, %v2263_v62  ;;  %8444 = vmatprep.mubr.msk.f32.mxu0 %vm476_vm0, %v385_v27  ;;  %v8732_v62 = vld [vmem:[%s14278_s3 + $0x438] sm:$0xff] }
 0x2c1   :  { %v12956_v6 = vadd.f32 %v9789_v42, %v12843_v7  ;;  %v1739_v17 = vpop.f32.mrf.mxu0  ;;  %9974 = vmatpush3.msra.mxu1 %v8710_v49  ;;  %v386_v7 = vld [vmem:[%s14277_s0 + $0xa80] sm:$0xff] }
 0x2c2   :  { %v2264_v60 = vmax.f32 %v1738_v35, 0.0  ;;  %9975 = vmatprep.subr.mxu1 %v8709_v38  ;;  %v389_v35 = vld [vmem:[%s14277_s0 + $0xa98] sm:$0xff]  ;;  %v12973_v42 = vpop.f32.mrf.mxu1 }
 0x2c3   :  { %v1742_v27 = vpop.f32.mrf.mxu0  ;;  %1981 = vmatmul.mubr.f32.gmra.mxu0 %v384_v33  ;;  %9976 = vmatpush3.msra.mxu1 %v8709_v38  ;;  %14307 = vst [vmem:[#allocation15_spill] sm:$0xff] %v12973_v42 }
 0x2c4   :  { %v1743_v0 = vadd.f32 %v12463_v63, %v1742_v27  ;;  %9958 = vmatprep.mubr.msk.f32.mxu1 %vm2363_vm2, %v2264_v60  ;;  %8445 = vmatprep.mubr.msk.f32.mxu0 %vm476_vm0, %v387_v37  ;;  %v388_v37 = vld [vmem:[%s14277_s0 + $0xa90] sm:$0xff] }
 0x2c5   :  { %v1744_v49 = vpop.f32.mrf.mxu0  ;;  %9989 = vmatprep.subr.mxu1 %v8732_v62 }
 0x2c6   :  { %v2265_v33 = vmax.f32 %v1743_v0, 0.0  ;;  %v391_v49 = vld [vmem:[%s14277_s0 + $0xaa8] sm:$0xff] }
 0x2c7   :  { %v1747_v38 = vpop.f32.mrf.mxu0  ;;  %1986 = vmatmul.mubr.f32.gmra.mxu0 %v386_v7 }
 0x2c8   :  { %v1748_v17 = vadd.f32 %v12463_v63, %v1747_v38  ;;  %v9792_v60 = vpop.f32.mrf.mxu1  ;;  %9959 = vmatmul.mubr.msk.f32.gmra.mxu1 %vm2363_vm2, %v2265_v33  ;;  %8446 = vmatprep.mubr.msk.f32.mxu0 %vm476_vm0, %v389_v35  ;;  %v390_v35 = vld [vmem:[%s14277_s0 + $0xaa0] sm:$0xff]  ;;  %v393_v38 = vld [vmem:[%s14277_s0 + $0xab8] sm:$0xff] }
 0x2c9   :  { %v1749_v27 = vpop.f32.mrf.mxu0 }
 0x2ca   :  { %v2266_v50 = vmax.f32 %v1748_v17, 0.0  ;;  %v12993_v60 = vpop.f32.mrf.mxu1 }
 0x2cb   :  { %v1752_v0 = vpop.f32.mrf.mxu0  ;;  %1991 = vmatmul.mubr.f32.gmra.mxu0 %v388_v37  ;;  %14308 = vst [vmem:[#allocation16_spill] sm:$0xff] %v12993_v60 }
 0x2cc   :  { %v1753_v7 = vadd.f32 %v12463_v63, %v1752_v0  ;;  %9977 = vmatprep.mubr.msk.f32.mxu1 %vm2363_vm2, %v2266_v50  ;;  %8447 = vmatprep.mubr.msk.f32.mxu0 %vm476_vm0, %v391_v49  ;;  %v8731_v50 = vld [vmem:[%s14278_s3 + $0x430] sm:$0xff] }
 0x2cd   :  { %v1754_v33 = vpop.f32.mrf.mxu0  ;;  %v392_v0 = vld [vmem:[%s14277_s0 + $0xab0] sm:$0xff] }
 0x2ce   :  { %v2267_v17 = vmax.f32 %v1753_v7, 0.0 }
 0x2cf   :  { %v1757_v27 = vpop.f32.mrf.mxu0  ;;  %1996 = vmatmul.mubr.f32.gmra.mxu0 %v390_v35  ;;  %v395_v35 = vld [vmem:[%s14277_s0 + $0xac8] sm:$0xff] }
 0x2d0   :  { %v1758_v37 = vadd.f32 %v12463_v63, %v1757_v27  ;;  %v9811_v49 = vpop.f32.mrf.mxu1  ;;  %9978 = vmatmul.mubr.msk.f32.vlgmr.msra.gmra.mxu1 %vm2363_vm2, %v2267_v17  ;;  %8448 = vmatprep.mubr.msk.f32.mxu0 %vm476_vm0, %v393_v38  ;;  %v8730_v63 = vld [vmem:[%s14278_s3 + $0x428] sm:$0xff]  ;;  %v8729_v27 = vld [vmem:[%s14278_s3 + $0x420] sm:$0xff] }
 0x2d1   :  { %v13005_v33 = vadd.f32 %v9811_v49, %v12892_v3  ;;  %v1759_v7 = vpop.f32.mrf.mxu0  ;;  %9990 = vmatpush3.msra.mxu1 %v8732_v62  ;;  %v13016_v3 = vld [vmem:[%s14279_s2] ss:$0 sm:$0xff] }
 0x2d2   :  { %v2268_v60 = vmax.f32 %v1758_v37, 0.0  ;;  %9991 = vmatprep.subr.mxu1 %v8731_v50  ;;  %v394_v62 = vld [vmem:[%s14277_s0 + $0xac0] sm:$0xff]  ;;  %v397_v37 = vld [vmem:[%s14277_s0 + $0xad8] sm:$0xff]  ;;  %v13030_v49 = vpop.f32.mrf.mxu1 }
 0x2d3   :  { %v1762_v38 = vpop.f32.mrf.mxu0  ;;  %2001 = vmatmul.mubr.f32.gmra.mxu0 %v392_v0  ;;  %9992 = vmatpush3.msra.mxu1 %v8731_v50  ;;  %14309 = vst [vmem:[#allocation17_spill] sm:$0xff] %v13030_v49  ;;  %v8728_v7 = vld [vmem:[%s14278_s3 + $0x418] sm:$0xff] }
 0x2d4   :  { %v1763_v17 = vadd.f32 %v13016_v3, %v1762_v38  ;;  %9980 = vmatprep.mubr.msk.f32.mxu1 %vm2363_vm2, %v2268_v60  ;;  %8449 = vmatprep.mubr.msk.f32.mxu0 %vm476_vm0, %v395_v35 }
 0x2d5   :  { %v1764_v50 = vpop.f32.mrf.mxu0  ;;  %9993 = vmatprep.subr.mxu1 %v8730_v63 }
 0x2d6   :  { %v2269_v0 = vmax.f32 %v1763_v17, 0.0  ;;  %9994 = vmatpush3.msra.mxu1 %v8730_v63  ;;  %v396_v50 = vld [vmem:[%s14277_s0 + $0xad0] sm:$0xff] }
 0x2d7   :  { %v1767_v60 = vpop.f32.mrf.mxu0  ;;  %2006 = vmatmul.mubr.f32.gmra.mxu0 %v394_v62  ;;  %9995 = vmatprep.subr.mxu1 %v8729_v27  ;;  %v399_v62 = vld [vmem:[%s14277_s0 + $0xae8] sm:$0xff] }
 0x2d8   :  { %v1768_v35 = vadd.f32 %v13016_v3, %v1767_v60  ;;  %v9814_v38 = vpop.f32.mrf.mxu1  ;;  %9981 = vmatmul.mubr.msk.f32.gmra.mxu1 %vm2363_vm2, %v2269_v0  ;;  %8450 = vmatprep.mubr.msk.f32.mxu0 %vm476_vm0, %v397_v37  ;;  %v8727_v0 = vld [vmem:[%s14278_s3 + $0x410] sm:$0xff] }
 0x2d9   :  { %v13042_v63 = vadd.f32 %v9814_v38, %v12924_v46  ;;  %v1769_v17 = vpop.f32.mrf.mxu0  ;;  %9996 = vmatpush3.msra.mxu1 %v8729_v27  ;;  %v398_v46 = vld [vmem:[%s14277_s0 + $0xae0] sm:$0xff]  ;;  %v8726_v27 = vld [vmem:[%s14278_s3 + $0x408] sm:$0xff]  ;;  %v401_v38 = vld [vmem:[%s14277_s0 + $0xaf8] sm:$0xff] }
 0x2da   :  { %v2270_v49 = vmax.f32 %v1768_v35, 0.0  ;;  %9997 = vmatprep.subr.mxu1 %v8728_v7  ;;  %v8725_v17 = vld [vmem:[%s14278_s3 + $0x400] sm:$0xff] }
 0x2db   :  { %v1772_v37 = vpop.f32.mrf.mxu0  ;;  %2011 = vmatmul.mubr.f32.gmra.mxu0 %v396_v50  ;;  %9998 = vmatpush3.msra.mxu1 %v8728_v7  ;;  %v13062_v7 = vpop.f32.mrf.mxu1 }
 0x2dc   :  { %v1773_v60 = vadd.f32 %v13016_v3, %v1772_v37  ;;  %9983 = vmatprep.mubr.msk.f32.mxu1 %vm2363_vm2, %v2270_v49  ;;  %8451 = vmatprep.mubr.msk.f32.mxu0 %vm476_vm0, %v399_v62 }
 0x2dd   :  { %v1774_v35 = vpop.f32.mrf.mxu0  ;;  %9999 = vmatprep.subr.mxu1 %v8727_v0 }
 0x2de   :  { %v2271_v50 = vmax.f32 %v1773_v60, 0.0  ;;  %10000 = vmatpush3.msra.mxu1 %v8727_v0  ;;  %v400_v35 = vld [vmem:[%s14277_s0 + $0xaf0] sm:$0xff] }
 0x2df   :  { %v1777_v49 = vpop.f32.mrf.mxu0  ;;  %2016 = vmatmul.mubr.f32.gmra.mxu0 %v398_v46  ;;  %10001 = vmatprep.subr.mxu1 %v8726_v27  ;;  %v403_v46 = vld [vmem:[%s14277_s0 + $0xb08] sm:$0xff] }
 0x2e0   :  { %v1778_v62 = vadd.f32 %v13016_v3, %v1777_v49  ;;  %v9817_v37 = vpop.f32.mrf.mxu1  ;;  %9984 = vmatmul.mubr.msk.f32.gmra.mxu1 %vm2363_vm2, %v2271_v50  ;;  %8452 = vmatprep.mubr.msk.f32.mxu0 %vm476_vm0, %v401_v38  ;;  %v8748_v50 = vld [vmem:[%s14278_s3 + $0x478] sm:$0xff] }
 0x2e1   :  { %v13074_v0 = vadd.f32 %v9817_v37, %v12956_v6  ;;  %v1779_v60 = vpop.f32.mrf.mxu0  ;;  %10002 = vmatpush3.msra.mxu1 %v8726_v27  ;;  %v402_v6 = vld [vmem:[%s14277_s0 + $0xb00] sm:$0xff] }
 0x2e2   :  { %v2272_v43 = vmax.f32 %v1778_v62, 0.0  ;;  %10003 = vmatprep.subr.mxu1 %v8725_v17  ;;  %v405_v62 = vld [vmem:[%s14277_s0 + $0xb18] sm:$0xff]  ;;  %v13091_v37 = vpop.f32.mrf.mxu1 }
 0x2e3   :  { %v1782_v38 = vpop.f32.mrf.mxu0  ;;  %2021 = vmatmul.mubr.f32.gmra.mxu0 %v400_v35  ;;  %10004 = vmatpush3.msra.mxu1 %v8725_v17  ;;  %14310 = vst [vmem:[#allocation18_spill] sm:$0xff] %v13091_v37 }
 0x2e4   :  { %v1783_v49 = vadd.f32 %v13016_v3, %v1782_v38  ;;  %9986 = vmatprep.mubr.msk.f32.mxu1 %vm2363_vm2, %v2272_v43  ;;  %8453 = vmatprep.mubr.msk.f32.mxu0 %vm476_vm0, %v403_v46  ;;  %v404_v46 = vld [vmem:[%s14277_s0 + $0xb10] sm:$0xff] }
 0x2e5   :  { %v1784_v27 = vpop.f32.mrf.mxu0  ;;  %10017 = vmatprep.subr.mxu1 %v8748_v50 }
 0x2e6   :  { %v2273_v35 = vmax.f32 %v1783_v49, 0.0 }
 0x2e7   :  { %v1787_v17 = vpop.f32.mrf.mxu0  ;;  %2026 = vmatmul.mubr.f32.gmra.mxu0 %v402_v6 }
 0x2e8   :  { %v1788_v60 = vadd.f32 %v13016_v3, %v1787_v17  ;;  %v9820_v43 = vpop.f32.mrf.mxu1  ;;  %9987 = vmatmul.mubr.msk.f32.gmra.mxu1 %vm2363_vm2, %v2273_v35  ;;  %8454 = vmatprep.mubr.msk.f32.mxu0 %vm476_vm0, %v405_v62  ;;  %v8747_v62 = vld [vmem:[%s14278_s3 + $0x470] sm:$0xff] }
 0x2e9   :  { %v1789_v38 = vpop.f32.mrf.mxu0 }
 0x2ea   :  { %v2274_v27 = vmax.f32 %v1788_v60, 0.0  ;;  %v13101_v6 = vpop.f32.mrf.mxu1 }
 0x2eb   :  { %v1792_v42 = vpop.f32.mrf.mxu0  ;;  %2031 = vmatmul.mubr.f32.gmra.mxu0 %v404_v46  ;;  %14311 = vst [vmem:[#allocation19_spill] sm:$0xff] %v13101_v6  ;;  %v8746_v46 = vld [vmem:[%s14278_s3 + $0x468] sm:$0xff] }
 0x2ec   :  { %v1793_v37 = vadd.f32 %v13016_v3, %v1792_v42  ;;  %10005 = vmatprep.mubr.msk.f32.mxu1 %vm2363_vm2, %v2274_v27  ;;  %v8745_v27 = vld [vmem:[%s14278_s3 + $0x460] sm:$0xff] }
 0x2ed   :  { %v1794_v49 = vpop.f32.mrf.mxu0 }
 0x2ee   :  { %v2275_v17 = vmax.f32 %v1793_v37, 0.0 }
 0x2ef   :  { %v1797_v43 = vpop.f32.mrf.mxu0 }
 0x2f0   :  { %v1798_v35 = vadd.f32 %v13016_v3, %v1797_v43  ;;  %v9839_v52 = vpop.f32.mrf.mxu1  ;;  %10006 = vmatmul.mubr.msk.f32.vlgmr.msra.gmra.mxu1 %vm2363_vm2, %v2275_v17 }
 0x2f1   :  { %v13109_v60 = vadd.f32 %v9839_v52, %v13005_v33  ;;  %v1799_v42 = vpop.f32.mrf.mxu0  ;;  %10018 = vmatpush3.msra.mxu1 %v8748_v50  ;;  %v8744_v33 = vld [vmem:[%s14278_s3 + $0x458] sm:$0xff] }
 0x2f2   :  { %v2276_v37 = vmax.f32 %v1798_v35, 0.0  ;;  %10019 = vmatprep.subr.mxu1 %v8747_v62  ;;  %v13122_v50 = vpop.f32.mrf.mxu1 }
 0x2f3   :  { %v1802_v38 = vpop.f32.mrf.mxu0  ;;  %10020 = vmatpush3.msra.mxu1 %v8747_v62  ;;  %14312 = vst [vmem:[#allocation20_spill] sm:$0xff] %v13122_v50  ;;  %v8743_v62 = vld [vmem:[%s14278_s3 + $0x450] sm:$0xff] }
 0x2f4   :  { %v1803_v49 = vadd.f32 %v13016_v3, %v1802_v38  ;;  %10008 = vmatprep.mubr.msk.f32.mxu1 %vm2363_vm2, %v2276_v37  ;;  %10021 = vmatprep.subr.mxu1 %v8746_v46  ;;  %v8742_v38 = vld [vmem:[%s14278_s3 + $0x448] sm:$0xff] }
 0x2f5   :  { %v1804_v52 = vpop.f32.mrf.mxu0  ;;  %10022 = vmatpush3.msra.mxu1 %v8746_v46 }
 0x2f6   :  { %v2277_v17 = vmax.f32 %v1803_v49, 0.0  ;;  %10023 = vmatprep.subr.mxu1 %v8745_v27  ;;  %v8741_v52 = vld [vmem:[%s14278_s3 + $0x440] sm:$0xff] }
 0x2f7   :  { %v1807_v43 = vpop.f32.mrf.mxu0  ;;  %10024 = vmatpush3.msra.mxu1 %v8745_v27 }
 0x2f8   :  { %v1808_v35 = vadd.f32 %v13016_v3, %v1807_v43  ;;  %v9842_v42 = vpop.f32.mrf.mxu1  ;;  %10009 = vmatmul.mubr.msk.f32.gmra.mxu1 %vm2363_vm2, %v2277_v17  ;;  %10025 = vmatprep.subr.mxu1 %v8744_v33 }
 0x2f9   :  { %v13130_v46 = vadd.f32 %v9842_v42, %v13042_v63  ;;  %v1809_v37 = vpop.f32.mrf.mxu0  ;;  %10026 = vmatpush3.msra.mxu1 %v8744_v33  ;;  %v8764_v33 = vld [vmem:[%s14278_s3 + $0x4b8] sm:$0xff] }
 0x2fa   :  { %v2278_v27 = vmax.f32 %v1808_v35, 0.0  ;;  %10027 = vmatprep.subr.mxu1 %v8743_v62  ;;  %v13143_v43 = vpop.f32.mrf.mxu1 }
 0x2fb   :  { %v1812_v49 = vpop.f32.mrf.mxu0  ;;  %10028 = vmatpush3.msra.mxu1 %v8743_v62 }
 0x2fc   :  { %v1813_v17 = vadd.f32 %v13016_v3, %v1812_v49  ;;  %10011 = vmatprep.mubr.msk.f32.mxu1 %vm2363_vm2, %v2278_v27  ;;  %10029 = vmatprep.subr.mxu1 %v8742_v38 }
 0x2fd   :  { %v1814_v63 = vpop.f32.mrf.mxu0  ;;  %10030 = vmatpush3.msra.mxu1 %v8742_v38 }
 0x2fe   :  { %v2279_v35 = vmax.f32 %v1813_v17, 0.0  ;;  %10031 = vmatprep.subr.mxu1 %v8741_v52 }
 0x2ff   :  { %v1817_v62 = vpop.f32.mrf.mxu0  ;;  %10032 = vmatpush3.msra.mxu1 %v8741_v52 }
 0x300   :  { %v1818_v42 = vadd.f32 %v13016_v3, %v1817_v62  ;;  %v9845_v37 = vpop.f32.mrf.mxu1  ;;  %10012 = vmatmul.mubr.msk.f32.gmra.mxu1 %vm2363_vm2, %v2279_v35  ;;  %10045 = vmatprep.subr.mxu1 %v8764_v33 }
 0x301   :  { %v13148_v27 = vadd.f32 %v9845_v37, %v13074_v0  ;;  %v1819_v38 = vpop.f32.mrf.mxu0 }
 0x302   :  { %v2280_v49 = vmax.f32 %v1818_v42, 0.0  ;;  %v13152_v6 = vpop.f32.mrf.mxu1 }
 0x303   :  { %v1822_v63 = vpop.f32.mrf.mxu0  ;;  %14313 = vst [vmem:[#allocation21_spill] sm:$0xff] %v13152_v6 }
 0x304   :  { %v1823_v50 = vadd.f32 %v13016_v3, %v1822_v63  ;;  %10014 = vmatprep.mubr.msk.f32.mxu1 %vm2363_vm2, %v2280_v49 }
 0x305   :  { %v1824_v17 = vpop.f32.mrf.mxu0 }
 0x306   :  { %v2281_v52 = vmax.f32 %v1823_v50, 0.0  ;;  %v8763_v50 = vld [vmem:[%s14278_s3 + $0x4b0] sm:$0xff] }
 0x307   :  { %v1827_v32 = vpop.f32.mrf.mxu0 }
 0x308   :  { %v1828_v62 = vadd.f32 %v13016_v3, %v1827_v32  ;;  %v9848_v22 = vpop.f32.mrf.mxu1  ;;  %10015 = vmatmul.mubr.msk.f32.gmra.mxu1 %vm2363_vm2, %v2281_v52 }
 0x309   :  { %v1829_v35 = vpop.f32.mrf.mxu0 }
 0x30a   :  { %v2282_v0 = vmax.f32 %v1828_v62, 0.0  ;;  %v13158_v63 = vpop.f32.mrf.mxu1  ;;  %v8762_v35 = vld [vmem:[%s14278_s3 + $0x4a8] sm:$0xff] }
 0x30b   :  { %v1832_v37 = vpop.f32.mrf.mxu0  ;;  %14314 = vst [vmem:[#allocation22_spill] sm:$0xff] %v13158_v63 }
 0x30c   :  { %v1833_v42 = vadd.f32 %v13016_v3, %v1832_v37  ;;  %10033 = vmatprep.mubr.msk.f32.mxu1 %vm2363_vm2, %v2282_v0 }
 0x30d   :  { %v1834_v38 = vpop.f32.mrf.mxu0 }
 0x30e   :  { %v2283_v49 = vmax.f32 %v1833_v42, 0.0  ;;  %v8761_v42 = vld [vmem:[%s14278_s3 + $0x4a0] sm:$0xff] }
 0x30f   :  { %v1837_v17 = vpop.f32.mrf.mxu0 }
 0x310   :  { %v1838_v22 = vadd.f32 %v13016_v3, %v1837_v17  ;;  %v9867_v32 = vpop.f32.mrf.mxu1  ;;  %10034 = vmatmul.mubr.msk.f32.vlgmr.msra.gmra.mxu1 %vm2363_vm2, %v2283_v49 }
 0x311   :  { %v13166_v52 = vadd.f32 %v9867_v32, %v13109_v60  ;;  %v1839_v62 = vpop.f32.mrf.mxu0  ;;  %10046 = vmatpush3.msra.mxu1 %v8764_v33  ;;  %v8760_v33 = vld [vmem:[%s14278_s3 + $0x498] sm:$0xff] }
 0x312   :  { %v2284_v0 = vmax.f32 %v1838_v22, 0.0  ;;  %10047 = vmatprep.subr.mxu1 %v8763_v50  ;;  %v13179_v49 = vpop.f32.mrf.mxu1  ;;  %v8759_v22 = vld [vmem:[%s14278_s3 + $0x490] sm:$0xff] }
 0x313   :  { %v1842_v37 = vpop.f32.mrf.mxu0  ;;  %10048 = vmatpush3.msra.mxu1 %v8763_v50  ;;  %14315 = vst [vmem:[#allocation23_spill] sm:$0xff] %v13179_v49 }
 0x314   :  { %v1843_v38 = vadd.f32 %v13016_v3, %v1842_v37  ;;  %10036 = vmatprep.mubr.msk.f32.mxu1 %vm2363_vm2, %v2284_v0  ;;  %10049 = vmatprep.subr.mxu1 %v8762_v35  ;;  %v8758_v37 = vld [vmem:[%s14278_s3 + $0x488] sm:$0xff] }
 0x315   :  { %v1844_v60 = vpop.f32.mrf.mxu0  ;;  %10050 = vmatpush3.msra.mxu1 %v8762_v35 }
 0x316   :  { %v2285_v17 = vmax.f32 %v1843_v38, 0.0  ;;  %10051 = vmatprep.subr.mxu1 %v8761_v42  ;;  %v8757_v60 = vld [vmem:[%s14278_s3 + $0x480] sm:$0xff] }
 0x317   :  { %v1847_v50 = vpop.f32.mrf.mxu0  ;;  %10052 = vmatpush3.msra.mxu1 %v8761_v42 }
 0x318   :  { %v1848_v32 = vadd.f32 %v13016_v3, %v1847_v50  ;;  %v9870_v62 = vpop.f32.mrf.mxu1  ;;  %10037 = vmatmul.mubr.msk.f32.gmra.mxu1 %vm2363_vm2, %v2285_v17  ;;  %10053 = vmatprep.subr.mxu1 %v8760_v33 }
 0x319   :  { %v13187_v35 = vadd.f32 %v9870_v62, %v13130_v46  ;;  %v1849_v0 = vpop.f32.mrf.mxu0  ;;  %10054 = vmatpush3.msra.mxu1 %v8760_v33  ;;  %v8780_v33 = vld [vmem:[%s14278_s3 + $0x4f8] sm:$0xff] }
 0x31a   :  { %v2286_v42 = vmax.f32 %v1848_v32, 0.0  ;;  %10055 = vmatprep.subr.mxu1 %v8759_v22  ;;  %v13200_v50 = vpop.f32.mrf.mxu1 }
 0x31b   :  { %v1852_v38 = vpop.f32.mrf.mxu0  ;;  %10056 = vmatpush3.msra.mxu1 %v8759_v22  ;;  %14316 = vst [vmem:[#allocation24_spill] sm:$0xff] %v13200_v50 }
 0x31c   :  { %v1853_v17 = vadd.f32 %v13016_v3, %v1852_v38  ;;  %10039 = vmatprep.mubr.msk.f32.mxu1 %vm2363_vm2, %v2286_v42  ;;  %10057 = vmatprep.subr.mxu1 %v8758_v37 }
 0x31d   :  { %v1854_v46 = vpop.f32.mrf.mxu0  ;;  %10058 = vmatpush3.msra.mxu1 %v8758_v37 }
 0x31e   :  { %v2287_v32 = vmax.f32 %v1853_v17, 0.0  ;;  %10059 = vmatprep.subr.mxu1 %v8757_v60 }
 0x31f   :  { %v1857_v22 = vpop.f32.mrf.mxu0  ;;  %10060 = vmatpush3.msra.mxu1 %v8757_v60 }
 0x320   :  { %v1858_v62 = vadd.f32 %v13016_v3, %v1857_v22  ;;  %v9873_v0 = vpop.f32.mrf.mxu1  ;;  %10040 = vmatmul.mubr.msk.f32.gmra.mxu1 %vm2363_vm2, %v2287_v32  ;;  %10073 = vmatprep.subr.mxu1 %v8780_v33 }
 0x321   :  { %v13205_v42 = vadd.f32 %v9873_v0, %v13148_v27  ;;  %v1859_v37 = vpop.f32.mrf.mxu0 }
 0x322   :  { %v2288_v38 = vmax.f32 %v1858_v62, 0.0  ;;  %v13209_v63 = vpop.f32.mrf.mxu1 }
 0x323   :  { %v1862_v46 = vpop.f32.mrf.mxu0  ;;  %14317 = vst [vmem:[#allocation25_spill] sm:$0xff] %v13209_v63 }
 0x324   :  { %v1863_v49 = vadd.f32 %v13016_v3, %v1862_v46  ;;  %10042 = vmatprep.mubr.msk.f32.mxu1 %vm2363_vm2, %v2288_v38 }
 0x325   :  { %v1864_v17 = vpop.f32.mrf.mxu0 }
 0x326   :  { %v2289_v60 = vmax.f32 %v1863_v49, 0.0  ;;  %v8779_v49 = vld [vmem:[%s14278_s3 + $0x4f0] sm:$0xff] }
 0x327   :  { %v1867_v6 = vpop.f32.mrf.mxu0 }
 0x328   :  { %v1868_v22 = vadd.f32 %v13016_v3, %v1867_v6  ;;  %v9876_v50 = vpop.f32.mrf.mxu1  ;;  %10043 = vmatmul.mubr.msk.f32.gmra.mxu1 %vm2363_vm2, %v2289_v60 }
 0x329   :  { %v1869_v32 = vpop.f32.mrf.mxu0 }
 0x32a   :  { %v2290_v27 = vmax.f32 %v1868_v22, 0.0  ;;  %v13215_v46 = vpop.f32.mrf.mxu1  ;;  %v8778_v32 = vld [vmem:[%s14278_s3 + $0x4e8] sm:$0xff] }
 0x32b   :  { %v1872_v0 = vpop.f32.mrf.mxu0  ;;  %14318 = vst [vmem:[#allocation26_spill] sm:$0xff] %v13215_v46 }
 0x32c   :  { %v1873_v62 = vadd.f32 %v13016_v3, %v1872_v0  ;;  %10061 = vmatprep.mubr.msk.f32.mxu1 %vm2363_vm2, %v2290_v27 }
 0x32d   :  { %v1874_v37 = vpop.f32.mrf.mxu0 }
 0x32e   :  { %v2291_v38 = vmax.f32 %v1873_v62, 0.0  ;;  %v8777_v62 = vld [vmem:[%s14278_s3 + $0x4e0] sm:$0xff] }
 0x32f   :  { %v1877_v17 = vpop.f32.mrf.mxu0 }
 0x330   :  { %v1878_v6 = vadd.f32 %v13016_v3, %v1877_v17  ;;  %v9895_v50 = vpop.f32.mrf.mxu1  ;;  %10062 = vmatmul.mubr.msk.f32.vlgmr.msra.gmra.mxu1 %vm2363_vm2, %v2291_v38 }
 0x331   :  { %v13223_v60 = vadd.f32 %v9895_v50, %v13166_v52  ;;  %v1879_v22 = vpop.f32.mrf.mxu0  ;;  %10074 = vmatpush3.msra.mxu1 %v8780_v33  ;;  %v8776_v33 = vld [vmem:[%s14278_s3 + $0x4d8] sm:$0xff] }
 0x332   :  { %v2292_v27 = vmax.f32 %v1878_v6, 0.0  ;;  %10075 = vmatprep.subr.mxu1 %v8779_v49  ;;  %v13236_v38 = vpop.f32.mrf.mxu1  ;;  %v8775_v6 = vld [vmem:[%s14278_s3 + $0x4d0] sm:$0xff] }
 0x333   :  { %v1882_v0 = vpop.f32.mrf.mxu0  ;;  %10076 = vmatpush3.msra.mxu1 %v8779_v49  ;;  %14319 = vst [vmem:[#allocation27_spill] sm:$0xff] %v13236_v38 }
 0x334   :  { %v1883_v37 = vadd.f32 %v13016_v3, %v1882_v0  ;;  %10064 = vmatprep.mubr.msk.f32.mxu1 %vm2363_vm2, %v2292_v27  ;;  %10077 = vmatprep.subr.mxu1 %v8778_v32  ;;  %v8774_v0 = vld [vmem:[%s14278_s3 + $0x4c8] sm:$0xff] }
 0x335   :  { %v1884_v52 = vpop.f32.mrf.mxu0  ;;  %10078 = vmatpush3.msra.mxu1 %v8778_v32 }
 0x336   :  { %v2293_v17 = vmax.f32 %v1883_v37, 0.0  ;;  %10079 = vmatprep.subr.mxu1 %v8777_v62  ;;  %v8773_v52 = vld [vmem:[%s14278_s3 + $0x4c0] sm:$0xff] }
 0x337   :  { %v1887_v49 = vpop.f32.mrf.mxu0  ;;  %10080 = vmatpush3.msra.mxu1 %v8777_v62 }
 0x338   :  { %v1888_v50 = vadd.f32 %v13016_v3, %v1887_v49  ;;  %v9898_v22 = vpop.f32.mrf.mxu1  ;;  %10065 = vmatmul.mubr.msk.f32.gmra.mxu1 %vm2363_vm2, %v2293_v17  ;;  %10081 = vmatprep.subr.mxu1 %v8776_v33 }
 0x339   :  { %v13244_v32 = vadd.f32 %v9898_v22, %v13187_v35  ;;  %v1889_v27 = vpop.f32.mrf.mxu0  ;;  %10082 = vmatpush3.msra.mxu1 %v8776_v33  ;;  %v8796_v33 = vld [vmem:[%s14278_s3 + $0x538] sm:$0xff] }
 0x33a   :  { %v2294_v62 = vmax.f32 %v1888_v50, 0.0  ;;  %10083 = vmatprep.subr.mxu1 %v8775_v6  ;;  %v13257_v49 = vpop.f32.mrf.mxu1 }
 0x33b   :  { %v1892_v37 = vpop.f32.mrf.mxu0  ;;  %10084 = vmatpush3.msra.mxu1 %v8775_v6  ;;  %14320 = vst [vmem:[#allocation28_spill] sm:$0xff] %v13257_v49 }
 0x33c   :  { %v1893_v17 = vadd.f32 %v13016_v3, %v1892_v37  ;;  %10067 = vmatprep.mubr.msk.f32.mxu1 %vm2363_vm2, %v2294_v62  ;;  %10085 = vmatprep.subr.mxu1 %v8774_v0 }
 0x33d   :  { %v1894_v35 = vpop.f32.mrf.mxu0  ;;  %10086 = vmatpush3.msra.mxu1 %v8774_v0 }
 0x33e   :  { %v2295_v50 = vmax.f32 %v1893_v17, 0.0  ;;  %10087 = vmatprep.subr.mxu1 %v8773_v52 }
 0x33f   :  { %v1897_v6 = vpop.f32.mrf.mxu0  ;;  %10088 = vmatpush3.msra.mxu1 %v8773_v52 }
 0x340   :  { %v1898_v22 = vadd.f32 %v13016_v3, %v1897_v6  ;;  %v9901_v27 = vpop.f32.mrf.mxu1  ;;  %10068 = vmatmul.mubr.msk.f32.gmra.mxu1 %vm2363_vm2, %v2295_v50  ;;  %10101 = vmatprep.subr.mxu1 %v8796_v33 }
 0x341   :  { %v13262_v62 = vadd.f32 %v9901_v27, %v13205_v42  ;;  %v1899_v0 = vpop.f32.mrf.mxu0 }
 0x342   :  { %v2296_v37 = vmax.f32 %v1898_v22, 0.0  ;;  %v13266_v46 = vpop.f32.mrf.mxu1 }
 0x343   :  { %v1902_v35 = vpop.f32.mrf.mxu0  ;;  %14321 = vst [vmem:[#allocation29_spill] sm:$0xff] %v13266_v46 }
 0x344   :  { %v1903_v38 = vadd.f32 %v13016_v3, %v1902_v35  ;;  %10070 = vmatprep.mubr.msk.f32.mxu1 %vm2363_vm2, %v2296_v37 }
 0x345   :  { %v1904_v17 = vpop.f32.mrf.mxu0 }
 0x346   :  { %v2297_v52 = vmax.f32 %v1903_v38, 0.0  ;;  %v8795_v38 = vld [vmem:[%s14278_s3 + $0x530] sm:$0xff] }
 0x347   :  { %v1907_v63 = vpop.f32.mrf.mxu0 }
 0x348   :  { %v1908_v6 = vadd.f32 %v13016_v3, %v1907_v63  ;;  %v9904_v49 = vpop.f32.mrf.mxu1  ;;  %10071 = vmatmul.mubr.msk.f32.gmra.mxu1 %vm2363_vm2, %v2297_v52 }
 0x349   :  { %v1909_v50 = vpop.f32.mrf.mxu0 }
 0x34a   :  { %v2298_v42 = vmax.f32 %v1908_v6, 0.0  ;;  %v13272_v35 = vpop.f32.mrf.mxu1  ;;  %v8794_v50 = vld [vmem:[%s14278_s3 + $0x528] sm:$0xff] }
 0x34b   :  { %v1912_v27 = vpop.f32.mrf.mxu0  ;;  %14322 = vst [vmem:[#allocation30_spill] sm:$0xff] %v13272_v35 }
 0x34c   :  { %v1913_v22 = vadd.f32 %v13016_v3, %v1912_v27  ;;  %10089 = vmatprep.mubr.msk.f32.mxu1 %vm2363_vm2, %v2298_v42 }
 0x34d   :  { %v1914_v0 = vpop.f32.mrf.mxu0 }
 0x34e   :  { %v2299_v37 = vmax.f32 %v1913_v22, 0.0  ;;  %v8793_v22 = vld [vmem:[%s14278_s3 + $0x520] sm:$0xff] }
 0x34f   :  { %v1917_v17 = vpop.f32.mrf.mxu0 }
 0x350   :  { %v1918_v63 = vadd.f32 %v13016_v3, %v1917_v17  ;;  %v9923_v49 = vpop.f32.mrf.mxu1  ;;  %10090 = vmatmul.mubr.msk.f32.vlgmr.msra.gmra.mxu1 %vm2363_vm2, %v2299_v37 }
 0x351   :  { %v13280_v52 = vadd.f32 %v9923_v49, %v13223_v60  ;;  %v1919_v6 = vpop.f32.mrf.mxu0  ;;  %10102 = vmatpush3.msra.mxu1 %v8796_v33  ;;  %v8792_v33 = vld [vmem:[%s14278_s3 + $0x518] sm:$0xff] }
 0x352   :  { %v2300_v42 = vmax.f32 %v1918_v63, 0.0  ;;  %10103 = vmatprep.subr.mxu1 %v8795_v38  ;;  %v13293_v37 = vpop.f32.mrf.mxu1  ;;  %v8791_v63 = vld [vmem:[%s14278_s3 + $0x510] sm:$0xff] }
 0x353   :  { %v1922_v27 = vpop.f32.mrf.mxu0  ;;  %10104 = vmatpush3.msra.mxu1 %v8795_v38  ;;  %14323 = vst [vmem:[#allocation31_spill] sm:$0xff] %v13293_v37 }
 0x354   :  { %v1923_v0 = vadd.f32 %v13016_v3, %v1922_v27  ;;  %10092 = vmatprep.mubr.msk.f32.mxu1 %vm2363_vm2, %v2300_v42  ;;  %10105 = vmatprep.subr.mxu1 %v8794_v50  ;;  %v8790_v27 = vld [vmem:[%s14278_s3 + $0x508] sm:$0xff] }
 0x355   :  { %v1924_v60 = vpop.f32.mrf.mxu0  ;;  %10106 = vmatpush3.msra.mxu1 %v8794_v50 }
 0x356   :  { %v2301_v17 = vmax.f32 %v1923_v0, 0.0  ;;  %10107 = vmatprep.subr.mxu1 %v8793_v22  ;;  %v8789_v60 = vld [vmem:[%s14278_s3 + $0x500] sm:$0xff] }
 0x357   :  { %v1927_v38 = vpop.f32.mrf.mxu0  ;;  %10108 = vmatpush3.msra.mxu1 %v8793_v22 }
 0x358   :  { %v1928_v49 = vadd.f32 %v13016_v3, %v1927_v38  ;;  %v9926_v6 = vpop.f32.mrf.mxu1  ;;  %10093 = vmatmul.mubr.msk.f32.gmra.mxu1 %vm2363_vm2, %v2301_v17  ;;  %10109 = vmatprep.subr.mxu1 %v8792_v33 }
 0x359   :  { %v13301_v50 = vadd.f32 %v9926_v6, %v13244_v32  ;;  %v1929_v42 = vpop.f32.mrf.mxu0  ;;  %10110 = vmatpush3.msra.mxu1 %v8792_v33  ;;  %v8812_v33 = vld [vmem:[%s14278_s3 + $0x578] sm:$0xff] }
 0x35a   :  { %v2302_v22 = vmax.f32 %v1928_v49, 0.0  ;;  %10111 = vmatprep.subr.mxu1 %v8791_v63  ;;  %v13314_v38 = vpop.f32.mrf.mxu1 }
 0x35b   :  { %v1932_v0 = vpop.f32.mrf.mxu0  ;;  %10112 = vmatpush3.msra.mxu1 %v8791_v63  ;;  %14324 = vst [vmem:[#allocation32_spill] sm:$0xff] %v13314_v38 }
 0x35c   :  { %v1933_v17 = vadd.f32 %v13016_v3, %v1932_v0  ;;  %10095 = vmatprep.mubr.msk.f32.mxu1 %vm2363_vm2, %v2302_v22  ;;  %10113 = vmatprep.subr.mxu1 %v8790_v27 }
 0x35d   :  { %v1934_v32 = vpop.f32.mrf.mxu0  ;;  %10114 = vmatpush3.msra.mxu1 %v8790_v27 }
 0x35e   :  { %v2303_v49 = vmax.f32 %v1933_v17, 0.0  ;;  %10115 = vmatprep.subr.mxu1 %v8789_v60 }
 0x35f   :  { %v1937_v63 = vpop.f32.mrf.mxu0  ;;  %10116 = vmatpush3.msra.mxu1 %v8789_v60 }
 0x360   :  { %v1938_v6 = vadd.f32 %v13016_v3, %v1937_v63  ;;  %v9929_v42 = vpop.f32.mrf.mxu1  ;;  %10096 = vmatmul.mubr.msk.f32.gmra.mxu1 %vm2363_vm2, %v2303_v49  ;;  %10129 = vmatprep.subr.mxu1 %v8812_v33 }
 0x361   :  { %v13319_v22 = vadd.f32 %v9929_v42, %v13262_v62  ;;  %v1939_v27 = vpop.f32.mrf.mxu0 }
 0x362   :  { %v2304_v0 = vmax.f32 %v1938_v6, 0.0  ;;  %v13323_v35 = vpop.f32.mrf.mxu1 }
 0x363   :  { %v1942_v32 = vpop.f32.mrf.mxu0  ;;  %14325 = vst [vmem:[#allocation33_spill] sm:$0xff] %v13323_v35 }
 0x364   :  { %v1943_v37 = vadd.f32 %v13016_v3, %v1942_v32  ;;  %10098 = vmatprep.mubr.msk.f32.mxu1 %vm2363_vm2, %v2304_v0 }
 0x365   :  { %v1944_v17 = vpop.f32.mrf.mxu0 }
 0x366   :  { %v2305_v60 = vmax.f32 %v1943_v37, 0.0  ;;  %v8811_v37 = vld [vmem:[%s14278_s3 + $0x570] sm:$0xff] }
 0x367   :  { %v1947_v46 = vpop.f32.mrf.mxu0 }
 0x368   :  { %v1948_v63 = vadd.f32 %v13016_v3, %v1947_v46  ;;  %v9932_v38 = vpop.f32.mrf.mxu1  ;;  %10099 = vmatmul.mubr.msk.f32.gmra.mxu1 %vm2363_vm2, %v2305_v60 }
 0x369   :  { %v1949_v49 = vpop.f32.mrf.mxu0 }
 0x36a   :  { %v2306_v62 = vmax.f32 %v1948_v63, 0.0  ;;  %v13329_v32 = vpop.f32.mrf.mxu1  ;;  %v8810_v49 = vld [vmem:[%s14278_s3 + $0x568] sm:$0xff] }
 0x36b   :  { %v1952_v42 = vpop.f32.mrf.mxu0  ;;  %14326 = vst [vmem:[#allocation34_spill] sm:$0xff] %v13329_v32 }
 0x36c   :  { %v1953_v6 = vadd.f32 %v13016_v3, %v1952_v42  ;;  %10117 = vmatprep.mubr.msk.f32.mxu1 %vm2363_vm2, %v2306_v62 }
 0x36d   :  { %v1954_v27 = vpop.f32.mrf.mxu0 }
 0x36e   :  { %v2307_v0 = vmax.f32 %v1953_v6, 0.0  ;;  %v8809_v6 = vld [vmem:[%s14278_s3 + $0x560] sm:$0xff] }
 0x36f   :  { %v1957_v17 = vpop.f32.mrf.mxu0 }
 0x370   :  { %v1958_v46 = vadd.f32 %v13016_v3, %v1957_v17  ;;  %v9951_v38 = vpop.f32.mrf.mxu1  ;;  %10118 = vmatmul.mubr.msk.f32.vlgmr.msra.gmra.mxu1 %vm2363_vm2, %v2307_v0 }
 0x371   :  { %v13337_v60 = vadd.f32 %v9951_v38, %v13280_v52  ;;  %v1959_v63 = vpop.f32.mrf.mxu0  ;;  %10130 = vmatpush3.msra.mxu1 %v8812_v33  ;;  %v8808_v33 = vld [vmem:[%s14278_s3 + $0x558] sm:$0xff] }
 0x372   :  { %v2308_v62 = vmax.f32 %v1958_v46, 0.0  ;;  %10131 = vmatprep.subr.mxu1 %v8811_v37  ;;  %v13350_v0 = vpop.f32.mrf.mxu1  ;;  %v8807_v46 = vld [vmem:[%s14278_s3 + $0x550] sm:$0xff] }
 0x373   :  { %v1962_v42 = vpop.f32.mrf.mxu0  ;;  %10132 = vmatpush3.msra.mxu1 %v8811_v37  ;;  %14327 = vst [vmem:[#allocation35_spill] sm:$0xff] %v13350_v0 }
 0x374   :  { %v1963_v27 = vadd.f32 %v13016_v3, %v1962_v42  ;;  %10120 = vmatprep.mubr.msk.f32.mxu1 %vm2363_vm2, %v2308_v62  ;;  %10133 = vmatprep.subr.mxu1 %v8810_v49  ;;  %v8806_v42 = vld [vmem:[%s14278_s3 + $0x548] sm:$0xff] }
 0x375   :  { %v1964_v52 = vpop.f32.mrf.mxu0  ;;  %10134 = vmatpush3.msra.mxu1 %v8810_v49 }
 0x376   :  { %v2309_v17 = vmax.f32 %v1963_v27, 0.0  ;;  %10135 = vmatprep.subr.mxu1 %v8809_v6  ;;  %v8805_v52 = vld [vmem:[%s14278_s3 + $0x540] sm:$0xff] }
 0x377   :  { %v1967_v37 = vpop.f32.mrf.mxu0  ;;  %10136 = vmatpush3.msra.mxu1 %v8809_v6 }
 0x378   :  { %v1968_v38 = vadd.f32 %v13016_v3, %v1967_v37  ;;  %v9954_v63 = vpop.f32.mrf.mxu1  ;;  %10121 = vmatmul.mubr.msk.f32.gmra.mxu1 %vm2363_vm2, %v2309_v17  ;;  %10137 = vmatprep.subr.mxu1 %v8808_v33 }
 0x379   :  { %v13358_v49 = vadd.f32 %v9954_v63, %v13301_v50  ;;  %v1969_v62 = vpop.f32.mrf.mxu0  ;;  %10138 = vmatpush3.msra.mxu1 %v8808_v33  ;;  %v8828_v33 = vld [vmem:[%s14278_s3 + $0x5b8] sm:$0xff] }
 0x37a   :  { %v2310_v6 = vmax.f32 %v1968_v38, 0.0  ;;  %10139 = vmatprep.subr.mxu1 %v8807_v46  ;;  %v13371_v37 = vpop.f32.mrf.mxu1 }
 0x37b   :  { %v1972_v27 = vpop.f32.mrf.mxu0  ;;  %10140 = vmatpush3.msra.mxu1 %v8807_v46  ;;  %14328 = vst [vmem:[#allocation36_spill] sm:$0xff] %v13371_v37 }
 0x37c   :  { %v1973_v17 = vadd.f32 %v13016_v3, %v1972_v27  ;;  %10123 = vmatprep.mubr.msk.f32.mxu1 %vm2363_vm2, %v2310_v6  ;;  %10141 = vmatprep.subr.mxu1 %v8806_v42 }
 0x37d   :  { %v1974_v50 = vpop.f32.mrf.mxu0  ;;  %10142 = vmatpush3.msra.mxu1 %v8806_v42 }
 0x37e   :  { %v2311_v38 = vmax.f32 %v1973_v17, 0.0  ;;  %10143 = vmatprep.subr.mxu1 %v8805_v52 }
 0x37f   :  { %v1977_v46 = vpop.f32.mrf.mxu0  ;;  %10144 = vmatpush3.msra.mxu1 %v8805_v52 }
 0x380   :  { %v1978_v63 = vadd.f32 %v13016_v3, %v1977_v46  ;;  %v9957_v62 = vpop.f32.mrf.mxu1  ;;  %10124 = vmatmul.mubr.msk.f32.gmra.mxu1 %vm2363_vm2, %v2311_v38  ;;  %10157 = vmatprep.subr.mxu1 %v8828_v33 }
 0x381   :  { %v13376_v6 = vadd.f32 %v9957_v62, %v13319_v22  ;;  %v1979_v42 = vpop.f32.mrf.mxu0 }
 0x382   :  { %v2312_v27 = vmax.f32 %v1978_v63, 0.0  ;;  %v13380_v32 = vpop.f32.mrf.mxu1 }
 0x383   :  { %v1982_v50 = vpop.f32.mrf.mxu0  ;;  %14329 = vst [vmem:[#allocation37_spill] sm:$0xff] %v13380_v32 }
 0x384   :  { %v1983_v0 = vadd.f32 %v13016_v3, %v1982_v50  ;;  %10126 = vmatprep.mubr.msk.f32.mxu1 %vm2363_vm2, %v2312_v27 }
 0x385   :  { %v1984_v17 = vpop.f32.mrf.mxu0 }
 0x386   :  { %v2313_v52 = vmax.f32 %v1983_v0, 0.0  ;;  %v8827_v0 = vld [vmem:[%s14278_s3 + $0x5b0] sm:$0xff] }
 0x387   :  { %v1987_v35 = vpop.f32.mrf.mxu0 }
 0x388   :  { %v1988_v46 = vadd.f32 %v13016_v3, %v1987_v35  ;;  %v9960_v37 = vpop.f32.mrf.mxu1  ;;  %10127 = vmatmul.mubr.msk.f32.gmra.mxu1 %vm2363_vm2, %v2313_v52 }
 0x389   :  { %v1989_v38 = vpop.f32.mrf.mxu0 }
 0x38a   :  { %v2314_v22 = vmax.f32 %v1988_v46, 0.0  ;;  %v13386_v50 = vpop.f32.mrf.mxu1  ;;  %v8826_v38 = vld [vmem:[%s14278_s3 + $0x5a8] sm:$0xff] }
 0x38b   :  { %v1992_v62 = vpop.f32.mrf.mxu0  ;;  %14330 = vst [vmem:[#allocation38_spill] sm:$0xff] %v13386_v50 }
 0x38c   :  { %v1993_v63 = vadd.f32 %v13016_v3, %v1992_v62  ;;  %10145 = vmatprep.mubr.msk.f32.mxu1 %vm2363_vm2, %v2314_v22 }
 0x38d   :  { %v1994_v42 = vpop.f32.mrf.mxu0 }
 0x38e   :  { %v2315_v27 = vmax.f32 %v1993_v63, 0.0  ;;  %v8825_v63 = vld [vmem:[%s14278_s3 + $0x5a0] sm:$0xff] }
 0x38f   :  { %v1997_v17 = vpop.f32.mrf.mxu0 }
 0x390   :  { %v1998_v35 = vadd.f32 %v13016_v3, %v1997_v17  ;;  %v9979_v37 = vpop.f32.mrf.mxu1  ;;  %10146 = vmatmul.mubr.msk.f32.vlgmr.msra.gmra.mxu1 %vm2363_vm2, %v2315_v27 }
 0x391   :  { %v13394_v52 = vadd.f32 %v9979_v37, %v13337_v60  ;;  %v1999_v46 = vpop.f32.mrf.mxu0  ;;  %10158 = vmatpush3.msra.mxu1 %v8828_v33  ;;  %v8824_v33 = vld [vmem:[%s14278_s3 + $0x598] sm:$0xff] }
 0x392   :  { %v2316_v22 = vmax.f32 %v1998_v35, 0.0  ;;  %10159 = vmatprep.subr.mxu1 %v8827_v0  ;;  %v13407_v27 = vpop.f32.mrf.mxu1  ;;  %v8823_v35 = vld [vmem:[%s14278_s3 + $0x590] sm:$0xff] }
 0x393   :  { %v2002_v62 = vpop.f32.mrf.mxu0  ;;  %10160 = vmatpush3.msra.mxu1 %v8827_v0  ;;  %14331 = vst [vmem:[#allocation39_spill] sm:$0xff] %v13407_v27  ;;  %v13438_v27 = vld [vmem:[%s14279_s2] ss:$0 sm:$0xff] }
 0x394   :  { %v2003_v42 = vadd.f32 %v13016_v3, %v2002_v62  ;;  %10148 = vmatprep.mubr.msk.f32.mxu1 %vm2363_vm2, %v2316_v22  ;;  %10161 = vmatprep.subr.mxu1 %v8826_v38  ;;  %v8822_v62 = vld [vmem:[%s14278_s3 + $0x588] sm:$0xff]  ;;  %v2038_v50 = vadd.f32 %v13438_v27, %v11349_v1  ;;  %v8843_v1 = vld [vmem:[%s14278_s3 + $0x5f0] sm:$0xff] }
 0x395   :  { %v2004_v60 = vpop.f32.mrf.mxu0  ;;  %10162 = vmatpush3.msra.mxu1 %v8826_v38 }
 0x396   :  { %v2317_v17 = vmax.f32 %v2003_v42, 0.0  ;;  %10163 = vmatprep.subr.mxu1 %v8825_v63  ;;  %v8821_v60 = vld [vmem:[%s14278_s3 + $0x580] sm:$0xff] }
 0x397   :  { %v2007_v0 = vpop.f32.mrf.mxu0  ;;  %10164 = vmatpush3.msra.mxu1 %v8825_v63 }
 0x398   :  { %v2008_v37 = vadd.f32 %v13016_v3, %v2007_v0  ;;  %v9982_v46 = vpop.f32.mrf.mxu1  ;;  %10149 = vmatmul.mubr.msk.f32.gmra.mxu1 %vm2363_vm2, %v2317_v17  ;;  %10165 = vmatprep.subr.mxu1 %v8824_v33 }
 0x399   :  { %v13415_v38 = vadd.f32 %v9982_v46, %v13358_v49  ;;  %v2009_v22 = vpop.f32.mrf.mxu0  ;;  %10166 = vmatpush3.msra.mxu1 %v8824_v33  ;;  %v8844_v33 = vld [vmem:[%s14278_s3 + $0x5f8] sm:$0xff] }
 0x39a   :  { %v2318_v63 = vmax.f32 %v2008_v37, 0.0  ;;  %10167 = vmatprep.subr.mxu1 %v8823_v35  ;;  %v13428_v0 = vpop.f32.mrf.mxu1 }
 0x39b   :  { %v2012_v42 = vpop.f32.mrf.mxu0  ;;  %10168 = vmatpush3.msra.mxu1 %v8823_v35 }
 0x39c   :  { %v2013_v17 = vadd.f32 %v13016_v3, %v2012_v42  ;;  %10151 = vmatprep.mubr.msk.f32.mxu1 %vm2363_vm2, %v2318_v63  ;;  %10169 = vmatprep.subr.mxu1 %v8822_v62 }
 0x39d   :  { %v2014_v49 = vpop.f32.mrf.mxu0  ;;  %10170 = vmatpush3.msra.mxu1 %v8822_v62 }
 0x39e   :  { %v2319_v37 = vmax.f32 %v2013_v17, 0.0  ;;  %10171 = vmatprep.subr.mxu1 %v8821_v60 }
 0x39f   :  { %v2017_v35 = vpop.f32.mrf.mxu0  ;;  %10172 = vmatpush3.msra.mxu1 %v8821_v60 }
 0x3a0   :  { %v2018_v46 = vadd.f32 %v13016_v3, %v2017_v35  ;;  %v9985_v22 = vpop.f32.mrf.mxu1  ;;  %10152 = vmatmul.mubr.msk.f32.gmra.mxu1 %vm2363_vm2, %v2319_v37  ;;  %10185 = vmatprep.subr.mxu1 %v8844_v33 }
 0x3a1   :  { %v13433_v63 = vadd.f32 %v9985_v22, %v13376_v6  ;;  %v2019_v62 = vpop.f32.mrf.mxu0 }
 0x3a2   :  { %v2320_v42 = vmax.f32 %v2018_v46, 0.0  ;;  %v13442_v60 = vpop.f32.mrf.mxu1 }
 0x3a3   :  { %v2022_v49 = vpop.f32.mrf.mxu0 }
 0x3a4   :  { %v2023_v17 = vadd.f32 %v13438_v27, %v2022_v49  ;;  %10154 = vmatprep.mubr.msk.f32.mxu1 %vm2363_vm2, %v2320_v42 }
 0x3a5   :  { %v2024_v3 = vpop.f32.mrf.mxu0 }
 0x3a6   :  { %v2321_v37 = vmax.f32 %v2023_v17, 0.0  ;;  %v2043_v17 = vadd.f32 %v13438_v27, %v11360_v8  ;;  %v8842_v8 = vld [vmem:[%s14278_s3 + $0x5e8] sm:$0xff] }
 0x3a7   :  { %v2027_v35 = vpop.f32.mrf.mxu0 }
 0x3a8   :  { %v2028_v6 = vadd.f32 %v13438_v27, %v2027_v35  ;;  %v9988_v22 = vpop.f32.mrf.mxu1  ;;  %10155 = vmatmul.mubr.msk.f32.gmra.mxu1 %vm2363_vm2, %v2321_v37  ;;  %v2048_v37 = vadd.f32 %v13438_v27, %v11371_v14  ;;  %v2053_v14 = vadd.f32 %v13438_v27, %v11382_v20  ;;  %v8840_v20 = vld [vmem:[%s14278_s3 + $0x5d8] sm:$0xff] }
 0x3a9   :  { %v2029_v46 = vpop.f32.mrf.mxu0  ;;  %v2324_v22 = vmax.f32 %v2038_v50, 0.0  ;;  %v2325_v50 = vmax.f32 %v2043_v17, 0.0  ;;  %v2068_v17 = vadd.f32 %v13438_v27, %v11422_v45 }
 0x3aa   :  { %v2322_v62 = vmax.f32 %v2028_v6, 0.0  ;;  %v13452_v3 = vpop.f32.mrf.mxu1  ;;  %v2326_v46 = vmax.f32 %v2048_v37, 0.0 }
 0x3ab   :  { %v2032_v32 = vpop.f32.mrf.mxu0 }
 0x3ac   :  { %v2033_v49 = vadd.f32 %v13438_v27, %v2032_v32  ;;  %10173 = vmatprep.mubr.msk.f32.mxu1 %vm2363_vm2, %v2322_v62  ;;  %v2058_v62 = vadd.f32 %v13438_v27, %v11397_v28 }
 0x3ad   :  { %v2034_v42 = vpop.f32.mrf.mxu0 }
 0x3ae   :  { %v2323_v35 = vmax.f32 %v2033_v49, 0.0  ;;  %v2063_v49 = vadd.f32 %v13438_v27, %v11408_v36  ;;  %v2328_v42 = vmax.f32 %v2058_v62, 0.0  ;;  %v8838_v36 = vld [vmem:[%s14278_s3 + $0x5c8] sm:$0xff]  ;;  %v2088_v62 = vadd.f32 %v13438_v27, %v11485_v34 }
 0x3b0   :  { %v10007_v6 = vpop.f32.mrf.mxu1  ;;  %10174 = vmatmul.mubr.msk.f32.vlgmr.msra.gmra.mxu1 %vm2363_vm2, %v2323_v35  ;;  %v8839_v35 = vld [vmem:[%s14278_s3 + $0x5d0] sm:$0xff]  ;;  %v2329_v45 = vmax.f32 %v2063_v49, 0.0  ;;  %v2093_v49 = vadd.f32 %v13438_v27, %v11501_v47  ;;  %v8856_v47 = vld [vmem:[%s14278_s3 + $0x618] sm:$0xff] }
 0x3b1   :  { %v13461_v32 = vadd.f32 %v10007_v6, %v13394_v52  ;;  %10186 = vmatpush3.msra.mxu1 %v8844_v33  ;;  %10176 = vmatprep.mubr.msk.f32.mxu1 %vm2363_vm2, %v2324_v22  ;;  %v8841_v52 = vld [vmem:[%s14278_s3 + $0x5e0] sm:$0xff]  ;;  %v2327_v33 = vmax.f32 %v2053_v14, 0.0  ;;  %v2330_v6 = vmax.f32 %v2068_v17, 0.0  ;;  %v2083_v14 = vadd.f32 %v13438_v27, %v11471_v23  ;;  %v8858_v23 = vld [vmem:[%s14278_s3 + $0x628] sm:$0xff] }
 0x3b2   :  { %10187 = vmatprep.subr.mxu1 %v8843_v1  ;;  %v13481_v28 = vpop.f32.mrf.mxu1  ;;  %v2098_v17 = vadd.f32 %v13438_v27, %v11515_v59 }
 0x3b3   :  { %10188 = vmatpush3.msra.mxu1 %v8843_v1  ;;  %v2073_v1 = vadd.f32 %v13438_v27, %v11440_v57  ;;  %v8860_v57 = vld [vmem:[%s14278_s3 + $0x638] sm:$0xff]  ;;  %v2333_v34 = vmax.f32 %v2083_v14, 0.0 }
 0x3b4   :  { %10189 = vmatprep.subr.mxu1 %v8842_v8  ;;  %10177 = vmatmul.mubr.msk.f32.gmra.mxu1 %vm2363_vm2, %v2325_v50 }
 0x3b5   :  { %10190 = vmatpush3.msra.mxu1 %v8842_v8  ;;  %10179 = vmatprep.mubr.msk.f32.mxu1 %vm2363_vm2, %v2326_v46  ;;  %v2078_v8 = vadd.f32 %v13438_v27, %v11454_v9  ;;  %v2331_v50 = vmax.f32 %v2073_v1, 0.0  ;;  %v8855_v1 = vld [vmem:[%s14278_s3 + $0x610] sm:$0xff] }
 0x3b6   :  { %10191 = vmatprep.subr.mxu1 %v8841_v52 }
 0x3b7   :  { %10192 = vmatpush3.msra.mxu1 %v8841_v52  ;;  %v2332_v46 = vmax.f32 %v2078_v8, 0.0  ;;  %v8859_v52 = vld [vmem:[%s14278_s3 + $0x630] sm:$0xff] }
 0x3b8   :  { %10193 = vmatprep.subr.mxu1 %v8840_v20  ;;  %v10010_v22 = vpop.f32.mrf.mxu1  ;;  %10180 = vmatmul.mubr.msk.f32.gmra.mxu1 %vm2363_vm2, %v2327_v33 }
 0x3b9   :  { %v13490_v37 = vadd.f32 %v10010_v22, %v13415_v38  ;;  %10194 = vmatpush3.msra.mxu1 %v8840_v20  ;;  %10182 = vmatprep.mubr.msk.f32.mxu1 %vm2363_vm2, %v2328_v42  ;;  %v8837_v38 = vld [vmem:[%s14278_s3 + $0x5c0] sm:$0xff]  ;;  %v2334_v42 = vmax.f32 %v2088_v62, 0.0  ;;  %v2103_v22 = vadd.f32 %v13438_v27, %v11533_v58  ;;  %v8854_v58 = vld [vmem:[%s14278_s3 + $0x608] sm:$0xff] }
 0x3ba   :  { %10195 = vmatprep.subr.mxu1 %v8839_v35  ;;  %v13510_v9 = vpop.f32.mrf.mxu1 }
 0x3bb   :  { %10196 = vmatpush3.msra.mxu1 %v8839_v35  ;;  %v2335_v35 = vmax.f32 %v2093_v49, 0.0  ;;  %v2337_v8 = vmax.f32 %v2103_v22, 0.0 }
 0x3bc   :  { %10197 = vmatprep.subr.mxu1 %v8838_v36  ;;  %10183 = vmatmul.mubr.msk.f32.gmra.mxu1 %vm2363_vm2, %v2329_v45  ;;  %v2108_v45 = vadd.f32 %v13438_v27, %v11553_v26  ;;  %v2113_v26 = vadd.f32 %v13438_v27, %v11573_v39  ;;  %v2123_v39 = vadd.f32 %v13438_v27, %v11612_v10 }
 0x3bd   :  { %10198 = vmatpush3.msra.mxu1 %v8838_v36  ;;  %10201 = vmatprep.mubr.msk.f32.mxu1 %vm2363_vm2, %v2330_v6  ;;  %v2336_v36 = vmax.f32 %v2098_v17, 0.0  ;;  %v2133_v10 = vadd.f32 %v13438_v27, %v11646_v18  ;;  %v2143_v17 = vadd.f32 %v13438_v27, %v11681_v4 }
 0x3be   :  { %10199 = vmatprep.subr.mxu1 %v8837_v38  ;;  %v2339_v14 = vmax.f32 %v2113_v26, 0.0 }
 0x3bf   :  { %10200 = vmatpush3.msra.mxu1 %v8837_v38  ;;  %v2338_v38 = vmax.f32 %v2108_v45, 0.0 }
 0x3c0   :  { %10213 = vmatprep.subr.mxu1 %v8860_v57  ;;  %v10013_v20 = vpop.f32.mrf.mxu1  ;;  %10202 = vmatmul.mubr.msk.f32.vlgmr.msra.gmra.mxu1 %vm2363_vm2, %v2331_v50  ;;  %v8853_v50 = vld [vmem:[%s14278_s3 + $0x600] sm:$0xff] }
 0x3c1   :  { %v13519_v33 = vadd.f32 %v10013_v20, %v13433_v63  ;;  %10214 = vmatpush3.msra.mxu1 %v8860_v57  ;;  %10204 = vmatprep.mubr.msk.f32.mxu1 %vm2363_vm2, %v2332_v46  ;;  %v8857_v63 = vld [vmem:[%s14278_s3 + $0x620] sm:$0xff]  ;;  %v2118_v57 = vadd.f32 %v13438_v27, %v11592_v55  ;;  %v2128_v55 = vadd.f32 %v13438_v27, %v11628_v5  ;;  %v14332_v20 = vmov 0.0  }
 0x3c2   :  { %10215 = vmatprep.subr.mxu1 %v8859_v52  ;;  %v13539_v59 = vpop.f32.mrf.mxu1  ;;  %v2343_v5 = vmax.f32 %v2133_v10, 0.0 }
 0x3c3   :  { %10216 = vmatpush3.msra.mxu1 %v8859_v52  ;;  %v2340_v62 = vmax.f32 %v2118_v57, 0.0  ;;  %v2342_v49 = vmax.f32 %v2128_v55, 0.0 }
 0x3c4   :  { %10217 = vmatprep.subr.mxu1 %v8858_v23  ;;  %10205 = vmatmul.mubr.msk.f32.gmra.mxu1 %vm2363_vm2, %v2333_v34  ;;  %v2341_v34 = vmax.f32 %v2123_v39, 0.0 }
 0x3c5   :  { %10218 = vmatpush3.msra.mxu1 %v8858_v23  ;;  %10207 = vmatprep.mubr.msk.f32.mxu1 %vm2363_vm2, %v2334_v42  ;;  %v2138_v42 = vadd.f32 %v13438_v27, %v11661_v51 }
 0x3c6   :  { %10219 = vmatprep.subr.mxu1 %v8857_v63 }
 0x3c7   :  { %10220 = vmatpush3.msra.mxu1 %v8857_v63 }
 0x3c8   :  { %10221 = vmatprep.subr.mxu1 %v8856_v47  ;;  %v10016_v6 = vpop.f32.mrf.mxu1  ;;  %10208 = vmatmul.mubr.msk.f32.gmra.mxu1 %vm2363_vm2, %v2335_v35  ;;  %v2345_v35 = vmax.f32 %v2143_v17, 0.0 }
 0x3c9   :  { %10222 = vmatpush3.msra.mxu1 %v8856_v47  ;;  %10210 = vmatprep.mubr.msk.f32.mxu1 %vm2363_vm2, %v2336_v36 }
 0x3ca   :  { %10223 = vmatprep.subr.mxu1 %v8855_v1  ;;  %v13562_v46 = vpop.f32.mrf.mxu1 }
 0x3cb   :  { %10224 = vmatpush3.msra.mxu1 %v8855_v1 }
 0x3cc   :  { %10225 = vmatprep.subr.mxu1 %v8854_v58  ;;  %10211 = vmatmul.mubr.msk.f32.gmra.mxu1 %vm2363_vm2, %v2337_v8 }
 0x3cd   :  { %10226 = vmatpush3.msra.mxu1 %v8854_v58  ;;  %10229 = vmatprep.mubr.msk.f32.mxu1 %vm2363_vm2, %v2338_v38 }
 0x3ce   :  { %10227 = vmatprep.subr.mxu1 %v8853_v50 }
 0x3cf   :  { %10228 = vmatpush3.msra.mxu1 %v8853_v50 }
 0x3d0   :  { %v10035_v52 = vpop.f32.mrf.mxu1  ;;  %10230 = vmatmul.mubr.msk.f32.vlgmr.msra.gmra.mxu1 %vm2363_vm2, %v2339_v14  ;;  %10241 = vmatprep.subr.mxu1 %v14332_v20  ;;  %v2603_v14 = vadd.f32 %v12223_v2, %v12163_v54  ;;  %v2613_v54 = vadd.f32 %v12237_v21, %v12174_v16  ;;  %v8873_v21 = vld [vmem:[%s14280_s5 + $0x38] sm:$0xff] }
 0x3d1   :  { %v4918_v23 = vadd.f32 %v10035_v52, %v13461_v32  ;;  %10232 = vmatprep.mubr.msk.f32.mxu1 %vm2363_vm2, %v2340_v62  ;;  %v2344_v32 = vmax.f32 %v2138_v42, 0.0  ;;  %v14335_v42 = vld [vmem:[#allocation3_spill] sm:$0xff]  ;;  %10242 = vmatpush3.msra.mxu1 %v8873_v21  ;;  %v14355_v21 = vld [vmem:[#allocation33_spill] sm:$0xff] }
 0x3d2   :  { %v13578_v63 = vpop.f32.mrf.mxu1  ;;  %v2761_v55 = vadd.f32 %v12290_v19, %v2603_v14  ;;  %10243 = vmatprep.subr.mxu1 %v14332_v20 }
 0x3d4   :  { %10233 = vmatmul.mubr.msk.f32.gmra.mxu1 %vm2363_vm2, %v2341_v34  ;;  %v14333_v34 = vld [vmem:[#allocation24_spill] sm:$0xff] }
 0x3d5   :  { %10235 = vmatprep.mubr.msk.f32.mxu1 %vm2363_vm2, %v2342_v49  ;;  %v14334_v49 = vld [vmem:[#allocation2_spill] sm:$0xff] }
 0x3d6   :  { %v2583_v16 = vadd.f32 %v14335_v42, %v14334_v49  ;;  %v8871_v49 = vld [vmem:[%s14280_s5 + $0x28] sm:$0xff] }
 0x3d7   :  { %v14354_v42 = vld [vmem:[#allocation19_spill] sm:$0xff] }
 0x3d8   :  { %v10038_v47 = vpop.f32.mrf.mxu1  ;;  %10236 = vmatmul.mubr.msk.f32.gmra.mxu1 %vm2363_vm2, %v2343_v5 }
 0x3d9   :  { %v4920_v18 = vadd.f32 %v10038_v47, %v13490_v37  ;;  %10238 = vmatprep.mubr.msk.f32.mxu1 %vm2363_vm2, %v2344_v32  ;;  %v2593_v37 = vadd.f32 %v12203_v48, %v12138_v41 }
 0x3da   :  { %v13584_v51 = vpop.f32.mrf.mxu1 }
 0x3db   :  { %v2759_v26 = vadd.f32 %v12273_v61, %v2593_v37  ;;  %v2905_v61 = vadd.f32 %v12403_v29, %v2761_v55 }
 0x3dc   :  { %10239 = vmatmul.mubr.msk.f32.gmra.mxu1 %vm2363_vm2, %v2345_v35 }
 0x3dd   :  { %v2903_v57 = vadd.f32 %v12374_v13, %v2759_v26  ;;  %v14344_v26 = vld [vmem:[#allocation11_spill] sm:$0xff]  ;;  %10249 = vmatprep.mubr.msk.f32.mxu1 %vm10601_vm3, %v14332_v20 }
 0x3e0   :  { %v10041_v22 = vpop.f32.mrf.mxu1 }
 0x3e1   :  { %v4922_v36 = vadd.f32 %v10041_v22, %v13519_v33  ;;  %v3047_v33 = vadd.f32 %v12492_v40, %v2903_v57  ;;  %v3049_v40 = vadd.f32 %v12521_v44, %v2905_v61  ;;  %v14342_v22 = vld [vmem:[#allocation32_spill] sm:$0xff] }
 0x3e2   :  { %v13587_v45 = vpop.f32.mrf.mxu1 }
 0x3e3   :  { %v3191_v39 = vadd.f32 %v12605_v30, %v3047_v33  ;;  %v3193_v2 = vadd.f32 %v12634_v56, %v3049_v40  ;;  %v14336_v56 = vld [vmem:[#allocation7_spill] sm:$0xff]  ;;  %v14345_v33 = vld [vmem:[#allocation21_spill] sm:$0xff] }
 0x3e5   :  { %v3335_v41 = vadd.f32 %v12718_v11, %v3191_v39  ;;  %v2763_v11 = vadd.f32 %v12310_v25, %v2613_v54  ;;  %v3337_v29 = vadd.f32 %v12747_v15, %v3193_v2  ;;  %v14337_v25 = vld [vmem:[#allocation15_spill] sm:$0xff]  ;;  %v14338_v15 = vld [vmem:[#allocation28_spill] sm:$0xff] }
 0x3e6   :  { %v14346_v39 = vld [vmem:[#allocation36_spill] sm:$0xff] }
 0x3e7   :  { %v3479_v13 = vadd.f32 %v12831_v12, %v3335_v41  ;;  %v2907_v44 = vadd.f32 %v12423_v31, %v2763_v11  ;;  %v14347_v41 = vld [vmem:[#allocation6_spill] sm:$0xff]  ;;  %v14351_v11 = vld [vmem:[#allocation16_spill] sm:$0xff] }
 0x3e8   :  { %v10044_v4 = vpop.f32.mrf.mxu1 }
 0x3e9   :  { %v3623_v52 = vadd.f32 %v12944_v24, %v3479_v13  ;;  %v3481_v24 = vadd.f32 %v12860_v53, %v3337_v29  ;;  %v14340_v53 = vld [vmem:[#allocation9_spill] sm:$0xff]  ;;  %v8872_v4 = vld [vmem:[%s14280_s5 + $0x30] sm:$0xff] }
 0x3ea   :  { %v13589_v27 = vpop.f32.mrf.mxu1  ;;  %10244 = vmatpush3.msra.mxu1 %v8872_v4  ;;  %v14348_v13 = vld [vmem:[#allocation13_spill] sm:$0xff] }
 0x3eb   :  { %v3767_v19 = vadd.f32 %v13062_v7, %v3623_v52  ;;  %v3051_v7 = vadd.f32 %v14336_v56, %v2907_v44  ;;  %v3625_v5 = vadd.f32 %v14337_v25, %v3481_v24  ;;  %10245 = vmatprep.subr.mxu1 %v14332_v20  ;;  %v14349_v52 = vld [vmem:[#allocation25_spill] sm:$0xff] }
 0x3ec   :  { %10246 = vmatpush3.msra.mxu1 %v8871_v49  ;;  %v14370_v49 = vld [vmem:[#allocation39_spill] sm:$0xff] }
 0x3ed   :  { %v3911_v12 = vadd.f32 %v13143_v43, %v3767_v19  ;;  %v14339_v43 = vld [vmem:[#allocation4_spill] sm:$0xff]  ;;  %v3195_v47 = vadd.f32 %v14340_v53, %v3051_v7  ;;  %10247 = vmatprep.subr.mxu1 %v14332_v20 }
 0x3ee   :  { %v2757_v31 = vadd.f32 %v14339_v43, %v2583_v16  ;;  %v14350_v19 = vld [vmem:[#allocation8_spill] sm:$0xff] }
 0x3ef   :  { %v4055_v10 = vadd.f32 %v14333_v34, %v3911_v12  ;;  %v3339_v57 = vadd.f32 %v14344_v26, %v3195_v47  ;;  %v14352_v12 = vld [vmem:[#allocation29_spill] sm:$0xff]  ;;  %v14356_v7 = vld [vmem:[#allocation12_spill] sm:$0xff]  ;;  %v8870_v47 = vld [vmem:[%s14280_s5 + $0x20] sm:$0xff] }
 0x3f0   :  { %v10063_v1 = vpop.f32.mrf.mxu1  ;;  %10248 = vmatpush3.msra.mxu1 %v8870_v47 }
 0x3f1   :  { %v5062_v6 = vadd.f32 %v10063_v1, %v4918_v23  ;;  %v4199_v17 = vadd.f32 %v14338_v15, %v4055_v10  ;;  %v14343_v1 = vld [vmem:[#allocation5_spill] sm:$0xff]  ;;  %v3483_v40 = vadd.f32 %v14348_v13, %v3339_v57  ;;  %10252 = vmatprep.subr.mxu1 %v14332_v20  ;;  %v14363_v57 = vld [vmem:[#allocation20_spill] sm:$0xff]  ;;  %v14366_v13 = vld [vmem:[#allocation38_spill] sm:$0xff] }
 0x3f2   :  { %v13591_v58 = vpop.f32.mrf.mxu1  ;;  %v2901_v37 = vadd.f32 %v14343_v1, %v2757_v31 }
 0x3f3   :  { %v3627_v29 = vadd.f32 %v14351_v11, %v3483_v40 }
 0x3f4   :  { %v3045_v61 = vadd.f32 %v14347_v41, %v2901_v37  ;;  %v14362_v37 = vld [vmem:[#allocation30_spill] sm:$0xff]  ;;  %v14365_v41 = vld [vmem:[#allocation23_spill] sm:$0xff] }
 0x3f5   :  { %v3771_v16 = vadd.f32 %v14354_v42, %v3627_v29  ;;  %v14368_v29 = vld [vmem:[#allocation31_spill] sm:$0xff] }
 0x3f8   :  { %v10066_v8 = vpop.f32.mrf.mxu1 }
 0x3f9   :  { %v13596_v38 = vadd.f32 %v10066_v8, %v4920_v18  ;;  %v14341_v18 = vld [vmem:[#allocation18_spill] sm:$0xff] }
 0x3fa   :  { %v13600_v50 = vpop.f32.mrf.mxu1  ;;  %v3769_v35 = vadd.f32 %v14341_v18, %v3625_v5  ;;  %v14359_v18 = vld [vmem:[#allocation14_spill] sm:$0xff] }
 0x3fc   :  { %v3913_v14 = vadd.f32 %v14345_v33, %v3769_v35 }
 0x3fe   :  { %v4057_v54 = vadd.f32 %v14349_v52, %v3913_v14  ;;  %v14364_v14 = vld [vmem:[#allocation34_spill] sm:$0xff] }
 0x400   :  { %v10069_v62 = vpop.f32.mrf.mxu1  ;;  %v4201_v44 = vadd.f32 %v14352_v12, %v4057_v54 }
 0x401   :  { %v13607_v48 = vadd.f32 %v10069_v62, %v4922_v36  ;;  %v4343_v36 = vadd.f32 %v14342_v22, %v4199_v17  ;;  %v14358_v17 = vld [vmem:[#allocation37_spill] sm:$0xff]  ;;  %v14360_v22 = vld [vmem:[#allocation26_spill] sm:$0xff] }
 0x402   :  { %v13613_v23 = vpop.f32.mrf.mxu1  ;;  %v4345_v56 = vadd.f32 %v14355_v21, %v4201_v44 }
 0x403   :  { %v4487_v62 = vadd.f32 %v14346_v39, %v4343_v36 }
 0x404   :  { %v4489_v43 = vadd.f32 %v14358_v17, %v4345_v56 }
 0x405   :  { %v4631_v2 = vadd.f32 %v13428_v0, %v4487_v62 }
 0x406   :  { %v4633_v4 = vadd.f32 %v13442_v60, %v4489_v43 }
 0x407   :  { %v4775_v24 = vadd.f32 %v13510_v9, %v4631_v2  ;;  %v14357_v9 = vld [vmem:[#allocation22_spill] sm:$0xff] }
 0x408   :  { %v10072_v30 = vpop.f32.mrf.mxu1  ;;  %v3915_v15 = vadd.f32 %v14357_v9, %v3771_v16  ;;  %v4777_v26 = vadd.f32 %v13539_v59, %v4633_v4 }
 0x409   :  { %v3189_v30 = vadd.f32 %v14350_v19, %v3045_v61  ;;  %v4919_v0 = vadd.f32 %v13584_v51, %v4775_v24  ;;  %v14367_v19 = vld [vmem:[#allocation27_spill] sm:$0xff] }
 0x40a   :  { %v13634_v32 = vpop.f32.mrf.mxu1  ;;  %v4059_v36 = vadd.f32 %v14360_v22, %v3915_v15  ;;  %v4921_v62 = vadd.f32 %v13587_v45, %v4777_v26  ;;  %v14369_v45 = vld [vmem:[#allocation35_spill] sm:$0xff] }
 0x40b   :  { %v5063_v31 = vadd.f32 %v13600_v50, %v4919_v0 }
 0x40c   :  { %v5065_v52 = vadd.f32 %v13613_v23, %v4921_v62 }
 0x410   :  { %v10091_v8 = vpop.f32.mrf.mxu1 }
 0x411   :  { %v13647_v55 = vadd.f32 %v10091_v8, %v5062_v6  ;;  %v14353_v6 = vld [vmem:[#allocation10_spill] sm:$0xff]  ;;  %v4203_v8 = vadd.f32 %v14362_v37, %v4059_v36 }
 0x412   :  { %v3333_v34 = vadd.f32 %v14353_v6, %v3189_v30  ;;  %v5167_v10 = vpop.f32.mrf.mxu1 }
 0x413   :  { %v4347_v39 = vadd.f32 %v14364_v14, %v4203_v8 }
 0x414   :  { %v3477_v25 = vadd.f32 %v14356_v7, %v3333_v34 }
 0x415   :  { %v4491_v40 = vadd.f32 %v14366_v13, %v4347_v39 }
 0x416   :  { %v3621_v51 = vadd.f32 %v14359_v18, %v3477_v25 }
 0x417   :  { %v4635_v59 = vadd.f32 %v13452_v3, %v4491_v40 }
 0x418   :  { %v10094_v5 = vpop.f32.mrf.mxu1 }
 0x419   :  { %v5208_v53 = vadd.f32 %v10094_v5, %v13596_v38  ;;  %v14361_v38 = vld [vmem:[#allocation17_spill] sm:$0xff]  ;;  %v4779_v44 = vadd.f32 %v13562_v46, %v4635_v59 }
 0x41a   :  { %v5177_v35 = vpop.f32.mrf.mxu1  ;;  %v3765_v50 = vadd.f32 %v14361_v38, %v3621_v51 }
 0x41b   :  { %v5207_v1 = vadd.f32 %v5177_v35, %v5063_v31  ;;  %v4923_v6 = vadd.f32 %v13589_v27, %v4779_v44 }
 0x41c   :  { %v3909_v33 = vadd.f32 %v14363_v57, %v3765_v50 }
 0x41d   :  { %v5067_v23 = vadd.f32 %v13634_v32, %v4923_v6 }
 0x41e   :  { %v4053_v61 = vadd.f32 %v14365_v41, %v3909_v33 }
 0x420   :  { %v10097_v60 = vpop.f32.mrf.mxu1  ;;  %v4197_v30 = vadd.f32 %v14367_v19, %v4053_v61 }
 0x421   :  { %v5210_v54 = vadd.f32 %v10097_v60, %v13607_v48 }
 0x422   :  { %v5187_v2 = vpop.f32.mrf.mxu1  ;;  %v4341_v12 = vadd.f32 %v14368_v29, %v4197_v30 }
 0x423   :  { %v5209_v11 = vadd.f32 %v5187_v2, %v5065_v52 }
 0x424   :  { %v4485_v24 = vadd.f32 %v14369_v45, %v4341_v12 }
 0x426   :  { %v4629_v42 = vadd.f32 %v14370_v49, %v4485_v24 }
 0x428   :  { %v10100_v34 = vpop.f32.mrf.mxu1  ;;  %v4773_v16 = vadd.f32 %v13481_v28, %v4629_v42 }
 0x42a   :  { %v5197_v48 = vpop.f32.mrf.mxu1  ;;  %v4917_v3 = vadd.f32 %v13578_v63, %v4773_v16 }
 0x42b   :  { %v5211_v21 = vadd.f32 %v5197_v48, %v5067_v23 }
 0x42c   :  { %v5061_v56 = vadd.f32 %v13591_v58, %v4917_v3 }
 0x42e   :  { %v5205_v7 = vadd.f32 %v5167_v10, %v5061_v56 }
 0x430   :  { %v10119_v0 = vpop.f32.mrf.mxu1 }
 0x431   :  { %v5350_v46 = vadd.f32 %v10119_v0, %v13647_v55  ;;  %v13711_v0 = vld [vmem:[%s14281_s4] ss:$0 sm:$0xff] }
 0x432   :  { %v5311_v25 = vpop.f32.mrf.mxu1 }
 0x433   :  { %v5349_v5 = vadd.f32 %v5311_v25, %v5205_v7 }
 0x438   :  { %v10122_v27 = vpop.f32.mrf.mxu1 }
 0x439   :  { %v5352_v9 = vadd.f32 %v10122_v27, %v5208_v53 }
 0x43a   :  { %v5321_v15 = vpop.f32.mrf.mxu1 }
 0x43b   :  { %v5351_v17 = vadd.f32 %v5321_v15, %v5207_v1 }
 0x440   :  { %v10125_v43 = vpop.f32.mrf.mxu1 }
 0x441   :  { %v5354_v32 = vadd.f32 %v10125_v43, %v5210_v54 }
 0x442   :  { %v5331_v31 = vpop.f32.mrf.mxu1 }
 0x443   :  { %v5353_v47 = vadd.f32 %v5331_v31, %v5209_v11  ;;  %v5956_v31 = vld [vmem:[%s14280_s5 + $0x18] sm:$0xff] }
 0x448   :  { %v10128_v28 = vpop.f32.mrf.mxu1 }
 0x44a   :  { %v5341_v18 = vpop.f32.mrf.mxu1 }
 0x44b   :  { %v5355_v51 = vadd.f32 %v5341_v18, %v5211_v21 }
 0x450   :  { %v10147_v63 = vpop.f32.mrf.mxu1 }
 0x451   :  { %v5494_v35 = vadd.f32 %v10147_v63, %v5350_v46  ;;  %v5955_v63 = vld [vmem:[%s14280_s5 + $0x10] sm:$0xff] }
 0x452   :  { %v5455_v58 = vpop.f32.mrf.mxu1 }
 0x453   :  { %v5493_v49 = vadd.f32 %v5455_v58, %v5349_v5 }
 0x458   :  { %v10150_v22 = vpop.f32.mrf.mxu1 }
 0x459   :  { %v5496_v10 = vadd.f32 %v10150_v22, %v5352_v9  ;;  %v5954_v22 = vld [vmem:[%s14280_s5 + $0x8] sm:$0xff] }
 0x45a   :  { %v5465_v36 = vpop.f32.mrf.mxu1 }
 0x45b   :  { %v5495_v55 = vadd.f32 %v5465_v36, %v5351_v17  ;;  %v5953_v36 = vld [vmem:[%s14280_s5] sm:$0xff] }
 0x460   :  { %v10153_v4 = vpop.f32.mrf.mxu1 }
 0x461   :  { %v5498_v38 = vadd.f32 %v10153_v4, %v5354_v32  ;;  %v8879_v4 = vld [vmem:[%s14280_s5 + $0x58] sm:$0xff] }
 0x462   :  { %v5475_v50 = vpop.f32.mrf.mxu1 }
 0x463   :  { %v5497_v53 = vadd.f32 %v5475_v50, %v5353_v47  ;;  %v8878_v50 = vld [vmem:[%s14280_s5 + $0x50] sm:$0xff] }
 0x468   :  { %v10156_v37 = vpop.f32.mrf.mxu1 }
 0x469   :  { %v8876_v37 = vld [vmem:[%s14280_s5 + $0x40] sm:$0xff] }
 0x46a   :  { %v5485_v1 = vpop.f32.mrf.mxu1 }
 0x46b   :  { %v5499_v8 = vadd.f32 %v5485_v1, %v5355_v51 }
 0x470   :  { %v10175_v26 = vpop.f32.mrf.mxu1 }
 0x471   :  { %v13702_v57 = vadd.f32 %v10175_v26, %v5494_v35  ;;  %v8883_v26 = vld [vmem:[%s14280_s5 + $0x70] sm:$0xff] }
 0x472   :  { %v5599_v33 = vpop.f32.mrf.mxu1 }
 0x473   :  { %v5637_v23 = vadd.f32 %v5599_v33, %v5493_v49  ;;  %v8882_v33 = vld [vmem:[%s14280_s5 + $0x68] sm:$0xff]  ;;  %v8901_v49 = vld [vmem:[%s14280_s5 + $0xe0] sm:$0xff] }
 0x474   :  { %v10178_v14 = vpop.f32.mrf.mxu1 }
 0x475   :  { %v5640_v39 = vadd.f32 %v10178_v14, %v5496_v10 }
 0x476   :  { %v5609_v62 = vpop.f32.mrf.mxu1 }
 0x477   :  { %v5639_v60 = vadd.f32 %v5609_v62, %v5495_v55 }
 0x478   :  { %v10181_v41 = vpop.f32.mrf.mxu1 }
 0x479   :  { %v5642_v61 = vadd.f32 %v10181_v41, %v5498_v38  ;;  %v8889_v41 = vld [vmem:[%s14280_s5 + $0x98] sm:$0xff] }
 0x47a   :  { %v5619_v13 = vpop.f32.mrf.mxu1 }
 0x47b   :  { %v5641_v40 = vadd.f32 %v5619_v13, %v5497_v53  ;;  %v8877_v53 = vld [vmem:[%s14280_s5 + $0x48] sm:$0xff] }
 0x47c   :  { %v10184_v52 = vpop.f32.mrf.mxu1  ;;  %v8887_v13 = vld [vmem:[%s14280_s5 + $0x88] sm:$0xff] }
 0x47e   :  { %v5629_v54 = vpop.f32.mrf.mxu1 }
 0x47f   :  { %v5643_v2 = vadd.f32 %v5629_v54, %v5499_v8  ;;  %v8884_v8 = vld [vmem:[%s14280_s5 + $0x78] sm:$0xff] }
 0x480   :  { %v13704_v19 = vpop.f32.mrf.mxu1  ;;  %v8894_v54 = vld [vmem:[%s14280_s5 + $0xb8] sm:$0xff] }
 0x481   :  { %v5782_v14 = vadd.f32 %v13704_v19, %v13702_v57  ;;  %v8888_v57 = vld [vmem:[%s14280_s5 + $0x90] sm:$0xff]  ;;  %v8892_v19 = vld [vmem:[%s14280_s5 + $0xa8] sm:$0xff] }
 0x482   :  { %v5743_v30 = vpop.f32.mrf.mxu1 }
 0x483   :  { %v5781_v21 = vadd.f32 %v5743_v30, %v5637_v23  ;;  %v8891_v30 = vld [vmem:[%s14280_s5 + $0xa0] sm:$0xff]  ;;  %v8909_v23 = vld [vmem:[%s14280_s5 + $0x118] sm:$0xff] }
 0x484   :  { %v10206_v59 = vpop.f32.mrf.mxu1 }
 0x485   :  { %v5784_v11 = vadd.f32 %v10206_v59, %v5640_v39  ;;  %v8881_v39 = vld [vmem:[%s14280_s5 + $0x60] sm:$0xff] }
 0x486   :  { %v5753_v29 = vpop.f32.mrf.mxu1 }
 0x487   :  { %v5783_v12 = vadd.f32 %v5753_v29, %v5639_v60  ;;  %v8898_v29 = vld [vmem:[%s14280_s5 + $0xd0] sm:$0xff] }
 0x488   :  { %v10209_v44 = vpop.f32.mrf.mxu1 }
 0x489   :  { %v5786_v45 = vadd.f32 %v10209_v44, %v5642_v61  ;;  %v8896_v44 = vld [vmem:[%s14280_s5 + $0xc0] sm:$0xff] }
 0x48a   :  { %v5763_v24 = vpop.f32.mrf.mxu1 }
 0x48b   :  { %v5785_v6 = vadd.f32 %v5763_v24, %v5641_v40  ;;  %v8886_v40 = vld [vmem:[%s14280_s5 + $0x80] sm:$0xff]  ;;  %v8904_v24 = vld [vmem:[%s14280_s5 + $0xf8] sm:$0xff] }
 0x48c   :  { %v10212_v34 = vpop.f32.mrf.mxu1 }
 0x48d   :  { %v8902_v34 = vld [vmem:[%s14280_s5 + $0xe8] sm:$0xff] }
 0x48e   :  { %v5773_v42 = vpop.f32.mrf.mxu1 }
 0x48f   :  { %v5787_v48 = vadd.f32 %v5773_v42, %v5643_v2  ;;  %v8893_v2 = vld [vmem:[%s14280_s5 + $0xb0] sm:$0xff] }
 0x490   :  { %v13706_v16 = vpop.f32.mrf.mxu1 }
 0x491   :  { %v5926_v62 = vadd.f32 %v13706_v16, %v5782_v14  ;;  %v8907_v16 = vld [vmem:[%s14280_s5 + $0x108] sm:$0xff]  ;;  %v8944_v14 = vld [vmem:[%s14280_s5 + $0x1f8] sm:$0xff] }
 0x492   :  { %v5887_v3 = vpop.f32.mrf.mxu1 }
 0x493   :  { %v5925_v56 = vadd.f32 %v5887_v3, %v5781_v21  ;;  %v5940_v61 = vadd.f32 %v13711_v0, %v5926_v62  ;;  %v8906_v21 = vld [vmem:[%s14280_s5 + $0x100] sm:$0xff]  ;;  %v8942_v62 = vld [vmem:[%s14280_s5 + $0x1e8] sm:$0xff] }
 0x494   :  { %v10234_v7 = vpop.f32.mrf.mxu1 }
 0x495   :  { %v5939_v46 = vadd.f32 %v13711_v0, %v5925_v56  ;;  %v5928_v25 = vadd.f32 %v10234_v7, %v5784_v11  ;;  %v5947_v52 = vmax.f32 %v5940_v61, 0.0  ;;  %v8899_v11 = vld [vmem:[%s14280_s5 + $0xd8] sm:$0xff]  ;;  %v8912_v7 = vld [vmem:[%s14280_s5 + $0x128] sm:$0xff]  ;;  %v8948_v61 = vld [vmem:[%s14280_s5 + $0x210] sm:$0xff] }
 0x496   :  { %v5897_v27 = vpop.f32.mrf.mxu1  ;;  %v8914_v56 = vld [vmem:[%s14280_s5 + $0x138] sm:$0xff] }
 0x497   :  { %v13714_v9 = vmax.f32 %v5939_v46, 0.0  ;;  %v13717_v5 = vadd.f32 %v13711_v0, %v5928_v25  ;;  %v5927_v15 = vadd.f32 %v5897_v27, %v5783_v12  ;;  %v6351_v59 = vrot.slane %v5947_v52, 2  ;;  %v8897_v12 = vld [vmem:[%s14280_s5 + $0xc8] sm:$0xff]  ;;  %v8911_v46 = vld [vmem:[%s14280_s5 + $0x120] sm:$0xff]  ;;  %v8919_v27 = vld [vmem:[%s14280_s5 + $0x158] sm:$0xff] }
 0x498   :  { %v10237_v17 = vpop.f32.mrf.mxu1  ;;  %v6509_v42 = vrot.slane %v5947_v52, 6 }
 0x499   :  { %v5963_v43 = vrot.slane %v13714_v9, 2  ;;  %v5930_v32 = vadd.f32 %v10237_v17, %v5786_v45  ;;  %v13724_v47 = vadd.f32 %v13711_v0, %v5927_v15  ;;  %v6114_v1 = vrot.slane %v13714_v9, 4  ;;  %v8917_v15 = vld [vmem:[%s14280_s5 + $0x148] sm:$0xff]  ;;  %v8916_v17 = vld [vmem:[%s14280_s5 + $0x140] sm:$0xff] }
 0x49a   :  { %v5907_v28 = vpop.f32.mrf.mxu1  ;;  %v6193_v60 = vrot.slane %v13714_v9, 6  ;;  %v6430_v45 = vrot.slane %v5947_v52, 4 }
 0x49b   :  { %v13727_v18 = vadd.f32 %v13711_v0, %v5930_v32  ;;  %v5929_v51 = vadd.f32 %v5907_v28, %v5785_v6  ;;  %10250 = vmatmul.mubr.msk.f32.vlgmr.msra.gmra.mxu1 %vm5964_vm4, %v5963_v43  ;;  %v8903_v6 = vld [vmem:[%s14280_s5 + $0xf0] sm:$0xff]  ;;  %v5948_v3 = vmax.f32 %v13724_v47, 0.0  ;;  %v8924_v32 = vld [vmem:[%s14280_s5 + $0x178] sm:$0xff]  ;;  %v8922_v47 = vld [vmem:[%s14280_s5 + $0x168] sm:$0xff] }
 0x49c   :  { %10253 = vmatpush3.msra.mxu1 %v5956_v31  ;;  %v10240_v35 = vpop.f32.mrf.mxu1  ;;  %10260 = vmatprep.mubr.msk.f32.mxu1 %vm10601_vm3, %v14332_v20  ;;  %v8923_v31 = vld [vmem:[%s14280_s5 + $0x170] sm:$0xff]  ;;  %v8921_v28 = vld [vmem:[%s14280_s5 + $0x160] sm:$0xff] }
 0x49d   :  { %v13736_v58 = vadd.f32 %v13711_v0, %v5929_v51  ;;  %10254 = vmatprep.subr.mxu1 %v14332_v20  ;;  %v6667_v25 = vrot.slane %v5948_v3, 2  ;;  %v6746_v43 = vrot.slane %v5948_v3, 4  ;;  %v6825_v51 = vrot.slane %v5948_v3, 6  ;;  %v8928_v35 = vld [vmem:[%s14280_s5 + $0x190] sm:$0xff] }
 0x49e   :  { %10255 = vmatpush3.msra.mxu1 %v5955_v63  ;;  %v5917_v10 = vpop.f32.mrf.mxu1  ;;  %v8929_v63 = vld [vmem:[%s14280_s5 + $0x198] sm:$0xff] }
 0x49f   :  { %10256 = vmatprep.subr.mxu1 %v14332_v20  ;;  %v5931_v55 = vadd.f32 %v5917_v10, %v5787_v48  ;;  %v8908_v48 = vld [vmem:[%s14280_s5 + $0x110] sm:$0xff]  ;;  %v8926_v10 = vld [vmem:[%s14280_s5 + $0x180] sm:$0xff] }
 0x4a0   :  { %10257 = vmatpush3.msra.mxu1 %v5954_v22  ;;  %v8927_v22 = vld [vmem:[%s14280_s5 + $0x188] sm:$0xff] }
 0x4a1   :  { %10258 = vmatprep.subr.mxu1 %v14332_v20  ;;  %v13751_v38 = vadd.f32 %v13711_v0, %v5931_v55  ;;  %v8913_v0 = vld [vmem:[%s14280_s5 + $0x130] sm:$0xff]  ;;  %v8934_v55 = vld [vmem:[%s14280_s5 + $0x1b8] sm:$0xff] }
 0x4a2   :  { %10259 = vmatpush3.msra.mxu1 %v5953_v36  ;;  %v5949_v36 = vmax.f32 %v13717_v5, 0.0  ;;  %v8932_v5 = vld [vmem:[%s14280_s5 + $0x1a8] sm:$0xff] }
 0x4a3   :  { %10261 = vmatmul.mubr.msk.f32.vlgmr.msra.gmra.mxu1 %vm5964_vm4, %v13714_v9  ;;  %10263 = vmatprep.subr.mxu1 %v14332_v20  ;;  %v8918_v9 = vld [vmem:[%s14280_s5 + $0x150] sm:$0xff] }
 0x4a4   :  { %10264 = vmatpush3.msra.mxu1 %v8879_v4  ;;  %10271 = vmatprep.mubr.msk.f32.mxu1 %vm10601_vm3, %v14332_v20  ;;  %v8933_v4 = vld [vmem:[%s14280_s5 + $0x1b0] sm:$0xff] }
 0x4a5   :  { %10265 = vmatprep.subr.mxu1 %v14332_v20 }
 0x4a6   :  { %10266 = vmatpush3.msra.mxu1 %v8878_v50  ;;  %v8931_v50 = vld [vmem:[%s14280_s5 + $0x1a0] sm:$0xff] }
 0x4a7   :  { %10267 = vmatprep.subr.mxu1 %v14332_v20 }
 0x4a8   :  { %10268 = vmatpush3.msra.mxu1 %v8877_v53  ;;  %v6983_v53 = vrot.slane %v5949_v36, 2 }
 0x4a9   :  { %10269 = vmatprep.subr.mxu1 %v14332_v20 }
 0x4aa   :  { %10270 = vmatpush3.msra.mxu1 %v8876_v37  ;;  %v8939_v37 = vld [vmem:[%s14280_s5 + $0x1d8] sm:$0xff] }
 0x4ab   :  { %10272 = vmatmul.mubr.msk.f32.vlgmr.msra.gmra.mxu1 %vm5964_vm4, %v6114_v1  ;;  %10274 = vmatprep.subr.mxu1 %v14332_v20  ;;  %v8938_v1 = vld [vmem:[%s14280_s5 + $0x1d0] sm:$0xff] }
 0x4ac   :  { %10275 = vmatpush3.msra.mxu1 %v8884_v8  ;;  %10282 = vmatprep.mubr.msk.f32.mxu1 %vm10601_vm3, %v14332_v20  ;;  %v8937_v8 = vld [vmem:[%s14280_s5 + $0x1c8] sm:$0xff] }
 0x4ad   :  { %10276 = vmatprep.subr.mxu1 %v14332_v20 }
 0x4ae   :  { %10277 = vmatpush3.msra.mxu1 %v8883_v26  ;;  %v8936_v26 = vld [vmem:[%s14280_s5 + $0x1c0] sm:$0xff] }
 0x4af   :  { %10278 = vmatprep.subr.mxu1 %v14332_v20 }
 0x4b0   :  { %10279 = vmatpush3.msra.mxu1 %v8882_v33  ;;  %v7062_v33 = vrot.slane %v5949_v36, 4 }
 0x4b1   :  { %10280 = vmatprep.subr.mxu1 %v14332_v20 }
 0x4b2   :  { %10281 = vmatpush3.msra.mxu1 %v8881_v39  ;;  %v8943_v39 = vld [vmem:[%s14280_s5 + $0x1f0] sm:$0xff] }
 0x4b3   :  { %10283 = vmatmul.mubr.msk.f32.vlgmr.msra.gmra.mxu1 %vm5964_vm4, %v6193_v60  ;;  %10285 = vmatprep.subr.mxu1 %v14332_v20  ;;  %v8941_v60 = vld [vmem:[%s14280_s5 + $0x1e0] sm:$0xff] }
 0x4b4   :  { %10286 = vmatpush3.msra.mxu1 %v8889_v41  ;;  %10293 = vmatprep.mubr.msk.f32.mxu1 %vm10601_vm3, %v14332_v20  ;;  %v7141_v41 = vrot.slane %v5949_v36, 6 }
 0x4b5   :  { %10287 = vmatprep.subr.mxu1 %v14332_v20 }
 0x4b6   :  { %10288 = vmatpush3.msra.mxu1 %v8888_v57  ;;  %v8949_v57 = vld [vmem:[%s14280_s5 + $0x218] sm:$0xff] }
 0x4b7   :  { %10289 = vmatprep.subr.mxu1 %v14332_v20 }
 0x4b8   :  { %10290 = vmatpush3.msra.mxu1 %v8887_v13  ;;  %v8947_v13 = vld [vmem:[%s14280_s5 + $0x208] sm:$0xff] }
 0x4b9   :  { %10291 = vmatprep.subr.mxu1 %v14332_v20 }
 0x4ba   :  { %10292 = vmatpush3.msra.mxu1 %v8886_v40  ;;  %v8946_v40 = vld [vmem:[%s14280_s5 + $0x200] sm:$0xff] }
 0x4bb   :  { %10294 = vmatmul.mubr.msk.f32.vlgmr.msra.gmra.mxu1 %vm5964_vm4, %v5947_v52  ;;  %10296 = vmatprep.subr.mxu1 %v14332_v20  ;;  %v5950_v52 = vmax.f32 %v13736_v58, 0.0  ;;  %v8952_v58 = vld [vmem:[%s14280_s5 + $0x228] sm:$0xff] }
 0x4bc   :  { %10297 = vmatpush3.msra.mxu1 %v8894_v54  ;;  %10304 = vmatprep.mubr.msk.f32.mxu1 %vm10601_vm3, %v14332_v20  ;;  %v8954_v54 = vld [vmem:[%s14280_s5 + $0x238] sm:$0xff] }
 0x4bd   :  { %10298 = vmatprep.subr.mxu1 %v14332_v20 }
 0x4be   :  { %10299 = vmatpush3.msra.mxu1 %v8893_v2  ;;  %v8953_v2 = vld [vmem:[%s14280_s5 + $0x230] sm:$0xff] }
 0x4bf   :  { %10300 = vmatprep.subr.mxu1 %v14332_v20 }
 0x4c0   :  { %10301 = vmatpush3.msra.mxu1 %v8892_v19  ;;  %v8951_v19 = vld [vmem:[%s14280_s5 + $0x220] sm:$0xff] }
 0x4c1   :  { %10302 = vmatprep.subr.mxu1 %v14332_v20 }
 0x4c2   :  { %10303 = vmatpush3.msra.mxu1 %v8891_v30  ;;  %v7299_v30 = vrot.slane %v5950_v52, 2 }
 0x4c3   :  { %10305 = vmatmul.mubr.msk.f32.vlgmr.msra.gmra.mxu1 %vm5964_vm4, %v6351_v59  ;;  %10307 = vmatprep.subr.mxu1 %v14332_v20  ;;  %v8959_v59 = vld [vmem:[%s14280_s5 + $0x258] sm:$0xff] }
 0x4c4   :  { %10308 = vmatpush3.msra.mxu1 %v8899_v11  ;;  %10315 = vmatprep.mubr.msk.f32.mxu1 %vm10601_vm3, %v14332_v20  ;;  %v8958_v11 = vld [vmem:[%s14280_s5 + $0x250] sm:$0xff] }
 0x4c5   :  { %10309 = vmatprep.subr.mxu1 %v14332_v20 }
 0x4c6   :  { %10310 = vmatpush3.msra.mxu1 %v8898_v29  ;;  %v8957_v29 = vld [vmem:[%s14280_s5 + $0x248] sm:$0xff] }
 0x4c7   :  { %10311 = vmatprep.subr.mxu1 %v14332_v20 }
 0x4c8   :  { %10312 = vmatpush3.msra.mxu1 %v8897_v12  ;;  %v8956_v12 = vld [vmem:[%s14280_s5 + $0x240] sm:$0xff] }
 0x4c9   :  { %10313 = vmatprep.subr.mxu1 %v14332_v20 }
 0x4ca   :  { %10314 = vmatpush3.msra.mxu1 %v8896_v44  ;;  %v7378_v44 = vrot.slane %v5950_v52, 4 }
 0x4cb   :  { %10316 = vmatmul.mubr.msk.f32.vlgmr.msra.gmra.mxu1 %vm5964_vm4, %v6430_v45  ;;  %10318 = vmatprep.subr.mxu1 %v14332_v20  ;;  %v8964_v45 = vld [vmem:[%s14280_s5 + $0x278] sm:$0xff] }
 0x4cc   :  { %10319 = vmatpush3.msra.mxu1 %v8904_v24  ;;  %10326 = vmatprep.mubr.msk.f32.mxu1 %vm10601_vm3, %v14332_v20  ;;  %v8963_v24 = vld [vmem:[%s14280_s5 + $0x270] sm:$0xff] }
 0x4cd   :  { %10320 = vmatprep.subr.mxu1 %v14332_v20 }
 0x4ce   :  { %10321 = vmatpush3.msra.mxu1 %v8903_v6  ;;  %v8962_v6 = vld [vmem:[%s14280_s5 + $0x268] sm:$0xff] }
 0x4cf   :  { %10322 = vmatprep.subr.mxu1 %v14332_v20 }
 0x4d0   :  { %10323 = vmatpush3.msra.mxu1 %v8902_v34  ;;  %v8961_v34 = vld [vmem:[%s14280_s5 + $0x260] sm:$0xff] }
 0x4d1   :  { %10324 = vmatprep.subr.mxu1 %v14332_v20 }
 0x4d2   :  { %10325 = vmatpush3.msra.mxu1 %v8901_v49  ;;  %v7457_v49 = vrot.slane %v5950_v52, 6 }
 0x4d3   :  { %10327 = vmatmul.mubr.msk.f32.vlgmr.msra.gmra.mxu1 %vm5964_vm4, %v6509_v42  ;;  %10329 = vmatprep.subr.mxu1 %v14332_v20  ;;  %v8969_v42 = vld [vmem:[%s14280_s5 + $0x298] sm:$0xff] }
 0x4d4   :  { %10330 = vmatpush3.msra.mxu1 %v8909_v23  ;;  %10337 = vmatprep.mubr.msk.f32.mxu1 %vm10601_vm3, %v14332_v20  ;;  %v8968_v23 = vld [vmem:[%s14280_s5 + $0x290] sm:$0xff] }
 0x4d5   :  { %10331 = vmatprep.subr.mxu1 %v14332_v20 }
 0x4d6   :  { %10332 = vmatpush3.msra.mxu1 %v8908_v48  ;;  %v8967_v48 = vld [vmem:[%s14280_s5 + $0x288] sm:$0xff] }
 0x4d7   :  { %10333 = vmatprep.subr.mxu1 %v14332_v20 }
 0x4d8   :  { %10334 = vmatpush3.msra.mxu1 %v8907_v16  ;;  %v8966_v16 = vld [vmem:[%s14280_s5 + $0x280] sm:$0xff] }
 0x4d9   :  { %10335 = vmatprep.subr.mxu1 %v14332_v20 }
 0x4da   :  { %10336 = vmatpush3.msra.mxu1 %v8906_v21  ;;  %v5951_v21 = vmax.f32 %v13727_v18, 0.0  ;;  %v8972_v18 = vld [vmem:[%s14280_s5 + $0x2a8] sm:$0xff] }
 0x4db   :  { %10338 = vmatmul.mubr.msk.f32.vlgmr.msra.gmra.mxu1 %vm5964_vm4, %v5948_v3  ;;  %10340 = vmatprep.subr.mxu1 %v14332_v20  ;;  %v8974_v3 = vld [vmem:[%s14280_s5 + $0x2b8] sm:$0xff] }
 0x4dc   :  { %10341 = vmatpush3.msra.mxu1 %v8914_v56  ;;  %10348 = vmatprep.mubr.msk.f32.mxu1 %vm10601_vm3, %v14332_v20  ;;  %v8973_v56 = vld [vmem:[%s14280_s5 + $0x2b0] sm:$0xff] }
 0x4dd   :  { %10342 = vmatprep.subr.mxu1 %v14332_v20 }
 0x4de   :  { %10343 = vmatpush3.msra.mxu1 %v8913_v0  ;;  %v8971_v0 = vld [vmem:[%s14280_s5 + $0x2a0] sm:$0xff] }
 0x4df   :  { %10344 = vmatprep.subr.mxu1 %v14332_v20 }
 0x4e0   :  { %10345 = vmatpush3.msra.mxu1 %v8912_v7  ;;  %v7615_v7 = vrot.slane %v5951_v21, 2 }
 0x4e1   :  { %10346 = vmatprep.subr.mxu1 %v14332_v20 }
 0x4e2   :  { %10347 = vmatpush3.msra.mxu1 %v8911_v46  ;;  %v8979_v46 = vld [vmem:[%s14280_s5 + $0x2d8] sm:$0xff] }
 0x4e3   :  { %10349 = vmatmul.mubr.msk.f32.vlgmr.msra.gmra.mxu1 %vm5964_vm4, %v6667_v25  ;;  %10351 = vmatprep.subr.mxu1 %v14332_v20  ;;  %v8978_v25 = vld [vmem:[%s14280_s5 + $0x2d0] sm:$0xff] }
 0x4e4   :  { %10352 = vmatpush3.msra.mxu1 %v8919_v27  ;;  %10359 = vmatprep.mubr.msk.f32.mxu1 %vm10601_vm3, %v14332_v20  ;;  %v8977_v27 = vld [vmem:[%s14280_s5 + $0x2c8] sm:$0xff] }
 0x4e5   :  { %10353 = vmatprep.subr.mxu1 %v14332_v20 }
 0x4e6   :  { %10354 = vmatpush3.msra.mxu1 %v8918_v9  ;;  %v8976_v9 = vld [vmem:[%s14280_s5 + $0x2c0] sm:$0xff] }
 0x4e7   :  { %10355 = vmatprep.subr.mxu1 %v14332_v20 }
 0x4e8   :  { %10356 = vmatpush3.msra.mxu1 %v8917_v15  ;;  %v7694_v15 = vrot.slane %v5951_v21, 4 }
 0x4e9   :  { %10357 = vmatprep.subr.mxu1 %v14332_v20 }
 0x4ea   :  { %10358 = vmatpush3.msra.mxu1 %v8916_v17  ;;  %v8984_v17 = vld [vmem:[%s14280_s5 + $0x2f8] sm:$0xff] }
 0x4eb   :  { %10360 = vmatmul.mubr.msk.f32.vlgmr.msra.gmra.mxu1 %vm5964_vm4, %v6746_v43  ;;  %10362 = vmatprep.subr.mxu1 %v14332_v20  ;;  %v8983_v43 = vld [vmem:[%s14280_s5 + $0x2f0] sm:$0xff] }
 0x4ec   :  { %10363 = vmatpush3.msra.mxu1 %v8924_v32  ;;  %10370 = vmatprep.mubr.msk.f32.mxu1 %vm10601_vm3, %v14332_v20  ;;  %v8982_v32 = vld [vmem:[%s14280_s5 + $0x2e8] sm:$0xff] }
 0x4ed   :  { %10364 = vmatprep.subr.mxu1 %v14332_v20 }
 0x4ee   :  { %10365 = vmatpush3.msra.mxu1 %v8923_v31  ;;  %v8981_v31 = vld [vmem:[%s14280_s5 + $0x2e0] sm:$0xff] }
 0x4ef   :  { %10366 = vmatprep.subr.mxu1 %v14332_v20 }
 0x4f0   :  { %10367 = vmatpush3.msra.mxu1 %v8922_v47  ;;  %v7773_v47 = vrot.slane %v5951_v21, 6 }
 0x4f1   :  { %10368 = vmatprep.subr.mxu1 %v14332_v20 }
 0x4f2   :  { %10369 = vmatpush3.msra.mxu1 %v8921_v28  ;;  %v8989_v28 = vld [vmem:[%s14280_s5 + $0x318] sm:$0xff] }
 0x4f3   :  { %10371 = vmatmul.mubr.msk.f32.vlgmr.msra.gmra.mxu1 %vm5964_vm4, %v6825_v51  ;;  %10373 = vmatprep.subr.mxu1 %v14332_v20  ;;  %v8988_v51 = vld [vmem:[%s14280_s5 + $0x310] sm:$0xff] }
 0x4f4   :  { %10374 = vmatpush3.msra.mxu1 %v8929_v63  ;;  %10381 = vmatprep.mubr.msk.f32.mxu1 %vm10601_vm3, %v14332_v20  ;;  %v8987_v63 = vld [vmem:[%s14280_s5 + $0x308] sm:$0xff] }
 0x4f5   :  { %10375 = vmatprep.subr.mxu1 %v14332_v20 }
 0x4f6   :  { %10376 = vmatpush3.msra.mxu1 %v8928_v35  ;;  %v8986_v35 = vld [vmem:[%s14280_s5 + $0x300] sm:$0xff] }
 0x4f7   :  { %10377 = vmatprep.subr.mxu1 %v14332_v20 }
 0x4f8   :  { %10378 = vmatpush3.msra.mxu1 %v8927_v22  ;;  %v5952_v22 = vmax.f32 %v13751_v38, 0.0 }
 0x4f9   :  { %10379 = vmatprep.subr.mxu1 %v14332_v20 }
 0x4fa   :  { %10380 = vmatpush3.msra.mxu1 %v8926_v10 }
 0x4fb   :  { %10382 = vmatmul.mubr.msk.f32.vlgmr.msra.gmra.mxu1 %vm5964_vm4, %v5949_v36  ;;  %10384 = vmatprep.subr.mxu1 %v14332_v20 }
 0x4fc   :  { %10385 = vmatpush3.msra.mxu1 %v8934_v55  ;;  %10392 = vmatprep.mubr.msk.f32.mxu1 %vm10601_vm3, %v14332_v20 }
 0x4fd   :  { %10386 = vmatprep.subr.mxu1 %v14332_v20 }
 0x4fe   :  { %10387 = vmatpush3.msra.mxu1 %v8933_v4 }
 0x4ff   :  { %10388 = vmatprep.subr.mxu1 %v14332_v20 }
 0x500   :  { %10389 = vmatpush3.msra.mxu1 %v8932_v5 }
 0x501   :  { %10390 = vmatprep.subr.mxu1 %v14332_v20 }
 0x502   :  { %10391 = vmatpush3.msra.mxu1 %v8931_v50 }
 0x503   :  { %10393 = vmatmul.mubr.msk.f32.vlgmr.msra.gmra.mxu1 %vm5964_vm4, %v6983_v53  ;;  %10395 = vmatprep.subr.mxu1 %v14332_v20 }
 0x504   :  { %10396 = vmatpush3.msra.mxu1 %v8939_v37  ;;  %10403 = vmatprep.mubr.msk.f32.mxu1 %vm10601_vm3, %v14332_v20 }
 0x505   :  { %10397 = vmatprep.subr.mxu1 %v14332_v20 }
 0x506   :  { %10398 = vmatpush3.msra.mxu1 %v8938_v1 }
 0x507   :  { %10399 = vmatprep.subr.mxu1 %v14332_v20 }
 0x508   :  { %10400 = vmatpush3.msra.mxu1 %v8937_v8 }
 0x509   :  { %10401 = vmatprep.subr.mxu1 %v14332_v20 }
 0x50a   :  { %10402 = vmatpush3.msra.mxu1 %v8936_v26 }
 0x50b   :  { %10404 = vmatmul.mubr.msk.f32.vlgmr.msra.gmra.mxu1 %vm5964_vm4, %v7062_v33  ;;  %10406 = vmatprep.subr.mxu1 %v14332_v20 }
 0x50c   :  { %10407 = vmatpush3.msra.mxu1 %v8944_v14  ;;  %10414 = vmatprep.mubr.msk.f32.mxu1 %vm10601_vm3, %v14332_v20 }
 0x50d   :  { %10408 = vmatprep.subr.mxu1 %v14332_v20 }
 0x50e   :  { %10409 = vmatpush3.msra.mxu1 %v8943_v39 }
 0x50f   :  { %10410 = vmatprep.subr.mxu1 %v14332_v20 }
 0x510   :  { %10411 = vmatpush3.msra.mxu1 %v8942_v62 }
 0x511   :  { %10412 = vmatprep.subr.mxu1 %v14332_v20 }
 0x512   :  { %10413 = vmatpush3.msra.mxu1 %v8941_v60 }
 0x513   :  { %10415 = vmatmul.mubr.msk.f32.vlgmr.msra.gmra.mxu1 %vm5964_vm4, %v7141_v41  ;;  %10417 = vmatprep.subr.mxu1 %v14332_v20 }
 0x514   :  { %10418 = vmatpush3.msra.mxu1 %v8949_v57  ;;  %10425 = vmatprep.mubr.msk.f32.mxu1 %vm10601_vm3, %v14332_v20 }
 0x515   :  { %10419 = vmatprep.subr.mxu1 %v14332_v20 }
 0x516   :  { %10420 = vmatpush3.msra.mxu1 %v8948_v61 }
 0x517   :  { %10421 = vmatprep.subr.mxu1 %v14332_v20 }
 0x518   :  { %10422 = vmatpush3.msra.mxu1 %v8947_v13 }
 0x519   :  { %10423 = vmatprep.subr.mxu1 %v14332_v20 }
 0x51a   :  { %10424 = vmatpush3.msra.mxu1 %v8946_v40 }
 0x51b   :  { %10426 = vmatmul.mubr.msk.f32.vlgmr.msra.gmra.mxu1 %vm5964_vm4, %v5950_v52  ;;  %10428 = vmatprep.subr.mxu1 %v14332_v20 }
 0x51c   :  { %10429 = vmatpush3.msra.mxu1 %v8954_v54  ;;  %10436 = vmatprep.mubr.msk.f32.mxu1 %vm10601_vm3, %v14332_v20  ;;  %v7939_v54 = vld [vmem:[%s14282_s9 + $0x8] sm:$0xf] }
 0x51d   :  { %10430 = vmatprep.subr.mxu1 %v14332_v20 }
 0x51e   :  { %10431 = vmatpush3.msra.mxu1 %v8953_v2  ;;  %v7938_v2 = vld [vmem:[%s14282_s9] sm:$0xff] }
 0x51f   :  { %10432 = vmatprep.subr.mxu1 %v14332_v20 }
 0x520   :  { %10433 = vmatpush3.msra.mxu1 %v8952_v58 }
 0x521   :  { %10434 = vmatprep.subr.mxu1 %v14332_v20 }
 0x522   :  { %10435 = vmatpush3.msra.mxu1 %v8951_v19  ;;  %v7937_v19 = vld [vmem:[%s14283_s7] sm:$0x3] }
 0x523   :  { %10437 = vmatmul.mubr.msk.f32.vlgmr.msra.gmra.mxu1 %vm5964_vm4, %v7299_v30  ;;  %10439 = vmatprep.subr.mxu1 %v14332_v20 }
 0x524   :  { %10440 = vmatpush3.msra.mxu1 %v8959_v59  ;;  %10447 = vmatprep.mubr.msk.f32.mxu1 %vm10601_vm3, %v14332_v20 }
 0x525   :  { %10441 = vmatprep.subr.mxu1 %v14332_v20 }
 0x526   :  { %10442 = vmatpush3.msra.mxu1 %v8958_v11  ;;  %v7936_v11 = vld [vmem:[%s14284_s8 + $0x8] sm:$0xff] }
 0x527   :  { %10443 = vmatprep.subr.mxu1 %v14332_v20 }
 0x528   :  { %10444 = vmatpush3.msra.mxu1 %v8957_v29  ;;  %v7935_v29 = vld [vmem:[%s14284_s8] sm:$0xff] }
 0x529   :  { %10445 = vmatprep.subr.mxu1 %v14332_v20 }
 0x52a   :  { %10446 = vmatpush3.msra.mxu1 %v8956_v12 }
 0x52b   :  { %10448 = vmatmul.mubr.msk.f32.vlgmr.msra.gmra.mxu1 %vm5964_vm4, %v7378_v44  ;;  %10450 = vmatprep.subr.mxu1 %v14332_v20 }
 0x52c   :  { %10451 = vmatpush3.msra.mxu1 %v8964_v45  ;;  %10458 = vmatprep.mubr.msk.f32.mxu1 %vm10601_vm3, %v14332_v20 }
 0x52d   :  { %10452 = vmatprep.subr.mxu1 %v14332_v20 }
 0x52e   :  { %10453 = vmatpush3.msra.mxu1 %v8963_v24 }
 0x52f   :  { %10454 = vmatprep.subr.mxu1 %v14332_v20 }
 0x530   :  { %10455 = vmatpush3.msra.mxu1 %v8962_v6 }
 0x531   :  { %10456 = vmatprep.subr.mxu1 %v14332_v20 }
 0x532   :  { %10457 = vmatpush3.msra.mxu1 %v8961_v34 }
 0x533   :  { %10459 = vmatmul.mubr.msk.f32.vlgmr.msra.gmra.mxu1 %vm5964_vm4, %v7457_v49  ;;  %10461 = vmatprep.subr.mxu1 %v14332_v20 }
 0x534   :  { %10462 = vmatpush3.msra.mxu1 %v8969_v42  ;;  %10469 = vmatprep.mubr.msk.f32.mxu1 %vm10601_vm3, %v14332_v20 }
 0x535   :  { %10463 = vmatprep.subr.mxu1 %v14332_v20 }
 0x536   :  { %10464 = vmatpush3.msra.mxu1 %v8968_v23 }
 0x537   :  { %10465 = vmatprep.subr.mxu1 %v14332_v20 }
 0x538   :  { %10466 = vmatpush3.msra.mxu1 %v8967_v48 }
 0x539   :  { %10467 = vmatprep.subr.mxu1 %v14332_v20 }
 0x53a   :  { %10468 = vmatpush3.msra.mxu1 %v8966_v16 }
 0x53b   :  { %10470 = vmatmul.mubr.msk.f32.vlgmr.msra.gmra.mxu1 %vm5964_vm4, %v5951_v21  ;;  %10472 = vmatprep.subr.mxu1 %v14332_v20 }
 0x53c   :  { %10473 = vmatpush3.msra.mxu1 %v8974_v3  ;;  %10480 = vmatprep.mubr.msk.f32.mxu1 %vm10601_vm3, %v14332_v20 }
 0x53d   :  { %10474 = vmatprep.subr.mxu1 %v14332_v20 }
 0x53e   :  { %10475 = vmatpush3.msra.mxu1 %v8973_v56 }
 0x53f   :  { %10476 = vmatprep.subr.mxu1 %v14332_v20 }
 0x540   :  { %10477 = vmatpush3.msra.mxu1 %v8972_v18 }
 0x541   :  { %10478 = vmatprep.subr.mxu1 %v14332_v20 }
 0x542   :  { %10479 = vmatpush3.msra.mxu1 %v8971_v0 }
 0x543   :  { %10481 = vmatmul.mubr.msk.f32.vlgmr.msra.gmra.mxu1 %vm5964_vm4, %v7615_v7  ;;  %10483 = vmatprep.subr.mxu1 %v14332_v20 }
 0x544   :  { %10484 = vmatpush3.msra.mxu1 %v8979_v46  ;;  %10491 = vmatprep.mubr.msk.f32.mxu1 %vm10601_vm3, %v14332_v20 }
 0x545   :  { %10485 = vmatprep.subr.mxu1 %v14332_v20 }
 0x546   :  { %10486 = vmatpush3.msra.mxu1 %v8978_v25 }
 0x547   :  { %10487 = vmatprep.subr.mxu1 %v14332_v20 }
 0x548   :  { %10488 = vmatpush3.msra.mxu1 %v8977_v27 }
 0x549   :  { %10489 = vmatprep.subr.mxu1 %v14332_v20 }
 0x54a   :  { %10490 = vmatpush3.msra.mxu1 %v8976_v9 }
 0x54b   :  { %10492 = vmatmul.mubr.msk.f32.vlgmr.msra.gmra.mxu1 %vm5964_vm4, %v7694_v15  ;;  %10494 = vmatprep.subr.mxu1 %v14332_v20 }
 0x54c   :  { %10495 = vmatpush3.msra.mxu1 %v8984_v17  ;;  %10502 = vmatprep.mubr.msk.f32.mxu1 %vm10601_vm3, %v14332_v20 }
 0x54d   :  { %10496 = vmatprep.subr.mxu1 %v14332_v20 }
 0x54e   :  { %10497 = vmatpush3.msra.mxu1 %v8983_v43 }
 0x54f   :  { %10498 = vmatprep.subr.mxu1 %v14332_v20 }
 0x550   :  { %10499 = vmatpush3.msra.mxu1 %v8982_v32 }
 0x551   :  { %10500 = vmatprep.subr.mxu1 %v14332_v20 }
 0x552   :  { %10501 = vmatpush3.msra.mxu1 %v8981_v31 }
 0x553   :  { %10503 = vmatmul.mubr.msk.f32.vlgmr.msra.gmra.mxu1 %vm5964_vm4, %v7773_v47  ;;  %10505 = vmatprep.subr.mxu1 %v14332_v20 }
 0x554   :  { %10506 = vmatpush3.msra.mxu1 %v8989_v28  ;;  %10513 = vmatprep.mubr.msk.f32.mxu1 %vm10601_vm3, %v14332_v20 }
 0x555   :  { %10507 = vmatprep.subr.mxu1 %v14332_v20 }
 0x556   :  { %10508 = vmatpush3.msra.mxu1 %v8988_v51 }
 0x557   :  { %10509 = vmatprep.subr.mxu1 %v14332_v20 }
 0x558   :  { %10510 = vmatpush3.msra.mxu1 %v8987_v63 }
 0x559   :  { %10511 = vmatprep.subr.mxu1 %v14332_v20 }
 0x55a   :  { %10512 = vmatpush3.msra.mxu1 %v8986_v35 }
 0x55b   :  { %10514 = vmatmul.mubr.msk.f32.vlgmr.msra.gmra.mxu1 %vm5964_vm4, %v5952_v22  ;;  %v6033_v10 = vpop.f32.mrf.mxu1  ;;  %10516 = vmatprep.subr.mxu1 %v14332_v20 }
 0x55c   :  { %10520 = vmatprep.mubr.msk.f32.mxu1 %vm10601_vm3, %v14332_v20  ;;  %10517 = vmatpush3.msk.msra.mxu1 %vm7944_vm5, %v7939_v54  ;;  %v8102_v54 = vld [vmem:[%s14286_s11 + $0x8] sm:$0xff] }
 0x55d   :  { %v10251_v36 = vpop.f32.mrf.mxu1  ;;  %10518 = vmatprep.subr.mxu1 %v14332_v20 }
 0x55e   :  { %10519 = vmatpush3.msra.mxu1 %v7938_v2  ;;  %v8101_v2 = vld [vmem:[%s14286_s11] sm:$0xff] }
 0x55f   :  { %10521 = vmatmul.mubr.msk.f32.vlgmr.msra.gmra.mxu1 %vm7940_vm6, %v7937_v19  ;;  %10523 = vmatprep.subr.mxu1 %v14332_v20  ;;  %v8995_v19 = vld [vmem:[%s14287_s10] ss:$0 sm:$0xff] }
 0x560   :  { %10527 = vmatprep.mubr.msk.f32.mxu1 %vm10601_vm3, %v14332_v20  ;;  %10524 = vmatpush3.msra.mxu1 %v7936_v11 }
 0x561   :  { %10525 = vmatprep.subr.mxu1 %v14332_v20 }
 0x562   :  { %10526 = vmatpush3.msra.mxu1 %v7935_v29 }
 0x563   :  { %v6105_v55 = vpop.f32.mrf.mxu1  ;;  %10530 = vmatprep.subr.mxu1 %v14332_v20 }
 0x564   :  { %v6106_v4 = vadd.f32 %v6105_v55, %v6033_v10 }
 0x565   :  { %v10262_v5 = vpop.f32.mrf.mxu1 }
 0x56b   :  { %v6183_v50 = vpop.f32.mrf.mxu1 }
 0x56c   :  { %v6187_v53 = vadd.f32 %v6183_v50, %v6106_v4 }
 0x56d   :  { %v10273_v37 = vpop.f32.mrf.mxu1 }
 0x573   :  { %v6262_v1 = vpop.f32.mrf.mxu1 }
 0x574   :  { %v6266_v38 = vadd.f32 %v6262_v1, %v6187_v53 }
 0x575   :  { %v10284_v8 = vpop.f32.mrf.mxu1 }
 0x57b   :  { %v6341_v26 = vpop.f32.mrf.mxu1 }
 0x57c   :  { %v6345_v33 = vadd.f32 %v6341_v26, %v6266_v38 }
 0x57d   :  { %v10295_v14 = vpop.f32.mrf.mxu1 }
 0x583   :  { %v6420_v39 = vpop.f32.mrf.mxu1 }
 0x584   :  { %v6424_v62 = vadd.f32 %v6420_v39, %v6345_v33  ;;  %v8991_v39 = vld [vmem:[%s14285_s6] ss:$0 sm:$0xff] }
 0x585   :  { %v10306_v60 = vpop.f32.mrf.mxu1 }
 0x58b   :  { %v6499_v41 = vpop.f32.mrf.mxu1 }
 0x58c   :  { %v6503_v57 = vadd.f32 %v6499_v41, %v6424_v62 }
 0x58d   :  { %v10317_v61 = vpop.f32.mrf.mxu1 }
 0x593   :  { %v6578_v13 = vpop.f32.mrf.mxu1 }
 0x594   :  { %v6582_v40 = vadd.f32 %v6578_v13, %v6503_v57 }
 0x595   :  { %v10328_v52 = vpop.f32.mrf.mxu1 }
 0x596   :  { %v8103_v52 = vld [vmem:[%s14286_s11 + $0x10] sm:$0xff] }
 0x59b   :  { %v6657_v58 = vpop.f32.mrf.mxu1 }
 0x59c   :  { %v6661_v30 = vadd.f32 %v6657_v58, %v6582_v40  ;;  %v8104_v40 = vld [vmem:[%s14286_s11 + $0x18] sm:$0xff] }
 0x59d   :  { %v10339_v59 = vpop.f32.mrf.mxu1 }
 0x5a3   :  { %v6736_v12 = vpop.f32.mrf.mxu1 }
 0x5a4   :  { %v6740_v44 = vadd.f32 %v6736_v12, %v6661_v30  ;;  %v8189_v12 = vld [vmem:[%s14288_s13 + $0x18] sm:$0xff] }
 0x5a5   :  { %v10350_v45 = vpop.f32.mrf.mxu1 }
 0x5a6   :  { %v8187_v45 = vld [vmem:[%s14288_s13 + $0x8] sm:$0xff] }
 0x5ab   :  { %v6815_v24 = vpop.f32.mrf.mxu1 }
 0x5ac   :  { %v6819_v6 = vadd.f32 %v6815_v24, %v6740_v44  ;;  %v8188_v44 = vld [vmem:[%s14288_s13 + $0x10] sm:$0xff]  ;;  %v8186_v24 = vld [vmem:[%s14288_s13] sm:$0xff] }
 0x5ad   :  { %v10361_v34 = vpop.f32.mrf.mxu1 }
 0x5b3   :  { %v6894_v49 = vpop.f32.mrf.mxu1 }
 0x5b4   :  { %v6898_v42 = vadd.f32 %v6894_v49, %v6819_v6  ;;  %v8996_v6 = vld [vmem:[%s14289_s12] ss:$0 sm:$0xff] }
 0x5b5   :  { %v10372_v23 = vpop.f32.mrf.mxu1 }
 0x5bb   :  { %v6973_v48 = vpop.f32.mrf.mxu1 }
 0x5bc   :  { %v6977_v16 = vadd.f32 %v6973_v48, %v6898_v42  ;;  %v8998_v48 = vld [vmem:[%s14290_s14] ss:$0 sm:$0xff] }
 0x5bd   :  { %v10383_v21 = vpop.f32.mrf.mxu1 }
 0x5c3   :  { %v7052_v3 = vpop.f32.mrf.mxu1 }
 0x5c4   :  { %v7056_v56 = vadd.f32 %v7052_v3, %v6977_v16 }
 0x5c5   :  { %v10394_v18 = vpop.f32.mrf.mxu1 }
 0x5cb   :  { %v7131_v0 = vpop.f32.mrf.mxu1 }
 0x5cc   :  { %v7135_v22 = vadd.f32 %v7131_v0, %v7056_v56 }
 0x5cd   :  { %v10405_v7 = vpop.f32.mrf.mxu1 }
 0x5d3   :  { %v7210_v46 = vpop.f32.mrf.mxu1 }
 0x5d4   :  { %v7214_v10 = vadd.f32 %v7210_v46, %v7135_v22 }
 0x5d5   :  { %v10416_v25 = vpop.f32.mrf.mxu1 }
 0x5db   :  { %v7289_v27 = vpop.f32.mrf.mxu1 }
 0x5dc   :  { %v7293_v55 = vadd.f32 %v7289_v27, %v7214_v10 }
 0x5dd   :  { %v10427_v9 = vpop.f32.mrf.mxu1 }
 0x5e3   :  { %v7368_v15 = vpop.f32.mrf.mxu1 }
 0x5e4   :  { %v7372_v5 = vadd.f32 %v7368_v15, %v7293_v55 }
 0x5e5   :  { %v10438_v17 = vpop.f32.mrf.mxu1 }
 0x5eb   :  { %v7447_v43 = vpop.f32.mrf.mxu1 }
 0x5ec   :  { %v7451_v50 = vadd.f32 %v7447_v43, %v7372_v5 }
 0x5ed   :  { %v10449_v32 = vpop.f32.mrf.mxu1 }
 0x5f3   :  { %v7526_v31 = vpop.f32.mrf.mxu1 }
 0x5f4   :  { %v7530_v53 = vadd.f32 %v7526_v31, %v7451_v50 }
 0x5f5   :  { %v10460_v47 = vpop.f32.mrf.mxu1 }
 0x5fb   :  { %v7605_v28 = vpop.f32.mrf.mxu1 }
 0x5fc   :  { %v7609_v1 = vadd.f32 %v7605_v28, %v7530_v53 }
 0x5fd   :  { %v10471_v51 = vpop.f32.mrf.mxu1 }
 0x603   :  { %v7684_v63 = vpop.f32.mrf.mxu1 }
 0x604   :  { %v7688_v8 = vadd.f32 %v7684_v63, %v7609_v1 }
 0x605   :  { %v10482_v35 = vpop.f32.mrf.mxu1 }
 0x60b   :  { %v7763_v36 = vpop.f32.mrf.mxu1 }
 0x60c   :  { %v7767_v26 = vadd.f32 %v7763_v36, %v7688_v8 }
 0x60d   :  { %v10493_v4 = vpop.f32.mrf.mxu1 }
 0x613   :  { %v7842_v37 = vpop.f32.mrf.mxu1 }
 0x614   :  { %v7846_v33 = vadd.f32 %v7842_v37, %v7767_v26 }
 0x615   :  { %v10504_v38 = vpop.f32.mrf.mxu1 }
 0x61b   :  { %v7921_v14 = vpop.f32.mrf.mxu1 }
 0x61c   :  { %v7925_v62 = vadd.f32 %v7921_v14, %v7846_v33 }
 0x61d   :  { %v10515_v60 = vpop.f32.mrf.mxu1 }
 0x61e   :  { %v7933_v41 = vadd.f32 %v8991_v39, %v7925_v62 }
 0x61f   :  { %v8014_v61 = vpop.f32.mrf.mxu1 }
 0x620   :  { %v7934_v57 = vmax.f32 %v7933_v41, 0.0 }
 0x621   :  { %v10522_v13 = vpop.f32.mrf.mxu1 }
 0x622   :  { %10528 = vmatmul.mubr.msk.f32.vlgmr.msra.gmra.mxu1 %vm8018_vm7, %v7934_v57 }
 0x623   :  { %10538 = vmatprep.mubr.msk.f32.mxu1 %vm10601_vm3, %v14332_v20  ;;  %10531 = vmatpush3.msra.mxu1 %v8104_v40 }
 0x624   :  { %10532 = vmatprep.subr.mxu1 %v14332_v20 }
 0x625   :  { %10533 = vmatpush3.msra.mxu1 %v8103_v52 }
 0x626   :  { %10534 = vmatprep.subr.mxu1 %v14332_v20 }
 0x627   :  { %10535 = vmatpush3.msra.mxu1 %v8102_v54 }
 0x628   :  { %10536 = vmatprep.subr.mxu1 %v14332_v20 }
 0x629   :  { %10537 = vmatpush3.msra.mxu1 %v8101_v2 }
 0x62a   :  { %10541 = vmatprep.subr.mxu1 %v14332_v20 }
 0x6e2   :  { %v8088_v58 = vpop.f32.mrf.mxu1 }
 0x6e3   :  { %v8089_v30 = vadd.f32 %v8088_v58, %v8014_v61 }
 0x6e4   :  { %v10529_v59 = vpop.f32.mrf.mxu1 }
 0x6e5   :  { %v8099_v11 = vadd.f32 %v8995_v19, %v8089_v30 }
 0x6e7   :  { %10592 = vtanh.f32 %v8099_v11 }
 0x6f4   :  { %v10593_v29 = vpop.eup %10592 }
 0x6f5   :  { %10539 = vmatmul.mubr.msk.f32.vlgmr.msra.gmra.mxu1 %vm5964_vm4, %v10593_v29 }
 0x6f6   :  { %10549 = vmatprep.mubr.msk.f32.mxu1 %vm10601_vm3, %v14332_v20  ;;  %10542 = vmatpush3.msra.mxu1 %v8189_v12 }
 0x6f7   :  { %10543 = vmatprep.subr.mxu1 %v14332_v20 }
 0x6f8   :  { %10544 = vmatpush3.msra.mxu1 %v8188_v44 }
 0x6f9   :  { %10545 = vmatprep.subr.mxu1 %v14332_v20 }
 0x6fa   :  { %10546 = vmatpush3.msra.mxu1 %v8187_v45 }
 0x6fb   :  { %10547 = vmatprep.subr.mxu1 %v14332_v20 }
 0x6fc   :  { %10548 = vmatpush3.msra.mxu1 %v8186_v24 }
 0x7b5   :  { %v8181_v34 = vpop.f32.mrf.mxu1 }
 0x7b6   :  { %v8182_v49 = vadd.f32 %v8996_v6, %v8181_v34 }
 0x7b7   :  { %v10540_v42 = vpop.f32.mrf.mxu1 }
 0x7b8   :  { %10594 = vtanh.f32 %v8182_v49 }
 0x7c5   :  { %v10595_v23 = vpop.eup %10594 }
 0x7c6   :  { %10550 = vmatmul.mubr.msk.f32.vlgmr.msra.gmra.mxu1 %vm5964_vm4, %v10595_v23 }
 0x886   :  { %v8266_v16 = vpop.f32.mrf.mxu1 }
 0x887   :  { %v8267_v21 = vadd.f32 %v8998_v48, %v8266_v16 }
 0x888   :  { %v10551_v3 = vpop.f32.mrf.mxu1 }
 0x889   :  { %8270 = vst [vmem:[%s14291_s15] sm:$0x3] %v8267_v21 }

</bundles_post_ra>
